<compile_context>
chip_gen: v5e
topology: v5e:2x2
jax: 0.10.0
libtpu: 0.0.40
codegen_flags: <defaults>
</compile_context>

<pallas_src>
import functools

import jax
import jax.numpy as jnp
from jax.experimental import pallas as pl
from jax.experimental.pallas import tpu as pltpu


_LANE = 128
_DEF_BLOCK_BATCH = 1024            # rows per grid step (amortize ~0.35us/step)
_VMEM_LIMIT_BYTES = 32 * 1024 * 1024


def _round_up(x, m):
    return (x + m - 1) // m * m


def _mxu_width():
    """MXU tile width: 128 on v4/v5-generation chips, 256 on v6e/v7x."""
    try:
        kind = jax.devices()[0].device_kind.lower()
        if "v6" in kind or "v7" in kind:
            return 256
        return 128
    except Exception:
        return 256


# ---------------------------------------------------------------------------
# Kernels
# ---------------------------------------------------------------------------
def _twinq_kernel_fused(xs_ref, xa_ref,
                        w1s_ref, w1a_ref, b1_ref,
                        w2_ref, b2_ref,
                        w3_ref, b3_ref,
                        out_ref, *, lane_dense_out):
    """Both Q-heads fused: W1 concat, W2 block-diagonal (2H,2H), W3 (2H,2)."""
    cdt = w1s_ref.dtype
    xs = xs_ref[...].astype(cdt)
    xa = xa_ref[...].astype(cdt)

    # layer 1: state @ W1[:S] + action @ W1[S:]   (no wrapper-side concat)
    h = jnp.dot(xs, w1s_ref[...], preferred_element_type=jnp.float32)
    h += jnp.dot(xa, w1a_ref[...], preferred_element_type=jnp.float32)
    h = jnp.maximum(h + b1_ref[...], 0.0)

    # layer 2: block-diagonal (2H, 2H)
    h = jnp.dot(h.astype(cdt), w2_ref[...], preferred_element_type=jnp.float32)
    h = jnp.maximum(h + b2_ref[...], 0.0)

    # layer 3: (2H, 2) -> q1 / q2 in the two output columns, then min
    q = jnp.dot(h.astype(cdt), w3_ref[...], preferred_element_type=jnp.float32)
    q += b3_ref[...]                                     # (tb, 2) f32
    if lane_dense_out:
        # sublane->lane relayout (XLU), then unmasked full-lane stores
        out_ref[...] = jnp.min(q, axis=-1).reshape(out_ref.shape)
    else:
        out_ref[...] = jnp.min(q, axis=-1, keepdims=True)


def _twinq_kernel_split(xs_ref, xa_ref,
                        w1s_ref, w1a_ref, b1_ref,
                        w2a_ref, b2a_ref, w2b_ref, b2b_ref,
                        w3a_ref, b3a_ref, w3b_ref, b3b_ref,
                        out_ref, *, hidden_pad, lane_dense_out):
    """Layer 1 fused across heads; hidden/output layers kept per-head (used when
    2H exceeds the MXU width, where a block-diag matmul would double MXU work).
    hidden_pad is a multiple of 128, so the slices below are lane-tile aligned."""
    cdt = w1s_ref.dtype
    xs = xs_ref[...].astype(cdt)
    xa = xa_ref[...].astype(cdt)

    h = jnp.dot(xs, w1s_ref[...], preferred_element_type=jnp.float32)
    h += jnp.dot(xa, w1a_ref[...], preferred_element_type=jnp.float32)
    h = jnp.maximum(h + b1_ref[...], 0.0)

    ha = h[:, :hidden_pad].astype(cdt)
    hb = h[:, hidden_pad:].astype(cdt)

    h2a = jnp.maximum(
        jnp.dot(ha, w2a_ref[...], preferred_element_type=jnp.float32) + b2a_ref[...], 0.0)
    h2b = jnp.maximum(
        jnp.dot(hb, w2b_ref[...], preferred_element_type=jnp.float32) + b2b_ref[...], 0.0)

    q1 = jnp.dot(h2a.astype(cdt), w3a_ref[...],
                 preferred_element_type=jnp.float32) + b3a_ref[...]
    q2 = jnp.dot(h2b.astype(cdt), w3b_ref[...],
                 preferred_element_type=jnp.float32) + b3b_ref[...]
    q = jnp.concatenate([q1, q2], axis=-1)               # (tb, 2) f32
    if lane_dense_out:
        out_ref[...] = jnp.min(q, axis=-1).reshape(out_ref.shape)
    else:
        out_ref[...] = jnp.min(q, axis=-1, keepdims=True)


# ---------------------------------------------------------------------------
# Parameter construction / fusion (done once, not per forward call)
# ---------------------------------------------------------------------------
def init_twinq_params(key, state_dim, action_dim, hidden_dim):
    """Per-head params, PyTorch-Linear-style init. Weights stored (in, out)."""
    in_dim = state_dim + action_dim
    dims = [in_dim, hidden_dim, hidden_dim, 1]

    def make_head(key):
        layers = []
        for d_in, d_out in zip(dims[:-1], dims[1:]):
            key, kw, kb = jax.random.split(key, 3)
            bound = 1.0 / jnp.sqrt(d_in)
            w = jax.random.uniform(kw, (d_in, d_out), jnp.float32, -bound, bound)
            b = jax.random.uniform(kb, (1, d_out), jnp.float32, -bound, bound)
            layers.append((w, b))
        return key, layers

    key, head1 = make_head(key)
    key, head2 = make_head(key)
    return head1, head2


def prepare_twinq_params(raw_params, state_dim, *,
                         matmul_dtype=jnp.bfloat16, mxu_width=None):
    """Fuse the two Q-heads into wide, kernel-ready weights."""
    if mxu_width is None:
        mxu_width = _mxu_width()
    (w1a, b1a), (w2a, b2a), (w3a, b3a) = raw_params[0]
    (w1b, b1b), (w2b, b2b), (w3b, b3b) = raw_params[1]
    H = w2a.shape[0]
    cast = lambda w: w.astype(matmul_dtype)

    if 2 * H <= mxu_width:
        # Fully fused: W1 (S+A,2H), block-diagonal W2 (2H,2H), W3 (2H,2).
        w1 = jnp.concatenate([w1a, w1b], axis=1)
        b1 = jnp.concatenate([b1a, b1b], axis=1)
        w2 = jnp.zeros((2 * H, 2 * H), jnp.float32)
        w2 = w2.at[:H, :H].set(w2a).at[H:, H:].set(w2b)
        b2 = jnp.concatenate([b2a, b2b], axis=1)
        w3 = jnp.zeros((2 * H, 2), jnp.float32)
        w3 = w3.at[:H, 0:1].set(w3a).at[H:, 1:2].set(w3b)
        b3 = jnp.concatenate([b3a, b3b], axis=1)
        w1_s, w1_a = w1[:state_dim], w1[state_dim:]
        params = (cast(w1_s), cast(w1_a), b1, cast(w2), b2, cast(w3), b3)
        return params, True, H

    # Per-head hidden/output layers; pad H up to a lane-tile multiple so the
    # in-kernel h[:, :Hp] / h[:, Hp:] slices never cut through an (8,128) tile.
    Hp = _round_up(H, _LANE)
    dH = Hp - H

    def padH(w, axes):
        pads = [(0, dH) if ax else (0, 0) for ax in axes]
        return jnp.pad(w, pads)

    w1 = jnp.concatenate([padH(w1a, (False, True)),
                          padH(w1b, (False, True))], axis=1)   # (S+A, 2Hp)
    b1 = jnp.concatenate([padH(b1a, (False, True)),
                          padH(b1b, (False, True))], axis=1)   # (1, 2Hp)
    w1_s, w1_a = w1[:state_dim], w1[state_dim:]
    params = (cast(w1_s), cast(w1_a), b1,
              cast(padH(w2a, (True, True))), padH(b2a, (False, True)),
              cast(padH(w2b, (True, True))), padH(b2b, (False, True)),
              cast(padH(w3a, (True, False))), b3a,
              cast(padH(w3b, (True, False))), b3b)
    return params, False, Hp


# ---------------------------------------------------------------------------
# Forward wrapper
# ---------------------------------------------------------------------------
def twinq_forward(state, action, prepared, *, block_batch=_DEF_BLOCK_BATCH):
    """state: (B, S), action: (B, A) -> (B,) float32 = min(q1, q2)."""
    params, fused, hidden = prepared
    B, S = state.shape
    A = action.shape[1]

    # Batch tile: multiple of 128 (lane-dense output), as large as is useful.
    tb = _round_up(min(block_batch, _round_up(B, _LANE)), _LANE)
    if _round_up(B, tb) == tb and tb >= 2 * _LANE:
        # keep >= 2 grid steps so the "parallel" batch axis can span both v7x TCs
        tb = max(_LANE, (tb // 2) // _LANE * _LANE)
    b_pad = _round_up(B, tb)
    n_tiles = b_pad // tb

    # Cast activations on the HBM side so the streamed bytes match the MXU dtype.
    mxu_dtype = params[0].dtype
    xs = state.astype(mxu_dtype)
    xa = action.astype(mxu_dtype)
    if b_pad != B:
        pad = b_pad - B
        xs = jnp.pad(xs, ((0, pad), (0, 0)))
        xa = jnp.pad(xa, ((0, pad), (0, 0)))

    # Rough cost estimate so XLA schedules the custom call sensibly.
    h2 = 2 * hidden
    l2_macs = h2 * h2 if fused else 2 * hidden * hidden
    l3_macs = 2 * h2 if fused else 2 * hidden
    flops = 2 * b_pad * ((S + A) * h2 + l2_macs + l3_macs)
    bytes_accessed = (xs.size * xs.dtype.itemsize + xa.size * xa.dtype.itemsize
                      + sum(int(p.size) * p.dtype.itemsize for p in params)
                      + b_pad * 4)

    def run(lane_dense, buffered_weights):
        def x_spec(d):
            return pl.BlockSpec((tb, d), lambda i: (i, 0))

        def w_spec(arr):
            # full-array block, constant index -> stays VMEM-resident across steps
            if buffered_weights:
                return pl.BlockSpec(arr.shape, lambda i: (0, 0),
                                    pipeline_mode=pl.Buffered(1))
            return pl.BlockSpec(arr.shape, lambda i: (0, 0))

        in_specs = [x_spec(S), x_spec(A)] + [w_spec(p) for p in params]
        if lane_dense:
            out_shape = jax.ShapeDtypeStruct((b_pad // _LANE, _LANE), jnp.float32)
            out_spec = pl.BlockSpec((tb // _LANE, _LANE), lambda i: (i, 0))
        else:
            out_shape = jax.ShapeDtypeStruct((b_pad, 1), jnp.float32)
            out_spec = pl.BlockSpec((tb, 1), lambda i: (i, 0))

        if fused:
            kernel = functools.partial(_twinq_kernel_fused,
                                       lane_dense_out=lane_dense)
        else:
            kernel = functools.partial(_twinq_kernel_split,
                                       hidden_pad=hidden,
                                       lane_dense_out=lane_dense)

        out = pl.pallas_call(
            kernel,
            out_shape=out_shape,
            grid=(n_tiles,),
            in_specs=in_specs,
            out_specs=out_spec,
            compiler_params=pltpu.CompilerParams(
                dimension_semantics=("parallel",),
                vmem_limit_bytes=_VMEM_LIMIT_BYTES),
            cost_estimate=pl.CostEstimate(
                flops=int(flops), transcendentals=0,
                bytes_accessed=int(bytes_accessed)),
        )(xs, xa, *params)
        out = jax.block_until_ready(out)
        return out.reshape(-1)[:B] if lane_dense else out[:, 0][:B]

    # Aggressive layout first; degrade gracefully if a given Mosaic build
    # rejects the lane-dense relayout or single-buffered weight specs.
    last_err = None
    for lane_dense, buffered in ((True, True), (True, False), (False, False)):
        try:
            return run(lane_dense, buffered)
        except Exception as e:   # noqa: BLE001 - fall back to conservative layout
            last_err = e
    raise last_err


# ---------------------------------------------------------------------------
# Pure-JAX reference
# ---------------------------------------------------------------------------
def twinq_reference(state, action, raw_params):
    sa = jnp.concatenate([state, action], axis=1)

    def head(layers):
        (w1, b1), (w2, b2), (w3, b3) = layers
        h = jnp.maximum(sa @ w1 + b1, 0.0)
        h = jnp.maximum(h @ w2 + b2, 0.0)
        return (h @ w3 + b3)[:, 0]

    return jnp.minimum(head(raw_params[0]), head(raw_params[1]))


if __name__ == "__main__":
    # Accurate f32 reference matmuls (the kernel accumulates in f32 already).
    jax.config.update("jax_default_matmul_precision", "highest")
    key = jax.random.PRNGKey(0)

    def run_case(key, B, S, A, H, dtype, tol, mxu_width=None,
                 block_batch=_DEF_BLOCK_BATCH):
        key, ks, ka, kp = jax.random.split(key, 4)
        state = jax.random.normal(ks, (B, S), jnp.float32)
        action = jax.random.normal(ka, (B, A), jnp.float32)
        raw = init_twinq_params(kp, S, A, H)
        prepared = prepare_twinq_params(raw, S, matmul_dtype=dtype,
                                        mxu_width=mxu_width)
        out = twinq_forward(state, action, prepared, block_batch=block_batch)
        out = jax.block_until_ready(out)
        ref = twinq_reference(state, action, raw)
        assert out.shape == (B,), out.shape
        assert jnp.allclose(out, ref, atol=tol, rtol=tol), (out, ref)
        return key

    # 1) Small hidden -> fully fused twin heads; ragged batch -> padding.
    key = run_case(key, B=20, S=17, A=6, H=32, dtype=jnp.float32, tol=1e-2)
    # 2) Module-default hidden_dim=256 -> per-head (split) hidden/output layers.
    key = run_case(key, B=16, S=17, A=6, H=256, dtype=jnp.float32, tol=1e-2)
    # 3) Split path with H not a multiple of 128 -> padded to lane-tile multiple.
    key = run_case(key, B=8, S=17, A=6, H=192, dtype=jnp.float32, tol=1e-2,
                   mxu_width=256)
    # 4) bf16 MXU operands (default on v6e/v7x), f32 accumulation / elementwise.
    key = run_case(key, B=16, S=17, A=6, H=32, dtype=jnp.bfloat16, tol=5e-2)

    print("KERNEL_OK")
</pallas_src>

<mosaic_0001>
module attributes {stable_mosaic.version = 11 : i64} {
  func.func @_twinq_kernel_fused(%arg0: i32, %arg1: memref<128x17xf32, #tpu.memory_space<vmem>>, %arg2: memref<128x6xf32, #tpu.memory_space<vmem>>, %arg3: memref<17x64xf32, #tpu.memory_space<vmem>>, %arg4: memref<6x64xf32, #tpu.memory_space<vmem>>, %arg5: memref<1x64xf32, #tpu.memory_space<vmem>>, %arg6: memref<64x64xf32, #tpu.memory_space<vmem>>, %arg7: memref<1x64xf32, #tpu.memory_space<vmem>>, %arg8: memref<64x2xf32, #tpu.memory_space<vmem>>, %arg9: memref<1x2xf32, #tpu.memory_space<vmem>>, %arg10: memref<1x128xf32, #tpu.memory_space<vmem>>) attributes {dimension_semantics = [#tpu.dimension_semantics<parallel>], iteration_bounds = array<i64: 1>, scalar_prefetch = 0 : i64, scratch_operands = 0 : i64, tpu.core_type = #tpu.core_type<tc>, window_params = [{transform_indices = @transform_0, window_bounds = array<i64: 128, 17>}, {transform_indices = @transform_1, window_bounds = array<i64: 128, 6>}, {pipeline_mode = #tpu.pipeline_mode<synchronous>, transform_indices = @transform_2, window_bounds = array<i64: 17, 64>}, {pipeline_mode = #tpu.pipeline_mode<synchronous>, transform_indices = @transform_3, window_bounds = array<i64: 6, 64>}, {pipeline_mode = #tpu.pipeline_mode<synchronous>, transform_indices = @transform_4, window_bounds = array<i64: 1, 64>}, {pipeline_mode = #tpu.pipeline_mode<synchronous>, transform_indices = @transform_5, window_bounds = array<i64: 64, 64>}, {pipeline_mode = #tpu.pipeline_mode<synchronous>, transform_indices = @transform_6, window_bounds = array<i64: 1, 64>}, {pipeline_mode = #tpu.pipeline_mode<synchronous>, transform_indices = @transform_7, window_bounds = array<i64: 64, 2>}, {pipeline_mode = #tpu.pipeline_mode<synchronous>, transform_indices = @transform_8, window_bounds = array<i64: 1, 2>}, {transform_indices = @transform_9, window_bounds = array<i64: 1, 128>}]} {
    %c0 = arith.constant 0 : index
    %c0_0 = arith.constant 0 : index
    %0 = vector.load %arg1[%c0, %c0_0] : memref<128x17xf32, #tpu.memory_space<vmem>>, vector<128x17xf32>
    %c0_1 = arith.constant 0 : index
    %c0_2 = arith.constant 0 : index
    %1 = vector.load %arg2[%c0_1, %c0_2] : memref<128x6xf32, #tpu.memory_space<vmem>>, vector<128x6xf32>
    %c0_3 = arith.constant 0 : index
    %c0_4 = arith.constant 0 : index
    %2 = vector.load %arg3[%c0_3, %c0_4] : memref<17x64xf32, #tpu.memory_space<vmem>>, vector<17x64xf32>
    %cst = arith.constant dense<0.000000e+00> : vector<128x64xf32>
    %3 = tpu.matmul %0, %2, %cst {dimension_numbers = #tpu.dot_dimension_numbers<[1], [0], [0], [1], [0, 0, 1, 1], [], []>, precision = #tpu.contract_precision<fp32>} : vector<128x17xf32>, vector<17x64xf32>, vector<128x64xf32> -> vector<128x64xf32>
    %c0_5 = arith.constant 0 : index
    %c0_6 = arith.constant 0 : index
    %4 = vector.load %arg4[%c0_5, %c0_6] : memref<6x64xf32, #tpu.memory_space<vmem>>, vector<6x64xf32>
    %cst_7 = arith.constant dense<0.000000e+00> : vector<128x64xf32>
    %5 = tpu.matmul %1, %4, %cst_7 {dimension_numbers = #tpu.dot_dimension_numbers<[1], [0], [0], [1], [0, 0, 1, 1], [], []>, precision = #tpu.contract_precision<fp32>} : vector<128x6xf32>, vector<6x64xf32>, vector<128x64xf32> -> vector<128x64xf32>
    %6 = arith.addf %3, %5 : vector<128x64xf32>
    %c0_8 = arith.constant 0 : index
    %c0_9 = arith.constant 0 : index
    %7 = vector.load %arg5[%c0_8, %c0_9] : memref<1x64xf32, #tpu.memory_space<vmem>>, vector<1x64xf32>
    %8 = vector.broadcast %7 : vector<1x64xf32> to vector<128x64xf32>
    %9 = arith.addf %6, %8 : vector<128x64xf32>
    %cst_10 = arith.constant 0.000000e+00 : f32
    %10 = vector.broadcast %cst_10 : f32 to vector<128x64xf32>
    %11 = arith.maximumf %9, %10 : vector<128x64xf32>
    %c0_11 = arith.constant 0 : index
    %c0_12 = arith.constant 0 : index
    %12 = vector.load %arg6[%c0_11, %c0_12] : memref<64x64xf32, #tpu.memory_space<vmem>>, vector<64x64xf32>
    %cst_13 = arith.constant dense<0.000000e+00> : vector<128x64xf32>
    %13 = tpu.matmul %11, %12, %cst_13 {dimension_numbers = #tpu.dot_dimension_numbers<[1], [0], [0], [1], [0, 0, 1, 1], [], []>, precision = #tpu.contract_precision<fp32>} : vector<128x64xf32>, vector<64x64xf32>, vector<128x64xf32> -> vector<128x64xf32>
    %c0_14 = arith.constant 0 : index
    %c0_15 = arith.constant 0 : index
    %14 = vector.load %arg7[%c0_14, %c0_15] : memref<1x64xf32, #tpu.memory_space<vmem>>, vector<1x64xf32>
    %15 = vector.broadcast %14 : vector<1x64xf32> to vector<128x64xf32>
    %16 = arith.addf %13, %15 : vector<128x64xf32>
    %cst_16 = arith.constant 0.000000e+00 : f32
    %17 = vector.broadcast %cst_16 : f32 to vector<128x64xf32>
    %18 = arith.maximumf %16, %17 : vector<128x64xf32>
    %c0_17 = arith.constant 0 : index
    %c0_18 = arith.constant 0 : index
    %19 = vector.load %arg8[%c0_17, %c0_18] : memref<64x2xf32, #tpu.memory_space<vmem>>, vector<64x2xf32>
    %cst_19 = arith.constant dense<0.000000e+00> : vector<128x2xf32>
    %20 = tpu.matmul %18, %19, %cst_19 {dimension_numbers = #tpu.dot_dimension_numbers<[1], [0], [0], [1], [0, 0, 1, 1], [], []>, precision = #tpu.contract_precision<fp32>} : vector<128x64xf32>, vector<64x2xf32>, vector<128x2xf32> -> vector<128x2xf32>
    %c0_20 = arith.constant 0 : index
    %c0_21 = arith.constant 0 : index
    %21 = vector.load %arg9[%c0_20, %c0_21] : memref<1x2xf32, #tpu.memory_space<vmem>>, vector<1x2xf32>
    %22 = vector.broadcast %21 : vector<1x2xf32> to vector<128x2xf32>
    %23 = arith.addf %20, %22 : vector<128x2xf32>
    %cst_22 = arith.constant dense<0x7F800000> : vector<128xf32>
    %24 = vector.multi_reduction <minimumf>, %23, %cst_22 [1] : vector<128x2xf32> to vector<128xf32>
    %25 = vector.shape_cast %24 : vector<128xf32> to vector<1x128xf32>
    %c0_23 = arith.constant 0 : index
    %c0_24 = arith.constant 0 : index
    %26 = vector.load %arg10[%c0_23, %c0_24] : memref<1x128xf32, #tpu.memory_space<vmem>>, vector<1x128xf32>
    tpu.vector_store %arg10[%c0_23, %c0_24], %25 {strides = array<i32>} : memref<1x128xf32, #tpu.memory_space<vmem>>, vector<1x128xf32>,
    return
  }
  func.func @transform_0(%arg0: i32) -> (i32, i32) {
    %c0_i32 = arith.constant 0 : i32
    %c0_i32_0 = arith.constant 0 : i32
    return %arg0, %c0_i32 : i32, i32
  }
  func.func @transform_1(%arg0: i32) -> (i32, i32) {
    %c0_i32 = arith.constant 0 : i32
    %c0_i32_0 = arith.constant 0 : i32
    return %arg0, %c0_i32 : i32, i32
  }
  func.func @transform_2(%arg0: i32) -> (i32, i32) {
    %c0_i32 = arith.constant 0 : i32
    %c0_i32_0 = arith.constant 0 : i32
    %c0_i32_1 = arith.constant 0 : i32
    return %c0_i32, %c0_i32_0 : i32, i32
  }
  func.func @transform_3(%arg0: i32) -> (i32, i32) {
    %c0_i32 = arith.constant 0 : i32
    %c0_i32_0 = arith.constant 0 : i32
    %c0_i32_1 = arith.constant 0 : i32
    return %c0_i32, %c0_i32_0 : i32, i32
  }
  func.func @transform_4(%arg0: i32) -> (i32, i32) {
    %c0_i32 = arith.constant 0 : i32
    %c0_i32_0 = arith.constant 0 : i32
    %c0_i32_1 = arith.constant 0 : i32
    return %c0_i32, %c0_i32_0 : i32, i32
  }
  func.func @transform_5(%arg0: i32) -> (i32, i32) {
    %c0_i32 = arith.constant 0 : i32
    %c0_i32_0 = arith.constant 0 : i32
    %c0_i32_1 = arith.constant 0 : i32
    return %c0_i32, %c0_i32_0 : i32, i32
  }
  func.func @transform_6(%arg0: i32) -> (i32, i32) {
    %c0_i32 = arith.constant 0 : i32
    %c0_i32_0 = arith.constant 0 : i32
    %c0_i32_1 = arith.constant 0 : i32
    return %c0_i32, %c0_i32_0 : i32, i32
  }
  func.func @transform_7(%arg0: i32) -> (i32, i32) {
    %c0_i32 = arith.constant 0 : i32
    %c0_i32_0 = arith.constant 0 : i32
    %c0_i32_1 = arith.constant 0 : i32
    return %c0_i32, %c0_i32_0 : i32, i32
  }
  func.func @transform_8(%arg0: i32) -> (i32, i32) {
    %c0_i32 = arith.constant 0 : i32
    %c0_i32_0 = arith.constant 0 : i32
    %c0_i32_1 = arith.constant 0 : i32
    return %c0_i32, %c0_i32_0 : i32, i32
  }
  func.func @transform_9(%arg0: i32) -> (i32, i32) {
    %c0_i32 = arith.constant 0 : i32
    %c0_i32_0 = arith.constant 0 : i32
    return %arg0, %c0_i32 : i32, i32
  }
}

module attributes {stable_mosaic.version = 11 : i64} {
  func.func @_twinq_kernel_fused(%arg0: i32, %arg1: memref<128x17xf32, #tpu.memory_space<vmem>>, %arg2: memref<128x6xf32, #tpu.memory_space<vmem>>, %arg3: memref<17x64xf32, #tpu.memory_space<vmem>>, %arg4: memref<6x64xf32, #tpu.memory_space<vmem>>, %arg5: memref<1x64xf32, #tpu.memory_space<vmem>>, %arg6: memref<64x64xf32, #tpu.memory_space<vmem>>, %arg7: memref<1x64xf32, #tpu.memory_space<vmem>>, %arg8: memref<64x2xf32, #tpu.memory_space<vmem>>, %arg9: memref<1x2xf32, #tpu.memory_space<vmem>>, %arg10: memref<1x128xf32, #tpu.memory_space<vmem>>) attributes {dimension_semantics = [#tpu.dimension_semantics<parallel>], iteration_bounds = array<i64: 1>, scalar_prefetch = 0 : i64, scratch_operands = 0 : i64, tpu.core_type = #tpu.core_type<tc>, window_params = [{transform_indices = @transform_0, window_bounds = array<i64: 128, 17>}, {transform_indices = @transform_1, window_bounds = array<i64: 128, 6>}, {pipeline_mode = #tpu.pipeline_mode<synchronous>, transform_indices = @transform_2, window_bounds = array<i64: 17, 64>}, {pipeline_mode = #tpu.pipeline_mode<synchronous>, transform_indices = @transform_3, window_bounds = array<i64: 6, 64>}, {pipeline_mode = #tpu.pipeline_mode<synchronous>, transform_indices = @transform_4, window_bounds = array<i64: 1, 64>}, {pipeline_mode = #tpu.pipeline_mode<synchronous>, transform_indices = @transform_5, window_bounds = array<i64: 64, 64>}, {pipeline_mode = #tpu.pipeline_mode<synchronous>, transform_indices = @transform_6, window_bounds = array<i64: 1, 64>}, {pipeline_mode = #tpu.pipeline_mode<synchronous>, transform_indices = @transform_7, window_bounds = array<i64: 64, 2>}, {pipeline_mode = #tpu.pipeline_mode<synchronous>, transform_indices = @transform_8, window_bounds = array<i64: 1, 2>}, {transform_indices = @transform_9, window_bounds = array<i64: 1, 128>}]} {
    %c0 = arith.constant 0 : index
    %c0_0 = arith.constant 0 : index
    %0 = vector.load %arg1[%c0, %c0_0] : memref<128x17xf32, #tpu.memory_space<vmem>>, vector<128x17xf32>
    %c0_1 = arith.constant 0 : index
    %c0_2 = arith.constant 0 : index
    %1 = vector.load %arg2[%c0_1, %c0_2] : memref<128x6xf32, #tpu.memory_space<vmem>>, vector<128x6xf32>
    %c0_3 = arith.constant 0 : index
    %c0_4 = arith.constant 0 : index
    %2 = vector.load %arg3[%c0_3, %c0_4] : memref<17x64xf32, #tpu.memory_space<vmem>>, vector<17x64xf32>
    %cst = arith.constant dense<0.000000e+00> : vector<128x64xf32>
    %3 = tpu.matmul %0, %2, %cst {dimension_numbers = #tpu.dot_dimension_numbers<[1], [0], [0], [1], [0, 0, 1, 1], [], []>, precision = #tpu.contract_precision<fp32>} : vector<128x17xf32>, vector<17x64xf32>, vector<128x64xf32> -> vector<128x64xf32>
    %c0_5 = arith.constant 0 : index
    %c0_6 = arith.constant 0 : index
    %4 = vector.load %arg4[%c0_5, %c0_6] : memref<6x64xf32, #tpu.memory_space<vmem>>, vector<6x64xf32>
    %cst_7 = arith.constant dense<0.000000e+00> : vector<128x64xf32>
    %5 = tpu.matmul %1, %4, %cst_7 {dimension_numbers = #tpu.dot_dimension_numbers<[1], [0], [0], [1], [0, 0, 1, 1], [], []>, precision = #tpu.contract_precision<fp32>} : vector<128x6xf32>, vector<6x64xf32>, vector<128x64xf32> -> vector<128x64xf32>
    %6 = arith.addf %3, %5 : vector<128x64xf32>
    %c0_8 = arith.constant 0 : index
    %c0_9 = arith.constant 0 : index
    %7 = vector.load %arg5[%c0_8, %c0_9] : memref<1x64xf32, #tpu.memory_space<vmem>>, vector<1x64xf32>
    %8 = vector.broadcast %7 : vector<1x64xf32> to vector<128x64xf32>
    %9 = arith.addf %6, %8 : vector<128x64xf32>
    %cst_10 = arith.constant 0.000000e+00 : f32
    %10 = vector.broadcast %cst_10 : f32 to vector<128x64xf32>
    %11 = arith.maximumf %9, %10 : vector<128x64xf32>
    %c0_11 = arith.constant 0 : index
    %c0_12 = arith.constant 0 : index
    %12 = vector.load %arg6[%c0_11, %c0_12] : memref<64x64xf32, #tpu.memory_space<vmem>>, vector<64x64xf32>
    %cst_13 = arith.constant dense<0.000000e+00> : vector<128x64xf32>
    %13 = tpu.matmul %11, %12, %cst_13 {dimension_numbers = #tpu.dot_dimension_numbers<[1], [0], [0], [1], [0, 0, 1, 1], [], []>, precision = #tpu.contract_precision<fp32>} : vector<128x64xf32>, vector<64x64xf32>, vector<128x64xf32> -> vector<128x64xf32>
    %c0_14 = arith.constant 0 : index
    %c0_15 = arith.constant 0 : index
    %14 = vector.load %arg7[%c0_14, %c0_15] : memref<1x64xf32, #tpu.memory_space<vmem>>, vector<1x64xf32>
    %15 = vector.broadcast %14 : vector<1x64xf32> to vector<128x64xf32>
    %16 = arith.addf %13, %15 : vector<128x64xf32>
    %cst_16 = arith.constant 0.000000e+00 : f32
    %17 = vector.broadcast %cst_16 : f32 to vector<128x64xf32>
    %18 = arith.maximumf %16, %17 : vector<128x64xf32>
    %c0_17 = arith.constant 0 : index
    %c0_18 = arith.constant 0 : index
    %19 = vector.load %arg8[%c0_17, %c0_18] : memref<64x2xf32, #tpu.memory_space<vmem>>, vector<64x2xf32>
    %cst_19 = arith.constant dense<0.000000e+00> : vector<128x2xf32>
    %20 = tpu.matmul %18, %19, %cst_19 {dimension_numbers = #tpu.dot_dimension_numbers<[1], [0], [0], [1], [0, 0, 1, 1], [], []>, precision = #tpu.contract_precision<fp32>} : vector<128x64xf32>, vector<64x2xf32>, vector<128x2xf32> -> vector<128x2xf32>
    %c0_20 = arith.constant 0 : index
    %c0_21 = arith.constant 0 : index
    %21 = vector.load %arg9[%c0_20, %c0_21] : memref<1x2xf32, #tpu.memory_space<vmem>>, vector<1x2xf32>
    %22 = vector.broadcast %21 : vector<1x2xf32> to vector<128x2xf32>
    %23 = arith.addf %20, %22 : vector<128x2xf32>
    %cst_22 = arith.constant dense<0x7F800000> : vector<128xf32>
    %24 = vector.multi_reduction <minimumf>, %23, %cst_22 [1] : vector<128x2xf32> to vector<128xf32>
    %25 = vector.shape_cast %24 : vector<128xf32> to vector<1x128xf32>
    %c0_23 = arith.constant 0 : index
    %c0_24 = arith.constant 0 : index
    %26 = vector.load %arg10[%c0_23, %c0_24] : memref<1x128xf32, #tpu.memory_space<vmem>>, vector<1x128xf32>
    tpu.vector_store %arg10[%c0_23, %c0_24], %25 {strides = array<i32>} : memref<1x128xf32, #tpu.memory_space<vmem>>, vector<1x128xf32>,
    return
  }
  func.func @transform_0(%arg0: i32) -> (i32, i32) {
    %c0_i32 = arith.constant 0 : i32
    %c0_i32_0 = arith.constant 0 : i32
    return %arg0, %c0_i32 : i32, i32
  }
  func.func @transform_1(%arg0: i32) -> (i32, i32) {
    %c0_i32 = arith.constant 0 : i32
    %c0_i32_0 = arith.constant 0 : i32
    return %arg0, %c0_i32 : i32, i32
  }
  func.func @transform_2(%arg0: i32) -> (i32, i32) {
    %c0_i32 = arith.constant 0 : i32
    %c0_i32_0 = arith.constant 0 : i32
    %c0_i32_1 = arith.constant 0 : i32
    return %c0_i32, %c0_i32_0 : i32, i32
  }
  func.func @transform_3(%arg0: i32) -> (i32, i32) {
    %c0_i32 = arith.constant 0 : i32
    %c0_i32_0 = arith.constant 0 : i32
    %c0_i32_1 = arith.constant 0 : i32
    return %c0_i32, %c0_i32_0 : i32, i32
  }
  func.func @transform_4(%arg0: i32) -> (i32, i32) {
    %c0_i32 = arith.constant 0 : i32
    %c0_i32_0 = arith.constant 0 : i32
    %c0_i32_1 = arith.constant 0 : i32
    return %c0_i32, %c0_i32_0 : i32, i32
  }
  func.func @transform_5(%arg0: i32) -> (i32, i32) {
    %c0_i32 = arith.constant 0 : i32
    %c0_i32_0 = arith.constant 0 : i32
    %c0_i32_1 = arith.constant 0 : i32
    return %c0_i32, %c0_i32_0 : i32, i32
  }
  func.func @transform_6(%arg0: i32) -> (i32, i32) {
    %c0_i32 = arith.constant 0 : i32
    %c0_i32_0 = arith.constant 0 : i32
    %c0_i32_1 = arith.constant 0 : i32
    return %c0_i32, %c0_i32_0 : i32, i32
  }
  func.func @transform_7(%arg0: i32) -> (i32, i32) {
    %c0_i32 = arith.constant 0 : i32
    %c0_i32_0 = arith.constant 0 : i32
    %c0_i32_1 = arith.constant 0 : i32
    return %c0_i32, %c0_i32_0 : i32, i32
  }
  func.func @transform_8(%arg0: i32) -> (i32, i32) {
    %c0_i32 = arith.constant 0 : i32
    %c0_i32_0 = arith.constant 0 : i32
    %c0_i32_1 = arith.constant 0 : i32
    return %c0_i32, %c0_i32_0 : i32, i32
  }
  func.func @transform_9(%arg0: i32) -> (i32, i32) {
    %c0_i32 = arith.constant 0 : i32
    %c0_i32_0 = arith.constant 0 : i32
    return %arg0, %c0_i32 : i32, i32
  }
}

module attributes {stable_mosaic.version = 11 : i64} {
  func.func @_twinq_kernel_fused(%arg0: i32, %arg1: memref<128x17xf32, #tpu.memory_space<vmem>>, %arg2: memref<128x6xf32, #tpu.memory_space<vmem>>, %arg3: memref<17x64xf32, #tpu.memory_space<vmem>>, %arg4: memref<6x64xf32, #tpu.memory_space<vmem>>, %arg5: memref<1x64xf32, #tpu.memory_space<vmem>>, %arg6: memref<64x64xf32, #tpu.memory_space<vmem>>, %arg7: memref<1x64xf32, #tpu.memory_space<vmem>>, %arg8: memref<64x2xf32, #tpu.memory_space<vmem>>, %arg9: memref<1x2xf32, #tpu.memory_space<vmem>>, %arg10: memref<128x1xf32, #tpu.memory_space<vmem>>) attributes {dimension_semantics = [#tpu.dimension_semantics<parallel>], iteration_bounds = array<i64: 1>, scalar_prefetch = 0 : i64, scratch_operands = 0 : i64, tpu.core_type = #tpu.core_type<tc>, window_params = [{transform_indices = @transform_0, window_bounds = array<i64: 128, 17>}, {transform_indices = @transform_1, window_bounds = array<i64: 128, 6>}, {pipeline_mode = #tpu.pipeline_mode<synchronous>, transform_indices = @transform_2, window_bounds = array<i64: 17, 64>}, {pipeline_mode = #tpu.pipeline_mode<synchronous>, transform_indices = @transform_3, window_bounds = array<i64: 6, 64>}, {pipeline_mode = #tpu.pipeline_mode<synchronous>, transform_indices = @transform_4, window_bounds = array<i64: 1, 64>}, {pipeline_mode = #tpu.pipeline_mode<synchronous>, transform_indices = @transform_5, window_bounds = array<i64: 64, 64>}, {pipeline_mode = #tpu.pipeline_mode<synchronous>, transform_indices = @transform_6, window_bounds = array<i64: 1, 64>}, {pipeline_mode = #tpu.pipeline_mode<synchronous>, transform_indices = @transform_7, window_bounds = array<i64: 64, 2>}, {pipeline_mode = #tpu.pipeline_mode<synchronous>, transform_indices = @transform_8, window_bounds = array<i64: 1, 2>}, {transform_indices = @transform_9, window_bounds = array<i64: 128, 1>}]} {
    %c0 = arith.constant 0 : index
    %c0_0 = arith.constant 0 : index
    %0 = vector.load %arg1[%c0, %c0_0] : memref<128x17xf32, #tpu.memory_space<vmem>>, vector<128x17xf32>
    %c0_1 = arith.constant 0 : index
    %c0_2 = arith.constant 0 : index
    %1 = vector.load %arg2[%c0_1, %c0_2] : memref<128x6xf32, #tpu.memory_space<vmem>>, vector<128x6xf32>
    %c0_3 = arith.constant 0 : index
    %c0_4 = arith.constant 0 : index
    %2 = vector.load %arg3[%c0_3, %c0_4] : memref<17x64xf32, #tpu.memory_space<vmem>>, vector<17x64xf32>
    %cst = arith.constant dense<0.000000e+00> : vector<128x64xf32>
    %3 = tpu.matmul %0, %2, %cst {dimension_numbers = #tpu.dot_dimension_numbers<[1], [0], [0], [1], [0, 0, 1, 1], [], []>, precision = #tpu.contract_precision<fp32>} : vector<128x17xf32>, vector<17x64xf32>, vector<128x64xf32> -> vector<128x64xf32>
    %c0_5 = arith.constant 0 : index
    %c0_6 = arith.constant 0 : index
    %4 = vector.load %arg4[%c0_5, %c0_6] : memref<6x64xf32, #tpu.memory_space<vmem>>, vector<6x64xf32>
    %cst_7 = arith.constant dense<0.000000e+00> : vector<128x64xf32>
    %5 = tpu.matmul %1, %4, %cst_7 {dimension_numbers = #tpu.dot_dimension_numbers<[1], [0], [0], [1], [0, 0, 1, 1], [], []>, precision = #tpu.contract_precision<fp32>} : vector<128x6xf32>, vector<6x64xf32>, vector<128x64xf32> -> vector<128x64xf32>
    %6 = arith.addf %3, %5 : vector<128x64xf32>
    %c0_8 = arith.constant 0 : index
    %c0_9 = arith.constant 0 : index
    %7 = vector.load %arg5[%c0_8, %c0_9] : memref<1x64xf32, #tpu.memory_space<vmem>>, vector<1x64xf32>
    %8 = vector.broadcast %7 : vector<1x64xf32> to vector<128x64xf32>
    %9 = arith.addf %6, %8 : vector<128x64xf32>
    %cst_10 = arith.constant 0.000000e+00 : f32
    %10 = vector.broadcast %cst_10 : f32 to vector<128x64xf32>
    %11 = arith.maximumf %9, %10 : vector<128x64xf32>
    %c0_11 = arith.constant 0 : index
    %c0_12 = arith.constant 0 : index
    %12 = vector.load %arg6[%c0_11, %c0_12] : memref<64x64xf32, #tpu.memory_space<vmem>>, vector<64x64xf32>
    %cst_13 = arith.constant dense<0.000000e+00> : vector<128x64xf32>
    %13 = tpu.matmul %11, %12, %cst_13 {dimension_numbers = #tpu.dot_dimension_numbers<[1], [0], [0], [1], [0, 0, 1, 1], [], []>, precision = #tpu.contract_precision<fp32>} : vector<128x64xf32>, vector<64x64xf32>, vector<128x64xf32> -> vector<128x64xf32>
    %c0_14 = arith.constant 0 : index
    %c0_15 = arith.constant 0 : index
    %14 = vector.load %arg7[%c0_14, %c0_15] : memref<1x64xf32, #tpu.memory_space<vmem>>, vector<1x64xf32>
    %15 = vector.broadcast %14 : vector<1x64xf32> to vector<128x64xf32>
    %16 = arith.addf %13, %15 : vector<128x64xf32>
    %cst_16 = arith.constant 0.000000e+00 : f32
    %17 = vector.broadcast %cst_16 : f32 to vector<128x64xf32>
    %18 = arith.maximumf %16, %17 : vector<128x64xf32>
    %c0_17 = arith.constant 0 : index
    %c0_18 = arith.constant 0 : index
    %19 = vector.load %arg8[%c0_17, %c0_18] : memref<64x2xf32, #tpu.memory_space<vmem>>, vector<64x2xf32>
    %cst_19 = arith.constant dense<0.000000e+00> : vector<128x2xf32>
    %20 = tpu.matmul %18, %19, %cst_19 {dimension_numbers = #tpu.dot_dimension_numbers<[1], [0], [0], [1], [0, 0, 1, 1], [], []>, precision = #tpu.contract_precision<fp32>} : vector<128x64xf32>, vector<64x2xf32>, vector<128x2xf32> -> vector<128x2xf32>
    %c0_20 = arith.constant 0 : index
    %c0_21 = arith.constant 0 : index
    %21 = vector.load %arg9[%c0_20, %c0_21] : memref<1x2xf32, #tpu.memory_space<vmem>>, vector<1x2xf32>
    %22 = vector.broadcast %21 : vector<1x2xf32> to vector<128x2xf32>
    %23 = arith.addf %20, %22 : vector<128x2xf32>
    %cst_22 = arith.constant dense<0x7F800000> : vector<128xf32>
    %24 = vector.multi_reduction <minimumf>, %23, %cst_22 [1] : vector<128x2xf32> to vector<128xf32>
    %25 = vector.shape_cast %24 : vector<128xf32> to vector<128x1xf32>
    %c0_23 = arith.constant 0 : index
    %c0_24 = arith.constant 0 : index
    %26 = vector.load %arg10[%c0_23, %c0_24] : memref<128x1xf32, #tpu.memory_space<vmem>>, vector<128x1xf32>
    tpu.vector_store %arg10[%c0_23, %c0_24], %25 {strides = array<i32>} : memref<128x1xf32, #tpu.memory_space<vmem>>, vector<128x1xf32>,
    return
  }
  func.func @transform_0(%arg0: i32) -> (i32, i32) {
    %c0_i32 = arith.constant 0 : i32
    %c0_i32_0 = arith.constant 0 : i32
    return %arg0, %c0_i32 : i32, i32
  }
  func.func @transform_1(%arg0: i32) -> (i32, i32) {
    %c0_i32 = arith.constant 0 : i32
    %c0_i32_0 = arith.constant 0 : i32
    return %arg0, %c0_i32 : i32, i32
  }
  func.func @transform_2(%arg0: i32) -> (i32, i32) {
    %c0_i32 = arith.constant 0 : i32
    %c0_i32_0 = arith.constant 0 : i32
    %c0_i32_1 = arith.constant 0 : i32
    return %c0_i32, %c0_i32_0 : i32, i32
  }
  func.func @transform_3(%arg0: i32) -> (i32, i32) {
    %c0_i32 = arith.constant 0 : i32
    %c0_i32_0 = arith.constant 0 : i32
    %c0_i32_1 = arith.constant 0 : i32
    return %c0_i32, %c0_i32_0 : i32, i32
  }
  func.func @transform_4(%arg0: i32) -> (i32, i32) {
    %c0_i32 = arith.constant 0 : i32
    %c0_i32_0 = arith.constant 0 : i32
    %c0_i32_1 = arith.constant 0 : i32
    return %c0_i32, %c0_i32_0 : i32, i32
  }
  func.func @transform_5(%arg0: i32) -> (i32, i32) {
    %c0_i32 = arith.constant 0 : i32
    %c0_i32_0 = arith.constant 0 : i32
    %c0_i32_1 = arith.constant 0 : i32
    return %c0_i32, %c0_i32_0 : i32, i32
  }
  func.func @transform_6(%arg0: i32) -> (i32, i32) {
    %c0_i32 = arith.constant 0 : i32
    %c0_i32_0 = arith.constant 0 : i32
    %c0_i32_1 = arith.constant 0 : i32
    return %c0_i32, %c0_i32_0 : i32, i32
  }
  func.func @transform_7(%arg0: i32) -> (i32, i32) {
    %c0_i32 = arith.constant 0 : i32
    %c0_i32_0 = arith.constant 0 : i32
    %c0_i32_1 = arith.constant 0 : i32
    return %c0_i32, %c0_i32_0 : i32, i32
  }
  func.func @transform_8(%arg0: i32) -> (i32, i32) {
    %c0_i32 = arith.constant 0 : i32
    %c0_i32_0 = arith.constant 0 : i32
    %c0_i32_1 = arith.constant 0 : i32
    return %c0_i32, %c0_i32_0 : i32, i32
  }
  func.func @transform_9(%arg0: i32) -> (i32, i32) {
    %c0_i32 = arith.constant 0 : i32
    %c0_i32_0 = arith.constant 0 : i32
    return %arg0, %c0_i32 : i32, i32
  }
}

</mosaic_0001>

<bundles_post_ra>
// kernel: tpu_custom_call.1
= control target key start
LH: loop header
LB: loop body
LE: loop exit
PB: predicated region body
PF: predicated region fallthrough
CT: control target
= control target key end

     0   :  { %vm118_vm0 = vcmask 1045504   ;;  %vm69_vm1 = vcmask 48128   ;;  %vm782_vm2 = vcmask 1040384   ;;  %s4576_s0 = inlined_call_operand.vmem [shape: f32[128,17], index: 0, kind: input, shape index: {}]   ;;  %s4577_s1 = inlined_call_operand.vmem [shape: f32[128,6], index: 1, kind: input, shape index: {}]   ;;  %s4578_s2 = inlined_call_operand.vmem [shape: f32[17,64], index: 2, kind: input, shape index: {}]   ;;  %s4579_s3 = inlined_call_operand.vmem [shape: f32[6,64], index: 3, kind: input, shape index: {}]   ;;  %s4580_s4 = inlined_call_operand.vmem [shape: f32[1,64], index: 4, kind: input, shape index: {}]   ;;  %s4581_s5 = inlined_call_operand.vmem [shape: f32[64,64], index: 5, kind: input, shape index: {}]   ;;  %s4582_s6 = inlined_call_operand.vmem [shape: f32[1,64], index: 6, kind: input, shape index: {}]   ;;  %s4583_s7 = inlined_call_operand.vmem [shape: f32[64,2], index: 7, kind: input, shape index: {}]   ;;  %s4584_s8 = inlined_call_operand.vmem [shape: f32[1,2], index: 8, kind: input, shape index: {}]   ;;  %s4585_s9 = inlined_call_operand.hbm [shape: f32[1,128], index: 9, kind: output, shape index: {}]  }
   0x1   :  { %v68_v0 = vld [vmem:[%s4579_s3] sm:$0x3f]  ;;  %v67_v4 = vld [vmem:[%s4578_s2 + $0x10] sm:$0x1]  ;;  %v50_v5 = vld [vmem:[%s4577_s1 + $0x8] sm:$0xff] }
   0x2   :  { %v49_v1 = vld [vmem:[%s4577_s1] sm:$0xff]  ;;  %v120_v2 = vsel %vm118_vm0, %v68_v0, 0  ;;  %v784_v8 = vsel %vm782_vm2, %v67_v4, 0  ;;  %v74_v9 = vsel %vm69_vm1, %v50_v5, 0  ;;  %v51_v10 = vld [vmem:[%s4577_s1 + $0x10] sm:$0xff] }
   0x3   :  { %v71_v3 = vsel %vm69_vm1, %v49_v1, 0  ;;  %v137_v6 = vand.u32 4294901760, %v120_v2  ;;  %v3246_v11 = vand.u32 4294901760, %v784_v8  ;;  %v3248_v12 = vand.u32 4294901760, %v74_v9 }
   0x4   :  { %v3240_v7 = vand.u32 4294901760, %v71_v3  ;;  %v77_v17 = vsel %vm69_vm1, %v51_v10, 0 }
   0x5   :  { %v284_v13 = vsub.f32 %v120_v2, %v137_v6  ;;  %469 = vmatpush.msra.mxu3 %v137_v6  ;;  %138 = vmatpush.msra.mxu0 %v137_v6  ;;  %v3252_v15 = vsub.f32 %v784_v8, %v3246_v11  ;;  %v148_v16 = vsub.f32 %v74_v9, %v3248_v12 }
   0x6   :  { %v140_v14 = vsub.f32 %v71_v3, %v3240_v7 }
   0x7   :  { %14 = vsyncpa [#allocation3], 0  ;;  %371 = vmatpush.msra.mxu2 %v284_v13  ;;  %v285_v19 = vand.u32 4294901760, %v284_v13  ;;  %v949_v20 = vand.u32 4294901760, %v3252_v15  ;;  %v149_v23 = vand.u32 4294901760, %v148_v16  ;;  %v3258_v24 = vand.u32 4294901760, %v77_v17 }
   0x8   :  { %v141_v18 = vand.u32 4294901760, %v140_v14  ;;  %374 = vmatmul.f32.vlgmr.msra.gmra.mxu2 %v140_v14  ;;  %v52_v28 = vld [vmem:[%s4577_s1 + $0x18] sm:$0xff]  ;;  %v53_v36 = vld [vmem:[%s4577_s1 + $0x20] sm:$0xff]  ;;  %v66_v40 = vld [vmem:[%s4578_s2 + $0x8] sm:$0xff]  ;;  %vm733_vm3 = vcmask 138240   ;;  %vm1471_vm4 = vcmask 523264  }
   0x9   :  { %800 = vmatpush.msrb.mxu2 %v3246_v11  ;;  %v286_v22 = vsub.f32 %v284_v13, %v285_v19  ;;  %585 = vmatpush.msrb.mxu0 %v285_v19  ;;  %v950_v25 = vsub.f32 %v3252_v15, %v949_v20  ;;  %v150_v30 = vsub.f32 %v148_v16, %v149_v23  ;;  %v80_v32 = vsel %vm69_vm1, %v52_v28, 0  ;;  %v54_v46 = vld [vmem:[%s4577_s1 + $0x28] sm:$0xff]  ;;  %v55_v56 = vld [vmem:[%s4577_s1 + $0x30] sm:$0xff]  ;;  %v56_v63 = vld [vmem:[%s4577_s1 + $0x38] sm:$0xff]  ;;  %s3137_s20 = sshll.u32 %s4585_s9, 4  ;;  %s3138_s20 = int_to_ptr.hbm [resolvable:$true] %s3137_s20 }
   0xa   :  { %473 = vmatmul.f32.vlgmr.msra.gmra.mxu3 %v141_v18  ;;  %v142_v21 = vsub.f32 %v140_v14, %v141_v18  ;;  %v156_v31 = vsub.f32 %v77_v17, %v3258_v24  ;;  %v3271_v35 = vand.u32 4294901760, %v80_v32  ;;  %v83_v39 = vsel %vm69_vm1, %v53_v36, 0  ;;  %v58_v17 = vld [vmem:[%s4577_s1 + $0x48] sm:$0xff] }
   0xb   :  { %v287_v27 = vand.u32 4294901760, %v286_v22  ;;  %v951_v29 = vand.u32 4294901760, %v950_v25  ;;  %v151_v33 = vand.u32 4294901760, %v150_v30  ;;  %v3282_v41 = vand.u32 4294901760, %v66_v40  ;;  %v65_v22 = vld [vmem:[%s4578_s2] sm:$0xff] }
   0xc   :  { %v143_v26 = vand.u32 4294901760, %v142_v21  ;;  %v157_v34 = vand.u32 4294901760, %v156_v31  ;;  %v164_v38 = vsub.f32 %v80_v32, %v3271_v35  ;;  %v3284_v44 = vand.u32 4294901760, %v83_v39 }
   0xd   :  { %288 = vmatpush.msra.mxu1 %v287_v27  ;;  %952 = vmatpush.msrb.mxu3 %v951_v29  ;;  %v3288_v45 = vsub.f32 %v66_v40, %v3282_v41  ;;  %v86_v51 = vsel %vm69_vm1, %v54_v46, 0  ;;  %v89_v59 = vsel %vm69_vm1, %v55_v56, 0  ;;  %v92_v2 = vsel %vm69_vm1, %v56_v63, 0  ;;  %v59_v29 = vld [vmem:[%s4577_s1 + $0x50] sm:$0xff] }
   0xe   :  { %144 = vmatmul.f32.vlgmr.msra.gmra.mxu0 %v143_v26  ;;  %290 = vmatmul.f32.vlgmr.msra.gmra.mxu1 %v3240_v7  ;;  %v158_v37 = vsub.f32 %v156_v31, %v157_v34  ;;  %v165_v43 = vand.u32 4294901760, %v164_v38  ;;  %v172_v49 = vsub.f32 %v83_v39, %v3284_v44  ;;  %v3302_v55 = vand.u32 4294901760, %v86_v51 }
   0xf   :  { %667 = vmatpush.msrb.mxu1 %v137_v6  ;;  %1045 = vmatpush.msra.mxu0 %v3252_v15  ;;  %v955_v47 = vand.u32 4294901760, %v3288_v45  ;;  %v3310_v62 = vand.u32 4294901760, %v89_v59  ;;  %v3318_v5 = vand.u32 4294901760, %v92_v2  ;;  %v57_v6 = vld [vmem:[%s4577_s1 + $0x40] sm:$0xff]  ;;  %v98_v21 = vsel %vm69_vm1, %v58_v17, 0 }
  0x10   :  { %379 = vmatmul.f32.gmra.mxu2 %v148_v16  ;;  %v159_v42 = vand.u32 4294901760, %v158_v37  ;;  %v166_v48 = vsub.f32 %v164_v38, %v165_v43  ;;  %v173_v54 = vand.u32 4294901760, %v172_v49  ;;  %v180_v58 = vsub.f32 %v86_v51, %v3302_v55 }
  0x11   :  { %1147 = vmatpush.msra.mxu1 %v3246_v11  ;;  %802 = vmatpush.msrb.mxu2 %v3282_v41  ;;  %v956_v50 = vsub.f32 %v3288_v45, %v955_v47  ;;  %v188_v1 = vsub.f32 %v89_v59, %v3310_v62  ;;  %v196_v9 = vsub.f32 %v92_v2, %v3318_v5  ;;  %v95_v10 = vsel %vm69_vm1, %v57_v6, 0 }
  0x12   :  { %479 = vmatmul.f32.gmra.mxu3 %v149_v23  ;;  %1048 = vmatpush.msra.mxu0 %v3288_v45  ;;  %v167_v53 = vand.u32 4294901760, %v166_v48  ;;  %v174_v57 = vsub.f32 %v172_v49, %v173_v54  ;;  %v181_v61 = vand.u32 4294901760, %v180_v58  ;;  %v3326_v16 = vand.u32 4294901760, %v95_v10 }
  0x13   :  { %1149 = vmatpush.msra.mxu1 %v3282_v41  ;;  %v957_v52 = vand.u32 4294901760, %v956_v50  ;;  %v189_v4 = vand.u32 4294901760, %v188_v1  ;;  %v197_v14 = vand.u32 4294901760, %v196_v9  ;;  %v803_v23 = vand.u32 4294901760, %v65_v22 }
  0x14   :  { %v175_v60 = vand.u32 4294901760, %v174_v57  ;;  %v182_v0 = vsub.f32 %v180_v58, %v181_v61  ;;  %v204_v19 = vsub.f32 %v95_v10, %v3326_v16  ;;  %v3337_v27 = vand.u32 4294901760, %v98_v21  ;;  %v33_v10 = vld [vmem:[%s4576_s0] sm:$0xff] }
  0x15   :  { %958 = vmatpush.msrb.mxu3 %v957_v52  ;;  %v190_v8 = vsub.f32 %v188_v1, %v189_v4  ;;  %v198_v18 = vsub.f32 %v196_v9, %v197_v14  ;;  %804 = vmatpush.msrb.mxu2 %v803_v23  ;;  %v960_v28 = vsub.f32 %v65_v22, %v803_v23  ;;  %v101_v15 = vsel %vm69_vm1, %v59_v29, 0  ;;  %v62_v52 = vld [vmem:[%s4577_s1 + $0x68] sm:$0xff] }
  0x16   :  { %152 = vmatmul.f32.gmra.mxu0 %v151_v33  ;;  %294 = vmatmul.f32.gmra.mxu1 %v3248_v12  ;;  %v183_v3 = vand.u32 4294901760, %v182_v0  ;;  %v205_v26 = vand.u32 4294901760, %v204_v19  ;;  %v212_v32 = vsub.f32 %v98_v21, %v3337_v27  ;;  %v3349_v37 = vand.u32 4294901760, %v101_v15 }
  0x17   :  { %v191_v13 = vand.u32 4294901760, %v190_v8  ;;  %v199_v25 = vand.u32 4294901760, %v198_v18  ;;  %1265 = vmatpush.msra.mxu2 %v949_v20  ;;  %1151 = vmatpush.msra.mxu1 %v803_v23  ;;  %v961_v30 = vand.u32 4294901760, %v960_v28  ;;  %v110_v56 = vsel %vm69_vm1, %v62_v52, 0 }
  0x18   :  { %384 = vmatmul.f32.gmra.mxu2 %v156_v31  ;;  %1051 = vmatpush.msra.mxu0 %v960_v28  ;;  %v206_v31 = vsub.f32 %v204_v19, %v205_v26  ;;  %v213_v36 = vand.u32 4294901760, %v212_v32  ;;  %v220_v40 = vsub.f32 %v101_v15, %v3349_v37  ;;  %v3375_v59 = vand.u32 4294901760, %v110_v56 }
  0x19   :  { %1269 = vmatpush.msra.mxu2 %v955_v47  ;;  %v962_v33 = vsub.f32 %v960_v28, %v961_v30  ;;  %v735_v18 = vsel %vm733_vm3, %v33_v10, 0  ;;  %vm3000_vm5 = vcmask 15360   ;;  %vm3070_vm6 = vcmask 130112  }
  0x1a   :  { %485 = vmatmul.f32.gmra.mxu3 %v157_v34  ;;  %v207_v34 = vand.u32 4294901760, %v206_v31  ;;  %v214_v39 = vsub.f32 %v212_v32, %v213_v36  ;;  %v221_v45 = vand.u32 4294901760, %v220_v40  ;;  %v244_v63 = vsub.f32 %v110_v56, %v3375_v59 }
  0x1b   :  { %1273 = vmatpush.msra.mxu2 %v961_v30  ;;  %v963_v20 = vand.u32 4294901760, %v962_v33  ;;  %v35_v33 = vld [vmem:[%s4576_s0 + $0x10] sm:$0xff]  ;;  %vm3074_vm7 = vcmask 195712   ;;  %vm3078_vm8 = vcmask 261312   ;;  %vm3082_vm9 = vcmask 326912  }
  0x1c   :  { %v222_v47 = vsub.f32 %v220_v40, %v221_v45  ;;  %v245_v2 = vand.u32 4294901760, %v244_v63  ;;  %vm3086_vm10 = vcmask 392512   ;;  %vm3090_vm11 = vcmask 458112  }
  0x1d   :  { %964 = vmatpush.msrb.mxu3 %v963_v20  ;;  %vm3094_vm12 = vcmask 523712   ;;  %vm3098_vm13 = vcmask 589312   ;;  %vm3102_vm14 = vcmask 654912   ;;  %vm3106_vm15 = vcmask 720512  }
  0x1e   :  { %160 = vmatmul.f32.gmra.mxu0 %v159_v42  ;;  %298 = vmatmul.f32.gmra.mxu1 %v3258_v24  ;;  %v246_v6 = vsub.f32 %v244_v63, %v245_v2  ;;  %vm3110_vm0 = vcmask 786112   ;;  %vm3118_vm2 = vcmask 917312  }
  0x1f   :  { %1353 = vmatpush.msra.mxu3 %v3246_v11  ;;  %v61_v11 = vld [vmem:[%s4577_s1 + $0x60] sm:$0xff] }
  0x20   :  { %389 = vmatmul.f32.gmra.mxu2 %v164_v38  ;;  %v60_v38 = vld [vmem:[%s4577_s1 + $0x58] sm:$0xff] }
  0x21   :  { %1355 = vmatpush.msra.mxu3 %v3282_v41  ;;  %v104_v42 = vsel %vm69_vm1, %v60_v38, 0  ;;  %v107_v41 = vsel %vm69_vm1, %v61_v11, 0 }
  0x22   :  { %491 = vmatmul.f32.gmra.mxu3 %v165_v43  ;;  %v215_v43 = vand.u32 4294901760, %v214_v39  ;;  %v3359_v46 = vand.u32 4294901760, %v104_v42  ;;  %v3367_v51 = vand.u32 4294901760, %v107_v41 }
  0x23   :  { %1357 = vmatpush.msra.mxu3 %v803_v23  ;;  %v34_v23 = vld [vmem:[%s4576_s0 + $0x8] sm:$0xff] }
  0x24   :  { %v228_v48 = vsub.f32 %v104_v42, %v3359_v46  ;;  %v738_v29 = vsel %vm733_vm3, %v34_v23, 0  ;;  %v36_v42 = vld [vmem:[%s4576_s0 + $0x18] sm:$0xff] }
  0x25   :  { %v3409_v31 = vand.u32 4294901760, %v738_v29  ;;  %v744_v11 = vsel %vm733_vm3, %v36_v42, 0 }
  0x26   :  { %168 = vmatmul.f32.gmra.mxu0 %v167_v53  ;;  %302 = vmatmul.f32.gmra.mxu1 %v3271_v35  ;;  %v229_v50 = vand.u32 4294901760, %v228_v48 }
  0x27   :  { %v3419_v20 = vsub.f32 %v738_v29, %v3409_v31 }
  0x28   :  { %394 = vmatmul.f32.gmra.mxu2 %v172_v49  ;;  %v223_v49 = vand.u32 4294901760, %v222_v47  ;;  %v230_v53 = vsub.f32 %v228_v48, %v229_v50 }
  0x29   :  { %v815_v39 = vand.u32 4294901760, %v3419_v20 }
  0x2a   :  { %497 = vmatmul.f32.gmra.mxu3 %v173_v54  ;;  %v236_v54 = vsub.f32 %v107_v41, %v3367_v51  ;;  %v231_v57 = vand.u32 4294901760, %v230_v53 }
  0x2e   :  { %176 = vmatmul.f32.gmra.mxu0 %v175_v60  ;;  %306 = vmatmul.f32.gmra.mxu1 %v3284_v44  ;;  %v63_v60 = vld [vmem:[%s4577_s1 + $0x70] sm:$0xff] }
  0x2f   :  { %v113_v0 = vsel %vm69_vm1, %v63_v60, 0 }
  0x30   :  { %399 = vmatmul.f32.gmra.mxu2 %v180_v58  ;;  %v237_v58 = vand.u32 4294901760, %v236_v54 }
  0x32   :  { %503 = vmatmul.f32.gmra.mxu3 %v181_v61  ;;  %v238_v61 = vsub.f32 %v236_v54, %v237_v58 }
  0x36   :  { %184 = vmatmul.f32.gmra.mxu0 %v183_v3  ;;  %310 = vmatmul.f32.gmra.mxu1 %v3302_v55  ;;  %v3383_v3 = vand.u32 4294901760, %v113_v0 }
  0x38   :  { %404 = vmatmul.f32.gmra.mxu2 %v188_v1  ;;  %v239_v1 = vand.u32 4294901760, %v238_v61  ;;  %v252_v8 = vsub.f32 %v113_v0, %v3383_v3 }
  0x3a   :  { %509 = vmatmul.f32.gmra.mxu3 %v189_v4  ;;  %v64_v4 = vld [vmem:[%s4577_s1 + $0x78] sm:$0xff] }
  0x3e   :  { %192 = vmatmul.f32.gmra.mxu0 %v191_v13  ;;  %314 = vmatmul.f32.gmra.mxu1 %v3310_v62  ;;  %v247_v13 = vand.u32 4294901760, %v246_v6 }
  0x40   :  { %409 = vmatmul.f32.gmra.mxu2 %v196_v9  ;;  %v116_v9 = vsel %vm69_vm1, %v64_v4, 0  ;;  %vm3114_vm1 = vcmask 851712  }
  0x41   :  { %v3394_v17 = vand.u32 4294901760, %v116_v9 }
  0x42   :  { %515 = vmatmul.f32.gmra.mxu3 %v197_v14  ;;  %v253_v14 = vand.u32 4294901760, %v252_v8 }
  0x43   :  { %v260_v22 = vsub.f32 %v116_v9, %v3394_v17 }
  0x44   :  { %v254_v21 = vsub.f32 %v252_v8, %v253_v14 }
  0x45   :  { %v261_v28 = vand.u32 4294901760, %v260_v22 }
  0x46   :  { %200 = vmatmul.f32.gmra.mxu0 %v199_v25  ;;  %318 = vmatmul.f32.gmra.mxu1 %v3318_v5 }
  0x48   :  { %414 = vmatmul.f32.gmra.mxu2 %v204_v19  ;;  %v3397_v19 = vand.u32 4294901760, %v735_v18 }
  0x4a   :  { %521 = vmatmul.f32.gmra.mxu3 %v205_v26  ;;  %v3405_v25 = vsub.f32 %v735_v18, %v3397_v19  ;;  %v255_v26 = vand.u32 4294901760, %v254_v21 }
  0x4c   :  { %v807_v30 = vand.u32 4294901760, %v3405_v25 }
  0x4e   :  { %208 = vmatmul.f32.gmra.mxu0 %v207_v34  ;;  %322 = vmatmul.f32.gmra.mxu1 %v3326_v16  ;;  %v808_v15 = vsub.f32 %v3405_v25, %v807_v30 }
  0x50   :  { %419 = vmatmul.f32.gmra.mxu2 %v212_v32  ;;  %v262_v32 = vsub.f32 %v260_v22, %v261_v28  ;;  %v809_v38 = vand.u32 4294901760, %v808_v15 }
  0x52   :  { %527 = vmatmul.f32.gmra.mxu3 %v213_v36  ;;  %v263_v34 = vand.u32 4294901760, %v262_v32  ;;  %v741_v36 = vsel %vm733_vm3, %v35_v33, 0 }
  0x56   :  { %216 = vmatmul.f32.gmra.mxu0 %v215_v43  ;;  %326 = vmatmul.f32.gmra.mxu1 %v3337_v27  ;;  %v816_v43 = vsub.f32 %v3419_v20, %v815_v39 }
  0x58   :  { %424 = vmatmul.f32.gmra.mxu2 %v220_v40  ;;  %v3423_v40 = vand.u32 4294901760, %v741_v36  ;;  %v817_v52 = vand.u32 4294901760, %v816_v43 }
  0x5a   :  { %533 = vmatmul.f32.gmra.mxu3 %v221_v45  ;;  %v3433_v45 = vsub.f32 %v741_v36, %v3423_v40  ;;  %v39_v36 = vld [vmem:[%s4576_s0 + $0x30] sm:$0xff] }
  0x5c   :  { %v4597_v53 = vand.u32 4294901760, %v3433_v45 }
  0x5e   :  { %224 = vmatmul.f32.gmra.mxu0 %v223_v49  ;;  %330 = vmatmul.f32.gmra.mxu1 %v3349_v37  ;;  %v824_v60 = vsub.f32 %v3433_v45, %v4597_v53 }
  0x60   :  { %429 = vmatmul.f32.gmra.mxu2 %v228_v48  ;;  %v825_v6 = vand.u32 4294901760, %v824_v60  ;;  %v40_v60 = vld [vmem:[%s4576_s0 + $0x38] sm:$0xff] }
  0x62   :  { %539 = vmatmul.f32.gmra.mxu3 %v229_v50 }
  0x66   :  { %232 = vmatmul.f32.gmra.mxu0 %v231_v57  ;;  %334 = vmatmul.f32.gmra.mxu1 %v3359_v46  ;;  %v37_v57 = vld [vmem:[%s4576_s0 + $0x20] sm:$0xff] }
  0x68   :  { %434 = vmatmul.f32.gmra.mxu2 %v236_v54  ;;  %v3438_v54 = vand.u32 4294901760, %v744_v11 }
  0x6a   :  { %545 = vmatmul.f32.gmra.mxu3 %v237_v58  ;;  %v3451_v61 = vsub.f32 %v744_v11, %v3438_v54  ;;  %v753_v11 = vsel %vm733_vm3, %v39_v36, 0 }
  0x6e   :  { %240 = vmatmul.f32.gmra.mxu0 %v239_v1  ;;  %338 = vmatmul.f32.gmra.mxu1 %v3367_v51 }
  0x70   :  { %439 = vmatmul.f32.gmra.mxu2 %v244_v63  ;;  %v747_v63 = vsel %vm733_vm3, %v37_v57, 0 }
  0x71   :  { %v3456_v9 = vand.u32 4294901760, %v747_v63 }
  0x72   :  { %551 = vmatmul.f32.gmra.mxu3 %v245_v2 }
  0x73   :  { %v3469_v21 = vsub.f32 %v747_v63, %v3456_v9 }
  0x75   :  { %v4594_v33 = vand.u32 4294901760, %v3469_v21 }
  0x76   :  { %248 = vmatmul.f32.gmra.mxu0 %v247_v13  ;;  %342 = vmatmul.f32.gmra.mxu1 %v3375_v59  ;;  %v38_v13 = vld [vmem:[%s4576_s0 + $0x28] sm:$0xff] }
  0x77   :  { %v840_v42 = vsub.f32 %v3469_v21, %v4594_v33 }
  0x78   :  { %444 = vmatmul.f32.gmra.mxu2 %v252_v8  ;;  %v4596_v8 = vand.u32 4294901760, %v3451_v61 }
  0x7a   :  { %557 = vmatmul.f32.gmra.mxu3 %v253_v14  ;;  %v832_v18 = vsub.f32 %v3451_v61, %v4596_v8 }
  0x7c   :  { %v833_v32 = vand.u32 4294901760, %v832_v18 }
  0x7e   :  { %256 = vmatmul.f32.gmra.mxu0 %v255_v26  ;;  %346 = vmatmul.f32.gmra.mxu1 %v3383_v3 }
  0x80   :  { %449 = vmatmul.f32.gmra.mxu2 %v260_v22  ;;  %v750_v22 = vsel %vm733_vm3, %v38_v13, 0 }
  0x81   :  { %v3474_v15 = vand.u32 4294901760, %v750_v22 }
  0x82   :  { %563 = vmatmul.f32.gmra.mxu3 %v261_v28 }
  0x83   :  { %v3487_v43 = vsub.f32 %v750_v22, %v3474_v15 }
  0x86   :  { %264 = vmatmul.f32.gmra.mxu0 %v263_v34  ;;  %350 = vmatmul.f32.gmra.mxu1 %v3394_v17 }
  0x88   :  { %810 = vmatmul.f32.vlgmr.msrb.gmra.mxu2 %v809_v38 }
  0x8a   :  { %966 = vmatmul.f32.vlgmr.msrb.gmra.mxu3 %v3397_v19 }
  0x8b   :  { %v145_v47 = vpop.f32.mrf.mxu0  ;;  %v291_v48 = vpop.f32.mrf.mxu1 }
  0x8c   :  { %v375_v41 = vpop.f32.mrf.mxu2  ;;  %v292_v49 = vadd.f32 %v291_v48, %v145_v47 }
  0x8d   :  { %v474_v50 = vpop.f32.mrf.mxu3 }
  0x8e   :  { %587 = vmatmul.f32.vlgmr.msrb.gmra.mxu0 %v3240_v7  ;;  %v376_v56 = vadd.f32 %v375_v41, %v292_v49  ;;  %669 = vmatmul.f32.vlgmr.msrb.gmra.mxu1 %v3240_v7 }
  0x90   :  { %v3445_v58 = vadd.f32 %v474_v50, %v376_v56  ;;  %818 = vmatmul.f32.gmra.mxu2 %v817_v52  ;;  %v841_v50 = vand.u32 4294901760, %v840_v42  ;;  %v4593_v52 = vand.u32 4294901760, %v3487_v43  ;;  %v3492_v56 = vand.u32 4294901760, %v753_v11 }
  0x92   :  { %970 = vmatmul.f32.gmra.mxu3 %v3409_v31 }
  0x93   :  { %v153_v0 = vpop.f32.mrf.mxu0  ;;  %v295_v7 = vpop.f32.mrf.mxu1 }
  0x94   :  { %v380_v1 = vpop.f32.mrf.mxu2  ;;  %v296_v2 = vadd.f32 %v295_v7, %v153_v0  ;;  %v848_v0 = vsub.f32 %v3487_v43, %v4593_v52  ;;  %v3505_v7 = vsub.f32 %v753_v11, %v3492_v56 }
  0x95   :  { %v480_v4 = vpop.f32.mrf.mxu3 }
  0x96   :  { %591 = vmatmul.f32.gmra.mxu0 %v3248_v12  ;;  %v381_v10 = vadd.f32 %v380_v1, %v296_v2  ;;  %673 = vmatmul.f32.gmra.mxu1 %v3248_v12  ;;  %v756_v1 = vsel %vm733_vm3, %v40_v60, 0  ;;  %v849_v13 = vand.u32 4294901760, %v848_v0  ;;  %v4591_v18 = vand.u32 4294901760, %v3505_v7 }
  0x97   :  { %v3510_v22 = vand.u32 4294901760, %v756_v1 }
  0x98   :  { %v3463_v14 = vadd.f32 %v480_v4, %v381_v10  ;;  %826 = vmatmul.f32.gmra.mxu2 %v825_v6 }
  0x9a   :  { %974 = vmatmul.f32.gmra.mxu3 %v3423_v40 }
  0x9b   :  { %v161_v23 = vpop.f32.mrf.mxu0  ;;  %v299_v12 = vpop.f32.mrf.mxu1 }
  0x9c   :  { %v385_v26 = vpop.f32.mrf.mxu2  ;;  %v300_v28 = vadd.f32 %v299_v12, %v161_v23  ;;  %v41_v12 = vld [vmem:[%s4576_s0 + $0x40] sm:$0xff] }
  0x9d   :  { %v486_v29 = vpop.f32.mrf.mxu3 }
  0x9e   :  { %595 = vmatmul.f32.gmra.mxu0 %v3258_v24  ;;  %v386_v34 = vadd.f32 %v385_v26, %v300_v28  ;;  %677 = vmatmul.f32.gmra.mxu1 %v3258_v24  ;;  %v856_v28 = vsub.f32 %v3505_v7, %v4591_v18 }
  0xa0   :  { %v3481_v38 = vadd.f32 %v486_v29, %v386_v34  ;;  %834 = vmatmul.f32.gmra.mxu2 %v833_v32  ;;  %v3523_v29 = vsub.f32 %v756_v1, %v3510_v22  ;;  %v759_v32 = vsel %vm733_vm3, %v41_v12, 0  ;;  %v43_v12 = vld [vmem:[%s4576_s0 + $0x50] sm:$0xff] }
  0xa2   :  { %978 = vmatmul.f32.gmra.mxu3 %v3438_v54 }
  0xa3   :  { %v169_v47 = vpop.f32.mrf.mxu0  ;;  %v303_v24 = vpop.f32.mrf.mxu1 }
  0xa4   :  { %v390_v48 = vpop.f32.mrf.mxu2  ;;  %v304_v41 = vadd.f32 %v303_v24, %v169_v47  ;;  %v857_v47 = vand.u32 4294901760, %v856_v28  ;;  %v4590_v24 = vand.u32 4294901760, %v3523_v29 }
  0xa5   :  { %v492_v49 = vpop.f32.mrf.mxu3 }
  0xa6   :  { %599 = vmatmul.f32.gmra.mxu0 %v3271_v35  ;;  %v391_v57 = vadd.f32 %v390_v48, %v304_v41  ;;  %681 = vmatmul.f32.gmra.mxu1 %v3271_v35  ;;  %v3528_v48 = vand.u32 4294901760, %v759_v32 }
  0xa8   :  { %v3499_v63 = vadd.f32 %v492_v49, %v391_v57  ;;  %842 = vmatmul.f32.gmra.mxu2 %v841_v50  ;;  %v42_v49 = vld [vmem:[%s4576_s0 + $0x48] sm:$0xff]  ;;  %v864_v57 = vsub.f32 %v3523_v29, %v4590_v24  ;;  %v3541_v60 = vsub.f32 %v759_v32, %v3528_v48 }
  0xa9   :  { %v762_v0 = vsel %vm733_vm3, %v42_v49, 0 }
  0xaa   :  { %982 = vmatmul.f32.gmra.mxu3 %v3456_v9 }
  0xab   :  { %v177_v2 = vpop.f32.mrf.mxu0  ;;  %v307_v35 = vpop.f32.mrf.mxu1 }
  0xac   :  { %v395_v4 = vpop.f32.mrf.mxu2  ;;  %v308_v6 = vadd.f32 %v307_v35, %v177_v2 }
  0xad   :  { %v498_v10 = vpop.f32.mrf.mxu3 }
  0xae   :  { %603 = vmatmul.f32.gmra.mxu0 %v3284_v44  ;;  %v396_v23 = vadd.f32 %v395_v4, %v308_v6  ;;  %685 = vmatmul.f32.gmra.mxu1 %v3284_v44  ;;  %v865_v6 = vand.u32 4294901760, %v864_v57 }
  0xb0   :  { %v3517_v26 = vadd.f32 %v498_v10, %v396_v23  ;;  %850 = vmatmul.f32.gmra.mxu2 %v849_v13  ;;  %v4588_v10 = vand.u32 4294901760, %v3541_v60  ;;  %v3546_v13 = vand.u32 4294901760, %v762_v0 }
  0xb2   :  { %986 = vmatmul.f32.gmra.mxu3 %v3474_v15  ;;  %v872_v32 = vsub.f32 %v3541_v60, %v4588_v10 }
  0xb3   :  { %v185_v34 = vpop.f32.mrf.mxu0  ;;  %v311_v44 = vpop.f32.mrf.mxu1 }
  0xb4   :  { %v400_v36 = vpop.f32.mrf.mxu2  ;;  %v312_v42 = vadd.f32 %v311_v44, %v185_v34  ;;  %v3559_v34 = vsub.f32 %v762_v0, %v3546_v13  ;;  %v765_v44 = vsel %vm733_vm3, %v43_v12, 0  ;;  %v44_v0 = vld [vmem:[%s4576_s0 + $0x58] sm:$0xff] }
  0xb5   :  { %v504_v11 = vpop.f32.mrf.mxu3  ;;  %v3564_v57 = vand.u32 4294901760, %v765_v44 }
  0xb6   :  { %607 = vmatmul.f32.gmra.mxu0 %v3302_v55  ;;  %v401_v41 = vadd.f32 %v400_v36, %v312_v42  ;;  %689 = vmatmul.f32.gmra.mxu1 %v3302_v55  ;;  %v4587_v49 = vand.u32 4294901760, %v3559_v34 }
  0xb8   :  { %v3535_v50 = vadd.f32 %v504_v11, %v401_v41  ;;  %858 = vmatmul.f32.gmra.mxu2 %v857_v47  ;;  %v873_v41 = vand.u32 4294901760, %v872_v32 }
  0xba   :  { %990 = vmatmul.f32.gmra.mxu3 %v3492_v56 }
  0xbb   :  { %v193_v1 = vpop.f32.mrf.mxu0  ;;  %v315_v55 = vpop.f32.mrf.mxu1 }
  0xbc   :  { %v405_v2 = vpop.f32.mrf.mxu2  ;;  %v316_v35 = vadd.f32 %v315_v55, %v193_v1 }
  0xbd   :  { %v510_v4 = vpop.f32.mrf.mxu3 }
  0xbe   :  { %611 = vmatmul.f32.gmra.mxu0 %v3310_v62  ;;  %v406_v23 = vadd.f32 %v405_v2, %v316_v35  ;;  %693 = vmatmul.f32.gmra.mxu1 %v3310_v62  ;;  %v880_v2 = vsub.f32 %v3559_v34, %v4587_v49  ;;  %v3577_v35 = vsub.f32 %v765_v44, %v3564_v57  ;;  %v45_v44 = vld [vmem:[%s4576_s0 + $0x60] sm:$0xff] }
  0xc0   :  { %v3553_v28 = vadd.f32 %v510_v4, %v406_v23  ;;  %866 = vmatmul.f32.gmra.mxu2 %v865_v6  ;;  %v768_v4 = vsel %vm733_vm3, %v44_v0, 0  ;;  %v771_v0 = vsel %vm733_vm3, %v45_v44, 0 }
  0xc2   :  { %994 = vmatmul.f32.gmra.mxu3 %v3510_v22 }
  0xc3   :  { %v201_v36 = vpop.f32.mrf.mxu0  ;;  %v319_v62 = vpop.f32.mrf.mxu1 }
  0xc4   :  { %v410_v42 = vpop.f32.mrf.mxu2  ;;  %v320_v11 = vadd.f32 %v319_v62, %v201_v36  ;;  %v881_v36 = vand.u32 4294901760, %v880_v2  ;;  %v4586_v62 = vand.u32 4294901760, %v3577_v35 }
  0xc5   :  { %v516_v47 = vpop.f32.mrf.mxu3 }
  0xc6   :  { %615 = vmatmul.f32.gmra.mxu0 %v3318_v5  ;;  %v411_v1 = vadd.f32 %v410_v42, %v320_v11  ;;  %697 = vmatmul.f32.gmra.mxu1 %v3318_v5  ;;  %v3582_v42 = vand.u32 4294901760, %v768_v4 }
  0xc8   :  { %v3571_v55 = vadd.f32 %v516_v47, %v411_v1  ;;  %874 = vmatmul.f32.gmra.mxu2 %v873_v41  ;;  %v888_v41 = vsub.f32 %v3577_v35, %v4586_v62  ;;  %v3595_v1 = vsub.f32 %v768_v4, %v3582_v42  ;;  %v46_v4 = vld [vmem:[%s4576_s0 + $0x68] sm:$0xff] }
  0xca   :  { %998 = vmatmul.f32.gmra.mxu3 %v3528_v48 }
  0xcb   :  { %v209_v6 = vpop.f32.mrf.mxu0  ;;  %v323_v5 = vpop.f32.mrf.mxu1 }
  0xcc   :  { %v415_v23 = vpop.f32.mrf.mxu2  ;;  %v324_v12 = vadd.f32 %v323_v5, %v209_v6 }
  0xcd   :  { %v522_v32 = vpop.f32.mrf.mxu3 }
  0xce   :  { %619 = vmatmul.f32.gmra.mxu0 %v3326_v16  ;;  %v416_v11 = vadd.f32 %v415_v23, %v324_v12  ;;  %701 = vmatmul.f32.gmra.mxu1 %v3326_v16  ;;  %v889_v12 = vand.u32 4294901760, %v888_v41 }
  0xd0   :  { %v3589_v47 = vadd.f32 %v522_v32, %v416_v11  ;;  %882 = vmatmul.f32.gmra.mxu2 %v881_v36  ;;  %v4589_v32 = vand.u32 4294901760, %v3595_v1  ;;  %v3600_v36 = vand.u32 4294901760, %v771_v0 }
  0xd2   :  { %1002 = vmatmul.f32.gmra.mxu3 %v3546_v13  ;;  %v896_v41 = vsub.f32 %v3595_v1, %v4589_v32 }
  0xd3   :  { %v217_v2 = vpop.f32.mrf.mxu0  ;;  %v327_v16 = vpop.f32.mrf.mxu1 }
  0xd4   :  { %v420_v6 = vpop.f32.mrf.mxu2  ;;  %v328_v5 = vadd.f32 %v327_v16, %v217_v2  ;;  %v3613_v2 = vsub.f32 %v771_v0, %v3600_v36  ;;  %v774_v16 = vsel %vm733_vm3, %v46_v4, 0  ;;  %v897_v10 = vand.u32 4294901760, %v896_v41  ;;  %v47_v0 = vld [vmem:[%s4576_s0 + $0x70] sm:$0xff] }
  0xd5   :  { %v528_v23 = vpop.f32.mrf.mxu3 }
  0xd6   :  { %623 = vmatmul.f32.gmra.mxu0 %v3337_v27  ;;  %v421_v11 = vadd.f32 %v420_v6, %v328_v5  ;;  %705 = vmatmul.f32.gmra.mxu1 %v3337_v27 }
  0xd8   :  { %v3607_v44 = vadd.f32 %v528_v23, %v421_v11  ;;  %890 = vmatmul.f32.gmra.mxu2 %v889_v12  ;;  %v4592_v23 = vand.u32 4294901760, %v3613_v2  ;;  %v3618_v12 = vand.u32 4294901760, %v774_v16 }
  0xda   :  { %1006 = vmatmul.f32.gmra.mxu3 %v3564_v57  ;;  %v904_v41 = vsub.f32 %v3613_v2, %v4592_v23 }
  0xdb   :  { %v225_v6 = vpop.f32.mrf.mxu0  ;;  %v331_v27 = vpop.f32.mrf.mxu1 }
  0xdc   :  { %v425_v5 = vpop.f32.mrf.mxu2  ;;  %v332_v62 = vadd.f32 %v331_v27, %v225_v6  ;;  %v3631_v6 = vsub.f32 %v774_v16, %v3618_v12  ;;  %v905_v18 = vand.u32 4294901760, %v904_v41  ;;  %v48_v16 = vld [vmem:[%s4576_s0 + $0x78] sm:$0xff] }
  0xdd   :  { %v534_v49 = vpop.f32.mrf.mxu3 }
  0xde   :  { %627 = vmatmul.f32.gmra.mxu0 %v3349_v37  ;;  %v426_v11 = vadd.f32 %v425_v5, %v332_v62  ;;  %709 = vmatmul.f32.gmra.mxu1 %v3349_v37  ;;  %v777_v62 = vsel %vm733_vm3, %v47_v0, 0 }
  0xe0   :  { %v3625_v4 = vadd.f32 %v534_v49, %v426_v11  ;;  %898 = vmatmul.f32.gmra.mxu2 %v897_v10  ;;  %v4595_v49 = vand.u32 4294901760, %v3631_v6  ;;  %v3636_v10 = vand.u32 4294901760, %v777_v62 }
  0xe2   :  { %1010 = vmatmul.f32.gmra.mxu3 %v3582_v42  ;;  %v912_v41 = vsub.f32 %v3631_v6, %v4595_v49 }
  0xe3   :  { %v233_v27 = vpop.f32.mrf.mxu0  ;;  %v335_v37 = vpop.f32.mrf.mxu1 }
  0xe4   :  { %v430_v5 = vpop.f32.mrf.mxu2  ;;  %v336_v32 = vadd.f32 %v335_v37, %v233_v27  ;;  %v3649_v27 = vsub.f32 %v777_v62, %v3636_v10  ;;  %v913_v33 = vand.u32 4294901760, %v912_v41 }
  0xe5   :  { %v540_v24 = vpop.f32.mrf.mxu3 }
  0xe6   :  { %631 = vmatmul.f32.gmra.mxu0 %v3359_v46  ;;  %v431_v11 = vadd.f32 %v430_v5, %v336_v32  ;;  %713 = vmatmul.f32.gmra.mxu1 %v3359_v46  ;;  %v780_v32 = vsel %vm733_vm3, %v48_v16, 0  ;;  %vm3122_vm3 = vcmask 982912  }
  0xe8   :  { %v3643_v0 = vadd.f32 %v540_v24, %v431_v11  ;;  %906 = vmatmul.f32.gmra.mxu2 %v905_v18  ;;  %v4598_v24 = vand.u32 4294901760, %v3649_v27  ;;  %v3654_v18 = vand.u32 4294901760, %v780_v32 }
  0xea   :  { %1014 = vmatmul.f32.gmra.mxu3 %v3600_v36  ;;  %v920_v16 = vsub.f32 %v3649_v27, %v4598_v24 }
  0xeb   :  { %v241_v37 = vpop.f32.mrf.mxu0  ;;  %v339_v46 = vpop.f32.mrf.mxu1 }
  0xec   :  { %v435_v5 = vpop.f32.mrf.mxu2  ;;  %v340_v23 = vadd.f32 %v339_v46, %v241_v37  ;;  %v3664_v37 = vsub.f32 %v780_v32, %v3654_v18 }
  0xed   :  { %v546_v52 = vpop.f32.mrf.mxu3 }
  0xee   :  { %635 = vmatmul.f32.gmra.mxu0 %v3367_v51  ;;  %v436_v11 = vadd.f32 %v435_v5, %v340_v23  ;;  %717 = vmatmul.f32.gmra.mxu1 %v3367_v51  ;;  %v921_v23 = vand.u32 4294901760, %v920_v16  ;;  %v4599_v51 = vand.u32 4294901760, %v3664_v37 }
  0xf0   :  { %v3658_v62 = vadd.f32 %v546_v52, %v436_v11  ;;  %914 = vmatmul.f32.gmra.mxu2 %v913_v33  ;;  %v928_v32 = vsub.f32 %v3664_v37, %v4599_v51 }
  0xf2   :  { %1018 = vmatmul.f32.gmra.mxu3 %v3618_v12  ;;  %v929_v24 = vand.u32 4294901760, %v928_v32 }
  0xf3   :  { %v249_v41 = vpop.f32.mrf.mxu0  ;;  %v343_v46 = vpop.f32.mrf.mxu1 }
  0xf4   :  { %v440_v49 = vpop.f32.mrf.mxu2  ;;  %v344_v8 = vadd.f32 %v343_v46, %v249_v41 }
  0xf5   :  { %v552_v53 = vpop.f32.mrf.mxu3 }
  0xf6   :  { %639 = vmatmul.f32.gmra.mxu0 %v3375_v59  ;;  %v441_v33 = vadd.f32 %v440_v49, %v344_v8  ;;  %721 = vmatmul.f32.gmra.mxu1 %v3375_v59 }
  0xf8   :  { %v3670_v52 = vadd.f32 %v552_v53, %v441_v33  ;;  %922 = vmatmul.f32.gmra.mxu2 %v921_v23  ;;  %v1466_v33 = vld [vmem:[%s4581_s5 + $0x38] sm:$0xff] }
  0xf9   :  { %v3684_v32 = vand.u32 4294901760, %v1466_v33 }
  0xfa   :  { %1022 = vmatmul.f32.gmra.mxu3 %v3636_v10 }
  0xfb   :  { %v257_v5 = vpop.f32.mrf.mxu0  ;;  %v347_v11 = vpop.f32.mrf.mxu1  ;;  %1529 = vmatpush.msrb.mxu0 %v3684_v32  ;;  %1916 = vmatpush.msrb.mxu3 %v3684_v32 }
  0xfc   :  { %v445_v41 = vpop.f32.mrf.mxu2  ;;  %v348_v16 = vadd.f32 %v347_v11, %v257_v5 }
  0xfd   :  { %v558_v46 = vpop.f32.mrf.mxu3 }
  0xfe   :  { %643 = vmatmul.f32.gmra.mxu0 %v3383_v3  ;;  %v446_v8 = vadd.f32 %v445_v41, %v348_v16  ;;  %725 = vmatmul.f32.gmra.mxu1 %v3383_v3  ;;  %v3690_v3 = vsub.f32 %v1466_v33, %v3684_v32 }
 0x100   :  { %v3678_v59 = vadd.f32 %v558_v46, %v446_v8  ;;  %930 = vmatmul.f32.gmra.mxu2 %v929_v24  ;;  %v4605_v16 = vand.u32 4294901760, %v3690_v3 }
 0x101   :  { %1804 = vmatpush.msrb.mxu2 %v3690_v3 }
 0x102   :  { %4606 = vst [vmem:[#allocation5_spill] sm:$0xff] %v3678_v59  ;;  %1026 = vmatmul.f32.gmra.mxu3 %v3654_v18 }
 0x103   :  { %v265_v53 = vpop.f32.mrf.mxu0  ;;  %v351_v49 = vpop.f32.mrf.mxu1 }
 0x104   :  { %v450_v23 = vpop.f32.mrf.mxu2  ;;  %v352_v5 = vadd.f32 %v351_v49, %v265_v53 }
 0x105   :  { %v564_v11 = vpop.f32.mrf.mxu3 }
 0x106   :  { %647 = vmatmul.f32.gmra.mxu0 %v3394_v17  ;;  %v451_v41 = vadd.f32 %v450_v23, %v352_v5  ;;  %729 = vmatmul.f32.gmra.mxu1 %v3394_v17  ;;  %v1684_v17 = vsub.f32 %v3690_v3, %v4605_v16 }
 0x108   :  { %v3693_v24 = vadd.f32 %v564_v11, %v451_v41  ;;  %1275 = vmatmul.f32.vlgmr.msra.gmra.mxu2 %v3397_v19  ;;  %v1685_v33 = vand.u32 4294901760, %v1684_v17  ;;  %v1465_v17 = vld [vmem:[%s4581_s5 + $0x30] sm:$0xff] }
 0x10a   :  { %4607 = vst [vmem:[#allocation6_spill] sm:$0xff] %v3693_v24  ;;  %1359 = vmatmul.f32.vlgmr.msra.gmra.mxu3 %v3397_v19  ;;  %1686 = vmatpush.msrb.mxu1 %v1685_v33 }
 0x10b   :  { %v588_v46 = vpop.f32.mrf.mxu0  ;;  %v670_v53 = vpop.f32.mrf.mxu1 }
 0x10c   :  { %v589_v8 = vadd.f32 %v588_v46, %v3445_v58  ;;  %v811_v49 = vpop.f32.mrf.mxu2 }
 0x10d   :  { %v967_v23 = vpop.f32.mrf.mxu3 }
 0x10e   :  { %v671_v5 = vadd.f32 %v670_v53, %v589_v8  ;;  %1054 = vmatmul.f32.vlgmr.msra.gmra.mxu0 %v3405_v25  ;;  %1155 = vmatmul.f32.vlgmr.msra.gmra.mxu1 %v807_v30  ;;  %v3714_v25 = vand.u32 4294901760, %v1465_v17 }
 0x110   :  { %v812_v19 = vadd.f32 %v811_v49, %v671_v5  ;;  %1279 = vmatmul.f32.gmra.mxu2 %v3409_v31  ;;  %1531 = vmatpush.msrb.mxu0 %v3714_v25 }
 0x111   :  { %1918 = vmatpush.msrb.mxu3 %v3714_v25 }
 0x112   :  { %v3707_v11 = vadd.f32 %v967_v23, %v812_v19  ;;  %1363 = vmatmul.f32.gmra.mxu3 %v3409_v31  ;;  %v3721_v31 = vsub.f32 %v1465_v17, %v3714_v25 }
 0x113   :  { %v592_v41 = vpop.f32.mrf.mxu0  ;;  %v674_v46 = vpop.f32.mrf.mxu1 }
 0x114   :  { %v593_v58 = vadd.f32 %v592_v41, %v3463_v14  ;;  %v819_v51 = vpop.f32.mrf.mxu2  ;;  %v4604_v53 = vand.u32 4294901760, %v3721_v31  ;;  %1807 = vmatpush.msrb.mxu2 %v3721_v31  ;;  %v4621_v59 = vand.u32 4294901760, %v3721_v31 }
 0x115   :  { %v971_v8 = vpop.f32.mrf.mxu3 }
 0x116   :  { %v675_v30 = vadd.f32 %v674_v46, %v593_v58  ;;  %1059 = vmatmul.f32.gmra.mxu0 %v3419_v20  ;;  %1161 = vmatmul.f32.gmra.mxu1 %v815_v39  ;;  %v1690_v39 = vsub.f32 %v3721_v31, %v4604_v53  ;;  %v4608_v58 = vand.u32 4294901760, %v3433_v45 }
 0x118   :  { %v820_v14 = vadd.f32 %v819_v51, %v675_v30  ;;  %1283 = vmatmul.f32.gmra.mxu2 %v3423_v40  ;;  %v1691_v19 = vand.u32 4294901760, %v1690_v39 }
 0x11a   :  { %v3726_v49 = vadd.f32 %v971_v8, %v820_v14  ;;  %1367 = vmatmul.f32.gmra.mxu3 %v3423_v40  ;;  %1692 = vmatpush.msrb.mxu1 %v1691_v19  ;;  %v1464_v14 = vld [vmem:[%s4581_s5 + $0x28] sm:$0xff] }
 0x11b   :  { %v596_v20 = vpop.f32.mrf.mxu0  ;;  %v678_v51 = vpop.f32.mrf.mxu1 }
 0x11c   :  { %v597_v23 = vadd.f32 %v596_v20, %v3481_v38  ;;  %v827_v33 = vpop.f32.mrf.mxu2 }
 0x11d   :  { %v975_v5 = vpop.f32.mrf.mxu3 }
 0x11e   :  { %v679_v41 = vadd.f32 %v678_v51, %v597_v23  ;;  %1064 = vmatmul.f32.gmra.mxu0 %v3433_v45  ;;  %1167 = vmatmul.f32.gmra.mxu1 %v4608_v58  ;;  %v3745_v45 = vand.u32 4294901760, %v1464_v14  ;;  %v4609_v23 = vand.u32 4294901760, %v3451_v61 }
 0x120   :  { %v828_v40 = vadd.f32 %v827_v33, %v679_v41  ;;  %1287 = vmatmul.f32.gmra.mxu2 %v3438_v54  ;;  %1533 = vmatpush.msrb.mxu0 %v3745_v45 }
 0x121   :  { %1920 = vmatpush.msrb.mxu3 %v3745_v45 }
 0x122   :  { %v3738_v46 = vadd.f32 %v975_v5, %v828_v40  ;;  %1371 = vmatmul.f32.gmra.mxu3 %v3438_v54  ;;  %v3752_v54 = vsub.f32 %v1464_v14, %v3745_v45 }
 0x123   :  { %v600_v17 = vpop.f32.mrf.mxu0  ;;  %v682_v8 = vpop.f32.mrf.mxu1 }
 0x124   :  { %v601_v38 = vadd.f32 %v600_v17, %v3499_v63  ;;  %v835_v30 = vpop.f32.mrf.mxu2  ;;  %v4603_v51 = vand.u32 4294901760, %v3752_v54  ;;  %1810 = vmatpush.msrb.mxu2 %v3752_v54 }
 0x125   :  { %v979_v20 = vpop.f32.mrf.mxu3 }
 0x126   :  { %v683_v39 = vadd.f32 %v682_v8, %v601_v38  ;;  %1069 = vmatmul.f32.gmra.mxu0 %v3451_v61  ;;  %1173 = vmatmul.f32.gmra.mxu1 %v4609_v23  ;;  %v1696_v5 = vsub.f32 %v3752_v54, %v4603_v51  ;;  %v4610_v8 = vand.u32 4294901760, %v3469_v21  ;;  %v1463_v23 = vld [vmem:[%s4581_s5 + $0x20] sm:$0xff] }
 0x128   :  { %v836_v63 = vadd.f32 %v835_v30, %v683_v39  ;;  %1291 = vmatmul.f32.gmra.mxu2 %v3456_v9  ;;  %v1697_v17 = vand.u32 4294901760, %v1696_v5  ;;  %v4611_v5 = vand.u32 4294901760, %v3487_v43 }
 0x12a   :  { %v3757_v33 = vadd.f32 %v979_v20, %v836_v63  ;;  %1375 = vmatmul.f32.gmra.mxu3 %v3456_v9  ;;  %1698 = vmatpush.msrb.mxu1 %v1697_v17 }
 0x12b   :  { %v604_v61 = vpop.f32.mrf.mxu0  ;;  %v686_v41 = vpop.f32.mrf.mxu1 }
 0x12c   :  { %v605_v19 = vadd.f32 %v604_v61, %v3517_v26  ;;  %v843_v58 = vpop.f32.mrf.mxu2 }
 0x12d   :  { %v983_v40 = vpop.f32.mrf.mxu3 }
 0x12e   :  { %v687_v38 = vadd.f32 %v686_v41, %v605_v19  ;;  %1074 = vmatmul.f32.gmra.mxu0 %v3469_v21  ;;  %1179 = vmatmul.f32.gmra.mxu1 %v4610_v8  ;;  %v3776_v21 = vand.u32 4294901760, %v1463_v23 }
 0x130   :  { %v844_v9 = vadd.f32 %v843_v58, %v687_v38  ;;  %1295 = vmatmul.f32.gmra.mxu2 %v3474_v15  ;;  %1535 = vmatpush.msrb.mxu0 %v3776_v21 }
 0x131   :  { %1922 = vmatpush.msrb.mxu3 %v3776_v21 }
 0x132   :  { %v3769_v30 = vadd.f32 %v983_v40, %v844_v9  ;;  %1379 = vmatmul.f32.gmra.mxu3 %v3474_v15  ;;  %v3783_v15 = vsub.f32 %v1463_v23, %v3776_v21 }
 0x133   :  { %v608_v14 = vpop.f32.mrf.mxu0  ;;  %v690_v20 = vpop.f32.mrf.mxu1 }
 0x134   :  { %v609_v26 = vadd.f32 %v608_v14, %v3535_v50  ;;  %v851_v39 = vpop.f32.mrf.mxu2  ;;  %v4602_v19 = vand.u32 4294901760, %v3783_v15  ;;  %1813 = vmatpush.msrb.mxu2 %v3783_v15 }
 0x135   :  { %v987_v63 = vpop.f32.mrf.mxu3 }
 0x136   :  { %v691_v61 = vadd.f32 %v690_v20, %v609_v26  ;;  %1079 = vmatmul.f32.gmra.mxu0 %v3487_v43  ;;  %1185 = vmatmul.f32.gmra.mxu1 %v4611_v5  ;;  %v1702_v58 = vsub.f32 %v3783_v15, %v4602_v19  ;;  %v4612_v26 = vand.u32 4294901760, %v3505_v7 }
 0x138   :  { %v852_v50 = vadd.f32 %v851_v39, %v691_v61  ;;  %1299 = vmatmul.f32.gmra.mxu2 %v3492_v56  ;;  %v1703_v9 = vand.u32 4294901760, %v1702_v58  ;;  %v1462_v61 = vld [vmem:[%s4581_s5 + $0x18] sm:$0xff] }
 0x13a   :  { %v3788_v41 = vadd.f32 %v987_v63, %v852_v50  ;;  %1383 = vmatmul.f32.gmra.mxu3 %v3492_v56  ;;  %1704 = vmatpush.msrb.mxu1 %v1703_v9 }
 0x13b   :  { %v612_v43 = vpop.f32.mrf.mxu0  ;;  %v694_v17 = vpop.f32.mrf.mxu1 }
 0x13c   :  { %v613_v40 = vadd.f32 %v612_v43, %v3553_v28  ;;  %v859_v38 = vpop.f32.mrf.mxu2  ;;  %v4613_v43 = vand.u32 4294901760, %v3523_v29 }
 0x13d   :  { %v991_v8 = vpop.f32.mrf.mxu3 }
 0x13e   :  { %v695_v14 = vadd.f32 %v694_v17, %v613_v40  ;;  %1084 = vmatmul.f32.gmra.mxu0 %v3505_v7  ;;  %1191 = vmatmul.f32.gmra.mxu1 %v4612_v26  ;;  %v3807_v7 = vand.u32 4294901760, %v1462_v61  ;;  %v4614_v26 = vand.u32 4294901760, %v3541_v60 }
 0x140   :  { %v860_v56 = vadd.f32 %v859_v38, %v695_v14  ;;  %1303 = vmatmul.f32.gmra.mxu2 %v3510_v22  ;;  %1537 = vmatpush.msrb.mxu0 %v3807_v7 }
 0x141   :  { %1924 = vmatpush.msrb.mxu3 %v3807_v7 }
 0x142   :  { %v3800_v20 = vadd.f32 %v991_v8, %v860_v56  ;;  %1387 = vmatmul.f32.gmra.mxu3 %v3510_v22  ;;  %v3814_v22 = vsub.f32 %v1462_v61, %v3807_v7 }
 0x143   :  { %v616_v39 = vpop.f32.mrf.mxu0  ;;  %v698_v23 = vpop.f32.mrf.mxu1 }
 0x144   :  { %v617_v28 = vadd.f32 %v616_v39, %v3571_v55  ;;  %v867_v63 = vpop.f32.mrf.mxu2  ;;  %v4601_v58 = vand.u32 4294901760, %v3814_v22  ;;  %1816 = vmatpush.msrb.mxu2 %v3814_v22 }
 0x145   :  { %v995_v5 = vpop.f32.mrf.mxu3 }
 0x146   :  { %v699_v50 = vadd.f32 %v698_v23, %v617_v28  ;;  %1089 = vmatmul.f32.gmra.mxu0 %v3523_v29  ;;  %1197 = vmatmul.f32.gmra.mxu1 %v4613_v43  ;;  %v1708_v17 = vsub.f32 %v3814_v22, %v4601_v58  ;;  %v1461_v28 = vld [vmem:[%s4581_s5 + $0x10] sm:$0xff] }
 0x148   :  { %v868_v55 = vadd.f32 %v867_v63, %v699_v50  ;;  %1307 = vmatmul.f32.gmra.mxu2 %v3528_v48  ;;  %v1709_v14 = vand.u32 4294901760, %v1708_v17  ;;  %v3850_v63 = vand.u32 4294901760, %v1461_v28 }
 0x14a   :  { %v3819_v40 = vadd.f32 %v995_v5, %v868_v55  ;;  %1391 = vmatmul.f32.gmra.mxu3 %v3528_v48  ;;  %1710 = vmatpush.msrb.mxu1 %v1709_v14  ;;  %v4616_v14 = vand.u32 4294901760, %v3577_v35 }
 0x14b   :  { %v3823_v29 = vpop.f32.mrf.mxu0  ;;  %v3828_v38 = vpop.f32.mrf.mxu1  ;;  %1539 = vmatpush.msrb.mxu0 %v3850_v63  ;;  %1926 = vmatpush.msrb.mxu3 %v3850_v63 }
 0x14c   :  { %v3830_v8 = vpop.f32.mrf.mxu2 }
 0x14d   :  { %v3832_v9 = vpop.f32.mrf.mxu3 }
 0x14e   :  { %1094 = vmatmul.f32.gmra.mxu0 %v3541_v60  ;;  %1203 = vmatmul.f32.gmra.mxu1 %v4614_v26  ;;  %v4615_v60 = vand.u32 4294901760, %v3559_v34 }
 0x150   :  { %1311 = vmatmul.f32.gmra.mxu2 %v3546_v13 }
 0x152   :  { %1395 = vmatmul.f32.gmra.mxu3 %v3546_v13  ;;  %v3857_v13 = vsub.f32 %v1461_v28, %v3850_v63 }
 0x153   :  { %v3839_v48 = vpop.f32.mrf.mxu0  ;;  %v3841_v56 = vpop.f32.mrf.mxu1 }
 0x154   :  { %v3843_v39 = vpop.f32.mrf.mxu2  ;;  %v4600_v61 = vand.u32 4294901760, %v3857_v13  ;;  %1819 = vmatpush.msrb.mxu2 %v3857_v13 }
 0x155   :  { %v3848_v23 = vpop.f32.mrf.mxu3 }
 0x156   :  { %1099 = vmatmul.f32.gmra.mxu0 %v3559_v34  ;;  %1209 = vmatmul.f32.gmra.mxu1 %v4615_v60  ;;  %v1714_v34 = vsub.f32 %v3857_v13, %v4600_v61  ;;  %v1460_v60 = vld [vmem:[%s4581_s5 + $0x8] sm:$0xff] }
 0x157   :  { %v3891_v61 = vand.u32 4294901760, %v1460_v60 }
 0x158   :  { %1315 = vmatmul.f32.gmra.mxu2 %v3564_v57  ;;  %v1715_v17 = vand.u32 4294901760, %v1714_v34 }
 0x159   :  { %1541 = vmatpush.msrb.mxu0 %v3891_v61  ;;  %1928 = vmatpush.msrb.mxu3 %v3891_v61 }
 0x15a   :  { %1399 = vmatmul.f32.gmra.mxu3 %v3564_v57  ;;  %1716 = vmatpush.msrb.mxu1 %v1715_v17 }
 0x15b   :  { %v3864_v5 = vpop.f32.mrf.mxu0  ;;  %v3869_v50 = vpop.f32.mrf.mxu1 }
 0x15c   :  { %v3871_v43 = vpop.f32.mrf.mxu2 }
 0x15d   :  { %v3873_v55 = vpop.f32.mrf.mxu3 }
 0x15e   :  { %1104 = vmatmul.f32.gmra.mxu0 %v3577_v35  ;;  %1215 = vmatmul.f32.gmra.mxu1 %v4616_v14  ;;  %v4617_v35 = vand.u32 4294901760, %v3595_v1 }
 0x160   :  { %1319 = vmatmul.f32.gmra.mxu2 %v3582_v42 }
 0x162   :  { %1403 = vmatmul.f32.gmra.mxu3 %v3582_v42  ;;  %v1718_v42 = vsub.f32 %v1460_v60, %v3891_v61  ;;  %v4618_v60 = vand.u32 4294901760, %v3613_v2 }
 0x163   :  { %v3880_v57 = vpop.f32.mrf.mxu0  ;;  %v3882_v26 = vpop.f32.mrf.mxu1 }
 0x164   :  { %v3884_v28 = vpop.f32.mrf.mxu2  ;;  %v1719_v17 = vand.u32 4294901760, %v1718_v42  ;;  %1822 = vmatpush.msrb.mxu2 %v1718_v42 }
 0x165   :  { %v3889_v34 = vpop.f32.mrf.mxu3 }
 0x166   :  { %1109 = vmatmul.f32.gmra.mxu0 %v3595_v1  ;;  %1221 = vmatmul.f32.gmra.mxu1 %v4617_v35  ;;  %v1720_v58 = vsub.f32 %v1718_v42, %v1719_v17 }
 0x168   :  { %1323 = vmatmul.f32.gmra.mxu2 %v3600_v36  ;;  %v1721_v35 = vand.u32 4294901760, %v1720_v58  ;;  %v4619_v58 = vand.u32 4294901760, %v3690_v3  ;;  %v4623_v3 = vand.u32 4294901760, %v3752_v54 }
 0x16a   :  { %1407 = vmatmul.f32.gmra.mxu3 %v3600_v36  ;;  %v1459_v36 = vld [vmem:[%s4581_s5] sm:$0xff]  ;;  %1722 = vmatpush.msrb.mxu1 %v1721_v35 }
 0x16b   :  { %v3901_v14 = vpop.f32.mrf.mxu0  ;;  %v3903_v19 = vpop.f32.mrf.mxu1  ;;  %v1542_v53 = vand.u32 4294901760, %v1459_v36 }
 0x16c   :  { %v3905_v51 = vpop.f32.mrf.mxu2 }
 0x16d   :  { %v3907_v1 = vpop.f32.mrf.mxu3  ;;  %1543 = vmatpush.msrb.mxu0 %v1542_v53  ;;  %v1724_v42 = vsub.f32 %v1459_v36, %v1542_v53  ;;  %1930 = vmatpush.msrb.mxu3 %v1542_v53  ;;  %v4622_v36 = vand.u32 4294901760, %v3631_v6 }
 0x16e   :  { %1114 = vmatmul.f32.gmra.mxu0 %v3613_v2  ;;  %1227 = vmatmul.f32.gmra.mxu1 %v4618_v60 }
 0x16f   :  { %2039 = vmatpush.msra.mxu0 %v4619_v58  ;;  %v1725_v24 = vand.u32 4294901760, %v1724_v42  ;;  %1825 = vmatpush.msrb.mxu2 %v1724_v42 }
 0x170   :  { %1327 = vmatmul.f32.gmra.mxu2 %v3618_v12 }
 0x171   :  { %2043 = vmatpush.msra.mxu0 %v4621_v59  ;;  %v4625_v59 = vand.u32 4294901760, %v3814_v22 }
 0x172   :  { %1411 = vmatmul.f32.gmra.mxu3 %v3618_v12  ;;  %v1726_v12 = vsub.f32 %v1724_v42, %v1725_v24 }
 0x173   :  { %v3917_v16 = vpop.f32.mrf.mxu0  ;;  %v3921_v2 = vpop.f32.mrf.mxu1  ;;  %2047 = vmatpush.msra.mxu0 %v4623_v3 }
 0x174   :  { %v3923_v60 = vpop.f32.mrf.mxu2  ;;  %v1727_v58 = vand.u32 4294901760, %v1726_v12  ;;  %v3977_v12 = vld [vmem:[%s4580_s4] ss:$0 sm:$0xff] }
 0x175   :  { %4620 = vst [vmem:[#allocation7_spill] sm:$0xff] %v3923_v60  ;;  %v3925_v35 = vpop.f32.mrf.mxu3  ;;  %v4624_v60 = vand.u32 4294901760, %v3783_v15  ;;  %v4626_v15 = vand.u32 4294901760, %v3857_v13 }
 0x176   :  { %1119 = vmatmul.f32.gmra.mxu0 %v3631_v6  ;;  %1233 = vmatmul.f32.gmra.mxu1 %v4622_v36 }
 0x177   :  { %2051 = vmatpush.msra.mxu0 %v4624_v60  ;;  %1728 = vmatpush.msrb.mxu1 %v1727_v58 }
 0x178   :  { %1331 = vmatmul.f32.gmra.mxu2 %v3636_v10 }
 0x179   :  { %2142 = vmatpush.msra.mxu1 %v3684_v32  ;;  %2055 = vmatpush.msra.mxu0 %v4625_v59 }
 0x17a   :  { %1415 = vmatmul.f32.gmra.mxu3 %v3636_v10  ;;  %v4627_v10 = vand.u32 4294901760, %v3649_v27 }
 0x17b   :  { %v3938_v31 = vpop.f32.mrf.mxu0  ;;  %v3943_v6 = vpop.f32.mrf.mxu1  ;;  %2144 = vmatpush.msra.mxu1 %v3714_v25  ;;  %2059 = vmatpush.msra.mxu0 %v4626_v15 }
 0x17c   :  { %v3945_v54 = vpop.f32.mrf.mxu2 }
 0x17d   :  { %v3947_v42 = vpop.f32.mrf.mxu3  ;;  %2063 = vmatpush.msra.mxu0 %v1719_v17  ;;  %2146 = vmatpush.msra.mxu1 %v3745_v45 }
 0x17e   :  { %1124 = vmatmul.f32.gmra.mxu0 %v3649_v27  ;;  %1239 = vmatmul.f32.gmra.mxu1 %v4627_v10 }
 0x17f   :  { %2067 = vmatpush.msra.mxu0 %v1725_v24  ;;  %2148 = vmatpush.msra.mxu1 %v3776_v21  ;;  %v4628_v24 = vand.u32 4294901760, %v3664_v37 }
 0x180   :  { %1335 = vmatmul.f32.gmra.mxu2 %v3654_v18 }
 0x181   :  { %2150 = vmatpush.msra.mxu1 %v3807_v7 }
 0x182   :  { %1419 = vmatmul.f32.gmra.mxu3 %v3654_v18 }
 0x183   :  { %v3959_v32 = vpop.f32.mrf.mxu0  ;;  %v3961_v25 = vpop.f32.mrf.mxu1  ;;  %2152 = vmatpush.msra.mxu1 %v3850_v63 }
 0x184   :  { %v3963_v22 = vpop.f32.mrf.mxu2 }
 0x185   :  { %v3966_v27 = vpop.f32.mrf.mxu3  ;;  %2154 = vmatpush.msra.mxu1 %v3891_v61 }
 0x186   :  { %1129 = vmatmul.f32.gmra.mxu0 %v3664_v37  ;;  %1245 = vmatmul.f32.gmra.mxu1 %v4628_v24 }
 0x187   :  { %2156 = vmatpush.msra.mxu1 %v1542_v53 }
 0x18b   :  { %v1055_v18 = vpop.f32.mrf.mxu0  ;;  %v1156_v21 = vpop.f32.mrf.mxu1 }
 0x18c   :  { %v1056_v45 = vadd.f32 %v1055_v18, %v3707_v11  ;;  %v1276_v13 = vpop.f32.mrf.mxu2 }
 0x18d   :  { %v1360_v17 = vpop.f32.mrf.mxu3 }
 0x18e   :  { %v1157_v60 = vadd.f32 %v1156_v21, %v1056_v45 }
 0x190   :  { %v1277_v7 = vadd.f32 %v1276_v13, %v1157_v60 }
 0x192   :  { %v1361_v63 = vadd.f32 %v1360_v17, %v1277_v7 }
 0x193   :  { %v1060_v36 = vpop.f32.mrf.mxu0  ;;  %v1162_v53 = vpop.f32.mrf.mxu1 }
 0x194   :  { %v1427_v37 = vadd.f32 %v3977_v12, %v1361_v63  ;;  %v1061_v61 = vadd.f32 %v1060_v36, %v3726_v49  ;;  %v1280_v3 = vpop.f32.mrf.mxu2 }
 0x195   :  { %v1364_v11 = vpop.f32.mrf.mxu3 }
 0x196   :  { %v1443_v58 = vmax.f32 %v1427_v37, 0.0  ;;  %v1163_v59 = vadd.f32 %v1162_v53, %v1061_v61 }
 0x198   :  { %v1473_v15 = vsel %vm1471_vm4, %v1443_v58, 0  ;;  %v1281_v10 = vadd.f32 %v1280_v3, %v1163_v59 }
 0x199   :  { %v3982_v24 = vand.u32 4294901760, %v1473_v15 }
 0x19a   :  { %v1365_v18 = vadd.f32 %v1364_v11, %v1281_v10 }
 0x19b   :  { %v1545_v45 = vsub.f32 %v1473_v15, %v3982_v24  ;;  %v1065_v21 = vpop.f32.mrf.mxu0  ;;  %1730 = vmatmul.f32.vlgmr.msrb.gmra.mxu1 %v3982_v24  ;;  %v1168_v17 = vpop.f32.mrf.mxu1 }
 0x19c   :  { %v1428_v13 = vadd.f32 %v3977_v12, %v1365_v18  ;;  %v1066_v49 = vadd.f32 %v1065_v21, %v3738_v46  ;;  %v1284_v60 = vpop.f32.mrf.mxu2 }
 0x19d   :  { %v1546_v7 = vand.u32 4294901760, %v1545_v45  ;;  %1828 = vmatmul.f32.vlgmr.msrb.gmra.mxu2 %v1545_v45  ;;  %v1368_v63 = vpop.f32.mrf.mxu3 }
 0x19e   :  { %v1444_v36 = vmax.f32 %v1428_v13, 0.0  ;;  %v1169_v37 = vadd.f32 %v1168_v17, %v1066_v49 }
 0x19f   :  { %v1547_v61 = vsub.f32 %v1545_v45, %v1546_v7  ;;  %1934 = vmatmul.f32.vlgmr.msrb.gmra.mxu3 %v1546_v7 }
 0x1a0   :  { %v1476_v53 = vsel %vm1471_vm4, %v1444_v36, 0  ;;  %v1285_v3 = vadd.f32 %v1284_v60, %v1169_v37 }
 0x1a1   :  { %v3989_v11 = vand.u32 4294901760, %v1476_v53  ;;  %v1548_v58 = vand.u32 4294901760, %v1547_v61 }
 0x1a2   :  { %v1369_v59 = vadd.f32 %v1368_v63, %v1285_v3 }
 0x1a3   :  { %v1070_v15 = vpop.f32.mrf.mxu0  ;;  %1549 = vmatmul.f32.vlgmr.msrb.gmra.mxu0 %v1548_v58  ;;  %1734 = vmatmul.f32.gmra.mxu1 %v3989_v11  ;;  %v1553_v46 = vsub.f32 %v1476_v53, %v3989_v11  ;;  %v1174_v21 = vpop.f32.mrf.mxu1 }
 0x1a4   :  { %v1429_v10 = vadd.f32 %v3977_v12, %v1369_v59  ;;  %v1071_v18 = vadd.f32 %v1070_v15, %v3757_v33  ;;  %v1288_v45 = vpop.f32.mrf.mxu2 }
 0x1a5   :  { %1833 = vmatmul.f32.gmra.mxu2 %v1553_v46  ;;  %v1554_v13 = vand.u32 4294901760, %v1553_v46  ;;  %v1372_v49 = vpop.f32.mrf.mxu3 }
 0x1a6   :  { %v1445_v17 = vmax.f32 %v1429_v10, 0.0  ;;  %v1175_v60 = vadd.f32 %v1174_v21, %v1071_v18 }
 0x1a7   :  { %1940 = vmatmul.f32.gmra.mxu3 %v1554_v13  ;;  %v1555_v7 = vsub.f32 %v1553_v46, %v1554_v13 }
 0x1a8   :  { %v1479_v63 = vsel %vm1471_vm4, %v1445_v17, 0  ;;  %v1289_v36 = vadd.f32 %v1288_v45, %v1175_v60 }
 0x1a9   :  { %v3996_v37 = vand.u32 4294901760, %v1479_v63  ;;  %v1556_v61 = vand.u32 4294901760, %v1555_v7 }
 0x1aa   :  { %v1373_v53 = vadd.f32 %v1372_v49, %v1289_v36 }
 0x1ab   :  { %v1075_v3 = vpop.f32.mrf.mxu0  ;;  %1557 = vmatmul.f32.gmra.mxu0 %v1556_v61  ;;  %1738 = vmatmul.f32.gmra.mxu1 %v3996_v37  ;;  %v1561_v33 = vsub.f32 %v1479_v63, %v3996_v37  ;;  %v1180_v15 = vpop.f32.mrf.mxu1 }
 0x1ac   :  { %v1430_v58 = vadd.f32 %v3977_v12, %v1373_v53  ;;  %v1076_v59 = vadd.f32 %v1075_v3, %v3769_v30  ;;  %v1292_v10 = vpop.f32.mrf.mxu2 }
 0x1ad   :  { %1838 = vmatmul.f32.gmra.mxu2 %v1561_v33  ;;  %v1562_v46 = vand.u32 4294901760, %v1561_v33  ;;  %v1376_v18 = vpop.f32.mrf.mxu3 }
 0x1ae   :  { %v1446_v21 = vmax.f32 %v1430_v58, 0.0  ;;  %v1181_v45 = vadd.f32 %v1180_v15, %v1076_v59 }
 0x1af   :  { %1946 = vmatmul.f32.gmra.mxu3 %v1562_v46  ;;  %v1563_v13 = vsub.f32 %v1561_v33, %v1562_v46 }
 0x1b0   :  { %v1482_v49 = vsel %vm1471_vm4, %v1446_v21, 0  ;;  %v1293_v17 = vadd.f32 %v1292_v10, %v1181_v45 }
 0x1b1   :  { %v4003_v60 = vand.u32 4294901760, %v1482_v49  ;;  %v1564_v7 = vand.u32 4294901760, %v1563_v13 }
 0x1b2   :  { %v1377_v63 = vadd.f32 %v1376_v18, %v1293_v17 }
 0x1b3   :  { %v1080_v36 = vpop.f32.mrf.mxu0  ;;  %1565 = vmatmul.f32.gmra.mxu0 %v1564_v7  ;;  %1742 = vmatmul.f32.gmra.mxu1 %v4003_v60  ;;  %v1569_v30 = vsub.f32 %v1482_v49, %v4003_v60  ;;  %v1186_v3 = vpop.f32.mrf.mxu1 }
 0x1b4   :  { %v1431_v61 = vadd.f32 %v3977_v12, %v1377_v63  ;;  %v1081_v53 = vadd.f32 %v1080_v36, %v3788_v41  ;;  %v1296_v58 = vpop.f32.mrf.mxu2 }
 0x1b5   :  { %1843 = vmatmul.f32.gmra.mxu2 %v1569_v30  ;;  %v1570_v33 = vand.u32 4294901760, %v1569_v30  ;;  %v1380_v59 = vpop.f32.mrf.mxu3 }
 0x1b6   :  { %v1447_v15 = vmax.f32 %v1431_v61, 0.0  ;;  %v1187_v10 = vadd.f32 %v1186_v3, %v1081_v53  ;;  %v621_v3 = vadd.f32 %v3823_v29, %v3589_v47 }
 0x1b7   :  { %1952 = vmatmul.f32.gmra.mxu3 %v1570_v33  ;;  %v1571_v46 = vsub.f32 %v1569_v30, %v1570_v33 }
 0x1b8   :  { %v1485_v18 = vsel %vm1471_vm4, %v1447_v15, 0  ;;  %v1297_v21 = vadd.f32 %v1296_v58, %v1187_v10 }
 0x1b9   :  { %v4010_v45 = vand.u32 4294901760, %v1485_v18  ;;  %v1572_v13 = vand.u32 4294901760, %v1571_v46 }
 0x1ba   :  { %v1381_v49 = vadd.f32 %v1380_v59, %v1297_v21 }
 0x1bb   :  { %v1085_v17 = vpop.f32.mrf.mxu0  ;;  %1573 = vmatmul.f32.gmra.mxu0 %v1572_v13  ;;  %1746 = vmatmul.f32.gmra.mxu1 %v4010_v45  ;;  %v1577_v41 = vsub.f32 %v1485_v18, %v4010_v45  ;;  %v1192_v36 = vpop.f32.mrf.mxu1 }
 0x1bc   :  { %v1432_v7 = vadd.f32 %v3977_v12, %v1381_v49  ;;  %v1086_v63 = vadd.f32 %v1085_v17, %v3800_v20  ;;  %v1300_v61 = vpop.f32.mrf.mxu2  ;;  %v703_v20 = vadd.f32 %v3828_v38, %v621_v3  ;;  %v625_v38 = vadd.f32 %v3839_v48, %v3607_v44 }
 0x1bd   :  { %1848 = vmatmul.f32.gmra.mxu2 %v1577_v41  ;;  %v1578_v30 = vand.u32 4294901760, %v1577_v41  ;;  %v1384_v53 = vpop.f32.mrf.mxu3 }
 0x1be   :  { %v1448_v58 = vmax.f32 %v1432_v7, 0.0  ;;  %v1193_v33 = vadd.f32 %v1192_v36, %v1086_v63  ;;  %v876_v36 = vadd.f32 %v3830_v8, %v703_v20 }
 0x1bf   :  { %1958 = vmatmul.f32.gmra.mxu3 %v1578_v30  ;;  %v1579_v59 = vsub.f32 %v1577_v41, %v1578_v30 }
 0x1c0   :  { %v1488_v15 = vsel %vm1471_vm4, %v1448_v58, 0  ;;  %v1301_v10 = vadd.f32 %v1300_v61, %v1193_v33 }
 0x1c1   :  { %v4019_v46 = vand.u32 4294901760, %v1488_v15  ;;  %v1580_v18 = vand.u32 4294901760, %v1579_v59  ;;  %v1000_v59 = vadd.f32 %v3832_v9, %v876_v36  ;;  %v629_v9 = vadd.f32 %v3864_v5, %v3625_v4 }
 0x1c2   :  { %v1385_v21 = vadd.f32 %v1384_v53, %v1301_v10 }
 0x1c3   :  { %v1090_v13 = vpop.f32.mrf.mxu0  ;;  %1581 = vmatmul.f32.gmra.mxu0 %v1580_v18  ;;  %1750 = vmatmul.f32.gmra.mxu1 %v4019_v46  ;;  %v1585_v49 = vsub.f32 %v1488_v15, %v4019_v46  ;;  %v1198_v17 = vpop.f32.mrf.mxu1  ;;  %v707_v15 = vadd.f32 %v3841_v56, %v625_v38 }
 0x1c4   :  { %v1433_v47 = vadd.f32 %v3977_v12, %v1385_v21  ;;  %v1091_v29 = vadd.f32 %v1090_v13, %v3819_v40  ;;  %v1304_v41 = vpop.f32.mrf.mxu2 }
 0x1c5   :  { %1853 = vmatmul.f32.gmra.mxu2 %v1585_v49  ;;  %v1586_v7 = vand.u32 4294901760, %v1585_v49  ;;  %v1388_v63 = vpop.f32.mrf.mxu3 }
 0x1c6   :  { %v1449_v61 = vmax.f32 %v1433_v47, 0.0  ;;  %v1199_v30 = vadd.f32 %v1198_v17, %v1091_v29  ;;  %v884_v47 = vadd.f32 %v3843_v39, %v707_v15 }
 0x1c7   :  { %1964 = vmatmul.f32.gmra.mxu3 %v1586_v7  ;;  %v1587_v53 = vsub.f32 %v1585_v49, %v1586_v7 }
 0x1c8   :  { %v1491_v3 = vsel %vm1471_vm4, %v1449_v61, 0  ;;  %v1305_v58 = vadd.f32 %v1304_v41, %v1199_v30  ;;  %v1004_v38 = vadd.f32 %v3848_v23, %v884_v47  ;;  %v711_v61 = vadd.f32 %v3869_v50, %v629_v9 }
 0x1c9   :  { %v4030_v33 = vand.u32 4294901760, %v1491_v3  ;;  %v1588_v40 = vand.u32 4294901760, %v1587_v53  ;;  %v633_v23 = vadd.f32 %v3880_v57, %v3643_v0 }
 0x1ca   :  { %v1389_v10 = vadd.f32 %v1388_v63, %v1305_v58  ;;  %v892_v15 = vadd.f32 %v3871_v43, %v711_v61 }
 0x1cb   :  { %v1095_v18 = vpop.f32.mrf.mxu0  ;;  %1589 = vmatmul.f32.gmra.mxu0 %v1588_v40  ;;  %1754 = vmatmul.f32.gmra.mxu1 %v4030_v33  ;;  %v1593_v44 = vsub.f32 %v1491_v3, %v4030_v33  ;;  %v1204_v20 = vpop.f32.mrf.mxu1 }
 0x1cc   :  { %v1434_v8 = vadd.f32 %v3977_v12, %v1389_v10  ;;  %v1096_v48 = vadd.f32 %v1095_v18, %v1000_v59  ;;  %v1308_v21 = vpop.f32.mrf.mxu2 }
 0x1cd   :  { %1858 = vmatmul.f32.gmra.mxu2 %v1593_v44  ;;  %v1594_v13 = vand.u32 4294901760, %v1593_v44  ;;  %v1392_v49 = vpop.f32.mrf.mxu3 }
 0x1ce   :  { %v1450_v56 = vmax.f32 %v1434_v8, 0.0  ;;  %v1205_v29 = vadd.f32 %v1204_v20, %v1096_v48 }
 0x1cf   :  { %1970 = vmatmul.f32.gmra.mxu3 %v1594_v13  ;;  %v1595_v17 = vsub.f32 %v1593_v44, %v1594_v13  ;;  %v715_v13 = vadd.f32 %v3882_v26, %v633_v23 }
 0x1d0   :  { %v1494_v41 = vsel %vm1471_vm4, %v1450_v56, 0  ;;  %v1309_v7 = vadd.f32 %v1308_v21, %v1205_v29  ;;  %v1008_v21 = vadd.f32 %v3873_v55, %v892_v15  ;;  %v637_v55 = vadd.f32 %v3901_v14, %v3658_v62 }
 0x1d1   :  { %v4041_v63 = vand.u32 4294901760, %v1494_v41  ;;  %v1596_v36 = vand.u32 4294901760, %v1595_v17 }
 0x1d2   :  { %v1393_v30 = vadd.f32 %v1392_v49, %v1309_v7 }
 0x1d3   :  { %v1100_v53 = vpop.f32.mrf.mxu0  ;;  %1597 = vmatmul.f32.gmra.mxu0 %v1596_v36  ;;  %1758 = vmatmul.f32.gmra.mxu1 %v4041_v63  ;;  %v1601_v4 = vsub.f32 %v1494_v41, %v4041_v63  ;;  %v1210_v3 = vpop.f32.mrf.mxu1  ;;  %v900_v41 = vadd.f32 %v3884_v28, %v715_v13 }
 0x1d4   :  { %v1435_v39 = vadd.f32 %v3977_v12, %v1393_v30  ;;  %v1101_v5 = vadd.f32 %v1100_v53, %v1004_v38  ;;  %v1312_v58 = vpop.f32.mrf.mxu2 }
 0x1d5   :  { %1863 = vmatmul.f32.gmra.mxu2 %v1601_v4  ;;  %v1602_v40 = vand.u32 4294901760, %v1601_v4  ;;  %v1396_v59 = vpop.f32.mrf.mxu3 }
 0x1d6   :  { %v1451_v50 = vmax.f32 %v1435_v39, 0.0  ;;  %v1211_v10 = vadd.f32 %v1210_v3, %v1101_v5  ;;  %v719_v39 = vadd.f32 %v3903_v19, %v637_v55  ;;  %v641_v19 = vadd.f32 %v3917_v16, %v3670_v52 }
 0x1d7   :  { %1976 = vmatmul.f32.gmra.mxu3 %v1602_v40  ;;  %v1603_v18 = vsub.f32 %v1601_v4, %v1602_v40  ;;  %v1012_v4 = vadd.f32 %v3889_v34, %v900_v41 }
 0x1d8   :  { %v1497_v44 = vsel %vm1471_vm4, %v1451_v50, 0  ;;  %v1313_v8 = vadd.f32 %v1312_v58, %v1211_v10  ;;  %v908_v23 = vadd.f32 %v3905_v51, %v719_v39  ;;  %v723_v13 = vadd.f32 %v3921_v2, %v641_v19 }
 0x1d9   :  { %v4052_v48 = vand.u32 4294901760, %v1497_v44  ;;  %v1604_v20 = vand.u32 4294901760, %v1603_v18 }
 0x1da   :  { %v1397_v49 = vadd.f32 %v1396_v59, %v1313_v8 }
 0x1db   :  { %v1105_v47 = vpop.f32.mrf.mxu0  ;;  %1605 = vmatmul.f32.gmra.mxu0 %v1604_v20  ;;  %1762 = vmatmul.f32.gmra.mxu1 %v4052_v48  ;;  %v1609_v0 = vsub.f32 %v1497_v44, %v4052_v48  ;;  %v1216_v9 = vpop.f32.mrf.mxu1 }
 0x1dc   :  { %v1436_v43 = vadd.f32 %v3977_v12, %v1397_v49  ;;  %v1106_v57 = vadd.f32 %v1105_v47, %v1008_v21  ;;  %v1316_v56 = vpop.f32.mrf.mxu2  ;;  %v1016_v21 = vadd.f32 %v3907_v1, %v908_v23  ;;  %v4630_v1 = vld [vmem:[#allocation5_spill] sm:$0xff] }
 0x1dd   :  { %1868 = vmatmul.f32.gmra.mxu2 %v1609_v0  ;;  %v1610_v29 = vand.u32 4294901760, %v1609_v0  ;;  %v1400_v17 = vpop.f32.mrf.mxu3  ;;  %v645_v2 = vadd.f32 %v3938_v31, %v4630_v1 }
 0x1de   :  { %v1452_v26 = vmax.f32 %v1436_v43, 0.0  ;;  %v1217_v7 = vadd.f32 %v1216_v9, %v1106_v57 }
 0x1df   :  { %1982 = vmatmul.f32.gmra.mxu3 %v1610_v29  ;;  %v1611_v36 = vsub.f32 %v1609_v0, %v1610_v29 }
 0x1e0   :  { %v1500_v38 = vsel %vm1471_vm4, %v1452_v26, 0  ;;  %v1317_v61 = vadd.f32 %v1316_v56, %v1217_v7  ;;  %v4629_v56 = vld [vmem:[#allocation7_spill] sm:$0xff] }
 0x1e1   :  { %v4063_v30 = vand.u32 4294901760, %v1500_v38  ;;  %v1612_v53 = vand.u32 4294901760, %v1611_v36  ;;  %v916_v29 = vadd.f32 %v4629_v56, %v723_v13 }
 0x1e2   :  { %v1401_v5 = vadd.f32 %v1400_v17, %v1317_v61 }
 0x1e3   :  { %v1110_v3 = vpop.f32.mrf.mxu0  ;;  %1613 = vmatmul.f32.gmra.mxu0 %v1612_v53  ;;  %1766 = vmatmul.f32.gmra.mxu1 %v4063_v30  ;;  %v1617_v62 = vsub.f32 %v1500_v38, %v4063_v30  ;;  %v1222_v58 = vpop.f32.mrf.mxu1  ;;  %v1020_v61 = vadd.f32 %v3925_v35, %v916_v29  ;;  %v727_v53 = vadd.f32 %v3943_v6, %v645_v2  ;;  %v4631_v35 = vld [vmem:[#allocation6_spill] sm:$0xff] }
 0x1e4   :  { %v1437_v28 = vadd.f32 %v3977_v12, %v1401_v5  ;;  %v1111_v14 = vadd.f32 %v1110_v3, %v1012_v4  ;;  %v1320_v40 = vpop.f32.mrf.mxu2  ;;  %v649_v6 = vadd.f32 %v3959_v32, %v4631_v35 }
 0x1e5   :  { %1873 = vmatmul.f32.gmra.mxu2 %v1617_v62  ;;  %v1618_v59 = vand.u32 4294901760, %v1617_v62  ;;  %v1404_v15 = vpop.f32.mrf.mxu3 }
 0x1e6   :  { %v1453_v34 = vmax.f32 %v1437_v28, 0.0  ;;  %v1223_v50 = vadd.f32 %v1222_v58, %v1111_v14 }
 0x1e7   :  { %1988 = vmatmul.f32.gmra.mxu3 %v1618_v59  ;;  %v1619_v10 = vsub.f32 %v1617_v62, %v1618_v59 }
 0x1e8   :  { %v1503_v18 = vsel %vm1471_vm4, %v1453_v34, 0  ;;  %v1321_v44 = vadd.f32 %v1320_v40, %v1223_v50  ;;  %v924_v40 = vadd.f32 %v3945_v54, %v727_v53 }
 0x1e9   :  { %v4074_v8 = vand.u32 4294901760, %v1503_v18  ;;  %v1620_v20 = vand.u32 4294901760, %v1619_v10 }
 0x1ea   :  { %v1405_v49 = vadd.f32 %v1404_v15, %v1321_v44  ;;  %v731_v44 = vadd.f32 %v3961_v25, %v649_v6 }
 0x1eb   :  { %v1115_v47 = vpop.f32.mrf.mxu0  ;;  %1621 = vmatmul.f32.gmra.mxu0 %v1620_v20  ;;  %1770 = vmatmul.f32.gmra.mxu1 %v4074_v8  ;;  %v1625_v52 = vsub.f32 %v1503_v18, %v4074_v8  ;;  %v1228_v0 = vpop.f32.mrf.mxu1  ;;  %v1024_v18 = vadd.f32 %v3947_v42, %v924_v40 }
 0x1ec   :  { %v1438_v16 = vadd.f32 %v3977_v12, %v1405_v49  ;;  %v1116_v51 = vadd.f32 %v1115_v47, %v1016_v21  ;;  %v1324_v43 = vpop.f32.mrf.mxu2 }
 0x1ed   :  { %1878 = vmatmul.f32.gmra.mxu2 %v1625_v52  ;;  %v1626_v57 = vand.u32 4294901760, %v1625_v52  ;;  %v1408_v9 = vpop.f32.mrf.mxu3 }
 0x1ee   :  { %v1454_v17 = vmax.f32 %v1438_v16, 0.0  ;;  %v1229_v41 = vadd.f32 %v1228_v0, %v1116_v51  ;;  %v932_v51 = vadd.f32 %v3963_v22, %v731_v44 }
 0x1ef   :  { %1994 = vmatmul.f32.gmra.mxu3 %v1626_v57  ;;  %v1627_v55 = vsub.f32 %v1625_v52, %v1626_v57 }
 0x1f0   :  { %v1506_v26 = vsel %vm1471_vm4, %v1454_v17, 0  ;;  %v1325_v7 = vadd.f32 %v1324_v43, %v1229_v41  ;;  %v1028_v29 = vadd.f32 %v3966_v27, %v932_v51 }
 0x1f1   :  { %v4085_v36 = vand.u32 4294901760, %v1506_v26  ;;  %v1628_v38 = vand.u32 4294901760, %v1627_v55 }
 0x1f2   :  { %v1409_v4 = vadd.f32 %v1408_v9, %v1325_v7 }
 0x1f3   :  { %v1120_v39 = vpop.f32.mrf.mxu0  ;;  %1629 = vmatmul.f32.gmra.mxu0 %v1628_v38  ;;  %1774 = vmatmul.f32.gmra.mxu1 %v4085_v36  ;;  %v1633_v31 = vsub.f32 %v1506_v26, %v4085_v36  ;;  %v1234_v62 = vpop.f32.mrf.mxu1 }
 0x1f4   :  { %v1439_v5 = vadd.f32 %v3977_v12, %v1409_v4  ;;  %v1121_v3 = vadd.f32 %v1120_v39, %v1020_v61  ;;  %v1328_v28 = vpop.f32.mrf.mxu2 }
 0x1f5   :  { %1883 = vmatmul.f32.gmra.mxu2 %v1633_v31  ;;  %v1634_v14 = vand.u32 4294901760, %v1633_v31  ;;  %v1412_v58 = vpop.f32.mrf.mxu3 }
 0x1f6   :  { %v1455_v59 = vmax.f32 %v1439_v5, 0.0  ;;  %v1235_v15 = vadd.f32 %v1234_v62, %v1121_v3 }
 0x1f7   :  { %2000 = vmatmul.f32.gmra.mxu3 %v1634_v14  ;;  %v1635_v23 = vsub.f32 %v1633_v31, %v1634_v14 }
 0x1f8   :  { %v1509_v19 = vsel %vm1471_vm4, %v1455_v59, 0  ;;  %v1329_v34 = vadd.f32 %v1328_v28, %v1235_v15 }
 0x1f9   :  { %v4096_v50 = vand.u32 4294901760, %v1509_v19  ;;  %v1636_v10 = vand.u32 4294901760, %v1635_v23 }
 0x1fa   :  { %v1413_v20 = vadd.f32 %v1412_v58, %v1329_v34 }
 0x1fb   :  { %v1125_v21 = vpop.f32.mrf.mxu0  ;;  %1637 = vmatmul.f32.gmra.mxu0 %v1636_v10  ;;  %1778 = vmatmul.f32.gmra.mxu1 %v4096_v50  ;;  %v1641_v54 = vsub.f32 %v1509_v19, %v4096_v50  ;;  %v1240_v49 = vpop.f32.mrf.mxu1 }
 0x1fc   :  { %v1440_v32 = vadd.f32 %v3977_v12, %v1413_v20  ;;  %v1126_v13 = vadd.f32 %v1125_v21, %v1024_v18  ;;  %v1332_v47 = vpop.f32.mrf.mxu2 }
 0x1fd   :  { %1888 = vmatmul.f32.gmra.mxu2 %v1641_v54  ;;  %v1642_v52 = vand.u32 4294901760, %v1641_v54  ;;  %v1416_v16 = vpop.f32.mrf.mxu3 }
 0x1fe   :  { %v1456_v42 = vmax.f32 %v1440_v32, 0.0  ;;  %v1241_v0 = vadd.f32 %v1240_v49, %v1126_v13  ;;  %v2244_v49 = vld [vmem:[%s4583_s7 + $0x30] sm:$0xff] }
 0x1ff   :  { %2006 = vmatmul.f32.gmra.mxu3 %v1642_v52  ;;  %v1643_v25 = vsub.f32 %v1641_v54, %v1642_v52 }
 0x200   :  { %v1512_v43 = vsel %vm1471_vm4, %v1456_v42, 0  ;;  %v1333_v57 = vadd.f32 %v1332_v47, %v1241_v0 }
 0x201   :  { %v4105_v9 = vand.u32 4294901760, %v1512_v43  ;;  %v1644_v56 = vand.u32 4294901760, %v1643_v25 }
 0x202   :  { %v1417_v1 = vadd.f32 %v1416_v16, %v1333_v57  ;;  %v4153_v16 = vand.u32 4294901760, %v2244_v49 }
 0x203   :  { %v1130_v2 = vpop.f32.mrf.mxu0  ;;  %1645 = vmatmul.f32.gmra.mxu0 %v1644_v56  ;;  %1782 = vmatmul.f32.gmra.mxu1 %v4105_v9  ;;  %v1649_v17 = vsub.f32 %v1512_v43, %v4105_v9  ;;  %v1246_v55 = vpop.f32.mrf.mxu1 }
 0x204   :  { %v1441_v22 = vadd.f32 %v3977_v12, %v1417_v1  ;;  %v1131_v41 = vadd.f32 %v1130_v2, %v1028_v29  ;;  %v1336_v26 = vpop.f32.mrf.mxu2  ;;  %v4157_v51 = vsub.f32 %v2244_v49, %v4153_v16 }
 0x205   :  { %1893 = vmatmul.f32.gmra.mxu2 %v1649_v17  ;;  %v1650_v7 = vand.u32 4294901760, %v1649_v17  ;;  %v1420_v53 = vpop.f32.mrf.mxu3 }
 0x206   :  { %v1457_v38 = vmax.f32 %v1441_v22, 0.0  ;;  %v1247_v61 = vadd.f32 %v1246_v55, %v1131_v41 }
 0x207   :  { %2012 = vmatmul.f32.gmra.mxu3 %v1650_v7  ;;  %v1651_v4 = vsub.f32 %v1649_v17, %v1650_v7 }
 0x208   :  { %v1515_v27 = vsel %vm1471_vm4, %v1457_v38, 0  ;;  %v1337_v39 = vadd.f32 %v1336_v26, %v1247_v61 }
 0x209   :  { %v4112_v31 = vand.u32 4294901760, %v1515_v27  ;;  %v1652_v5 = vand.u32 4294901760, %v1651_v4 }
 0x20a   :  { %v1421_v3 = vadd.f32 %v1420_v53, %v1337_v39 }
 0x20b   :  { %1653 = vmatmul.f32.gmra.mxu0 %v1652_v5  ;;  %1786 = vmatmul.f32.gmra.mxu1 %v4112_v31  ;;  %v1657_v62 = vsub.f32 %v1515_v27, %v4112_v31 }
 0x20c   :  { %v1442_v28 = vadd.f32 %v3977_v12, %v1421_v3  ;;  %v2245_v12 = vld [vmem:[%s4583_s7 + $0x38] sm:$0xff] }
 0x20d   :  { %1898 = vmatmul.f32.gmra.mxu2 %v1657_v62  ;;  %v1658_v14 = vand.u32 4294901760, %v1657_v62  ;;  %v4127_v10 = vand.u32 4294901760, %v2245_v12 }
 0x20e   :  { %v1458_v58 = vmax.f32 %v1442_v28, 0.0 }
 0x20f   :  { %2018 = vmatmul.f32.gmra.mxu3 %v1658_v14  ;;  %v1659_v40 = vsub.f32 %v1657_v62, %v1658_v14  ;;  %2307 = vmatpush.msra.mxu2 %v4127_v10  ;;  %v4131_v44 = vsub.f32 %v2245_v12, %v4127_v10 }
 0x210   :  { %v1518_v35 = vsel %vm1471_vm4, %v1458_v58, 0  ;;  %2694 = vmatpush.msrb.mxu1 %v4127_v10 }
 0x211   :  { %v4118_v6 = vand.u32 4294901760, %v1518_v35  ;;  %v1660_v59 = vand.u32 4294901760, %v1659_v40  ;;  %v2461_v20 = vand.u32 4294901760, %v4131_v44  ;;  %2582 = vmatpush.msrb.mxu0 %v4131_v44  ;;  %2309 = vmatpush.msra.mxu2 %v4153_v16 }
 0x212   :  { %2696 = vmatpush.msrb.mxu1 %v4153_v16 }
 0x213   :  { %1661 = vmatmul.f32.gmra.mxu0 %v1660_v59  ;;  %1790 = vmatmul.f32.gmra.mxu1 %v4118_v6  ;;  %v1665_v15 = vsub.f32 %v1518_v35, %v4118_v6  ;;  %v2462_v21 = vsub.f32 %v4131_v44, %v2461_v20 }
 0x214   :  { %2585 = vmatpush.msrb.mxu0 %v4157_v51 }
 0x215   :  { %1903 = vmatmul.f32.gmra.mxu2 %v1665_v15  ;;  %v1666_v23 = vand.u32 4294901760, %v1665_v15  ;;  %v2463_v13 = vand.u32 4294901760, %v2462_v21 }
 0x217   :  { %2024 = vmatmul.f32.gmra.mxu3 %v1666_v23  ;;  %v1667_v19 = vsub.f32 %v1665_v15, %v1666_v23 }
 0x218   :  { %v4125_v34 = vpop.f32.mrf.mxu1  ;;  %2464 = vmatpush.msra.mxu3 %v2463_v13  ;;  %v2239_v13 = vld [vmem:[%s4583_s7 + $0x8] sm:$0xff] }
 0x219   :  { %v1668_v18 = vand.u32 4294901760, %v1667_v19 }
 0x21b   :  { %1669 = vmatmul.f32.gmra.mxu0 %v1668_v18  ;;  %2158 = vmatmul.f32.vlgmr.msra.gmra.mxu1 %v3982_v24 }
 0x220   :  { %v4140_v54 = vpop.f32.mrf.mxu0  ;;  %v4142_v32 = vpop.f32.mrf.mxu1 }
 0x223   :  { %2069 = vmatmul.f32.vlgmr.msra.gmra.mxu0 %v3982_v24  ;;  %2162 = vmatmul.f32.gmra.mxu1 %v3989_v11  ;;  %v2467_v24 = vand.u32 4294901760, %v4157_v51 }
 0x225   :  { %v2468_v42 = vsub.f32 %v4157_v51, %v2467_v24 }
 0x227   :  { %v2469_v43 = vand.u32 4294901760, %v2468_v42  ;;  %v2318_v42 = vand.u32 4294901760, %v2239_v13 }
 0x228   :  { %v4149_v47 = vpop.f32.mrf.mxu0  ;;  %v4151_v52 = vpop.f32.mrf.mxu1 }
 0x229   :  { %2470 = vmatpush.msra.mxu3 %v2469_v43  ;;  %v2496_v43 = vsub.f32 %v2239_v13, %v2318_v42 }
 0x22b   :  { %2073 = vmatmul.f32.gmra.mxu0 %v3989_v11  ;;  %2166 = vmatmul.f32.gmra.mxu1 %v3996_v37  ;;  %v2243_v11 = vld [vmem:[%s4583_s7 + $0x28] sm:$0xff] }
 0x22c   :  { %v4180_v29 = vand.u32 4294901760, %v2243_v11 }
 0x22e   :  { %2311 = vmatpush.msra.mxu2 %v4180_v29  ;;  %v4184_v1 = vsub.f32 %v2243_v11, %v4180_v29  ;;  %2698 = vmatpush.msrb.mxu1 %v4180_v29  ;;  %v1829_v11 = vpop.f32.mrf.mxu2 }
 0x230   :  { %v4167_v0 = vpop.f32.mrf.mxu0  ;;  %v4169_v25 = vpop.f32.mrf.mxu1  ;;  %2588 = vmatpush.msrb.mxu0 %v4184_v1 }
 0x233   :  { %2077 = vmatmul.f32.gmra.mxu0 %v3996_v37  ;;  %2170 = vmatmul.f32.gmra.mxu1 %v4003_v60  ;;  %v2473_v37 = vand.u32 4294901760, %v4184_v1 }
 0x235   :  { %v2474_v2 = vsub.f32 %v4184_v1, %v2473_v37 }
 0x237   :  { %v2475_v41 = vand.u32 4294901760, %v2474_v2 }
 0x238   :  { %v4176_v57 = vpop.f32.mrf.mxu0  ;;  %v4178_v56 = vpop.f32.mrf.mxu1 }
 0x239   :  { %2476 = vmatpush.msra.mxu3 %v2475_v41  ;;  %v1935_v41 = vpop.f32.mrf.mxu3 }
 0x23b   :  { %2081 = vmatmul.f32.gmra.mxu0 %v4003_v60  ;;  %2174 = vmatmul.f32.gmra.mxu1 %v4010_v45  ;;  %v2242_v60 = vld [vmem:[%s4583_s7 + $0x20] sm:$0xff] }
 0x23c   :  { %v4207_v7 = vand.u32 4294901760, %v2242_v60 }
 0x23e   :  { %2313 = vmatpush.msra.mxu2 %v4207_v7  ;;  %v4211_v38 = vsub.f32 %v2242_v60, %v4207_v7  ;;  %2700 = vmatpush.msrb.mxu1 %v4207_v7  ;;  %v2238_v60 = vld [vmem:[%s4583_s7] sm:$0xff] }
 0x240   :  { %v4194_v17 = vpop.f32.mrf.mxu0  ;;  %v4196_v22 = vpop.f32.mrf.mxu1  ;;  %2591 = vmatpush.msrb.mxu0 %v4211_v38 }
 0x243   :  { %2085 = vmatmul.f32.gmra.mxu0 %v4010_v45  ;;  %2178 = vmatmul.f32.gmra.mxu1 %v4019_v46  ;;  %v2479_v45 = vand.u32 4294901760, %v4211_v38 }
 0x245   :  { %v2480_v61 = vsub.f32 %v4211_v38, %v2479_v45 }
 0x247   :  { %v2481_v27 = vand.u32 4294901760, %v2480_v61 }
 0x248   :  { %v4203_v55 = vpop.f32.mrf.mxu0  ;;  %v4205_v26 = vpop.f32.mrf.mxu1 }
 0x249   :  { %2482 = vmatpush.msra.mxu3 %v2481_v27 }
 0x24b   :  { %2089 = vmatmul.f32.gmra.mxu0 %v4019_v46  ;;  %2182 = vmatmul.f32.gmra.mxu1 %v4030_v33  ;;  %v2241_v46 = vld [vmem:[%s4583_s7 + $0x18] sm:$0xff] }
 0x24c   :  { %v4234_v3 = vand.u32 4294901760, %v2241_v46 }
 0x24e   :  { %2315 = vmatpush.msra.mxu2 %v4234_v3  ;;  %v4238_v62 = vsub.f32 %v2241_v46, %v4234_v3  ;;  %2702 = vmatpush.msrb.mxu1 %v4234_v3 }
 0x250   :  { %v4221_v53 = vpop.f32.mrf.mxu0  ;;  %v4223_v4 = vpop.f32.mrf.mxu1  ;;  %2594 = vmatpush.msrb.mxu0 %v4238_v62 }
 0x253   :  { %2093 = vmatmul.f32.gmra.mxu0 %v4030_v33  ;;  %2186 = vmatmul.f32.gmra.mxu1 %v4041_v63  ;;  %v2485_v33 = vand.u32 4294901760, %v4238_v62 }
 0x255   :  { %v2486_v28 = vsub.f32 %v4238_v62, %v2485_v33 }
 0x257   :  { %v2487_v40 = vand.u32 4294901760, %v2486_v28  ;;  %v2320_v28 = vand.u32 4294901760, %v2238_v60 }
 0x258   :  { %v4230_v39 = vpop.f32.mrf.mxu0  ;;  %v4232_v5 = vpop.f32.mrf.mxu1 }
 0x259   :  { %2488 = vmatpush.msra.mxu3 %v2487_v40  ;;  %v2502_v40 = vsub.f32 %v2238_v60, %v2320_v28 }
 0x25b   :  { %2097 = vmatmul.f32.gmra.mxu0 %v4041_v63  ;;  %2190 = vmatmul.f32.gmra.mxu1 %v4052_v48  ;;  %v2240_v63 = vld [vmem:[%s4583_s7 + $0x10] sm:$0xff] }
 0x25c   :  { %v4261_v15 = vand.u32 4294901760, %v2240_v63 }
 0x25e   :  { %2317 = vmatpush.msra.mxu2 %v4261_v15  ;;  %v2490_v23 = vsub.f32 %v2240_v63, %v4261_v15  ;;  %2704 = vmatpush.msrb.mxu1 %v4261_v15  ;;  %v1834_v63 = vpop.f32.mrf.mxu2 }
 0x260   :  { %v4248_v14 = vpop.f32.mrf.mxu0  ;;  %v4250_v58 = vpop.f32.mrf.mxu1  ;;  %2597 = vmatpush.msrb.mxu0 %v2490_v23  ;;  %2319 = vmatpush.msra.mxu2 %v2318_v42 }
 0x261   :  { %2706 = vmatpush.msrb.mxu1 %v2318_v42 }
 0x262   :  { %2600 = vmatpush.msrb.mxu0 %v2496_v43  ;;  %2321 = vmatpush.msra.mxu2 %v2320_v28 }
 0x263   :  { %2101 = vmatmul.f32.gmra.mxu0 %v4052_v48  ;;  %2194 = vmatmul.f32.gmra.mxu1 %v4063_v30  ;;  %v2491_v48 = vand.u32 4294901760, %v2490_v23 }
 0x264   :  { %2603 = vmatpush.msrb.mxu0 %v2502_v40  ;;  %2708 = vmatpush.msrb.mxu1 %v2320_v28 }
 0x265   :  { %v2492_v19 = vsub.f32 %v2490_v23, %v2491_v48  ;;  %2817 = vmatpush.msrb.mxu2 %v2461_v20 }
 0x266   :  { %v1839_v44 = vpop.f32.mrf.mxu2 }
 0x267   :  { %v2493_v21 = vand.u32 4294901760, %v2492_v19  ;;  %2821 = vmatpush.msrb.mxu2 %v2467_v24 }
 0x268   :  { %v4257_v35 = vpop.f32.mrf.mxu0  ;;  %v4259_v59 = vpop.f32.mrf.mxu1 }
 0x269   :  { %2494 = vmatpush.msra.mxu3 %v2493_v21  ;;  %2825 = vmatpush.msrb.mxu2 %v2473_v37 }
 0x26b   :  { %2105 = vmatmul.f32.gmra.mxu0 %v4063_v30  ;;  %2198 = vmatmul.f32.gmra.mxu1 %v4074_v8 }
 0x26c   :  { %2829 = vmatpush.msrb.mxu2 %v2479_v45 }
 0x26e   :  { %2833 = vmatpush.msrb.mxu2 %v2485_v33  ;;  %v1844_v1 = vpop.f32.mrf.mxu2 }
 0x270   :  { %v4268_v12 = vpop.f32.mrf.mxu0  ;;  %v4270_v18 = vpop.f32.mrf.mxu1  ;;  %2837 = vmatpush.msrb.mxu2 %v2491_v48 }
 0x273   :  { %2109 = vmatmul.f32.gmra.mxu0 %v4074_v8  ;;  %2202 = vmatmul.f32.gmra.mxu1 %v4085_v36  ;;  %v2497_v8 = vand.u32 4294901760, %v2496_v43 }
 0x275   :  { %v2498_v2 = vsub.f32 %v2496_v43, %v2497_v8  ;;  %v1941_v43 = vpop.f32.mrf.mxu3  ;;  %2841 = vmatpush.msrb.mxu2 %v2497_v8 }
 0x277   :  { %v2499_v46 = vand.u32 4294901760, %v2498_v2 }
 0x278   :  { %v4277_v30 = vpop.f32.mrf.mxu0  ;;  %v4279_v49 = vpop.f32.mrf.mxu1 }
 0x279   :  { %2500 = vmatpush.msra.mxu3 %v2499_v46 }
 0x27b   :  { %2113 = vmatmul.f32.gmra.mxu0 %v4085_v36  ;;  %2206 = vmatmul.f32.gmra.mxu1 %v4096_v50  ;;  %v2503_v36 = vand.u32 4294901760, %v2502_v40 }
 0x27d   :  { %v2504_v23 = vsub.f32 %v2502_v40, %v2503_v36  ;;  %2845 = vmatpush.msrb.mxu2 %v2503_v36 }
 0x27f   :  { %v2505_v13 = vand.u32 4294901760, %v2504_v23 }
 0x280   :  { %v4286_v61 = vpop.f32.mrf.mxu0  ;;  %v4288_v27 = vpop.f32.mrf.mxu1 }
 0x281   :  { %2506 = vmatpush.msra.mxu3 %v2505_v13 }
 0x283   :  { %2117 = vmatmul.f32.gmra.mxu0 %v4096_v50  ;;  %2210 = vmatmul.f32.gmra.mxu1 %v4105_v9  ;;  %v4313_v50 = vld [vmem:[%s4582_s6] ss:$0 sm:$0xff] }
 0x284   :  { %2920 = vmatpush.msrb.mxu3 %v4127_v10  ;;  %v1551_v10 = vadd.f32 %v4313_v50, %v4140_v54  ;;  %v1559_v54 = vadd.f32 %v4313_v50, %v4149_v47  ;;  %v1567_v33 = vadd.f32 %v4313_v50, %v4167_v0  ;;  %v1575_v0 = vadd.f32 %v4313_v50, %v4176_v57 }
 0x286   :  { %2922 = vmatpush.msrb.mxu3 %v4153_v16  ;;  %v1947_v16 = vpop.f32.mrf.mxu3  ;;  %v1732_v51 = vadd.f32 %v4125_v34, %v1551_v10  ;;  %v1736_v38 = vadd.f32 %v4142_v32, %v1559_v54  ;;  %v1740_v8 = vadd.f32 %v4151_v52, %v1567_v33 }
 0x288   :  { %v4296_v19 = vpop.f32.mrf.mxu0  ;;  %v4298_v21 = vpop.f32.mrf.mxu1  ;;  %2924 = vmatpush.msrb.mxu3 %v4180_v29  ;;  %v1830_v37 = vadd.f32 %v1829_v11, %v1732_v51  ;;  %v1835_v34 = vadd.f32 %v1834_v63, %v1736_v38 }
 0x28a   :  { %2926 = vmatpush.msrb.mxu3 %v4207_v7  ;;  %v1936_v7 = vadd.f32 %v1935_v41, %v1830_v37  ;;  %v1942_v11 = vadd.f32 %v1941_v43, %v1835_v34  ;;  %v1744_v43 = vadd.f32 %v4169_v25, %v1575_v0 }
 0x28b   :  { %2121 = vmatmul.f32.gmra.mxu0 %v4105_v9  ;;  %2214 = vmatmul.f32.gmra.mxu1 %v4112_v31 }
 0x28c   :  { %2928 = vmatpush.msrb.mxu3 %v4234_v3  ;;  %v1845_v38 = vadd.f32 %v1844_v1, %v1744_v43 }
 0x28e   :  { %2930 = vmatpush.msrb.mxu3 %v4261_v15  ;;  %v1849_v15 = vpop.f32.mrf.mxu2 }
 0x290   :  { %v4315_v20 = vpop.f32.mrf.mxu0  ;;  %v4317_v9 = vpop.f32.mrf.mxu1  ;;  %2932 = vmatpush.msrb.mxu3 %v2318_v42 }
 0x292   :  { %2934 = vmatpush.msrb.mxu3 %v2320_v28  ;;  %v1840_v28 = vadd.f32 %v1839_v44, %v1740_v8 }
 0x293   :  { %2125 = vmatmul.f32.gmra.mxu0 %v4112_v31  ;;  %2218 = vmatmul.f32.gmra.mxu1 %v4118_v6  ;;  %v1953_v31 = vpop.f32.mrf.mxu3 }
 0x294   :  { %v1948_v13 = vadd.f32 %v1947_v16, %v1840_v28  ;;  %v1583_v16 = vadd.f32 %v4313_v50, %v4194_v17  ;;  %v1954_v34 = vadd.f32 %v1953_v31, %v1845_v38  ;;  %v1591_v31 = vadd.f32 %v4313_v50, %v4203_v55 }
 0x296   :  { %v1854_v52 = vpop.f32.mrf.mxu2  ;;  %v1748_v33 = vadd.f32 %v4178_v56, %v1583_v16 }
 0x298   :  { %v4328_v24 = vpop.f32.mrf.mxu0  ;;  %v2159_v29 = vpop.f32.mrf.mxu1 }
 0x29b   :  { %2129 = vmatmul.f32.gmra.mxu0 %v4118_v6  ;;  %v1959_v47 = vpop.f32.mrf.mxu3 }
 0x2a0   :  { %v2070_v45 = vpop.f32.mrf.mxu0  ;;  %v2163_v3 = vpop.f32.mrf.mxu1 }
 0x2a1   :  { %v2071_v62 = vadd.f32 %v2070_v45, %v1936_v7 }
 0x2a3   :  { %v2160_v48 = vadd.f32 %v2159_v29, %v2071_v62  ;;  %v1965_v54 = vpop.f32.mrf.mxu3 }
 0x2a5   :  { %v2222_v42 = vmax.f32 %v2160_v48, 0.0  ;;  %v1859_v48 = vpop.f32.mrf.mxu2 }
 0x2a7   :  { %v2251_v6 = vsel %vm1471_vm4, %v2222_v42, 0 }
 0x2a8   :  { %v4338_v2 = vand.u32 4294901760, %v2251_v6  ;;  %v2074_v41 = vpop.f32.mrf.mxu0  ;;  %v2167_v32 = vpop.f32.mrf.mxu1 }
 0x2a9   :  { %v2075_v60 = vadd.f32 %v2074_v41, %v1942_v11 }
 0x2aa   :  { %v2323_v46 = vsub.f32 %v2251_v6, %v4338_v2  ;;  %2508 = vmatmul.f32.vlgmr.msra.gmra.mxu3 %v4338_v2 }
 0x2ab   :  { %v2164_v40 = vadd.f32 %v2163_v3, %v2075_v60  ;;  %v1971_v60 = vpop.f32.mrf.mxu3 }
 0x2ac   :  { %v2324_v36 = vand.u32 4294901760, %v2323_v46  ;;  %2606 = vmatmul.f32.vlgmr.msrb.gmra.mxu0 %v2323_v46 }
 0x2ad   :  { %v2223_v63 = vmax.f32 %v2164_v40, 0.0 }
 0x2ae   :  { %v2325_v23 = vsub.f32 %v2323_v46, %v2324_v36  ;;  %2712 = vmatmul.f32.vlgmr.msrb.gmra.mxu1 %v2324_v36  ;;  %v1752_v36 = vadd.f32 %v4196_v22, %v1591_v31 }
 0x2af   :  { %v2254_v10 = vsel %vm1471_vm4, %v2223_v63, 0 }
 0x2b0   :  { %v4346_v51 = vand.u32 4294901760, %v2254_v10  ;;  %v2078_v29 = vpop.f32.mrf.mxu0  ;;  %v2171_v37 = vpop.f32.mrf.mxu1  ;;  %v2326_v44 = vand.u32 4294901760, %v2325_v23 }
 0x2b1   :  { %v2079_v7 = vadd.f32 %v2078_v29, %v1948_v13 }
 0x2b2   :  { %2327 = vmatmul.f32.vlgmr.msra.gmra.mxu2 %v2326_v44  ;;  %2512 = vmatmul.f32.gmra.mxu3 %v4346_v51  ;;  %v2331_v57 = vsub.f32 %v2254_v10, %v4346_v51  ;;  %v1864_v10 = vpop.f32.mrf.mxu2 }
 0x2b3   :  { %v2168_v45 = vadd.f32 %v2167_v32, %v2079_v7  ;;  %v1850_v32 = vadd.f32 %v1849_v15, %v1748_v33  ;;  %v1977_v7 = vpop.f32.mrf.mxu3 }
 0x2b4   :  { %2611 = vmatmul.f32.gmra.mxu0 %v2331_v57  ;;  %v2332_v25 = vand.u32 4294901760, %v2331_v57 }
 0x2b5   :  { %v2224_v3 = vmax.f32 %v2168_v45, 0.0  ;;  %v1960_v40 = vadd.f32 %v1959_v47, %v1850_v32  ;;  %v1599_v47 = vadd.f32 %v4313_v50, %v4221_v53 }
 0x2b6   :  { %2718 = vmatmul.f32.gmra.mxu1 %v2332_v25  ;;  %v2333_v62 = vsub.f32 %v2331_v57, %v2332_v25 }
 0x2b7   :  { %v2257_v42 = vsel %vm1471_vm4, %v2224_v3, 0  ;;  %v1756_v45 = vadd.f32 %v4205_v26, %v1599_v47 }
 0x2b8   :  { %v4354_v11 = vand.u32 4294901760, %v2257_v42  ;;  %v2082_v8 = vpop.f32.mrf.mxu0  ;;  %v2175_v6 = vpop.f32.mrf.mxu1  ;;  %v2334_v1 = vand.u32 4294901760, %v2333_v62 }
 0x2b9   :  { %v2083_v41 = vadd.f32 %v2082_v8, %v1954_v34  ;;  %v1607_v8 = vadd.f32 %v4313_v50, %v4230_v39 }
 0x2ba   :  { %2335 = vmatmul.f32.gmra.mxu2 %v2334_v1  ;;  %2516 = vmatmul.f32.gmra.mxu3 %v4354_v11  ;;  %v2339_v17 = vsub.f32 %v2257_v42, %v4354_v11  ;;  %v1860_v42 = vadd.f32 %v1859_v48, %v1756_v45 }
 0x2bb   :  { %v2172_v56 = vadd.f32 %v2171_v37, %v2083_v41  ;;  %v1855_v37 = vadd.f32 %v1854_v52, %v1752_v36  ;;  %v1760_v32 = vadd.f32 %v4223_v4, %v1607_v8  ;;  %v1983_v31 = vpop.f32.mrf.mxu3 }
 0x2bc   :  { %2616 = vmatmul.f32.gmra.mxu0 %v2339_v17  ;;  %v2340_v46 = vand.u32 4294901760, %v2339_v17 }
 0x2bd   :  { %v2225_v28 = vmax.f32 %v2172_v56, 0.0  ;;  %v1966_v16 = vadd.f32 %v1965_v54, %v1855_v37  ;;  %v1869_v54 = vpop.f32.mrf.mxu2  ;;  %v1865_v36 = vadd.f32 %v1864_v10, %v1760_v32 }
 0x2be   :  { %2724 = vmatmul.f32.gmra.mxu1 %v2340_v46  ;;  %v2341_v0 = vsub.f32 %v2339_v17, %v2340_v46  ;;  %v1972_v17 = vadd.f32 %v1971_v60, %v1860_v42  ;;  %v1615_v60 = vadd.f32 %v4313_v50, %v4248_v14 }
 0x2bf   :  { %v2260_v63 = vsel %vm1471_vm4, %v2225_v28, 0 }
 0x2c0   :  { %v4362_v23 = vand.u32 4294901760, %v2260_v63  ;;  %v2086_v13 = vpop.f32.mrf.mxu0  ;;  %v2179_v43 = vpop.f32.mrf.mxu1  ;;  %v2342_v15 = vand.u32 4294901760, %v2341_v0 }
 0x2c1   :  { %v2087_v29 = vadd.f32 %v2086_v13, %v1960_v40 }
 0x2c2   :  { %2343 = vmatmul.f32.gmra.mxu2 %v2342_v15  ;;  %2520 = vmatmul.f32.gmra.mxu3 %v4362_v23  ;;  %v2347_v55 = vsub.f32 %v2260_v63, %v4362_v23 }
 0x2c3   :  { %v2176_v44 = vadd.f32 %v2175_v6, %v2087_v29  ;;  %v1978_v29 = vadd.f32 %v1977_v7, %v1865_v36  ;;  %v1623_v7 = vadd.f32 %v4313_v50, %v4257_v35 }
 0x2c4   :  { %2621 = vmatmul.f32.gmra.mxu0 %v2347_v55  ;;  %v2348_v22 = vand.u32 4294901760, %v2347_v55 }
 0x2c5   :  { %v2226_v57 = vmax.f32 %v2176_v44, 0.0  ;;  %v1874_v13 = vpop.f32.mrf.mxu2 }
 0x2c6   :  { %2730 = vmatmul.f32.gmra.mxu1 %v2348_v22  ;;  %v2349_v38 = vsub.f32 %v2347_v55, %v2348_v22  ;;  %v1764_v55 = vadd.f32 %v4232_v5, %v1615_v60 }
 0x2c7   :  { %v2263_v25 = vsel %vm1471_vm4, %v2226_v57, 0 }
 0x2c8   :  { %v4370_v3 = vand.u32 4294901760, %v2263_v25  ;;  %v2090_v62 = vpop.f32.mrf.mxu0  ;;  %v2183_v34 = vpop.f32.mrf.mxu1  ;;  %v2350_v52 = vand.u32 4294901760, %v2349_v38 }
 0x2c9   :  { %v2091_v33 = vadd.f32 %v2090_v62, %v1966_v16  ;;  %v1989_v38 = vpop.f32.mrf.mxu3  ;;  %v1870_v16 = vadd.f32 %v1869_v54, %v1764_v55 }
 0x2ca   :  { %2351 = vmatmul.f32.gmra.mxu2 %v2350_v52  ;;  %2524 = vmatmul.f32.gmra.mxu3 %v4370_v3  ;;  %v2355_v53 = vsub.f32 %v2263_v25, %v4370_v3  ;;  %v1768_v52 = vadd.f32 %v4250_v58, %v1623_v7 }
 0x2cb   :  { %v2180_v6 = vadd.f32 %v2179_v43, %v2091_v33 }
 0x2cc   :  { %2626 = vmatmul.f32.gmra.mxu0 %v2355_v53  ;;  %v2356_v26 = vand.u32 4294901760, %v2355_v53 }
 0x2cd   :  { %v2227_v1 = vmax.f32 %v2180_v6, 0.0  ;;  %v1879_v33 = vpop.f32.mrf.mxu2 }
 0x2ce   :  { %2736 = vmatmul.f32.gmra.mxu1 %v2356_v26  ;;  %v2357_v41 = vsub.f32 %v2355_v53, %v2356_v26 }
 0x2cf   :  { %v2266_v56 = vsel %vm1471_vm4, %v2227_v1, 0  ;;  %v1875_v1 = vadd.f32 %v1874_v13, %v1768_v52 }
 0x2d0   :  { %v4378_v46 = vand.u32 4294901760, %v2266_v56  ;;  %v2094_v28 = vpop.f32.mrf.mxu0  ;;  %v2187_v48 = vpop.f32.mrf.mxu1  ;;  %v2358_v0 = vand.u32 4294901760, %v2357_v41  ;;  %v1631_v41 = vadd.f32 %v4313_v50, %v4268_v12 }
 0x2d1   :  { %v2095_v40 = vadd.f32 %v2094_v28, %v1972_v17  ;;  %v1995_v58 = vpop.f32.mrf.mxu3  ;;  %v1990_v28 = vadd.f32 %v1989_v38, %v1875_v1 }
 0x2d2   :  { %2359 = vmatmul.f32.gmra.mxu2 %v2358_v0  ;;  %2528 = vmatmul.f32.gmra.mxu3 %v4378_v46  ;;  %v2363_v39 = vsub.f32 %v2266_v56, %v4378_v46 }
 0x2d3   :  { %v2184_v63 = vadd.f32 %v2183_v34, %v2095_v40  ;;  %v1984_v34 = vadd.f32 %v1983_v31, %v1870_v16 }
 0x2d4   :  { %2631 = vmatmul.f32.gmra.mxu0 %v2363_v39  ;;  %v2364_v4 = vand.u32 4294901760, %v2363_v39 }
 0x2d5   :  { %v2228_v43 = vmax.f32 %v2184_v63, 0.0 }
 0x2d6   :  { %2742 = vmatmul.f32.gmra.mxu1 %v2364_v4  ;;  %v2365_v15 = vsub.f32 %v2363_v39, %v2364_v4  ;;  %v1884_v4 = vpop.f32.mrf.mxu2 }
 0x2d7   :  { %v2269_v37 = vsel %vm1471_vm4, %v2228_v43, 0  ;;  %v1639_v43 = vadd.f32 %v4313_v50, %v4277_v30 }
 0x2d8   :  { %v4386_v47 = vand.u32 4294901760, %v2269_v37  ;;  %v2098_v44 = vpop.f32.mrf.mxu0  ;;  %v2191_v22 = vpop.f32.mrf.mxu1  ;;  %v2366_v10 = vand.u32 4294901760, %v2365_v15 }
 0x2d9   :  { %v2099_v57 = vadd.f32 %v2098_v44, %v1978_v29  ;;  %v2001_v55 = vpop.f32.mrf.mxu3 }
 0x2da   :  { %2367 = vmatmul.f32.gmra.mxu2 %v2366_v10  ;;  %2532 = vmatmul.f32.gmra.mxu3 %v4386_v47  ;;  %v2371_v14 = vsub.f32 %v2269_v37, %v4386_v47 }
 0x2db   :  { %v2188_v45 = vadd.f32 %v2187_v48, %v2099_v57  ;;  %v1772_v48 = vadd.f32 %v4259_v59, %v1631_v41 }
 0x2dc   :  { %2636 = vmatmul.f32.gmra.mxu0 %v2371_v14  ;;  %v2372_v5 = vand.u32 4294901760, %v2371_v14 }
 0x2dd   :  { %v2229_v25 = vmax.f32 %v2188_v45, 0.0  ;;  %v1880_v13 = vadd.f32 %v1879_v33, %v1772_v48 }
 0x2de   :  { %2748 = vmatmul.f32.gmra.mxu1 %v2372_v5  ;;  %v2373_v62 = vsub.f32 %v2371_v14, %v2372_v5  ;;  %v1647_v5 = vadd.f32 %v4313_v50, %v4286_v61 }
 0x2df   :  { %v2272_v53 = vsel %vm1471_vm4, %v2229_v25, 0  ;;  %v1996_v44 = vadd.f32 %v1995_v58, %v1880_v13 }
 0x2e0   :  { %v4394_v42 = vand.u32 4294901760, %v2272_v53  ;;  %v2102_v8 = vpop.f32.mrf.mxu0  ;;  %v2195_v6 = vpop.f32.mrf.mxu1  ;;  %v2374_v54 = vand.u32 4294901760, %v2373_v62 }
 0x2e1   :  { %v2103_v26 = vadd.f32 %v2102_v8, %v1984_v34  ;;  %v1889_v62 = vpop.f32.mrf.mxu2 }
 0x2e2   :  { %2375 = vmatmul.f32.gmra.mxu2 %v2374_v54  ;;  %2536 = vmatmul.f32.gmra.mxu3 %v4394_v42  ;;  %v2379_v35 = vsub.f32 %v2272_v53, %v4394_v42  ;;  %v1780_v53 = vadd.f32 %v4279_v49, %v1647_v5 }
 0x2e3   :  { %v2192_v17 = vadd.f32 %v2191_v22, %v2103_v26  ;;  %v1776_v22 = vadd.f32 %v4270_v18, %v1639_v43  ;;  %v1663_v43 = vadd.f32 %v4313_v50, %v4315_v20 }
 0x2e4   :  { %2641 = vmatmul.f32.gmra.mxu0 %v2379_v35  ;;  %v2380_v32 = vand.u32 4294901760, %v2379_v35  ;;  %v1890_v41 = vadd.f32 %v1889_v62, %v1780_v53 }
 0x2e5   :  { %v2230_v31 = vmax.f32 %v2192_v17, 0.0  ;;  %v1885_v45 = vadd.f32 %v1884_v4, %v1776_v22  ;;  %v1655_v17 = vadd.f32 %v4313_v50, %v4296_v19 }
 0x2e6   :  { %2754 = vmatmul.f32.gmra.mxu1 %v2380_v32  ;;  %v2381_v56 = vsub.f32 %v2379_v35, %v2380_v32 }
 0x2e7   :  { %v2275_v0 = vsel %vm1471_vm4, %v2230_v31, 0  ;;  %v2002_v33 = vadd.f32 %v2001_v55, %v1885_v45  ;;  %v1671_v45 = vadd.f32 %v4313_v50, %v4328_v24 }
 0x2e8   :  { %v4402_v40 = vand.u32 4294901760, %v2275_v0  ;;  %v2106_v39 = vpop.f32.mrf.mxu0  ;;  %v2199_v36 = vpop.f32.mrf.mxu1  ;;  %v2382_v60 = vand.u32 4294901760, %v2381_v56 }
 0x2e9   :  { %v2107_v63 = vadd.f32 %v2106_v39, %v1990_v28  ;;  %v1894_v56 = vpop.f32.mrf.mxu2 }
 0x2ea   :  { %2383 = vmatmul.f32.gmra.mxu2 %v2382_v60  ;;  %2540 = vmatmul.f32.gmra.mxu3 %v4402_v40  ;;  %v2387_v12 = vsub.f32 %v2275_v0, %v4402_v40  ;;  %v1784_v0 = vadd.f32 %v4288_v27, %v1655_v17 }
 0x2eb   :  { %v2196_v15 = vadd.f32 %v2195_v6, %v2107_v63  ;;  %v2007_v6 = vpop.f32.mrf.mxu3 }
 0x2ec   :  { %2646 = vmatmul.f32.gmra.mxu0 %v2387_v12  ;;  %v2388_v59 = vand.u32 4294901760, %v2387_v12  ;;  %v2008_v48 = vadd.f32 %v2007_v6, %v1890_v41  ;;  %v1895_v13 = vadd.f32 %v1894_v56, %v1784_v0 }
 0x2ed   :  { %v2231_v29 = vmax.f32 %v2196_v15, 0.0 }
 0x2ee   :  { %2760 = vmatmul.f32.gmra.mxu1 %v2388_v59  ;;  %v2389_v37 = vsub.f32 %v2387_v12, %v2388_v59 }
 0x2ef   :  { %v2278_v10 = vsel %vm1471_vm4, %v2231_v29, 0 }
 0x2f0   :  { %v4410_v57 = vand.u32 4294901760, %v2278_v10  ;;  %v2110_v38 = vpop.f32.mrf.mxu0  ;;  %v2390_v14 = vand.u32 4294901760, %v2389_v37  ;;  %v2203_v7 = vpop.f32.mrf.mxu1 }
 0x2f1   :  { %v2111_v16 = vadd.f32 %v2110_v38, %v1996_v44  ;;  %v1788_v44 = vadd.f32 %v4298_v21, %v1663_v43 }
 0x2f2   :  { %2391 = vmatmul.f32.gmra.mxu2 %v2390_v14  ;;  %2544 = vmatmul.f32.gmra.mxu3 %v4410_v57  ;;  %v2395_v30 = vsub.f32 %v2278_v10, %v4410_v57  ;;  %v1899_v10 = vpop.f32.mrf.mxu2 }
 0x2f3   :  { %v2200_v25 = vadd.f32 %v2199_v36, %v2111_v16  ;;  %v2013_v12 = vpop.f32.mrf.mxu3 }
 0x2f4   :  { %2651 = vmatmul.f32.gmra.mxu0 %v2395_v30  ;;  %v2396_v18 = vand.u32 4294901760, %v2395_v30  ;;  %v2014_v37 = vadd.f32 %v2013_v12, %v1895_v13 }
 0x2f5   :  { %v2232_v34 = vmax.f32 %v2200_v25, 0.0 }
 0x2f6   :  { %2766 = vmatmul.f32.gmra.mxu1 %v2396_v18  ;;  %v2397_v52 = vsub.f32 %v2395_v30, %v2396_v18  ;;  %v1900_v30 = vadd.f32 %v1899_v10, %v1788_v44 }
 0x2f7   :  { %v2281_v8 = vsel %vm1471_vm4, %v2232_v34, 0 }
 0x2f8   :  { %v4418_v54 = vand.u32 4294901760, %v2281_v8  ;;  %v2114_v26 = vpop.f32.mrf.mxu0  ;;  %v2398_v35 = vand.u32 4294901760, %v2397_v52  ;;  %v2207_v32 = vpop.f32.mrf.mxu1  ;;  %v1792_v52 = vadd.f32 %v4317_v9, %v1671_v45 }
 0x2f9   :  { %v2115_v1 = vadd.f32 %v2114_v26, %v2002_v33 }
 0x2fa   :  { %2399 = vmatmul.f32.gmra.mxu2 %v2398_v35  ;;  %2548 = vmatmul.f32.gmra.mxu3 %v4418_v54  ;;  %v2403_v61 = vsub.f32 %v2281_v8, %v4418_v54 }
 0x2fb   :  { %v2204_v58 = vadd.f32 %v2203_v7, %v2115_v1  ;;  %v2019_v25 = vpop.f32.mrf.mxu3  ;;  %v1904_v1 = vpop.f32.mrf.mxu2 }
 0x2fc   :  { %2656 = vmatmul.f32.gmra.mxu0 %v2403_v61  ;;  %v2404_v49 = vand.u32 4294901760, %v2403_v61  ;;  %v2020_v34 = vadd.f32 %v2019_v25, %v1900_v30  ;;  %v1905_v24 = vadd.f32 %v1904_v1, %v1792_v52 }
 0x2fd   :  { %v2233_v31 = vmax.f32 %v2204_v58, 0.0 }
 0x2fe   :  { %2772 = vmatmul.f32.gmra.mxu1 %v2404_v49  ;;  %v2405_v28 = vsub.f32 %v2403_v61, %v2404_v49 }
 0x2ff   :  { %v2284_v39 = vsel %vm1471_vm4, %v2233_v31, 0 }
 0x300   :  { %v4426_v36 = vand.u32 4294901760, %v2284_v39  ;;  %v2118_v60 = vpop.f32.mrf.mxu0  ;;  %v2406_v63 = vand.u32 4294901760, %v2405_v28  ;;  %v2211_v29 = vpop.f32.mrf.mxu1 }
 0x301   :  { %v2119_v4 = vadd.f32 %v2118_v60, %v2008_v48 }
 0x302   :  { %2407 = vmatmul.f32.gmra.mxu2 %v2406_v63  ;;  %2552 = vmatmul.f32.gmra.mxu3 %v4426_v36  ;;  %v2411_v19 = vsub.f32 %v2284_v39, %v4426_v36 }
 0x303   :  { %v2208_v15 = vadd.f32 %v2207_v32, %v2119_v4  ;;  %v2025_v9 = vpop.f32.mrf.mxu3 }
 0x304   :  { %2661 = vmatmul.f32.gmra.mxu0 %v2411_v19  ;;  %v2412_v27 = vand.u32 4294901760, %v2411_v19  ;;  %v2026_v32 = vadd.f32 %v2025_v9, %v1905_v24 }
 0x305   :  { %v2234_v59 = vmax.f32 %v2208_v15, 0.0 }
 0x306   :  { %2778 = vmatmul.f32.gmra.mxu1 %v2412_v27  ;;  %v2413_v55 = vsub.f32 %v2411_v19, %v2412_v27 }
 0x307   :  { %v2287_v22 = vsel %vm1471_vm4, %v2234_v59, 0 }
 0x308   :  { %v4434_v38 = vand.u32 4294901760, %v2287_v22  ;;  %v2122_v14 = vpop.f32.mrf.mxu0  ;;  %v2414_v16 = vand.u32 4294901760, %v2413_v55  ;;  %v2215_v8 = vpop.f32.mrf.mxu1 }
 0x309   :  { %v2123_v7 = vadd.f32 %v2122_v14, %v2014_v37  ;;  %v4462_v37 = vld [vmem:[%s4584_s8] ss:$0 sm:$0xff]  ;;  %s3176_s8 = smov [#allocation2]  }
 0x30a   :  { %2415 = vmatmul.f32.gmra.mxu2 %v2414_v16  ;;  %2556 = vmatmul.f32.gmra.mxu3 %v4434_v38  ;;  %v2419_v20 = vsub.f32 %v2287_v22, %v4434_v38  ;;  %s3135_s17 = sshll.u32 %s3176_s8, 4  ;;  %s3136_s17 = int_to_ptr.vmem [resolvable:$true] %s3135_s17 }
 0x30b   :  { %v2212_v5 = vadd.f32 %v2211_v29, %v2123_v7 }
 0x30c   :  { %2666 = vmatmul.f32.gmra.mxu0 %v2419_v20  ;;  %v2420_v21 = vand.u32 4294901760, %v2419_v20 }
 0x30d   :  { %v2235_v62 = vmax.f32 %v2212_v5, 0.0 }
 0x30e   :  { %2784 = vmatmul.f32.gmra.mxu1 %v2420_v21  ;;  %v2421_v18 = vsub.f32 %v2419_v20, %v2420_v21 }
 0x30f   :  { %v2290_v33 = vsel %vm1471_vm4, %v2235_v62, 0 }
 0x310   :  { %v4442_v53 = vand.u32 4294901760, %v2290_v33  ;;  %v2126_v6 = vpop.f32.mrf.mxu0  ;;  %v2422_v26 = vand.u32 4294901760, %v2421_v18  ;;  %v2219_v0 = vpop.f32.mrf.mxu1 }
 0x311   :  { %v2127_v35 = vadd.f32 %v2126_v6, %v2020_v34 }
 0x312   :  { %2423 = vmatmul.f32.gmra.mxu2 %v2422_v26  ;;  %2560 = vmatmul.f32.gmra.mxu3 %v4442_v53  ;;  %v2427_v50 = vsub.f32 %v2290_v33, %v4442_v53 }
 0x313   :  { %v2216_v61 = vadd.f32 %v2215_v8, %v2127_v35 }
 0x314   :  { %2671 = vmatmul.f32.gmra.mxu0 %v2427_v50  ;;  %v2428_v41 = vand.u32 4294901760, %v2427_v50 }
 0x315   :  { %v2236_v17 = vmax.f32 %v2216_v61, 0.0 }
 0x316   :  { %2790 = vmatmul.f32.gmra.mxu1 %v2428_v41  ;;  %v2429_v58 = vsub.f32 %v2427_v50, %v2428_v41 }
 0x317   :  { %v2293_v49 = vsel %vm1471_vm4, %v2236_v17, 0 }
 0x318   :  { %v4447_v31 = vand.u32 4294901760, %v2293_v49  ;;  %v2130_v56 = vpop.f32.mrf.mxu0  ;;  %v2430_v28 = vand.u32 4294901760, %v2429_v58 }
 0x319   :  { %v2131_v48 = vadd.f32 %v2130_v56, %v2026_v32 }
 0x31a   :  { %2431 = vmatmul.f32.gmra.mxu2 %v2430_v28  ;;  %2564 = vmatmul.f32.gmra.mxu3 %v4447_v31  ;;  %v2435_v39 = vsub.f32 %v2293_v49, %v4447_v31 }
 0x31b   :  { %v2220_v60 = vadd.f32 %v2219_v0, %v2131_v48 }
 0x31c   :  { %2676 = vmatmul.f32.gmra.mxu0 %v2435_v39  ;;  %v2436_v63 = vand.u32 4294901760, %v2435_v39 }
 0x31d   :  { %v2237_v4 = vmax.f32 %v2220_v60, 0.0 }
 0x31e   :  { %2796 = vmatmul.f32.gmra.mxu1 %v2436_v63  ;;  %v2437_v12 = vsub.f32 %v2435_v39, %v2436_v63 }
 0x31f   :  { %v2296_v19 = vsel %vm1471_vm4, %v2237_v4, 0  ;;  %vm3126_vm4 = vcmask 1048512  }
 0x320   :  { %v4452_v13 = vand.u32 4294901760, %v2296_v19  ;;  %v2438_v43 = vand.u32 4294901760, %v2437_v12 }
 0x322   :  { %2439 = vmatmul.f32.gmra.mxu2 %v2438_v43  ;;  %2568 = vmatmul.f32.gmra.mxu3 %v4452_v13  ;;  %v2443_v15 = vsub.f32 %v2296_v19, %v4452_v13 }
 0x324   :  { %2681 = vmatmul.f32.gmra.mxu0 %v2443_v15  ;;  %v2444_v27 = vand.u32 4294901760, %v2443_v15 }
 0x326   :  { %2802 = vmatmul.f32.gmra.mxu1 %v2444_v27  ;;  %v2445_v59 = vsub.f32 %v2443_v15, %v2444_v27 }
 0x328   :  { %v2446_v29 = vand.u32 4294901760, %v2445_v59 }
 0x329   :  { %v2607_v63 = vpop.f32.mrf.mxu0 }
 0x32a   :  { %2447 = vmatmul.f32.gmra.mxu2 %v2446_v29  ;;  %2936 = vmatmul.f32.vlgmr.msrb.gmra.mxu3 %v4338_v2 }
 0x32d   :  { %v2509_v55 = vpop.f32.mrf.mxu3 }
 0x332   :  { %2847 = vmatmul.f32.vlgmr.msrb.gmra.mxu2 %v4338_v2  ;;  %2940 = vmatmul.f32.gmra.mxu3 %v4346_v51 }
 0x335   :  { %v2328_v44 = vpop.f32.mrf.mxu2  ;;  %v2513_v22 = vpop.f32.mrf.mxu3 }
 0x336   :  { %v2329_v10 = vadd.f32 %v4462_v37, %v2328_v44 }
 0x338   :  { %v4465_v14 = vadd.f32 %v2509_v55, %v2329_v10 }
 0x33a   :  { %2851 = vmatmul.f32.gmra.mxu2 %v4346_v51  ;;  %2944 = vmatmul.f32.gmra.mxu3 %v4354_v11 }
 0x33d   :  { %v2336_v16 = vpop.f32.mrf.mxu2  ;;  %v2517_v7 = vpop.f32.mrf.mxu3 }
 0x33e   :  { %v2337_v2 = vadd.f32 %v4462_v37, %v2336_v16 }
 0x340   :  { %v4470_v20 = vadd.f32 %v2513_v22, %v2337_v2 }
 0x342   :  { %2855 = vmatmul.f32.gmra.mxu2 %v4354_v11  ;;  %2948 = vmatmul.f32.gmra.mxu3 %v4362_v23 }
 0x345   :  { %v2344_v30 = vpop.f32.mrf.mxu2  ;;  %v2521_v45 = vpop.f32.mrf.mxu3 }
 0x346   :  { %v2345_v5 = vadd.f32 %v4462_v37, %v2344_v30 }
 0x348   :  { %v4475_v25 = vadd.f32 %v2517_v7, %v2345_v5 }
 0x34a   :  { %2859 = vmatmul.f32.gmra.mxu2 %v4362_v23  ;;  %2952 = vmatmul.f32.gmra.mxu3 %v4370_v3 }
 0x34d   :  { %v2352_v51 = vpop.f32.mrf.mxu2  ;;  %v2525_v21 = vpop.f32.mrf.mxu3 }
 0x34e   :  { %v2353_v62 = vadd.f32 %v4462_v37, %v2352_v51 }
 0x350   :  { %v4480_v18 = vadd.f32 %v2521_v45, %v2353_v62 }
 0x352   :  { %2863 = vmatmul.f32.gmra.mxu2 %v4370_v3  ;;  %2956 = vmatmul.f32.gmra.mxu3 %v4378_v46 }
 0x355   :  { %v2360_v11 = vpop.f32.mrf.mxu2  ;;  %v2529_v34 = vpop.f32.mrf.mxu3 }
 0x356   :  { %v2361_v52 = vadd.f32 %v4462_v37, %v2360_v11 }
 0x358   :  { %v4485_v33 = vadd.f32 %v2525_v21, %v2361_v52 }
 0x35a   :  { %2867 = vmatmul.f32.gmra.mxu2 %v4378_v46  ;;  %2960 = vmatmul.f32.gmra.mxu3 %v4386_v47 }
 0x35d   :  { %v2368_v23 = vpop.f32.mrf.mxu2  ;;  %v2533_v8 = vpop.f32.mrf.mxu3 }
 0x35e   :  { %v2369_v6 = vadd.f32 %v4462_v37, %v2368_v23 }
 0x360   :  { %v4490_v26 = vadd.f32 %v2529_v34, %v2369_v6 }
 0x362   :  { %2871 = vmatmul.f32.gmra.mxu2 %v4386_v47  ;;  %2964 = vmatmul.f32.gmra.mxu3 %v4394_v42 }
 0x365   :  { %v2376_v3 = vpop.f32.mrf.mxu2  ;;  %v2537_v35 = vpop.f32.mrf.mxu3 }
 0x366   :  { %v2377_v1 = vadd.f32 %v4462_v37, %v2376_v3 }
 0x368   :  { %v4495_v50 = vadd.f32 %v2533_v8, %v2377_v1 }
 0x36a   :  { %2875 = vmatmul.f32.gmra.mxu2 %v4394_v42  ;;  %2968 = vmatmul.f32.gmra.mxu3 %v4402_v40 }
 0x36d   :  { %v2384_v46 = vpop.f32.mrf.mxu2  ;;  %v2541_v24 = vpop.f32.mrf.mxu3 }
 0x36e   :  { %v2385_v61 = vadd.f32 %v4462_v37, %v2384_v46 }
 0x370   :  { %v4500_v41 = vadd.f32 %v2537_v35, %v2385_v61 }
 0x372   :  { %2879 = vmatmul.f32.gmra.mxu2 %v4402_v40  ;;  %2972 = vmatmul.f32.gmra.mxu3 %v4410_v57 }
 0x375   :  { %v2392_v47 = vpop.f32.mrf.mxu2  ;;  %v2545_v17 = vpop.f32.mrf.mxu3 }
 0x376   :  { %v2393_v9 = vadd.f32 %v4462_v37, %v2392_v47 }
 0x378   :  { %v4505_v58 = vadd.f32 %v2541_v24, %v2393_v9 }
 0x37a   :  { %2883 = vmatmul.f32.gmra.mxu2 %v4410_v57  ;;  %2976 = vmatmul.f32.gmra.mxu3 %v4418_v54 }
 0x37d   :  { %v2400_v42 = vpop.f32.mrf.mxu2  ;;  %v2549_v32 = vpop.f32.mrf.mxu3 }
 0x37e   :  { %v2401_v49 = vadd.f32 %v4462_v37, %v2400_v42 }
 0x380   :  { %v4510_v56 = vadd.f32 %v2545_v17, %v2401_v49 }
 0x382   :  { %2887 = vmatmul.f32.gmra.mxu2 %v4418_v54  ;;  %2980 = vmatmul.f32.gmra.mxu3 %v4426_v36  ;;  %v2713_v54 = vpop.f32.mrf.mxu1 }
 0x385   :  { %v2408_v40 = vpop.f32.mrf.mxu2  ;;  %v2553_v28 = vpop.f32.mrf.mxu3 }
 0x386   :  { %v2409_v48 = vadd.f32 %v4462_v37, %v2408_v40 }
 0x388   :  { %v4515_v0 = vadd.f32 %v2549_v32, %v2409_v48 }
 0x38a   :  { %2891 = vmatmul.f32.gmra.mxu2 %v4426_v36  ;;  %2984 = vmatmul.f32.gmra.mxu3 %v4434_v38  ;;  %v2612_v36 = vpop.f32.mrf.mxu0  ;;  %v2719_v29 = vpop.f32.mrf.mxu1 }
 0x38b   :  { %v2613_v6 = vadd.f32 %v2612_v36, %v4470_v20 }
 0x38d   :  { %v2416_v57 = vpop.f32.mrf.mxu2  ;;  %v2557_v39 = vpop.f32.mrf.mxu3  ;;  %v2720_v35 = vadd.f32 %v2719_v29, %v2613_v6 }
 0x38e   :  { %v2417_v60 = vadd.f32 %v4462_v37, %v2416_v57 }
 0x390   :  { %v4520_v4 = vadd.f32 %v2553_v28, %v2417_v60 }
 0x392   :  { %2895 = vmatmul.f32.gmra.mxu2 %v4434_v38  ;;  %2988 = vmatmul.f32.gmra.mxu3 %v4442_v53  ;;  %v2617_v44 = vpop.f32.mrf.mxu0  ;;  %v2725_v7 = vpop.f32.mrf.mxu1 }
 0x395   :  { %v2424_v12 = vpop.f32.mrf.mxu2  ;;  %v2561_v19 = vpop.f32.mrf.mxu3 }
 0x396   :  { %v2425_v43 = vadd.f32 %v4462_v37, %v2424_v12 }
 0x398   :  { %v4525_v15 = vadd.f32 %v2557_v39, %v2425_v43 }
 0x39a   :  { %2899 = vmatmul.f32.gmra.mxu2 %v4442_v53  ;;  %2992 = vmatmul.f32.gmra.mxu3 %v4447_v31  ;;  %v2622_v45 = vpop.f32.mrf.mxu0  ;;  %v2731_v21 = vpop.f32.mrf.mxu1 }
 0x39b   :  { %v2623_v40 = vadd.f32 %v2622_v45, %v4480_v18 }
 0x39d   :  { %v2432_v27 = vpop.f32.mrf.mxu2  ;;  %v2565_v59 = vpop.f32.mrf.mxu3  ;;  %v2732_v57 = vadd.f32 %v2731_v21, %v2623_v40 }
 0x39e   :  { %v2433_v55 = vadd.f32 %v4462_v37, %v2432_v27 }
 0x3a0   :  { %v4530_v38 = vadd.f32 %v2561_v19, %v2433_v55 }
 0x3a2   :  { %2903 = vmatmul.f32.gmra.mxu2 %v4447_v31  ;;  %2996 = vmatmul.f32.gmra.mxu3 %v4452_v13  ;;  %v2608_v31 = vadd.f32 %v2607_v63, %v4465_v14  ;;  %v2627_v23 = vpop.f32.mrf.mxu0  ;;  %v2737_v3 = vpop.f32.mrf.mxu1  ;;  %v2618_v14 = vadd.f32 %v2617_v44, %v4475_v25 }
 0x3a3   :  { %v2628_v12 = vadd.f32 %v2627_v23, %v4485_v33 }
 0x3a4   :  { %v2714_v62 = vadd.f32 %v2713_v54, %v2608_v31  ;;  %v2726_v17 = vadd.f32 %v2725_v7, %v2618_v14 }
 0x3a5   :  { %v2440_v22 = vpop.f32.mrf.mxu2  ;;  %v2569_v10 = vpop.f32.mrf.mxu3  ;;  %v2738_v43 = vadd.f32 %v2737_v3, %v2628_v12 }
 0x3a6   :  { %v2441_v16 = vadd.f32 %v4462_v37, %v2440_v22 }
 0x3a8   :  { %v4535_v53 = vadd.f32 %v2565_v59, %v2441_v16 }
 0x3aa   :  { %2907 = vmatmul.f32.gmra.mxu2 %v4452_v13  ;;  %v2632_v61 = vpop.f32.mrf.mxu0  ;;  %v2743_v32 = vpop.f32.mrf.mxu1 }
 0x3ab   :  { %v2633_v55 = vadd.f32 %v2632_v61, %v4490_v26 }
 0x3ad   :  { %v2448_v2 = vpop.f32.mrf.mxu2  ;;  %v2937_v30 = vpop.f32.mrf.mxu3 }
 0x3ae   :  { %v2449_v5 = vadd.f32 %v4462_v37, %v2448_v2 }
 0x3b0   :  { %v4539_v51 = vadd.f32 %v2569_v10, %v2449_v5  ;;  %v2744_v10 = vadd.f32 %v2743_v32, %v2633_v55 }
 0x3b2   :  { %v2637_v48 = vpop.f32.mrf.mxu0  ;;  %v2749_v63 = vpop.f32.mrf.mxu1 }
 0x3b3   :  { %v2638_v45 = vadd.f32 %v2637_v48, %v4495_v50 }
 0x3b5   :  { %v2848_v11 = vpop.f32.mrf.mxu2  ;;  %v2941_v34 = vpop.f32.mrf.mxu3  ;;  %v2750_v21 = vadd.f32 %v2749_v63, %v2638_v45 }
 0x3b6   :  { %v2849_v52 = vadd.f32 %v2848_v11, %v2714_v62 }
 0x3b8   :  { %v2938_v8 = vadd.f32 %v2937_v30, %v2849_v52 }
 0x3ba   :  { %v3001_v13 = vsel %vm3000_vm5, %v2938_v8, inf  ;;  %v2642_v59 = vpop.f32.mrf.mxu0  ;;  %v2755_v44 = vpop.f32.mrf.mxu1 }
 0x3bb   :  { %3002 = vmin.xlane.f32.xlu0 %v3001_v13  ;;  %v2643_v52 = vadd.f32 %v2642_v59, %v4500_v41 }
 0x3bd   :  { %v2852_v37 = vpop.f32.mrf.mxu2  ;;  %v2945_v1 = vpop.f32.mrf.mxu3  ;;  %v2756_v6 = vadd.f32 %v2755_v44, %v2643_v52 }
 0x3be   :  { %v2853_v46 = vadd.f32 %v2852_v37, %v2720_v35 }
 0x3c0   :  { %v2942_v24 = vadd.f32 %v2941_v34, %v2853_v46 }
 0x3c2   :  { %v3004_v47 = vsel %vm3000_vm5, %v2942_v24, inf  ;;  %v2647_v33 = vpop.f32.mrf.mxu0  ;;  %v2761_v31 = vpop.f32.mrf.mxu1 }
 0x3c3   :  { %3005 = vmin.xlane.f32.xlu0 %v3004_v47 }
 0x3c5   :  { %v2856_v9 = vpop.f32.mrf.mxu2  ;;  %v2949_v42 = vpop.f32.mrf.mxu3 }
 0x3c6   :  { %v2857_v20 = vadd.f32 %v2856_v9, %v2726_v17 }
 0x3c8   :  { %v2946_v49 = vadd.f32 %v2945_v1, %v2857_v20  ;;  %v2648_v1 = vadd.f32 %v2647_v33, %v4505_v58 }
 0x3ca   :  { %v3007_v28 = vsel %vm3000_vm5, %v2946_v49, inf  ;;  %v2652_v23 = vpop.f32.mrf.mxu0  ;;  %v2767_v50 = vpop.f32.mrf.mxu1  ;;  %v2762_v14 = vadd.f32 %v2761_v31, %v2648_v1 }
 0x3cb   :  { %3008 = vmin.xlane.f32.xlu1 %v3007_v28  ;;  %v2653_v9 = vadd.f32 %v2652_v23, %v4510_v56 }
 0x3cd   :  { %v2860_v39 = vpop.f32.mrf.mxu2  ;;  %v2953_v60 = vpop.f32.mrf.mxu3  ;;  %v2768_v20 = vadd.f32 %v2767_v50, %v2653_v9 }
 0x3ce   :  { %v2861_v25 = vadd.f32 %v2860_v39, %v2732_v57 }
 0x3d0   :  { %v2950_v54 = vadd.f32 %v2949_v42, %v2861_v25 }
 0x3d2   :  { %v3010_v19 = vsel %vm3000_vm5, %v2950_v54, inf  ;;  %v2657_v24 = vpop.f32.mrf.mxu0  ;;  %v2773_v42 = vpop.f32.mrf.mxu1 }
 0x3d3   :  { %3011 = vmin.xlane.f32.xlu1 %v3010_v19  ;;  %v2658_v57 = vadd.f32 %v2657_v24, %v4515_v0 }
 0x3d5   :  { %v2864_v36 = vpop.f32.mrf.mxu2  ;;  %v2957_v27 = vpop.f32.mrf.mxu3  ;;  %v2774_v25 = vadd.f32 %v2773_v42, %v2658_v57 }
 0x3d6   :  { %v2865_v18 = vadd.f32 %v2864_v36, %v2738_v43 }
 0x3d8   :  { %v2954_v29 = vadd.f32 %v2953_v60, %v2865_v18 }
 0x3da   :  { %v3013_v22 = vsel %vm3000_vm5, %v2954_v29, inf  ;;  %v2662_v58 = vpop.f32.mrf.mxu0  ;;  %v2779_v60 = vpop.f32.mrf.mxu1 }
 0x3db   :  { %3014 = vmin.xlane.f32.xlu2 %v3013_v22  ;;  %v2663_v19 = vadd.f32 %v2662_v58, %v4520_v4 }
 0x3dd   :  { %v2868_v16 = vpop.f32.mrf.mxu2  ;;  %v2961_v7 = vpop.f32.mrf.mxu3 }
 0x3de   :  { %v2869_v2 = vadd.f32 %v2868_v16, %v2744_v10 }
 0x3e0   :  { %v2958_v30 = vadd.f32 %v2957_v27, %v2869_v2  ;;  %v2780_v27 = vadd.f32 %v2779_v60, %v2663_v19 }
 0x3e2   :  { %v3016_v5 = vsel %vm3000_vm5, %v2958_v30, inf  ;;  %v2667_v43 = vpop.f32.mrf.mxu0  ;;  %v2785_v59 = vpop.f32.mrf.mxu1 }
 0x3e3   :  { %3017 = vmin.xlane.f32.xlu2 %v3016_v5  ;;  %v2668_v55 = vadd.f32 %v2667_v43, %v4525_v15 }
 0x3e5   :  { %v2872_v62 = vpop.f32.mrf.mxu2  ;;  %v2965_v11 = vpop.f32.mrf.mxu3  ;;  %v2786_v16 = vadd.f32 %v2785_v59, %v2668_v55 }
 0x3e6   :  { %v2873_v26 = vadd.f32 %v2872_v62, %v2750_v21 }
 0x3e8   :  { %v2962_v34 = vadd.f32 %v2961_v7, %v2873_v26 }
 0x3ea   :  { %v3019_v8 = vsel %vm3000_vm5, %v2962_v34, inf  ;;  %v2672_v10 = vpop.f32.mrf.mxu0  ;;  %v2791_v4 = vpop.f32.mrf.mxu1 }
 0x3eb   :  { %3020 = vmin.xlane.f32.xlu0 %v3019_v8  ;;  %v2673_v30 = vadd.f32 %v2672_v10, %v4530_v38 }
 0x3ed   :  { %v2876_v13 = vpop.f32.mrf.mxu2  ;;  %v2969_v3 = vpop.f32.mrf.mxu3  ;;  %v2792_v31 = vadd.f32 %v2791_v4, %v2673_v30 }
 0x3ee   :  { %v2877_v35 = vadd.f32 %v2876_v13, %v2756_v6 }
 0x3f0   :  { %v2966_v37 = vadd.f32 %v2965_v11, %v2877_v35 }
 0x3f2   :  { %v3022_v46 = vsel %vm3000_vm5, %v2966_v37, inf  ;;  %v2677_v21 = vpop.f32.mrf.mxu0  ;;  %v2797_v34 = vpop.f32.mrf.mxu1 }
 0x3f3   :  { %3023 = vmin.xlane.f32.xlu1 %v3022_v46  ;;  %v2678_v26 = vadd.f32 %v2677_v21, %v4535_v53 }
 0x3f5   :  { %v2880_v61 = vpop.f32.mrf.mxu2  ;;  %v2973_v47 = vpop.f32.mrf.mxu3  ;;  %v2798_v23 = vadd.f32 %v2797_v34, %v2678_v26 }
 0x3f6   :  { %v2881_v41 = vadd.f32 %v2880_v61, %v2762_v14 }
 0x3f8   :  { %v2970_v17 = vadd.f32 %v2969_v3, %v2881_v41 }
 0x3fa   :  { %v3025_v32 = vsel %vm3000_vm5, %v2970_v17, inf  ;;  %v2682_v38 = vpop.f32.mrf.mxu0  ;;  %v2803_v37 = vpop.f32.mrf.mxu1 }
 0x3fb   :  { %3026 = vmin.xlane.f32.xlu2 %v3025_v32  ;;  %v2683_v35 = vadd.f32 %v2682_v38, %v4539_v51 }
 0x3fd   :  { %v2884_v49 = vpop.f32.mrf.mxu2  ;;  %v2977_v40 = vpop.f32.mrf.mxu3  ;;  %v2804_v1 = vadd.f32 %v2803_v37, %v2683_v35 }
 0x3fe   :  { %v2885_v28 = vadd.f32 %v2884_v49, %v2768_v20  ;;  %v3065_v20 = vlaneseq }
 0x400   :  { %v2974_v48 = vadd.f32 %v2973_v47, %v2885_v28 }
 0x402   :  { %v3028_v39 = vsel %vm3000_vm5, %v2974_v48, inf }
 0x403   :  { %3029 = vmin.xlane.f32.xlu0 %v3028_v39 }
 0x405   :  { %v2888_v63 = vpop.f32.mrf.mxu2  ;;  %v2981_v56 = vpop.f32.mrf.mxu3 }
 0x406   :  { %v2889_v54 = vadd.f32 %v2888_v63, %v2774_v25 }
 0x408   :  { %v2978_v12 = vadd.f32 %v2977_v40, %v2889_v54  ;;  %v3066_v40 = vand.u32 127, %v3065_v20 }
 0x40a   :  { %v3031_v36 = vsel %vm3000_vm5, %v2978_v12, inf  ;;  %v3068_v58 = vadd.s32 4294967288, %v3066_v40  ;;  %v3072_v48 = vadd.s32 4294967280, %v3066_v40  ;;  %v3076_v57 = vadd.s32 4294967272, %v3066_v40 }
 0x40b   :  { %3032 = vmin.xlane.f32.xlu1 %v3031_v36  ;;  %v3080_v39 = vadd.s32 4294967264, %v3066_v40  ;;  %v3084_v63 = vadd.s32 4294967256, %v3066_v40  ;;  %v3092_v36 = vadd.s32 4294967240, %v3066_v40  ;;  %v3100_v55 = vadd.s32 4294967224, %v3066_v40 }
 0x40c   :  { %v3104_v10 = vadd.s32 4294967216, %v3066_v40  ;;  %v3112_v30 = vadd.s32 4294967200, %v3066_v40  ;;  %v3116_v21 = vadd.s32 4294967192, %v3066_v40  ;;  %v3120_v26 = vadd.s32 4294967184, %v3066_v40 }
 0x40d   :  { %v2892_v18 = vpop.f32.mrf.mxu2  ;;  %v2985_v44 = vpop.f32.mrf.mxu3 }
 0x40e   :  { %v2893_v29 = vadd.f32 %v2892_v18, %v2780_v27  ;;  %v3096_v18 = vadd.s32 4294967232, %v3066_v40 }
 0x410   :  { %v2982_v0 = vadd.f32 %v2981_v56, %v2893_v29  ;;  %v3088_v56 = vadd.s32 4294967248, %v3066_v40 }
 0x412   :  { %v3034_v22 = vsel %vm3000_vm5, %v2982_v0, inf }
 0x413   :  { %3035 = vmin.xlane.f32.xlu2 %v3034_v22 }
 0x415   :  { %v2896_v7 = vpop.f32.mrf.mxu2  ;;  %v2989_v5 = vpop.f32.mrf.mxu3 }
 0x416   :  { %v2897_v2 = vadd.f32 %v2896_v7, %v2786_v16 }
 0x418   :  { %v2986_v33 = vadd.f32 %v2985_v44, %v2897_v2  ;;  %v3108_v2 = vadd.s32 4294967208, %v3066_v40 }
 0x41a   :  { %v3037_v45 = vsel %vm3000_vm5, %v2986_v33, inf }
 0x41b   :  { %3038 = vmin.xlane.f32.xlu0 %v3037_v45 }
 0x41d   :  { %v2900_v62 = vpop.f32.mrf.mxu2  ;;  %v2993_v8 = vpop.f32.mrf.mxu3 }
 0x41e   :  { %v2901_v15 = vadd.f32 %v2900_v62, %v2792_v31 }
 0x420   :  { %v2990_v11 = vadd.f32 %v2989_v5, %v2901_v15 }
 0x422   :  { %v3040_v52 = vsel %vm3000_vm5, %v2990_v11, inf }
 0x423   :  { %3041 = vmin.xlane.f32.xlu1 %v3040_v52 }
 0x425   :  { %v2904_v6 = vpop.f32.mrf.mxu2  ;;  %v2997_v53 = vpop.f32.mrf.mxu3 }
 0x426   :  { %v2905_v13 = vadd.f32 %v2904_v6, %v2798_v23 }
 0x428   :  { %v2994_v3 = vadd.f32 %v2993_v8, %v2905_v13 }
 0x42a   :  { %v3043_v50 = vsel %vm3000_vm5, %v2994_v3, inf  ;;  %v3124_v3 = vadd.s32 4294967176, %v3066_v40 }
 0x42b   :  { %3044 = vmin.xlane.f32.xlu2 %v3043_v50 }
 0x42d   :  { %v2908_v46 = vpop.f32.mrf.mxu2 }
 0x42e   :  { %v2909_v24 = vadd.f32 %v2908_v46, %v2804_v1  ;;  %v3003_v47 = vpop.xlane.xlu0 %3002 }
 0x42f   :  { %v3067_v19 = vperm.slane %v3003_v47, %v3066_v40 }
 0x430   :  { %v2998_v14 = vadd.f32 %v2997_v53, %v2909_v24 }
 0x432   :  { %v3046_v61 = vsel %vm3000_vm5, %v2998_v14, inf }
 0x433   :  { %3047 = vmin.xlane.f32.xlu0 %v3046_v61 }
 0x436   :  { %v3006_v9 = vpop.xlane.xlu0 %3005 }
 0x437   :  { %v3069_v25 = vperm.slane %v3006_v9, %v3068_v58 }
 0x439   :  { %v3071_v29 = vsel %vm3070_vm6, %v3069_v25, %v3067_v19 }
 0x43e   :  { %v3009_v41 = vpop.xlane.xlu1 %3008 }
 0x43f   :  { %v3073_v54 = vperm.slane %v3009_v41, %v3072_v48 }
 0x441   :  { %v3075_v44 = vsel %vm3074_vm7, %v3073_v54, %v3071_v29 }
 0x446   :  { %v3012_v42 = vpop.xlane.xlu1 %3011 }
 0x447   :  { %v3077_v43 = vperm.slane %v3012_v42, %v3076_v57 }
 0x449   :  { %v3079_v16 = vsel %vm3078_vm8, %v3077_v43, %v3075_v44 }
 0x44e   :  { %v3015_v17 = vpop.xlane.xlu2 %3014 }
 0x44f   :  { %v3081_v59 = vperm.slane %v3015_v17, %v3080_v39 }
 0x451   :  { %v3083_v4 = vsel %vm3082_vm9, %v3081_v59, %v3079_v16 }
 0x456   :  { %v3018_v32 = vpop.xlane.xlu2 %3017 }
 0x457   :  { %v3085_v0 = vperm.slane %v3018_v32, %v3084_v63 }
 0x459   :  { %v3087_v5 = vsel %vm3086_vm10, %v3085_v0, %v3083_v4 }
 0x45e   :  { %v3021_v51 = vpop.xlane.xlu0 %3020 }
 0x45f   :  { %v3089_v22 = vperm.slane %v3021_v51, %v3088_v56 }
 0x461   :  { %v3091_v62 = vsel %vm3090_vm11, %v3089_v22, %v3087_v5 }
 0x466   :  { %v3024_v49 = vpop.xlane.xlu1 %3023 }
 0x467   :  { %v3093_v7 = vperm.slane %v3024_v49, %v3092_v36 }
 0x469   :  { %v3095_v34 = vsel %vm3094_vm12, %v3093_v7, %v3091_v62 }
 0x46e   :  { %v3027_v28 = vpop.xlane.xlu2 %3026 }
 0x46f   :  { %v3097_v33 = vperm.slane %v3027_v28, %v3096_v18 }
 0x471   :  { %v3099_v8 = vsel %vm3098_vm13, %v3097_v33, %v3095_v34 }
 0x476   :  { %v3030_v60 = vpop.xlane.xlu0 %3029 }
 0x477   :  { %v3101_v31 = vperm.slane %v3030_v60, %v3100_v55 }
 0x479   :  { %v3103_v13 = vsel %vm3102_vm14, %v3101_v31, %v3099_v8 }
 0x47e   :  { %v3033_v12 = vpop.xlane.xlu1 %3032 }
 0x47f   :  { %v3105_v15 = vperm.slane %v3033_v12, %v3104_v10 }
 0x481   :  { %v3107_v35 = vsel %vm3106_vm15, %v3105_v15, %v3103_v13 }
 0x486   :  { %v3036_v27 = vpop.xlane.xlu2 %3035 }
 0x487   :  { %v3109_v52 = vperm.slane %v3036_v27, %v3108_v2 }
 0x489   :  { %v3111_v37 = vsel %vm3110_vm0, %v3109_v52, %v3107_v35 }
 0x48e   :  { %v3039_v45 = vpop.xlane.xlu0 %3038 }
 0x48f   :  { %v3113_v6 = vperm.slane %v3039_v45, %v3112_v30 }
 0x491   :  { %v3115_v1 = vsel %vm3114_vm1, %v3113_v6, %v3111_v37 }
 0x496   :  { %v3042_v11 = vpop.xlane.xlu1 %3041 }
 0x497   :  { %v3117_v38 = vperm.slane %v3042_v11, %v3116_v21 }
 0x499   :  { %v3119_v24 = vsel %vm3118_vm2, %v3117_v38, %v3115_v1 }
 0x49e   :  { %v3045_v23 = vpop.xlane.xlu2 %3044 }
 0x49f   :  { %v3121_v50 = vperm.slane %v3045_v23, %v3120_v26 }
 0x4a1   :  { %v3123_v14 = vsel %vm3122_vm3, %v3121_v50, %v3119_v24 }
 0x4a6   :  { %v3048_v46 = vpop.xlane.xlu0 %3047 }
 0x4a7   :  { %v3125_v53 = vperm.slane %v3048_v46, %v3124_v3 }
 0x4a9   :  { %v3127_v61 = vsel %vm3126_vm4, %v3125_v53, %v3123_v14 }
 0x4aa   :  { %3129 = vst [vmem:[#allocation2] sm:$0x1] %v3127_v61 }
 0x4ab   :  { %3140 = dma.vmem_to_hbm [thread:$0]  %s3136_s17, 16, %s3138_s20, [#allocation3]  }
 0x4ac   :  { %3174 = dma.done.wait [#allocation3], 16  }
 0x4ad   :  { %3175 = vsyncadd [#allocation3], 4294967280 }
 0x4ae   :  { %3145 = vsyncpa [#allocation3], 1 }

// kernel: tpu_custom_call.1
= control target key start
LH: loop header
LB: loop body
LE: loop exit
PB: predicated region body
PF: predicated region fallthrough
CT: control target
= control target key end

     0   :  { %vm118_vm0 = vcmask 1045504   ;;  %vm69_vm1 = vcmask 48128   ;;  %vm782_vm2 = vcmask 1040384   ;;  %s4576_s0 = inlined_call_operand.vmem [shape: f32[128,17], index: 0, kind: input, shape index: {}]   ;;  %s4577_s1 = inlined_call_operand.vmem [shape: f32[128,6], index: 1, kind: input, shape index: {}]   ;;  %s4578_s2 = inlined_call_operand.vmem [shape: f32[17,64], index: 2, kind: input, shape index: {}]   ;;  %s4579_s3 = inlined_call_operand.vmem [shape: f32[6,64], index: 3, kind: input, shape index: {}]   ;;  %s4580_s4 = inlined_call_operand.vmem [shape: f32[1,64], index: 4, kind: input, shape index: {}]   ;;  %s4581_s5 = inlined_call_operand.vmem [shape: f32[64,64], index: 5, kind: input, shape index: {}]   ;;  %s4582_s6 = inlined_call_operand.vmem [shape: f32[1,64], index: 6, kind: input, shape index: {}]   ;;  %s4583_s7 = inlined_call_operand.vmem [shape: f32[64,2], index: 7, kind: input, shape index: {}]   ;;  %s4584_s8 = inlined_call_operand.vmem [shape: f32[1,2], index: 8, kind: input, shape index: {}]   ;;  %s4585_s9 = inlined_call_operand.hbm [shape: f32[1,128], index: 9, kind: output, shape index: {}]  }
   0x1   :  { %v68_v0 = vld [vmem:[%s4579_s3] sm:$0x3f]  ;;  %v67_v4 = vld [vmem:[%s4578_s2 + $0x10] sm:$0x1]  ;;  %v50_v5 = vld [vmem:[%s4577_s1 + $0x8] sm:$0xff] }
   0x2   :  { %v49_v1 = vld [vmem:[%s4577_s1] sm:$0xff]  ;;  %v120_v2 = vsel %vm118_vm0, %v68_v0, 0  ;;  %v784_v8 = vsel %vm782_vm2, %v67_v4, 0  ;;  %v74_v9 = vsel %vm69_vm1, %v50_v5, 0  ;;  %v51_v10 = vld [vmem:[%s4577_s1 + $0x10] sm:$0xff] }
   0x3   :  { %v71_v3 = vsel %vm69_vm1, %v49_v1, 0  ;;  %v137_v6 = vand.u32 4294901760, %v120_v2  ;;  %v3246_v11 = vand.u32 4294901760, %v784_v8  ;;  %v3248_v12 = vand.u32 4294901760, %v74_v9 }
   0x4   :  { %v3240_v7 = vand.u32 4294901760, %v71_v3  ;;  %v77_v17 = vsel %vm69_vm1, %v51_v10, 0 }
   0x5   :  { %v284_v13 = vsub.f32 %v120_v2, %v137_v6  ;;  %469 = vmatpush.msra.mxu3 %v137_v6  ;;  %138 = vmatpush.msra.mxu0 %v137_v6  ;;  %v3252_v15 = vsub.f32 %v784_v8, %v3246_v11  ;;  %v148_v16 = vsub.f32 %v74_v9, %v3248_v12 }
   0x6   :  { %v140_v14 = vsub.f32 %v71_v3, %v3240_v7 }
   0x7   :  { %14 = vsyncpa [#allocation3], 0  ;;  %371 = vmatpush.msra.mxu2 %v284_v13  ;;  %v285_v19 = vand.u32 4294901760, %v284_v13  ;;  %v949_v20 = vand.u32 4294901760, %v3252_v15  ;;  %v149_v23 = vand.u32 4294901760, %v148_v16  ;;  %v3258_v24 = vand.u32 4294901760, %v77_v17 }
   0x8   :  { %v141_v18 = vand.u32 4294901760, %v140_v14  ;;  %374 = vmatmul.f32.vlgmr.msra.gmra.mxu2 %v140_v14  ;;  %v52_v28 = vld [vmem:[%s4577_s1 + $0x18] sm:$0xff]  ;;  %v53_v36 = vld [vmem:[%s4577_s1 + $0x20] sm:$0xff]  ;;  %v66_v40 = vld [vmem:[%s4578_s2 + $0x8] sm:$0xff]  ;;  %vm733_vm3 = vcmask 138240   ;;  %vm1471_vm4 = vcmask 523264  }
   0x9   :  { %800 = vmatpush.msrb.mxu2 %v3246_v11  ;;  %v286_v22 = vsub.f32 %v284_v13, %v285_v19  ;;  %585 = vmatpush.msrb.mxu0 %v285_v19  ;;  %v950_v25 = vsub.f32 %v3252_v15, %v949_v20  ;;  %v150_v30 = vsub.f32 %v148_v16, %v149_v23  ;;  %v80_v32 = vsel %vm69_vm1, %v52_v28, 0  ;;  %v54_v46 = vld [vmem:[%s4577_s1 + $0x28] sm:$0xff]  ;;  %v55_v56 = vld [vmem:[%s4577_s1 + $0x30] sm:$0xff]  ;;  %v56_v63 = vld [vmem:[%s4577_s1 + $0x38] sm:$0xff]  ;;  %s3137_s20 = sshll.u32 %s4585_s9, 4  ;;  %s3138_s20 = int_to_ptr.hbm [resolvable:$true] %s3137_s20 }
   0xa   :  { %473 = vmatmul.f32.vlgmr.msra.gmra.mxu3 %v141_v18  ;;  %v142_v21 = vsub.f32 %v140_v14, %v141_v18  ;;  %v156_v31 = vsub.f32 %v77_v17, %v3258_v24  ;;  %v3271_v35 = vand.u32 4294901760, %v80_v32  ;;  %v83_v39 = vsel %vm69_vm1, %v53_v36, 0  ;;  %v58_v17 = vld [vmem:[%s4577_s1 + $0x48] sm:$0xff] }
   0xb   :  { %v287_v27 = vand.u32 4294901760, %v286_v22  ;;  %v951_v29 = vand.u32 4294901760, %v950_v25  ;;  %v151_v33 = vand.u32 4294901760, %v150_v30  ;;  %v3282_v41 = vand.u32 4294901760, %v66_v40  ;;  %v65_v22 = vld [vmem:[%s4578_s2] sm:$0xff] }
   0xc   :  { %v143_v26 = vand.u32 4294901760, %v142_v21  ;;  %v157_v34 = vand.u32 4294901760, %v156_v31  ;;  %v164_v38 = vsub.f32 %v80_v32, %v3271_v35  ;;  %v3284_v44 = vand.u32 4294901760, %v83_v39 }
   0xd   :  { %288 = vmatpush.msra.mxu1 %v287_v27  ;;  %952 = vmatpush.msrb.mxu3 %v951_v29  ;;  %v3288_v45 = vsub.f32 %v66_v40, %v3282_v41  ;;  %v86_v51 = vsel %vm69_vm1, %v54_v46, 0  ;;  %v89_v59 = vsel %vm69_vm1, %v55_v56, 0  ;;  %v92_v2 = vsel %vm69_vm1, %v56_v63, 0  ;;  %v59_v29 = vld [vmem:[%s4577_s1 + $0x50] sm:$0xff] }
   0xe   :  { %144 = vmatmul.f32.vlgmr.msra.gmra.mxu0 %v143_v26  ;;  %290 = vmatmul.f32.vlgmr.msra.gmra.mxu1 %v3240_v7  ;;  %v158_v37 = vsub.f32 %v156_v31, %v157_v34  ;;  %v165_v43 = vand.u32 4294901760, %v164_v38  ;;  %v172_v49 = vsub.f32 %v83_v39, %v3284_v44  ;;  %v3302_v55 = vand.u32 4294901760, %v86_v51 }
   0xf   :  { %667 = vmatpush.msrb.mxu1 %v137_v6  ;;  %1045 = vmatpush.msra.mxu0 %v3252_v15  ;;  %v955_v47 = vand.u32 4294901760, %v3288_v45  ;;  %v3310_v62 = vand.u32 4294901760, %v89_v59  ;;  %v3318_v5 = vand.u32 4294901760, %v92_v2  ;;  %v57_v6 = vld [vmem:[%s4577_s1 + $0x40] sm:$0xff]  ;;  %v98_v21 = vsel %vm69_vm1, %v58_v17, 0 }
  0x10   :  { %379 = vmatmul.f32.gmra.mxu2 %v148_v16  ;;  %v159_v42 = vand.u32 4294901760, %v158_v37  ;;  %v166_v48 = vsub.f32 %v164_v38, %v165_v43  ;;  %v173_v54 = vand.u32 4294901760, %v172_v49  ;;  %v180_v58 = vsub.f32 %v86_v51, %v3302_v55 }
  0x11   :  { %1147 = vmatpush.msra.mxu1 %v3246_v11  ;;  %802 = vmatpush.msrb.mxu2 %v3282_v41  ;;  %v956_v50 = vsub.f32 %v3288_v45, %v955_v47  ;;  %v188_v1 = vsub.f32 %v89_v59, %v3310_v62  ;;  %v196_v9 = vsub.f32 %v92_v2, %v3318_v5  ;;  %v95_v10 = vsel %vm69_vm1, %v57_v6, 0 }
  0x12   :  { %479 = vmatmul.f32.gmra.mxu3 %v149_v23  ;;  %1048 = vmatpush.msra.mxu0 %v3288_v45  ;;  %v167_v53 = vand.u32 4294901760, %v166_v48  ;;  %v174_v57 = vsub.f32 %v172_v49, %v173_v54  ;;  %v181_v61 = vand.u32 4294901760, %v180_v58  ;;  %v3326_v16 = vand.u32 4294901760, %v95_v10 }
  0x13   :  { %1149 = vmatpush.msra.mxu1 %v3282_v41  ;;  %v957_v52 = vand.u32 4294901760, %v956_v50  ;;  %v189_v4 = vand.u32 4294901760, %v188_v1  ;;  %v197_v14 = vand.u32 4294901760, %v196_v9  ;;  %v803_v23 = vand.u32 4294901760, %v65_v22 }
  0x14   :  { %v175_v60 = vand.u32 4294901760, %v174_v57  ;;  %v182_v0 = vsub.f32 %v180_v58, %v181_v61  ;;  %v204_v19 = vsub.f32 %v95_v10, %v3326_v16  ;;  %v3337_v27 = vand.u32 4294901760, %v98_v21  ;;  %v33_v10 = vld [vmem:[%s4576_s0] sm:$0xff] }
  0x15   :  { %958 = vmatpush.msrb.mxu3 %v957_v52  ;;  %v190_v8 = vsub.f32 %v188_v1, %v189_v4  ;;  %v198_v18 = vsub.f32 %v196_v9, %v197_v14  ;;  %804 = vmatpush.msrb.mxu2 %v803_v23  ;;  %v960_v28 = vsub.f32 %v65_v22, %v803_v23  ;;  %v101_v15 = vsel %vm69_vm1, %v59_v29, 0  ;;  %v62_v52 = vld [vmem:[%s4577_s1 + $0x68] sm:$0xff] }
  0x16   :  { %152 = vmatmul.f32.gmra.mxu0 %v151_v33  ;;  %294 = vmatmul.f32.gmra.mxu1 %v3248_v12  ;;  %v183_v3 = vand.u32 4294901760, %v182_v0  ;;  %v205_v26 = vand.u32 4294901760, %v204_v19  ;;  %v212_v32 = vsub.f32 %v98_v21, %v3337_v27  ;;  %v3349_v37 = vand.u32 4294901760, %v101_v15 }
  0x17   :  { %v191_v13 = vand.u32 4294901760, %v190_v8  ;;  %v199_v25 = vand.u32 4294901760, %v198_v18  ;;  %1265 = vmatpush.msra.mxu2 %v949_v20  ;;  %1151 = vmatpush.msra.mxu1 %v803_v23  ;;  %v961_v30 = vand.u32 4294901760, %v960_v28  ;;  %v110_v56 = vsel %vm69_vm1, %v62_v52, 0 }
  0x18   :  { %384 = vmatmul.f32.gmra.mxu2 %v156_v31  ;;  %1051 = vmatpush.msra.mxu0 %v960_v28  ;;  %v206_v31 = vsub.f32 %v204_v19, %v205_v26  ;;  %v213_v36 = vand.u32 4294901760, %v212_v32  ;;  %v220_v40 = vsub.f32 %v101_v15, %v3349_v37  ;;  %v3375_v59 = vand.u32 4294901760, %v110_v56 }
  0x19   :  { %1269 = vmatpush.msra.mxu2 %v955_v47  ;;  %v962_v33 = vsub.f32 %v960_v28, %v961_v30  ;;  %v735_v18 = vsel %vm733_vm3, %v33_v10, 0  ;;  %vm3000_vm5 = vcmask 15360   ;;  %vm3070_vm6 = vcmask 130112  }
  0x1a   :  { %485 = vmatmul.f32.gmra.mxu3 %v157_v34  ;;  %v207_v34 = vand.u32 4294901760, %v206_v31  ;;  %v214_v39 = vsub.f32 %v212_v32, %v213_v36  ;;  %v221_v45 = vand.u32 4294901760, %v220_v40  ;;  %v244_v63 = vsub.f32 %v110_v56, %v3375_v59 }
  0x1b   :  { %1273 = vmatpush.msra.mxu2 %v961_v30  ;;  %v963_v20 = vand.u32 4294901760, %v962_v33  ;;  %v35_v33 = vld [vmem:[%s4576_s0 + $0x10] sm:$0xff]  ;;  %vm3074_vm7 = vcmask 195712   ;;  %vm3078_vm8 = vcmask 261312   ;;  %vm3082_vm9 = vcmask 326912  }
  0x1c   :  { %v222_v47 = vsub.f32 %v220_v40, %v221_v45  ;;  %v245_v2 = vand.u32 4294901760, %v244_v63  ;;  %vm3086_vm10 = vcmask 392512   ;;  %vm3090_vm11 = vcmask 458112  }
  0x1d   :  { %964 = vmatpush.msrb.mxu3 %v963_v20  ;;  %vm3094_vm12 = vcmask 523712   ;;  %vm3098_vm13 = vcmask 589312   ;;  %vm3102_vm14 = vcmask 654912   ;;  %vm3106_vm15 = vcmask 720512  }
  0x1e   :  { %160 = vmatmul.f32.gmra.mxu0 %v159_v42  ;;  %298 = vmatmul.f32.gmra.mxu1 %v3258_v24  ;;  %v246_v6 = vsub.f32 %v244_v63, %v245_v2  ;;  %vm3110_vm0 = vcmask 786112   ;;  %vm3118_vm2 = vcmask 917312  }
  0x1f   :  { %1353 = vmatpush.msra.mxu3 %v3246_v11  ;;  %v61_v11 = vld [vmem:[%s4577_s1 + $0x60] sm:$0xff] }
  0x20   :  { %389 = vmatmul.f32.gmra.mxu2 %v164_v38  ;;  %v60_v38 = vld [vmem:[%s4577_s1 + $0x58] sm:$0xff] }
  0x21   :  { %1355 = vmatpush.msra.mxu3 %v3282_v41  ;;  %v104_v42 = vsel %vm69_vm1, %v60_v38, 0  ;;  %v107_v41 = vsel %vm69_vm1, %v61_v11, 0 }
  0x22   :  { %491 = vmatmul.f32.gmra.mxu3 %v165_v43  ;;  %v215_v43 = vand.u32 4294901760, %v214_v39  ;;  %v3359_v46 = vand.u32 4294901760, %v104_v42  ;;  %v3367_v51 = vand.u32 4294901760, %v107_v41 }
  0x23   :  { %1357 = vmatpush.msra.mxu3 %v803_v23  ;;  %v34_v23 = vld [vmem:[%s4576_s0 + $0x8] sm:$0xff] }
  0x24   :  { %v228_v48 = vsub.f32 %v104_v42, %v3359_v46  ;;  %v738_v29 = vsel %vm733_vm3, %v34_v23, 0  ;;  %v36_v42 = vld [vmem:[%s4576_s0 + $0x18] sm:$0xff] }
  0x25   :  { %v3409_v31 = vand.u32 4294901760, %v738_v29  ;;  %v744_v11 = vsel %vm733_vm3, %v36_v42, 0 }
  0x26   :  { %168 = vmatmul.f32.gmra.mxu0 %v167_v53  ;;  %302 = vmatmul.f32.gmra.mxu1 %v3271_v35  ;;  %v229_v50 = vand.u32 4294901760, %v228_v48 }
  0x27   :  { %v3419_v20 = vsub.f32 %v738_v29, %v3409_v31 }
  0x28   :  { %394 = vmatmul.f32.gmra.mxu2 %v172_v49  ;;  %v223_v49 = vand.u32 4294901760, %v222_v47  ;;  %v230_v53 = vsub.f32 %v228_v48, %v229_v50 }
  0x29   :  { %v815_v39 = vand.u32 4294901760, %v3419_v20 }
  0x2a   :  { %497 = vmatmul.f32.gmra.mxu3 %v173_v54  ;;  %v236_v54 = vsub.f32 %v107_v41, %v3367_v51  ;;  %v231_v57 = vand.u32 4294901760, %v230_v53 }
  0x2e   :  { %176 = vmatmul.f32.gmra.mxu0 %v175_v60  ;;  %306 = vmatmul.f32.gmra.mxu1 %v3284_v44  ;;  %v63_v60 = vld [vmem:[%s4577_s1 + $0x70] sm:$0xff] }
  0x2f   :  { %v113_v0 = vsel %vm69_vm1, %v63_v60, 0 }
  0x30   :  { %399 = vmatmul.f32.gmra.mxu2 %v180_v58  ;;  %v237_v58 = vand.u32 4294901760, %v236_v54 }
  0x32   :  { %503 = vmatmul.f32.gmra.mxu3 %v181_v61  ;;  %v238_v61 = vsub.f32 %v236_v54, %v237_v58 }
  0x36   :  { %184 = vmatmul.f32.gmra.mxu0 %v183_v3  ;;  %310 = vmatmul.f32.gmra.mxu1 %v3302_v55  ;;  %v3383_v3 = vand.u32 4294901760, %v113_v0 }
  0x38   :  { %404 = vmatmul.f32.gmra.mxu2 %v188_v1  ;;  %v239_v1 = vand.u32 4294901760, %v238_v61  ;;  %v252_v8 = vsub.f32 %v113_v0, %v3383_v3 }
  0x3a   :  { %509 = vmatmul.f32.gmra.mxu3 %v189_v4  ;;  %v64_v4 = vld [vmem:[%s4577_s1 + $0x78] sm:$0xff] }
  0x3e   :  { %192 = vmatmul.f32.gmra.mxu0 %v191_v13  ;;  %314 = vmatmul.f32.gmra.mxu1 %v3310_v62  ;;  %v247_v13 = vand.u32 4294901760, %v246_v6 }
  0x40   :  { %409 = vmatmul.f32.gmra.mxu2 %v196_v9  ;;  %v116_v9 = vsel %vm69_vm1, %v64_v4, 0  ;;  %vm3114_vm1 = vcmask 851712  }
  0x41   :  { %v3394_v17 = vand.u32 4294901760, %v116_v9 }
  0x42   :  { %515 = vmatmul.f32.gmra.mxu3 %v197_v14  ;;  %v253_v14 = vand.u32 4294901760, %v252_v8 }
  0x43   :  { %v260_v22 = vsub.f32 %v116_v9, %v3394_v17 }
  0x44   :  { %v254_v21 = vsub.f32 %v252_v8, %v253_v14 }
  0x45   :  { %v261_v28 = vand.u32 4294901760, %v260_v22 }
  0x46   :  { %200 = vmatmul.f32.gmra.mxu0 %v199_v25  ;;  %318 = vmatmul.f32.gmra.mxu1 %v3318_v5 }
  0x48   :  { %414 = vmatmul.f32.gmra.mxu2 %v204_v19  ;;  %v3397_v19 = vand.u32 4294901760, %v735_v18 }
  0x4a   :  { %521 = vmatmul.f32.gmra.mxu3 %v205_v26  ;;  %v3405_v25 = vsub.f32 %v735_v18, %v3397_v19  ;;  %v255_v26 = vand.u32 4294901760, %v254_v21 }
  0x4c   :  { %v807_v30 = vand.u32 4294901760, %v3405_v25 }
  0x4e   :  { %208 = vmatmul.f32.gmra.mxu0 %v207_v34  ;;  %322 = vmatmul.f32.gmra.mxu1 %v3326_v16  ;;  %v808_v15 = vsub.f32 %v3405_v25, %v807_v30 }
  0x50   :  { %419 = vmatmul.f32.gmra.mxu2 %v212_v32  ;;  %v262_v32 = vsub.f32 %v260_v22, %v261_v28  ;;  %v809_v38 = vand.u32 4294901760, %v808_v15 }
  0x52   :  { %527 = vmatmul.f32.gmra.mxu3 %v213_v36  ;;  %v263_v34 = vand.u32 4294901760, %v262_v32  ;;  %v741_v36 = vsel %vm733_vm3, %v35_v33, 0 }
  0x56   :  { %216 = vmatmul.f32.gmra.mxu0 %v215_v43  ;;  %326 = vmatmul.f32.gmra.mxu1 %v3337_v27  ;;  %v816_v43 = vsub.f32 %v3419_v20, %v815_v39 }
  0x58   :  { %424 = vmatmul.f32.gmra.mxu2 %v220_v40  ;;  %v3423_v40 = vand.u32 4294901760, %v741_v36  ;;  %v817_v52 = vand.u32 4294901760, %v816_v43 }
  0x5a   :  { %533 = vmatmul.f32.gmra.mxu3 %v221_v45  ;;  %v3433_v45 = vsub.f32 %v741_v36, %v3423_v40  ;;  %v39_v36 = vld [vmem:[%s4576_s0 + $0x30] sm:$0xff] }
  0x5c   :  { %v4597_v53 = vand.u32 4294901760, %v3433_v45 }
  0x5e   :  { %224 = vmatmul.f32.gmra.mxu0 %v223_v49  ;;  %330 = vmatmul.f32.gmra.mxu1 %v3349_v37  ;;  %v824_v60 = vsub.f32 %v3433_v45, %v4597_v53 }
  0x60   :  { %429 = vmatmul.f32.gmra.mxu2 %v228_v48  ;;  %v825_v6 = vand.u32 4294901760, %v824_v60  ;;  %v40_v60 = vld [vmem:[%s4576_s0 + $0x38] sm:$0xff] }
  0x62   :  { %539 = vmatmul.f32.gmra.mxu3 %v229_v50 }
  0x66   :  { %232 = vmatmul.f32.gmra.mxu0 %v231_v57  ;;  %334 = vmatmul.f32.gmra.mxu1 %v3359_v46  ;;  %v37_v57 = vld [vmem:[%s4576_s0 + $0x20] sm:$0xff] }
  0x68   :  { %434 = vmatmul.f32.gmra.mxu2 %v236_v54  ;;  %v3438_v54 = vand.u32 4294901760, %v744_v11 }
  0x6a   :  { %545 = vmatmul.f32.gmra.mxu3 %v237_v58  ;;  %v3451_v61 = vsub.f32 %v744_v11, %v3438_v54  ;;  %v753_v11 = vsel %vm733_vm3, %v39_v36, 0 }
  0x6e   :  { %240 = vmatmul.f32.gmra.mxu0 %v239_v1  ;;  %338 = vmatmul.f32.gmra.mxu1 %v3367_v51 }
  0x70   :  { %439 = vmatmul.f32.gmra.mxu2 %v244_v63  ;;  %v747_v63 = vsel %vm733_vm3, %v37_v57, 0 }
  0x71   :  { %v3456_v9 = vand.u32 4294901760, %v747_v63 }
  0x72   :  { %551 = vmatmul.f32.gmra.mxu3 %v245_v2 }
  0x73   :  { %v3469_v21 = vsub.f32 %v747_v63, %v3456_v9 }
  0x75   :  { %v4594_v33 = vand.u32 4294901760, %v3469_v21 }
  0x76   :  { %248 = vmatmul.f32.gmra.mxu0 %v247_v13  ;;  %342 = vmatmul.f32.gmra.mxu1 %v3375_v59  ;;  %v38_v13 = vld [vmem:[%s4576_s0 + $0x28] sm:$0xff] }
  0x77   :  { %v840_v42 = vsub.f32 %v3469_v21, %v4594_v33 }
  0x78   :  { %444 = vmatmul.f32.gmra.mxu2 %v252_v8  ;;  %v4596_v8 = vand.u32 4294901760, %v3451_v61 }
  0x7a   :  { %557 = vmatmul.f32.gmra.mxu3 %v253_v14  ;;  %v832_v18 = vsub.f32 %v3451_v61, %v4596_v8 }
  0x7c   :  { %v833_v32 = vand.u32 4294901760, %v832_v18 }
  0x7e   :  { %256 = vmatmul.f32.gmra.mxu0 %v255_v26  ;;  %346 = vmatmul.f32.gmra.mxu1 %v3383_v3 }
  0x80   :  { %449 = vmatmul.f32.gmra.mxu2 %v260_v22  ;;  %v750_v22 = vsel %vm733_vm3, %v38_v13, 0 }
  0x81   :  { %v3474_v15 = vand.u32 4294901760, %v750_v22 }
  0x82   :  { %563 = vmatmul.f32.gmra.mxu3 %v261_v28 }
  0x83   :  { %v3487_v43 = vsub.f32 %v750_v22, %v3474_v15 }
  0x86   :  { %264 = vmatmul.f32.gmra.mxu0 %v263_v34  ;;  %350 = vmatmul.f32.gmra.mxu1 %v3394_v17 }
  0x88   :  { %810 = vmatmul.f32.vlgmr.msrb.gmra.mxu2 %v809_v38 }
  0x8a   :  { %966 = vmatmul.f32.vlgmr.msrb.gmra.mxu3 %v3397_v19 }
  0x8b   :  { %v145_v47 = vpop.f32.mrf.mxu0  ;;  %v291_v48 = vpop.f32.mrf.mxu1 }
  0x8c   :  { %v375_v41 = vpop.f32.mrf.mxu2  ;;  %v292_v49 = vadd.f32 %v291_v48, %v145_v47 }
  0x8d   :  { %v474_v50 = vpop.f32.mrf.mxu3 }
  0x8e   :  { %587 = vmatmul.f32.vlgmr.msrb.gmra.mxu0 %v3240_v7  ;;  %v376_v56 = vadd.f32 %v375_v41, %v292_v49  ;;  %669 = vmatmul.f32.vlgmr.msrb.gmra.mxu1 %v3240_v7 }
  0x90   :  { %v3445_v58 = vadd.f32 %v474_v50, %v376_v56  ;;  %818 = vmatmul.f32.gmra.mxu2 %v817_v52  ;;  %v841_v50 = vand.u32 4294901760, %v840_v42  ;;  %v4593_v52 = vand.u32 4294901760, %v3487_v43  ;;  %v3492_v56 = vand.u32 4294901760, %v753_v11 }
  0x92   :  { %970 = vmatmul.f32.gmra.mxu3 %v3409_v31 }
  0x93   :  { %v153_v0 = vpop.f32.mrf.mxu0  ;;  %v295_v7 = vpop.f32.mrf.mxu1 }
  0x94   :  { %v380_v1 = vpop.f32.mrf.mxu2  ;;  %v296_v2 = vadd.f32 %v295_v7, %v153_v0  ;;  %v848_v0 = vsub.f32 %v3487_v43, %v4593_v52  ;;  %v3505_v7 = vsub.f32 %v753_v11, %v3492_v56 }
  0x95   :  { %v480_v4 = vpop.f32.mrf.mxu3 }
  0x96   :  { %591 = vmatmul.f32.gmra.mxu0 %v3248_v12  ;;  %v381_v10 = vadd.f32 %v380_v1, %v296_v2  ;;  %673 = vmatmul.f32.gmra.mxu1 %v3248_v12  ;;  %v756_v1 = vsel %vm733_vm3, %v40_v60, 0  ;;  %v849_v13 = vand.u32 4294901760, %v848_v0  ;;  %v4591_v18 = vand.u32 4294901760, %v3505_v7 }
  0x97   :  { %v3510_v22 = vand.u32 4294901760, %v756_v1 }
  0x98   :  { %v3463_v14 = vadd.f32 %v480_v4, %v381_v10  ;;  %826 = vmatmul.f32.gmra.mxu2 %v825_v6 }
  0x9a   :  { %974 = vmatmul.f32.gmra.mxu3 %v3423_v40 }
  0x9b   :  { %v161_v23 = vpop.f32.mrf.mxu0  ;;  %v299_v12 = vpop.f32.mrf.mxu1 }
  0x9c   :  { %v385_v26 = vpop.f32.mrf.mxu2  ;;  %v300_v28 = vadd.f32 %v299_v12, %v161_v23  ;;  %v41_v12 = vld [vmem:[%s4576_s0 + $0x40] sm:$0xff] }
  0x9d   :  { %v486_v29 = vpop.f32.mrf.mxu3 }
  0x9e   :  { %595 = vmatmul.f32.gmra.mxu0 %v3258_v24  ;;  %v386_v34 = vadd.f32 %v385_v26, %v300_v28  ;;  %677 = vmatmul.f32.gmra.mxu1 %v3258_v24  ;;  %v856_v28 = vsub.f32 %v3505_v7, %v4591_v18 }
  0xa0   :  { %v3481_v38 = vadd.f32 %v486_v29, %v386_v34  ;;  %834 = vmatmul.f32.gmra.mxu2 %v833_v32  ;;  %v3523_v29 = vsub.f32 %v756_v1, %v3510_v22  ;;  %v759_v32 = vsel %vm733_vm3, %v41_v12, 0  ;;  %v43_v12 = vld [vmem:[%s4576_s0 + $0x50] sm:$0xff] }
  0xa2   :  { %978 = vmatmul.f32.gmra.mxu3 %v3438_v54 }
  0xa3   :  { %v169_v47 = vpop.f32.mrf.mxu0  ;;  %v303_v24 = vpop.f32.mrf.mxu1 }
  0xa4   :  { %v390_v48 = vpop.f32.mrf.mxu2  ;;  %v304_v41 = vadd.f32 %v303_v24, %v169_v47  ;;  %v857_v47 = vand.u32 4294901760, %v856_v28  ;;  %v4590_v24 = vand.u32 4294901760, %v3523_v29 }
  0xa5   :  { %v492_v49 = vpop.f32.mrf.mxu3 }
  0xa6   :  { %599 = vmatmul.f32.gmra.mxu0 %v3271_v35  ;;  %v391_v57 = vadd.f32 %v390_v48, %v304_v41  ;;  %681 = vmatmul.f32.gmra.mxu1 %v3271_v35  ;;  %v3528_v48 = vand.u32 4294901760, %v759_v32 }
  0xa8   :  { %v3499_v63 = vadd.f32 %v492_v49, %v391_v57  ;;  %842 = vmatmul.f32.gmra.mxu2 %v841_v50  ;;  %v42_v49 = vld [vmem:[%s4576_s0 + $0x48] sm:$0xff]  ;;  %v864_v57 = vsub.f32 %v3523_v29, %v4590_v24  ;;  %v3541_v60 = vsub.f32 %v759_v32, %v3528_v48 }
  0xa9   :  { %v762_v0 = vsel %vm733_vm3, %v42_v49, 0 }
  0xaa   :  { %982 = vmatmul.f32.gmra.mxu3 %v3456_v9 }
  0xab   :  { %v177_v2 = vpop.f32.mrf.mxu0  ;;  %v307_v35 = vpop.f32.mrf.mxu1 }
  0xac   :  { %v395_v4 = vpop.f32.mrf.mxu2  ;;  %v308_v6 = vadd.f32 %v307_v35, %v177_v2 }
  0xad   :  { %v498_v10 = vpop.f32.mrf.mxu3 }
  0xae   :  { %603 = vmatmul.f32.gmra.mxu0 %v3284_v44  ;;  %v396_v23 = vadd.f32 %v395_v4, %v308_v6  ;;  %685 = vmatmul.f32.gmra.mxu1 %v3284_v44  ;;  %v865_v6 = vand.u32 4294901760, %v864_v57 }
  0xb0   :  { %v3517_v26 = vadd.f32 %v498_v10, %v396_v23  ;;  %850 = vmatmul.f32.gmra.mxu2 %v849_v13  ;;  %v4588_v10 = vand.u32 4294901760, %v3541_v60  ;;  %v3546_v13 = vand.u32 4294901760, %v762_v0 }
  0xb2   :  { %986 = vmatmul.f32.gmra.mxu3 %v3474_v15  ;;  %v872_v32 = vsub.f32 %v3541_v60, %v4588_v10 }
  0xb3   :  { %v185_v34 = vpop.f32.mrf.mxu0  ;;  %v311_v44 = vpop.f32.mrf.mxu1 }
  0xb4   :  { %v400_v36 = vpop.f32.mrf.mxu2  ;;  %v312_v42 = vadd.f32 %v311_v44, %v185_v34  ;;  %v3559_v34 = vsub.f32 %v762_v0, %v3546_v13  ;;  %v765_v44 = vsel %vm733_vm3, %v43_v12, 0  ;;  %v44_v0 = vld [vmem:[%s4576_s0 + $0x58] sm:$0xff] }
  0xb5   :  { %v504_v11 = vpop.f32.mrf.mxu3  ;;  %v3564_v57 = vand.u32 4294901760, %v765_v44 }
  0xb6   :  { %607 = vmatmul.f32.gmra.mxu0 %v3302_v55  ;;  %v401_v41 = vadd.f32 %v400_v36, %v312_v42  ;;  %689 = vmatmul.f32.gmra.mxu1 %v3302_v55  ;;  %v4587_v49 = vand.u32 4294901760, %v3559_v34 }
  0xb8   :  { %v3535_v50 = vadd.f32 %v504_v11, %v401_v41  ;;  %858 = vmatmul.f32.gmra.mxu2 %v857_v47  ;;  %v873_v41 = vand.u32 4294901760, %v872_v32 }
  0xba   :  { %990 = vmatmul.f32.gmra.mxu3 %v3492_v56 }
  0xbb   :  { %v193_v1 = vpop.f32.mrf.mxu0  ;;  %v315_v55 = vpop.f32.mrf.mxu1 }
  0xbc   :  { %v405_v2 = vpop.f32.mrf.mxu2  ;;  %v316_v35 = vadd.f32 %v315_v55, %v193_v1 }
  0xbd   :  { %v510_v4 = vpop.f32.mrf.mxu3 }
  0xbe   :  { %611 = vmatmul.f32.gmra.mxu0 %v3310_v62  ;;  %v406_v23 = vadd.f32 %v405_v2, %v316_v35  ;;  %693 = vmatmul.f32.gmra.mxu1 %v3310_v62  ;;  %v880_v2 = vsub.f32 %v3559_v34, %v4587_v49  ;;  %v3577_v35 = vsub.f32 %v765_v44, %v3564_v57  ;;  %v45_v44 = vld [vmem:[%s4576_s0 + $0x60] sm:$0xff] }
  0xc0   :  { %v3553_v28 = vadd.f32 %v510_v4, %v406_v23  ;;  %866 = vmatmul.f32.gmra.mxu2 %v865_v6  ;;  %v768_v4 = vsel %vm733_vm3, %v44_v0, 0  ;;  %v771_v0 = vsel %vm733_vm3, %v45_v44, 0 }
  0xc2   :  { %994 = vmatmul.f32.gmra.mxu3 %v3510_v22 }
  0xc3   :  { %v201_v36 = vpop.f32.mrf.mxu0  ;;  %v319_v62 = vpop.f32.mrf.mxu1 }
  0xc4   :  { %v410_v42 = vpop.f32.mrf.mxu2  ;;  %v320_v11 = vadd.f32 %v319_v62, %v201_v36  ;;  %v881_v36 = vand.u32 4294901760, %v880_v2  ;;  %v4586_v62 = vand.u32 4294901760, %v3577_v35 }
  0xc5   :  { %v516_v47 = vpop.f32.mrf.mxu3 }
  0xc6   :  { %615 = vmatmul.f32.gmra.mxu0 %v3318_v5  ;;  %v411_v1 = vadd.f32 %v410_v42, %v320_v11  ;;  %697 = vmatmul.f32.gmra.mxu1 %v3318_v5  ;;  %v3582_v42 = vand.u32 4294901760, %v768_v4 }
  0xc8   :  { %v3571_v55 = vadd.f32 %v516_v47, %v411_v1  ;;  %874 = vmatmul.f32.gmra.mxu2 %v873_v41  ;;  %v888_v41 = vsub.f32 %v3577_v35, %v4586_v62  ;;  %v3595_v1 = vsub.f32 %v768_v4, %v3582_v42  ;;  %v46_v4 = vld [vmem:[%s4576_s0 + $0x68] sm:$0xff] }
  0xca   :  { %998 = vmatmul.f32.gmra.mxu3 %v3528_v48 }
  0xcb   :  { %v209_v6 = vpop.f32.mrf.mxu0  ;;  %v323_v5 = vpop.f32.mrf.mxu1 }
  0xcc   :  { %v415_v23 = vpop.f32.mrf.mxu2  ;;  %v324_v12 = vadd.f32 %v323_v5, %v209_v6 }
  0xcd   :  { %v522_v32 = vpop.f32.mrf.mxu3 }
  0xce   :  { %619 = vmatmul.f32.gmra.mxu0 %v3326_v16  ;;  %v416_v11 = vadd.f32 %v415_v23, %v324_v12  ;;  %701 = vmatmul.f32.gmra.mxu1 %v3326_v16  ;;  %v889_v12 = vand.u32 4294901760, %v888_v41 }
  0xd0   :  { %v3589_v47 = vadd.f32 %v522_v32, %v416_v11  ;;  %882 = vmatmul.f32.gmra.mxu2 %v881_v36  ;;  %v4589_v32 = vand.u32 4294901760, %v3595_v1  ;;  %v3600_v36 = vand.u32 4294901760, %v771_v0 }
  0xd2   :  { %1002 = vmatmul.f32.gmra.mxu3 %v3546_v13  ;;  %v896_v41 = vsub.f32 %v3595_v1, %v4589_v32 }
  0xd3   :  { %v217_v2 = vpop.f32.mrf.mxu0  ;;  %v327_v16 = vpop.f32.mrf.mxu1 }
  0xd4   :  { %v420_v6 = vpop.f32.mrf.mxu2  ;;  %v328_v5 = vadd.f32 %v327_v16, %v217_v2  ;;  %v3613_v2 = vsub.f32 %v771_v0, %v3600_v36  ;;  %v774_v16 = vsel %vm733_vm3, %v46_v4, 0  ;;  %v897_v10 = vand.u32 4294901760, %v896_v41  ;;  %v47_v0 = vld [vmem:[%s4576_s0 + $0x70] sm:$0xff] }
  0xd5   :  { %v528_v23 = vpop.f32.mrf.mxu3 }
  0xd6   :  { %623 = vmatmul.f32.gmra.mxu0 %v3337_v27  ;;  %v421_v11 = vadd.f32 %v420_v6, %v328_v5  ;;  %705 = vmatmul.f32.gmra.mxu1 %v3337_v27 }
  0xd8   :  { %v3607_v44 = vadd.f32 %v528_v23, %v421_v11  ;;  %890 = vmatmul.f32.gmra.mxu2 %v889_v12  ;;  %v4592_v23 = vand.u32 4294901760, %v3613_v2  ;;  %v3618_v12 = vand.u32 4294901760, %v774_v16 }
  0xda   :  { %1006 = vmatmul.f32.gmra.mxu3 %v3564_v57  ;;  %v904_v41 = vsub.f32 %v3613_v2, %v4592_v23 }
  0xdb   :  { %v225_v6 = vpop.f32.mrf.mxu0  ;;  %v331_v27 = vpop.f32.mrf.mxu1 }
  0xdc   :  { %v425_v5 = vpop.f32.mrf.mxu2  ;;  %v332_v62 = vadd.f32 %v331_v27, %v225_v6  ;;  %v3631_v6 = vsub.f32 %v774_v16, %v3618_v12  ;;  %v905_v18 = vand.u32 4294901760, %v904_v41  ;;  %v48_v16 = vld [vmem:[%s4576_s0 + $0x78] sm:$0xff] }
  0xdd   :  { %v534_v49 = vpop.f32.mrf.mxu3 }
  0xde   :  { %627 = vmatmul.f32.gmra.mxu0 %v3349_v37  ;;  %v426_v11 = vadd.f32 %v425_v5, %v332_v62  ;;  %709 = vmatmul.f32.gmra.mxu1 %v3349_v37  ;;  %v777_v62 = vsel %vm733_vm3, %v47_v0, 0 }
  0xe0   :  { %v3625_v4 = vadd.f32 %v534_v49, %v426_v11  ;;  %898 = vmatmul.f32.gmra.mxu2 %v897_v10  ;;  %v4595_v49 = vand.u32 4294901760, %v3631_v6  ;;  %v3636_v10 = vand.u32 4294901760, %v777_v62 }
  0xe2   :  { %1010 = vmatmul.f32.gmra.mxu3 %v3582_v42  ;;  %v912_v41 = vsub.f32 %v3631_v6, %v4595_v49 }
  0xe3   :  { %v233_v27 = vpop.f32.mrf.mxu0  ;;  %v335_v37 = vpop.f32.mrf.mxu1 }
  0xe4   :  { %v430_v5 = vpop.f32.mrf.mxu2  ;;  %v336_v32 = vadd.f32 %v335_v37, %v233_v27  ;;  %v3649_v27 = vsub.f32 %v777_v62, %v3636_v10  ;;  %v913_v33 = vand.u32 4294901760, %v912_v41 }
  0xe5   :  { %v540_v24 = vpop.f32.mrf.mxu3 }
  0xe6   :  { %631 = vmatmul.f32.gmra.mxu0 %v3359_v46  ;;  %v431_v11 = vadd.f32 %v430_v5, %v336_v32  ;;  %713 = vmatmul.f32.gmra.mxu1 %v3359_v46  ;;  %v780_v32 = vsel %vm733_vm3, %v48_v16, 0  ;;  %vm3122_vm3 = vcmask 982912  }
  0xe8   :  { %v3643_v0 = vadd.f32 %v540_v24, %v431_v11  ;;  %906 = vmatmul.f32.gmra.mxu2 %v905_v18  ;;  %v4598_v24 = vand.u32 4294901760, %v3649_v27  ;;  %v3654_v18 = vand.u32 4294901760, %v780_v32 }
  0xea   :  { %1014 = vmatmul.f32.gmra.mxu3 %v3600_v36  ;;  %v920_v16 = vsub.f32 %v3649_v27, %v4598_v24 }
  0xeb   :  { %v241_v37 = vpop.f32.mrf.mxu0  ;;  %v339_v46 = vpop.f32.mrf.mxu1 }
  0xec   :  { %v435_v5 = vpop.f32.mrf.mxu2  ;;  %v340_v23 = vadd.f32 %v339_v46, %v241_v37  ;;  %v3664_v37 = vsub.f32 %v780_v32, %v3654_v18 }
  0xed   :  { %v546_v52 = vpop.f32.mrf.mxu3 }
  0xee   :  { %635 = vmatmul.f32.gmra.mxu0 %v3367_v51  ;;  %v436_v11 = vadd.f32 %v435_v5, %v340_v23  ;;  %717 = vmatmul.f32.gmra.mxu1 %v3367_v51  ;;  %v921_v23 = vand.u32 4294901760, %v920_v16  ;;  %v4599_v51 = vand.u32 4294901760, %v3664_v37 }
  0xf0   :  { %v3658_v62 = vadd.f32 %v546_v52, %v436_v11  ;;  %914 = vmatmul.f32.gmra.mxu2 %v913_v33  ;;  %v928_v32 = vsub.f32 %v3664_v37, %v4599_v51 }
  0xf2   :  { %1018 = vmatmul.f32.gmra.mxu3 %v3618_v12  ;;  %v929_v24 = vand.u32 4294901760, %v928_v32 }
  0xf3   :  { %v249_v41 = vpop.f32.mrf.mxu0  ;;  %v343_v46 = vpop.f32.mrf.mxu1 }
  0xf4   :  { %v440_v49 = vpop.f32.mrf.mxu2  ;;  %v344_v8 = vadd.f32 %v343_v46, %v249_v41 }
  0xf5   :  { %v552_v53 = vpop.f32.mrf.mxu3 }
  0xf6   :  { %639 = vmatmul.f32.gmra.mxu0 %v3375_v59  ;;  %v441_v33 = vadd.f32 %v440_v49, %v344_v8  ;;  %721 = vmatmul.f32.gmra.mxu1 %v3375_v59 }
  0xf8   :  { %v3670_v52 = vadd.f32 %v552_v53, %v441_v33  ;;  %922 = vmatmul.f32.gmra.mxu2 %v921_v23  ;;  %v1466_v33 = vld [vmem:[%s4581_s5 + $0x38] sm:$0xff] }
  0xf9   :  { %v3684_v32 = vand.u32 4294901760, %v1466_v33 }
  0xfa   :  { %1022 = vmatmul.f32.gmra.mxu3 %v3636_v10 }
  0xfb   :  { %v257_v5 = vpop.f32.mrf.mxu0  ;;  %v347_v11 = vpop.f32.mrf.mxu1  ;;  %1529 = vmatpush.msrb.mxu0 %v3684_v32  ;;  %1916 = vmatpush.msrb.mxu3 %v3684_v32 }
  0xfc   :  { %v445_v41 = vpop.f32.mrf.mxu2  ;;  %v348_v16 = vadd.f32 %v347_v11, %v257_v5 }
  0xfd   :  { %v558_v46 = vpop.f32.mrf.mxu3 }
  0xfe   :  { %643 = vmatmul.f32.gmra.mxu0 %v3383_v3  ;;  %v446_v8 = vadd.f32 %v445_v41, %v348_v16  ;;  %725 = vmatmul.f32.gmra.mxu1 %v3383_v3  ;;  %v3690_v3 = vsub.f32 %v1466_v33, %v3684_v32 }
 0x100   :  { %v3678_v59 = vadd.f32 %v558_v46, %v446_v8  ;;  %930 = vmatmul.f32.gmra.mxu2 %v929_v24  ;;  %v4605_v16 = vand.u32 4294901760, %v3690_v3 }
 0x101   :  { %1804 = vmatpush.msrb.mxu2 %v3690_v3 }
 0x102   :  { %4606 = vst [vmem:[#allocation5_spill] sm:$0xff] %v3678_v59  ;;  %1026 = vmatmul.f32.gmra.mxu3 %v3654_v18 }
 0x103   :  { %v265_v53 = vpop.f32.mrf.mxu0  ;;  %v351_v49 = vpop.f32.mrf.mxu1 }
 0x104   :  { %v450_v23 = vpop.f32.mrf.mxu2  ;;  %v352_v5 = vadd.f32 %v351_v49, %v265_v53 }
 0x105   :  { %v564_v11 = vpop.f32.mrf.mxu3 }
 0x106   :  { %647 = vmatmul.f32.gmra.mxu0 %v3394_v17  ;;  %v451_v41 = vadd.f32 %v450_v23, %v352_v5  ;;  %729 = vmatmul.f32.gmra.mxu1 %v3394_v17  ;;  %v1684_v17 = vsub.f32 %v3690_v3, %v4605_v16 }
 0x108   :  { %v3693_v24 = vadd.f32 %v564_v11, %v451_v41  ;;  %1275 = vmatmul.f32.vlgmr.msra.gmra.mxu2 %v3397_v19  ;;  %v1685_v33 = vand.u32 4294901760, %v1684_v17  ;;  %v1465_v17 = vld [vmem:[%s4581_s5 + $0x30] sm:$0xff] }
 0x10a   :  { %4607 = vst [vmem:[#allocation6_spill] sm:$0xff] %v3693_v24  ;;  %1359 = vmatmul.f32.vlgmr.msra.gmra.mxu3 %v3397_v19  ;;  %1686 = vmatpush.msrb.mxu1 %v1685_v33 }
 0x10b   :  { %v588_v46 = vpop.f32.mrf.mxu0  ;;  %v670_v53 = vpop.f32.mrf.mxu1 }
 0x10c   :  { %v589_v8 = vadd.f32 %v588_v46, %v3445_v58  ;;  %v811_v49 = vpop.f32.mrf.mxu2 }
 0x10d   :  { %v967_v23 = vpop.f32.mrf.mxu3 }
 0x10e   :  { %v671_v5 = vadd.f32 %v670_v53, %v589_v8  ;;  %1054 = vmatmul.f32.vlgmr.msra.gmra.mxu0 %v3405_v25  ;;  %1155 = vmatmul.f32.vlgmr.msra.gmra.mxu1 %v807_v30  ;;  %v3714_v25 = vand.u32 4294901760, %v1465_v17 }
 0x110   :  { %v812_v19 = vadd.f32 %v811_v49, %v671_v5  ;;  %1279 = vmatmul.f32.gmra.mxu2 %v3409_v31  ;;  %1531 = vmatpush.msrb.mxu0 %v3714_v25 }
 0x111   :  { %1918 = vmatpush.msrb.mxu3 %v3714_v25 }
 0x112   :  { %v3707_v11 = vadd.f32 %v967_v23, %v812_v19  ;;  %1363 = vmatmul.f32.gmra.mxu3 %v3409_v31  ;;  %v3721_v31 = vsub.f32 %v1465_v17, %v3714_v25 }
 0x113   :  { %v592_v41 = vpop.f32.mrf.mxu0  ;;  %v674_v46 = vpop.f32.mrf.mxu1 }
 0x114   :  { %v593_v58 = vadd.f32 %v592_v41, %v3463_v14  ;;  %v819_v51 = vpop.f32.mrf.mxu2  ;;  %v4604_v53 = vand.u32 4294901760, %v3721_v31  ;;  %1807 = vmatpush.msrb.mxu2 %v3721_v31  ;;  %v4621_v59 = vand.u32 4294901760, %v3721_v31 }
 0x115   :  { %v971_v8 = vpop.f32.mrf.mxu3 }
 0x116   :  { %v675_v30 = vadd.f32 %v674_v46, %v593_v58  ;;  %1059 = vmatmul.f32.gmra.mxu0 %v3419_v20  ;;  %1161 = vmatmul.f32.gmra.mxu1 %v815_v39  ;;  %v1690_v39 = vsub.f32 %v3721_v31, %v4604_v53  ;;  %v4608_v58 = vand.u32 4294901760, %v3433_v45 }
 0x118   :  { %v820_v14 = vadd.f32 %v819_v51, %v675_v30  ;;  %1283 = vmatmul.f32.gmra.mxu2 %v3423_v40  ;;  %v1691_v19 = vand.u32 4294901760, %v1690_v39 }
 0x11a   :  { %v3726_v49 = vadd.f32 %v971_v8, %v820_v14  ;;  %1367 = vmatmul.f32.gmra.mxu3 %v3423_v40  ;;  %1692 = vmatpush.msrb.mxu1 %v1691_v19  ;;  %v1464_v14 = vld [vmem:[%s4581_s5 + $0x28] sm:$0xff] }
 0x11b   :  { %v596_v20 = vpop.f32.mrf.mxu0  ;;  %v678_v51 = vpop.f32.mrf.mxu1 }
 0x11c   :  { %v597_v23 = vadd.f32 %v596_v20, %v3481_v38  ;;  %v827_v33 = vpop.f32.mrf.mxu2 }
 0x11d   :  { %v975_v5 = vpop.f32.mrf.mxu3 }
 0x11e   :  { %v679_v41 = vadd.f32 %v678_v51, %v597_v23  ;;  %1064 = vmatmul.f32.gmra.mxu0 %v3433_v45  ;;  %1167 = vmatmul.f32.gmra.mxu1 %v4608_v58  ;;  %v3745_v45 = vand.u32 4294901760, %v1464_v14  ;;  %v4609_v23 = vand.u32 4294901760, %v3451_v61 }
 0x120   :  { %v828_v40 = vadd.f32 %v827_v33, %v679_v41  ;;  %1287 = vmatmul.f32.gmra.mxu2 %v3438_v54  ;;  %1533 = vmatpush.msrb.mxu0 %v3745_v45 }
 0x121   :  { %1920 = vmatpush.msrb.mxu3 %v3745_v45 }
 0x122   :  { %v3738_v46 = vadd.f32 %v975_v5, %v828_v40  ;;  %1371 = vmatmul.f32.gmra.mxu3 %v3438_v54  ;;  %v3752_v54 = vsub.f32 %v1464_v14, %v3745_v45 }
 0x123   :  { %v600_v17 = vpop.f32.mrf.mxu0  ;;  %v682_v8 = vpop.f32.mrf.mxu1 }
 0x124   :  { %v601_v38 = vadd.f32 %v600_v17, %v3499_v63  ;;  %v835_v30 = vpop.f32.mrf.mxu2  ;;  %v4603_v51 = vand.u32 4294901760, %v3752_v54  ;;  %1810 = vmatpush.msrb.mxu2 %v3752_v54 }
 0x125   :  { %v979_v20 = vpop.f32.mrf.mxu3 }
 0x126   :  { %v683_v39 = vadd.f32 %v682_v8, %v601_v38  ;;  %1069 = vmatmul.f32.gmra.mxu0 %v3451_v61  ;;  %1173 = vmatmul.f32.gmra.mxu1 %v4609_v23  ;;  %v1696_v5 = vsub.f32 %v3752_v54, %v4603_v51  ;;  %v4610_v8 = vand.u32 4294901760, %v3469_v21  ;;  %v1463_v23 = vld [vmem:[%s4581_s5 + $0x20] sm:$0xff] }
 0x128   :  { %v836_v63 = vadd.f32 %v835_v30, %v683_v39  ;;  %1291 = vmatmul.f32.gmra.mxu2 %v3456_v9  ;;  %v1697_v17 = vand.u32 4294901760, %v1696_v5  ;;  %v4611_v5 = vand.u32 4294901760, %v3487_v43 }
 0x12a   :  { %v3757_v33 = vadd.f32 %v979_v20, %v836_v63  ;;  %1375 = vmatmul.f32.gmra.mxu3 %v3456_v9  ;;  %1698 = vmatpush.msrb.mxu1 %v1697_v17 }
 0x12b   :  { %v604_v61 = vpop.f32.mrf.mxu0  ;;  %v686_v41 = vpop.f32.mrf.mxu1 }
 0x12c   :  { %v605_v19 = vadd.f32 %v604_v61, %v3517_v26  ;;  %v843_v58 = vpop.f32.mrf.mxu2 }
 0x12d   :  { %v983_v40 = vpop.f32.mrf.mxu3 }
 0x12e   :  { %v687_v38 = vadd.f32 %v686_v41, %v605_v19  ;;  %1074 = vmatmul.f32.gmra.mxu0 %v3469_v21  ;;  %1179 = vmatmul.f32.gmra.mxu1 %v4610_v8  ;;  %v3776_v21 = vand.u32 4294901760, %v1463_v23 }
 0x130   :  { %v844_v9 = vadd.f32 %v843_v58, %v687_v38  ;;  %1295 = vmatmul.f32.gmra.mxu2 %v3474_v15  ;;  %1535 = vmatpush.msrb.mxu0 %v3776_v21 }
 0x131   :  { %1922 = vmatpush.msrb.mxu3 %v3776_v21 }
 0x132   :  { %v3769_v30 = vadd.f32 %v983_v40, %v844_v9  ;;  %1379 = vmatmul.f32.gmra.mxu3 %v3474_v15  ;;  %v3783_v15 = vsub.f32 %v1463_v23, %v3776_v21 }
 0x133   :  { %v608_v14 = vpop.f32.mrf.mxu0  ;;  %v690_v20 = vpop.f32.mrf.mxu1 }
 0x134   :  { %v609_v26 = vadd.f32 %v608_v14, %v3535_v50  ;;  %v851_v39 = vpop.f32.mrf.mxu2  ;;  %v4602_v19 = vand.u32 4294901760, %v3783_v15  ;;  %1813 = vmatpush.msrb.mxu2 %v3783_v15 }
 0x135   :  { %v987_v63 = vpop.f32.mrf.mxu3 }
 0x136   :  { %v691_v61 = vadd.f32 %v690_v20, %v609_v26  ;;  %1079 = vmatmul.f32.gmra.mxu0 %v3487_v43  ;;  %1185 = vmatmul.f32.gmra.mxu1 %v4611_v5  ;;  %v1702_v58 = vsub.f32 %v3783_v15, %v4602_v19  ;;  %v4612_v26 = vand.u32 4294901760, %v3505_v7 }
 0x138   :  { %v852_v50 = vadd.f32 %v851_v39, %v691_v61  ;;  %1299 = vmatmul.f32.gmra.mxu2 %v3492_v56  ;;  %v1703_v9 = vand.u32 4294901760, %v1702_v58  ;;  %v1462_v61 = vld [vmem:[%s4581_s5 + $0x18] sm:$0xff] }
 0x13a   :  { %v3788_v41 = vadd.f32 %v987_v63, %v852_v50  ;;  %1383 = vmatmul.f32.gmra.mxu3 %v3492_v56  ;;  %1704 = vmatpush.msrb.mxu1 %v1703_v9 }
 0x13b   :  { %v612_v43 = vpop.f32.mrf.mxu0  ;;  %v694_v17 = vpop.f32.mrf.mxu1 }
 0x13c   :  { %v613_v40 = vadd.f32 %v612_v43, %v3553_v28  ;;  %v859_v38 = vpop.f32.mrf.mxu2  ;;  %v4613_v43 = vand.u32 4294901760, %v3523_v29 }
 0x13d   :  { %v991_v8 = vpop.f32.mrf.mxu3 }
 0x13e   :  { %v695_v14 = vadd.f32 %v694_v17, %v613_v40  ;;  %1084 = vmatmul.f32.gmra.mxu0 %v3505_v7  ;;  %1191 = vmatmul.f32.gmra.mxu1 %v4612_v26  ;;  %v3807_v7 = vand.u32 4294901760, %v1462_v61  ;;  %v4614_v26 = vand.u32 4294901760, %v3541_v60 }
 0x140   :  { %v860_v56 = vadd.f32 %v859_v38, %v695_v14  ;;  %1303 = vmatmul.f32.gmra.mxu2 %v3510_v22  ;;  %1537 = vmatpush.msrb.mxu0 %v3807_v7 }
 0x141   :  { %1924 = vmatpush.msrb.mxu3 %v3807_v7 }
 0x142   :  { %v3800_v20 = vadd.f32 %v991_v8, %v860_v56  ;;  %1387 = vmatmul.f32.gmra.mxu3 %v3510_v22  ;;  %v3814_v22 = vsub.f32 %v1462_v61, %v3807_v7 }
 0x143   :  { %v616_v39 = vpop.f32.mrf.mxu0  ;;  %v698_v23 = vpop.f32.mrf.mxu1 }
 0x144   :  { %v617_v28 = vadd.f32 %v616_v39, %v3571_v55  ;;  %v867_v63 = vpop.f32.mrf.mxu2  ;;  %v4601_v58 = vand.u32 4294901760, %v3814_v22  ;;  %1816 = vmatpush.msrb.mxu2 %v3814_v22 }
 0x145   :  { %v995_v5 = vpop.f32.mrf.mxu3 }
 0x146   :  { %v699_v50 = vadd.f32 %v698_v23, %v617_v28  ;;  %1089 = vmatmul.f32.gmra.mxu0 %v3523_v29  ;;  %1197 = vmatmul.f32.gmra.mxu1 %v4613_v43  ;;  %v1708_v17 = vsub.f32 %v3814_v22, %v4601_v58  ;;  %v1461_v28 = vld [vmem:[%s4581_s5 + $0x10] sm:$0xff] }
 0x148   :  { %v868_v55 = vadd.f32 %v867_v63, %v699_v50  ;;  %1307 = vmatmul.f32.gmra.mxu2 %v3528_v48  ;;  %v1709_v14 = vand.u32 4294901760, %v1708_v17  ;;  %v3850_v63 = vand.u32 4294901760, %v1461_v28 }
 0x14a   :  { %v3819_v40 = vadd.f32 %v995_v5, %v868_v55  ;;  %1391 = vmatmul.f32.gmra.mxu3 %v3528_v48  ;;  %1710 = vmatpush.msrb.mxu1 %v1709_v14  ;;  %v4616_v14 = vand.u32 4294901760, %v3577_v35 }
 0x14b   :  { %v3823_v29 = vpop.f32.mrf.mxu0  ;;  %v3828_v38 = vpop.f32.mrf.mxu1  ;;  %1539 = vmatpush.msrb.mxu0 %v3850_v63  ;;  %1926 = vmatpush.msrb.mxu3 %v3850_v63 }
 0x14c   :  { %v3830_v8 = vpop.f32.mrf.mxu2 }
 0x14d   :  { %v3832_v9 = vpop.f32.mrf.mxu3 }
 0x14e   :  { %1094 = vmatmul.f32.gmra.mxu0 %v3541_v60  ;;  %1203 = vmatmul.f32.gmra.mxu1 %v4614_v26  ;;  %v4615_v60 = vand.u32 4294901760, %v3559_v34 }
 0x150   :  { %1311 = vmatmul.f32.gmra.mxu2 %v3546_v13 }
 0x152   :  { %1395 = vmatmul.f32.gmra.mxu3 %v3546_v13  ;;  %v3857_v13 = vsub.f32 %v1461_v28, %v3850_v63 }
 0x153   :  { %v3839_v48 = vpop.f32.mrf.mxu0  ;;  %v3841_v56 = vpop.f32.mrf.mxu1 }
 0x154   :  { %v3843_v39 = vpop.f32.mrf.mxu2  ;;  %v4600_v61 = vand.u32 4294901760, %v3857_v13  ;;  %1819 = vmatpush.msrb.mxu2 %v3857_v13 }
 0x155   :  { %v3848_v23 = vpop.f32.mrf.mxu3 }
 0x156   :  { %1099 = vmatmul.f32.gmra.mxu0 %v3559_v34  ;;  %1209 = vmatmul.f32.gmra.mxu1 %v4615_v60  ;;  %v1714_v34 = vsub.f32 %v3857_v13, %v4600_v61  ;;  %v1460_v60 = vld [vmem:[%s4581_s5 + $0x8] sm:$0xff] }
 0x157   :  { %v3891_v61 = vand.u32 4294901760, %v1460_v60 }
 0x158   :  { %1315 = vmatmul.f32.gmra.mxu2 %v3564_v57  ;;  %v1715_v17 = vand.u32 4294901760, %v1714_v34 }
 0x159   :  { %1541 = vmatpush.msrb.mxu0 %v3891_v61  ;;  %1928 = vmatpush.msrb.mxu3 %v3891_v61 }
 0x15a   :  { %1399 = vmatmul.f32.gmra.mxu3 %v3564_v57  ;;  %1716 = vmatpush.msrb.mxu1 %v1715_v17 }
 0x15b   :  { %v3864_v5 = vpop.f32.mrf.mxu0  ;;  %v3869_v50 = vpop.f32.mrf.mxu1 }
 0x15c   :  { %v3871_v43 = vpop.f32.mrf.mxu2 }
 0x15d   :  { %v3873_v55 = vpop.f32.mrf.mxu3 }
 0x15e   :  { %1104 = vmatmul.f32.gmra.mxu0 %v3577_v35  ;;  %1215 = vmatmul.f32.gmra.mxu1 %v4616_v14  ;;  %v4617_v35 = vand.u32 4294901760, %v3595_v1 }
 0x160   :  { %1319 = vmatmul.f32.gmra.mxu2 %v3582_v42 }
 0x162   :  { %1403 = vmatmul.f32.gmra.mxu3 %v3582_v42  ;;  %v1718_v42 = vsub.f32 %v1460_v60, %v3891_v61  ;;  %v4618_v60 = vand.u32 4294901760, %v3613_v2 }
 0x163   :  { %v3880_v57 = vpop.f32.mrf.mxu0  ;;  %v3882_v26 = vpop.f32.mrf.mxu1 }
 0x164   :  { %v3884_v28 = vpop.f32.mrf.mxu2  ;;  %v1719_v17 = vand.u32 4294901760, %v1718_v42  ;;  %1822 = vmatpush.msrb.mxu2 %v1718_v42 }
 0x165   :  { %v3889_v34 = vpop.f32.mrf.mxu3 }
 0x166   :  { %1109 = vmatmul.f32.gmra.mxu0 %v3595_v1  ;;  %1221 = vmatmul.f32.gmra.mxu1 %v4617_v35  ;;  %v1720_v58 = vsub.f32 %v1718_v42, %v1719_v17 }
 0x168   :  { %1323 = vmatmul.f32.gmra.mxu2 %v3600_v36  ;;  %v1721_v35 = vand.u32 4294901760, %v1720_v58  ;;  %v4619_v58 = vand.u32 4294901760, %v3690_v3  ;;  %v4623_v3 = vand.u32 4294901760, %v3752_v54 }
 0x16a   :  { %1407 = vmatmul.f32.gmra.mxu3 %v3600_v36  ;;  %v1459_v36 = vld [vmem:[%s4581_s5] sm:$0xff]  ;;  %1722 = vmatpush.msrb.mxu1 %v1721_v35 }
 0x16b   :  { %v3901_v14 = vpop.f32.mrf.mxu0  ;;  %v3903_v19 = vpop.f32.mrf.mxu1  ;;  %v1542_v53 = vand.u32 4294901760, %v1459_v36 }
 0x16c   :  { %v3905_v51 = vpop.f32.mrf.mxu2 }
 0x16d   :  { %v3907_v1 = vpop.f32.mrf.mxu3  ;;  %1543 = vmatpush.msrb.mxu0 %v1542_v53  ;;  %v1724_v42 = vsub.f32 %v1459_v36, %v1542_v53  ;;  %1930 = vmatpush.msrb.mxu3 %v1542_v53  ;;  %v4622_v36 = vand.u32 4294901760, %v3631_v6 }
 0x16e   :  { %1114 = vmatmul.f32.gmra.mxu0 %v3613_v2  ;;  %1227 = vmatmul.f32.gmra.mxu1 %v4618_v60 }
 0x16f   :  { %2039 = vmatpush.msra.mxu0 %v4619_v58  ;;  %v1725_v24 = vand.u32 4294901760, %v1724_v42  ;;  %1825 = vmatpush.msrb.mxu2 %v1724_v42 }
 0x170   :  { %1327 = vmatmul.f32.gmra.mxu2 %v3618_v12 }
 0x171   :  { %2043 = vmatpush.msra.mxu0 %v4621_v59  ;;  %v4625_v59 = vand.u32 4294901760, %v3814_v22 }
 0x172   :  { %1411 = vmatmul.f32.gmra.mxu3 %v3618_v12  ;;  %v1726_v12 = vsub.f32 %v1724_v42, %v1725_v24 }
 0x173   :  { %v3917_v16 = vpop.f32.mrf.mxu0  ;;  %v3921_v2 = vpop.f32.mrf.mxu1  ;;  %2047 = vmatpush.msra.mxu0 %v4623_v3 }
 0x174   :  { %v3923_v60 = vpop.f32.mrf.mxu2  ;;  %v1727_v58 = vand.u32 4294901760, %v1726_v12  ;;  %v3977_v12 = vld [vmem:[%s4580_s4] ss:$0 sm:$0xff] }
 0x175   :  { %4620 = vst [vmem:[#allocation7_spill] sm:$0xff] %v3923_v60  ;;  %v3925_v35 = vpop.f32.mrf.mxu3  ;;  %v4624_v60 = vand.u32 4294901760, %v3783_v15  ;;  %v4626_v15 = vand.u32 4294901760, %v3857_v13 }
 0x176   :  { %1119 = vmatmul.f32.gmra.mxu0 %v3631_v6  ;;  %1233 = vmatmul.f32.gmra.mxu1 %v4622_v36 }
 0x177   :  { %2051 = vmatpush.msra.mxu0 %v4624_v60  ;;  %1728 = vmatpush.msrb.mxu1 %v1727_v58 }
 0x178   :  { %1331 = vmatmul.f32.gmra.mxu2 %v3636_v10 }
 0x179   :  { %2142 = vmatpush.msra.mxu1 %v3684_v32  ;;  %2055 = vmatpush.msra.mxu0 %v4625_v59 }
 0x17a   :  { %1415 = vmatmul.f32.gmra.mxu3 %v3636_v10  ;;  %v4627_v10 = vand.u32 4294901760, %v3649_v27 }
 0x17b   :  { %v3938_v31 = vpop.f32.mrf.mxu0  ;;  %v3943_v6 = vpop.f32.mrf.mxu1  ;;  %2144 = vmatpush.msra.mxu1 %v3714_v25  ;;  %2059 = vmatpush.msra.mxu0 %v4626_v15 }
 0x17c   :  { %v3945_v54 = vpop.f32.mrf.mxu2 }
 0x17d   :  { %v3947_v42 = vpop.f32.mrf.mxu3  ;;  %2063 = vmatpush.msra.mxu0 %v1719_v17  ;;  %2146 = vmatpush.msra.mxu1 %v3745_v45 }
 0x17e   :  { %1124 = vmatmul.f32.gmra.mxu0 %v3649_v27  ;;  %1239 = vmatmul.f32.gmra.mxu1 %v4627_v10 }
 0x17f   :  { %2067 = vmatpush.msra.mxu0 %v1725_v24  ;;  %2148 = vmatpush.msra.mxu1 %v3776_v21  ;;  %v4628_v24 = vand.u32 4294901760, %v3664_v37 }
 0x180   :  { %1335 = vmatmul.f32.gmra.mxu2 %v3654_v18 }
 0x181   :  { %2150 = vmatpush.msra.mxu1 %v3807_v7 }
 0x182   :  { %1419 = vmatmul.f32.gmra.mxu3 %v3654_v18 }
 0x183   :  { %v3959_v32 = vpop.f32.mrf.mxu0  ;;  %v3961_v25 = vpop.f32.mrf.mxu1  ;;  %2152 = vmatpush.msra.mxu1 %v3850_v63 }
 0x184   :  { %v3963_v22 = vpop.f32.mrf.mxu2 }
 0x185   :  { %v3966_v27 = vpop.f32.mrf.mxu3  ;;  %2154 = vmatpush.msra.mxu1 %v3891_v61 }
 0x186   :  { %1129 = vmatmul.f32.gmra.mxu0 %v3664_v37  ;;  %1245 = vmatmul.f32.gmra.mxu1 %v4628_v24 }
 0x187   :  { %2156 = vmatpush.msra.mxu1 %v1542_v53 }
 0x18b   :  { %v1055_v18 = vpop.f32.mrf.mxu0  ;;  %v1156_v21 = vpop.f32.mrf.mxu1 }
 0x18c   :  { %v1056_v45 = vadd.f32 %v1055_v18, %v3707_v11  ;;  %v1276_v13 = vpop.f32.mrf.mxu2 }
 0x18d   :  { %v1360_v17 = vpop.f32.mrf.mxu3 }
 0x18e   :  { %v1157_v60 = vadd.f32 %v1156_v21, %v1056_v45 }
 0x190   :  { %v1277_v7 = vadd.f32 %v1276_v13, %v1157_v60 }
 0x192   :  { %v1361_v63 = vadd.f32 %v1360_v17, %v1277_v7 }
 0x193   :  { %v1060_v36 = vpop.f32.mrf.mxu0  ;;  %v1162_v53 = vpop.f32.mrf.mxu1 }
 0x194   :  { %v1427_v37 = vadd.f32 %v3977_v12, %v1361_v63  ;;  %v1061_v61 = vadd.f32 %v1060_v36, %v3726_v49  ;;  %v1280_v3 = vpop.f32.mrf.mxu2 }
 0x195   :  { %v1364_v11 = vpop.f32.mrf.mxu3 }
 0x196   :  { %v1443_v58 = vmax.f32 %v1427_v37, 0.0  ;;  %v1163_v59 = vadd.f32 %v1162_v53, %v1061_v61 }
 0x198   :  { %v1473_v15 = vsel %vm1471_vm4, %v1443_v58, 0  ;;  %v1281_v10 = vadd.f32 %v1280_v3, %v1163_v59 }
 0x199   :  { %v3982_v24 = vand.u32 4294901760, %v1473_v15 }
 0x19a   :  { %v1365_v18 = vadd.f32 %v1364_v11, %v1281_v10 }
 0x19b   :  { %v1545_v45 = vsub.f32 %v1473_v15, %v3982_v24  ;;  %v1065_v21 = vpop.f32.mrf.mxu0  ;;  %1730 = vmatmul.f32.vlgmr.msrb.gmra.mxu1 %v3982_v24  ;;  %v1168_v17 = vpop.f32.mrf.mxu1 }
 0x19c   :  { %v1428_v13 = vadd.f32 %v3977_v12, %v1365_v18  ;;  %v1066_v49 = vadd.f32 %v1065_v21, %v3738_v46  ;;  %v1284_v60 = vpop.f32.mrf.mxu2 }
 0x19d   :  { %v1546_v7 = vand.u32 4294901760, %v1545_v45  ;;  %1828 = vmatmul.f32.vlgmr.msrb.gmra.mxu2 %v1545_v45  ;;  %v1368_v63 = vpop.f32.mrf.mxu3 }
 0x19e   :  { %v1444_v36 = vmax.f32 %v1428_v13, 0.0  ;;  %v1169_v37 = vadd.f32 %v1168_v17, %v1066_v49 }
 0x19f   :  { %v1547_v61 = vsub.f32 %v1545_v45, %v1546_v7  ;;  %1934 = vmatmul.f32.vlgmr.msrb.gmra.mxu3 %v1546_v7 }
 0x1a0   :  { %v1476_v53 = vsel %vm1471_vm4, %v1444_v36, 0  ;;  %v1285_v3 = vadd.f32 %v1284_v60, %v1169_v37 }
 0x1a1   :  { %v3989_v11 = vand.u32 4294901760, %v1476_v53  ;;  %v1548_v58 = vand.u32 4294901760, %v1547_v61 }
 0x1a2   :  { %v1369_v59 = vadd.f32 %v1368_v63, %v1285_v3 }
 0x1a3   :  { %v1070_v15 = vpop.f32.mrf.mxu0  ;;  %1549 = vmatmul.f32.vlgmr.msrb.gmra.mxu0 %v1548_v58  ;;  %1734 = vmatmul.f32.gmra.mxu1 %v3989_v11  ;;  %v1553_v46 = vsub.f32 %v1476_v53, %v3989_v11  ;;  %v1174_v21 = vpop.f32.mrf.mxu1 }
 0x1a4   :  { %v1429_v10 = vadd.f32 %v3977_v12, %v1369_v59  ;;  %v1071_v18 = vadd.f32 %v1070_v15, %v3757_v33  ;;  %v1288_v45 = vpop.f32.mrf.mxu2 }
 0x1a5   :  { %1833 = vmatmul.f32.gmra.mxu2 %v1553_v46  ;;  %v1554_v13 = vand.u32 4294901760, %v1553_v46  ;;  %v1372_v49 = vpop.f32.mrf.mxu3 }
 0x1a6   :  { %v1445_v17 = vmax.f32 %v1429_v10, 0.0  ;;  %v1175_v60 = vadd.f32 %v1174_v21, %v1071_v18 }
 0x1a7   :  { %1940 = vmatmul.f32.gmra.mxu3 %v1554_v13  ;;  %v1555_v7 = vsub.f32 %v1553_v46, %v1554_v13 }
 0x1a8   :  { %v1479_v63 = vsel %vm1471_vm4, %v1445_v17, 0  ;;  %v1289_v36 = vadd.f32 %v1288_v45, %v1175_v60 }
 0x1a9   :  { %v3996_v37 = vand.u32 4294901760, %v1479_v63  ;;  %v1556_v61 = vand.u32 4294901760, %v1555_v7 }
 0x1aa   :  { %v1373_v53 = vadd.f32 %v1372_v49, %v1289_v36 }
 0x1ab   :  { %v1075_v3 = vpop.f32.mrf.mxu0  ;;  %1557 = vmatmul.f32.gmra.mxu0 %v1556_v61  ;;  %1738 = vmatmul.f32.gmra.mxu1 %v3996_v37  ;;  %v1561_v33 = vsub.f32 %v1479_v63, %v3996_v37  ;;  %v1180_v15 = vpop.f32.mrf.mxu1 }
 0x1ac   :  { %v1430_v58 = vadd.f32 %v3977_v12, %v1373_v53  ;;  %v1076_v59 = vadd.f32 %v1075_v3, %v3769_v30  ;;  %v1292_v10 = vpop.f32.mrf.mxu2 }
 0x1ad   :  { %1838 = vmatmul.f32.gmra.mxu2 %v1561_v33  ;;  %v1562_v46 = vand.u32 4294901760, %v1561_v33  ;;  %v1376_v18 = vpop.f32.mrf.mxu3 }
 0x1ae   :  { %v1446_v21 = vmax.f32 %v1430_v58, 0.0  ;;  %v1181_v45 = vadd.f32 %v1180_v15, %v1076_v59 }
 0x1af   :  { %1946 = vmatmul.f32.gmra.mxu3 %v1562_v46  ;;  %v1563_v13 = vsub.f32 %v1561_v33, %v1562_v46 }
 0x1b0   :  { %v1482_v49 = vsel %vm1471_vm4, %v1446_v21, 0  ;;  %v1293_v17 = vadd.f32 %v1292_v10, %v1181_v45 }
 0x1b1   :  { %v4003_v60 = vand.u32 4294901760, %v1482_v49  ;;  %v1564_v7 = vand.u32 4294901760, %v1563_v13 }
 0x1b2   :  { %v1377_v63 = vadd.f32 %v1376_v18, %v1293_v17 }
 0x1b3   :  { %v1080_v36 = vpop.f32.mrf.mxu0  ;;  %1565 = vmatmul.f32.gmra.mxu0 %v1564_v7  ;;  %1742 = vmatmul.f32.gmra.mxu1 %v4003_v60  ;;  %v1569_v30 = vsub.f32 %v1482_v49, %v4003_v60  ;;  %v1186_v3 = vpop.f32.mrf.mxu1 }
 0x1b4   :  { %v1431_v61 = vadd.f32 %v3977_v12, %v1377_v63  ;;  %v1081_v53 = vadd.f32 %v1080_v36, %v3788_v41  ;;  %v1296_v58 = vpop.f32.mrf.mxu2 }
 0x1b5   :  { %1843 = vmatmul.f32.gmra.mxu2 %v1569_v30  ;;  %v1570_v33 = vand.u32 4294901760, %v1569_v30  ;;  %v1380_v59 = vpop.f32.mrf.mxu3 }
 0x1b6   :  { %v1447_v15 = vmax.f32 %v1431_v61, 0.0  ;;  %v1187_v10 = vadd.f32 %v1186_v3, %v1081_v53  ;;  %v621_v3 = vadd.f32 %v3823_v29, %v3589_v47 }
 0x1b7   :  { %1952 = vmatmul.f32.gmra.mxu3 %v1570_v33  ;;  %v1571_v46 = vsub.f32 %v1569_v30, %v1570_v33 }
 0x1b8   :  { %v1485_v18 = vsel %vm1471_vm4, %v1447_v15, 0  ;;  %v1297_v21 = vadd.f32 %v1296_v58, %v1187_v10 }
 0x1b9   :  { %v4010_v45 = vand.u32 4294901760, %v1485_v18  ;;  %v1572_v13 = vand.u32 4294901760, %v1571_v46 }
 0x1ba   :  { %v1381_v49 = vadd.f32 %v1380_v59, %v1297_v21 }
 0x1bb   :  { %v1085_v17 = vpop.f32.mrf.mxu0  ;;  %1573 = vmatmul.f32.gmra.mxu0 %v1572_v13  ;;  %1746 = vmatmul.f32.gmra.mxu1 %v4010_v45  ;;  %v1577_v41 = vsub.f32 %v1485_v18, %v4010_v45  ;;  %v1192_v36 = vpop.f32.mrf.mxu1 }
 0x1bc   :  { %v1432_v7 = vadd.f32 %v3977_v12, %v1381_v49  ;;  %v1086_v63 = vadd.f32 %v1085_v17, %v3800_v20  ;;  %v1300_v61 = vpop.f32.mrf.mxu2  ;;  %v703_v20 = vadd.f32 %v3828_v38, %v621_v3  ;;  %v625_v38 = vadd.f32 %v3839_v48, %v3607_v44 }
 0x1bd   :  { %1848 = vmatmul.f32.gmra.mxu2 %v1577_v41  ;;  %v1578_v30 = vand.u32 4294901760, %v1577_v41  ;;  %v1384_v53 = vpop.f32.mrf.mxu3 }
 0x1be   :  { %v1448_v58 = vmax.f32 %v1432_v7, 0.0  ;;  %v1193_v33 = vadd.f32 %v1192_v36, %v1086_v63  ;;  %v876_v36 = vadd.f32 %v3830_v8, %v703_v20 }
 0x1bf   :  { %1958 = vmatmul.f32.gmra.mxu3 %v1578_v30  ;;  %v1579_v59 = vsub.f32 %v1577_v41, %v1578_v30 }
 0x1c0   :  { %v1488_v15 = vsel %vm1471_vm4, %v1448_v58, 0  ;;  %v1301_v10 = vadd.f32 %v1300_v61, %v1193_v33 }
 0x1c1   :  { %v4019_v46 = vand.u32 4294901760, %v1488_v15  ;;  %v1580_v18 = vand.u32 4294901760, %v1579_v59  ;;  %v1000_v59 = vadd.f32 %v3832_v9, %v876_v36  ;;  %v629_v9 = vadd.f32 %v3864_v5, %v3625_v4 }
 0x1c2   :  { %v1385_v21 = vadd.f32 %v1384_v53, %v1301_v10 }
 0x1c3   :  { %v1090_v13 = vpop.f32.mrf.mxu0  ;;  %1581 = vmatmul.f32.gmra.mxu0 %v1580_v18  ;;  %1750 = vmatmul.f32.gmra.mxu1 %v4019_v46  ;;  %v1585_v49 = vsub.f32 %v1488_v15, %v4019_v46  ;;  %v1198_v17 = vpop.f32.mrf.mxu1  ;;  %v707_v15 = vadd.f32 %v3841_v56, %v625_v38 }
 0x1c4   :  { %v1433_v47 = vadd.f32 %v3977_v12, %v1385_v21  ;;  %v1091_v29 = vadd.f32 %v1090_v13, %v3819_v40  ;;  %v1304_v41 = vpop.f32.mrf.mxu2 }
 0x1c5   :  { %1853 = vmatmul.f32.gmra.mxu2 %v1585_v49  ;;  %v1586_v7 = vand.u32 4294901760, %v1585_v49  ;;  %v1388_v63 = vpop.f32.mrf.mxu3 }
 0x1c6   :  { %v1449_v61 = vmax.f32 %v1433_v47, 0.0  ;;  %v1199_v30 = vadd.f32 %v1198_v17, %v1091_v29  ;;  %v884_v47 = vadd.f32 %v3843_v39, %v707_v15 }
 0x1c7   :  { %1964 = vmatmul.f32.gmra.mxu3 %v1586_v7  ;;  %v1587_v53 = vsub.f32 %v1585_v49, %v1586_v7 }
 0x1c8   :  { %v1491_v3 = vsel %vm1471_vm4, %v1449_v61, 0  ;;  %v1305_v58 = vadd.f32 %v1304_v41, %v1199_v30  ;;  %v1004_v38 = vadd.f32 %v3848_v23, %v884_v47  ;;  %v711_v61 = vadd.f32 %v3869_v50, %v629_v9 }
 0x1c9   :  { %v4030_v33 = vand.u32 4294901760, %v1491_v3  ;;  %v1588_v40 = vand.u32 4294901760, %v1587_v53  ;;  %v633_v23 = vadd.f32 %v3880_v57, %v3643_v0 }
 0x1ca   :  { %v1389_v10 = vadd.f32 %v1388_v63, %v1305_v58  ;;  %v892_v15 = vadd.f32 %v3871_v43, %v711_v61 }
 0x1cb   :  { %v1095_v18 = vpop.f32.mrf.mxu0  ;;  %1589 = vmatmul.f32.gmra.mxu0 %v1588_v40  ;;  %1754 = vmatmul.f32.gmra.mxu1 %v4030_v33  ;;  %v1593_v44 = vsub.f32 %v1491_v3, %v4030_v33  ;;  %v1204_v20 = vpop.f32.mrf.mxu1 }
 0x1cc   :  { %v1434_v8 = vadd.f32 %v3977_v12, %v1389_v10  ;;  %v1096_v48 = vadd.f32 %v1095_v18, %v1000_v59  ;;  %v1308_v21 = vpop.f32.mrf.mxu2 }
 0x1cd   :  { %1858 = vmatmul.f32.gmra.mxu2 %v1593_v44  ;;  %v1594_v13 = vand.u32 4294901760, %v1593_v44  ;;  %v1392_v49 = vpop.f32.mrf.mxu3 }
 0x1ce   :  { %v1450_v56 = vmax.f32 %v1434_v8, 0.0  ;;  %v1205_v29 = vadd.f32 %v1204_v20, %v1096_v48 }
 0x1cf   :  { %1970 = vmatmul.f32.gmra.mxu3 %v1594_v13  ;;  %v1595_v17 = vsub.f32 %v1593_v44, %v1594_v13  ;;  %v715_v13 = vadd.f32 %v3882_v26, %v633_v23 }
 0x1d0   :  { %v1494_v41 = vsel %vm1471_vm4, %v1450_v56, 0  ;;  %v1309_v7 = vadd.f32 %v1308_v21, %v1205_v29  ;;  %v1008_v21 = vadd.f32 %v3873_v55, %v892_v15  ;;  %v637_v55 = vadd.f32 %v3901_v14, %v3658_v62 }
 0x1d1   :  { %v4041_v63 = vand.u32 4294901760, %v1494_v41  ;;  %v1596_v36 = vand.u32 4294901760, %v1595_v17 }
 0x1d2   :  { %v1393_v30 = vadd.f32 %v1392_v49, %v1309_v7 }
 0x1d3   :  { %v1100_v53 = vpop.f32.mrf.mxu0  ;;  %1597 = vmatmul.f32.gmra.mxu0 %v1596_v36  ;;  %1758 = vmatmul.f32.gmra.mxu1 %v4041_v63  ;;  %v1601_v4 = vsub.f32 %v1494_v41, %v4041_v63  ;;  %v1210_v3 = vpop.f32.mrf.mxu1  ;;  %v900_v41 = vadd.f32 %v3884_v28, %v715_v13 }
 0x1d4   :  { %v1435_v39 = vadd.f32 %v3977_v12, %v1393_v30  ;;  %v1101_v5 = vadd.f32 %v1100_v53, %v1004_v38  ;;  %v1312_v58 = vpop.f32.mrf.mxu2 }
 0x1d5   :  { %1863 = vmatmul.f32.gmra.mxu2 %v1601_v4  ;;  %v1602_v40 = vand.u32 4294901760, %v1601_v4  ;;  %v1396_v59 = vpop.f32.mrf.mxu3 }
 0x1d6   :  { %v1451_v50 = vmax.f32 %v1435_v39, 0.0  ;;  %v1211_v10 = vadd.f32 %v1210_v3, %v1101_v5  ;;  %v719_v39 = vadd.f32 %v3903_v19, %v637_v55  ;;  %v641_v19 = vadd.f32 %v3917_v16, %v3670_v52 }
 0x1d7   :  { %1976 = vmatmul.f32.gmra.mxu3 %v1602_v40  ;;  %v1603_v18 = vsub.f32 %v1601_v4, %v1602_v40  ;;  %v1012_v4 = vadd.f32 %v3889_v34, %v900_v41 }
 0x1d8   :  { %v1497_v44 = vsel %vm1471_vm4, %v1451_v50, 0  ;;  %v1313_v8 = vadd.f32 %v1312_v58, %v1211_v10  ;;  %v908_v23 = vadd.f32 %v3905_v51, %v719_v39  ;;  %v723_v13 = vadd.f32 %v3921_v2, %v641_v19 }
 0x1d9   :  { %v4052_v48 = vand.u32 4294901760, %v1497_v44  ;;  %v1604_v20 = vand.u32 4294901760, %v1603_v18 }
 0x1da   :  { %v1397_v49 = vadd.f32 %v1396_v59, %v1313_v8 }
 0x1db   :  { %v1105_v47 = vpop.f32.mrf.mxu0  ;;  %1605 = vmatmul.f32.gmra.mxu0 %v1604_v20  ;;  %1762 = vmatmul.f32.gmra.mxu1 %v4052_v48  ;;  %v1609_v0 = vsub.f32 %v1497_v44, %v4052_v48  ;;  %v1216_v9 = vpop.f32.mrf.mxu1 }
 0x1dc   :  { %v1436_v43 = vadd.f32 %v3977_v12, %v1397_v49  ;;  %v1106_v57 = vadd.f32 %v1105_v47, %v1008_v21  ;;  %v1316_v56 = vpop.f32.mrf.mxu2  ;;  %v1016_v21 = vadd.f32 %v3907_v1, %v908_v23  ;;  %v4630_v1 = vld [vmem:[#allocation5_spill] sm:$0xff] }
 0x1dd   :  { %1868 = vmatmul.f32.gmra.mxu2 %v1609_v0  ;;  %v1610_v29 = vand.u32 4294901760, %v1609_v0  ;;  %v1400_v17 = vpop.f32.mrf.mxu3  ;;  %v645_v2 = vadd.f32 %v3938_v31, %v4630_v1 }
 0x1de   :  { %v1452_v26 = vmax.f32 %v1436_v43, 0.0  ;;  %v1217_v7 = vadd.f32 %v1216_v9, %v1106_v57 }
 0x1df   :  { %1982 = vmatmul.f32.gmra.mxu3 %v1610_v29  ;;  %v1611_v36 = vsub.f32 %v1609_v0, %v1610_v29 }
 0x1e0   :  { %v1500_v38 = vsel %vm1471_vm4, %v1452_v26, 0  ;;  %v1317_v61 = vadd.f32 %v1316_v56, %v1217_v7  ;;  %v4629_v56 = vld [vmem:[#allocation7_spill] sm:$0xff] }
 0x1e1   :  { %v4063_v30 = vand.u32 4294901760, %v1500_v38  ;;  %v1612_v53 = vand.u32 4294901760, %v1611_v36  ;;  %v916_v29 = vadd.f32 %v4629_v56, %v723_v13 }
 0x1e2   :  { %v1401_v5 = vadd.f32 %v1400_v17, %v1317_v61 }
 0x1e3   :  { %v1110_v3 = vpop.f32.mrf.mxu0  ;;  %1613 = vmatmul.f32.gmra.mxu0 %v1612_v53  ;;  %1766 = vmatmul.f32.gmra.mxu1 %v4063_v30  ;;  %v1617_v62 = vsub.f32 %v1500_v38, %v4063_v30  ;;  %v1222_v58 = vpop.f32.mrf.mxu1  ;;  %v1020_v61 = vadd.f32 %v3925_v35, %v916_v29  ;;  %v727_v53 = vadd.f32 %v3943_v6, %v645_v2  ;;  %v4631_v35 = vld [vmem:[#allocation6_spill] sm:$0xff] }
 0x1e4   :  { %v1437_v28 = vadd.f32 %v3977_v12, %v1401_v5  ;;  %v1111_v14 = vadd.f32 %v1110_v3, %v1012_v4  ;;  %v1320_v40 = vpop.f32.mrf.mxu2  ;;  %v649_v6 = vadd.f32 %v3959_v32, %v4631_v35 }
 0x1e5   :  { %1873 = vmatmul.f32.gmra.mxu2 %v1617_v62  ;;  %v1618_v59 = vand.u32 4294901760, %v1617_v62  ;;  %v1404_v15 = vpop.f32.mrf.mxu3 }
 0x1e6   :  { %v1453_v34 = vmax.f32 %v1437_v28, 0.0  ;;  %v1223_v50 = vadd.f32 %v1222_v58, %v1111_v14 }
 0x1e7   :  { %1988 = vmatmul.f32.gmra.mxu3 %v1618_v59  ;;  %v1619_v10 = vsub.f32 %v1617_v62, %v1618_v59 }
 0x1e8   :  { %v1503_v18 = vsel %vm1471_vm4, %v1453_v34, 0  ;;  %v1321_v44 = vadd.f32 %v1320_v40, %v1223_v50  ;;  %v924_v40 = vadd.f32 %v3945_v54, %v727_v53 }
 0x1e9   :  { %v4074_v8 = vand.u32 4294901760, %v1503_v18  ;;  %v1620_v20 = vand.u32 4294901760, %v1619_v10 }
 0x1ea   :  { %v1405_v49 = vadd.f32 %v1404_v15, %v1321_v44  ;;  %v731_v44 = vadd.f32 %v3961_v25, %v649_v6 }
 0x1eb   :  { %v1115_v47 = vpop.f32.mrf.mxu0  ;;  %1621 = vmatmul.f32.gmra.mxu0 %v1620_v20  ;;  %1770 = vmatmul.f32.gmra.mxu1 %v4074_v8  ;;  %v1625_v52 = vsub.f32 %v1503_v18, %v4074_v8  ;;  %v1228_v0 = vpop.f32.mrf.mxu1  ;;  %v1024_v18 = vadd.f32 %v3947_v42, %v924_v40 }
 0x1ec   :  { %v1438_v16 = vadd.f32 %v3977_v12, %v1405_v49  ;;  %v1116_v51 = vadd.f32 %v1115_v47, %v1016_v21  ;;  %v1324_v43 = vpop.f32.mrf.mxu2 }
 0x1ed   :  { %1878 = vmatmul.f32.gmra.mxu2 %v1625_v52  ;;  %v1626_v57 = vand.u32 4294901760, %v1625_v52  ;;  %v1408_v9 = vpop.f32.mrf.mxu3 }
 0x1ee   :  { %v1454_v17 = vmax.f32 %v1438_v16, 0.0  ;;  %v1229_v41 = vadd.f32 %v1228_v0, %v1116_v51  ;;  %v932_v51 = vadd.f32 %v3963_v22, %v731_v44 }
 0x1ef   :  { %1994 = vmatmul.f32.gmra.mxu3 %v1626_v57  ;;  %v1627_v55 = vsub.f32 %v1625_v52, %v1626_v57 }
 0x1f0   :  { %v1506_v26 = vsel %vm1471_vm4, %v1454_v17, 0  ;;  %v1325_v7 = vadd.f32 %v1324_v43, %v1229_v41  ;;  %v1028_v29 = vadd.f32 %v3966_v27, %v932_v51 }
 0x1f1   :  { %v4085_v36 = vand.u32 4294901760, %v1506_v26  ;;  %v1628_v38 = vand.u32 4294901760, %v1627_v55 }
 0x1f2   :  { %v1409_v4 = vadd.f32 %v1408_v9, %v1325_v7 }
 0x1f3   :  { %v1120_v39 = vpop.f32.mrf.mxu0  ;;  %1629 = vmatmul.f32.gmra.mxu0 %v1628_v38  ;;  %1774 = vmatmul.f32.gmra.mxu1 %v4085_v36  ;;  %v1633_v31 = vsub.f32 %v1506_v26, %v4085_v36  ;;  %v1234_v62 = vpop.f32.mrf.mxu1 }
 0x1f4   :  { %v1439_v5 = vadd.f32 %v3977_v12, %v1409_v4  ;;  %v1121_v3 = vadd.f32 %v1120_v39, %v1020_v61  ;;  %v1328_v28 = vpop.f32.mrf.mxu2 }
 0x1f5   :  { %1883 = vmatmul.f32.gmra.mxu2 %v1633_v31  ;;  %v1634_v14 = vand.u32 4294901760, %v1633_v31  ;;  %v1412_v58 = vpop.f32.mrf.mxu3 }
 0x1f6   :  { %v1455_v59 = vmax.f32 %v1439_v5, 0.0  ;;  %v1235_v15 = vadd.f32 %v1234_v62, %v1121_v3 }
 0x1f7   :  { %2000 = vmatmul.f32.gmra.mxu3 %v1634_v14  ;;  %v1635_v23 = vsub.f32 %v1633_v31, %v1634_v14 }
 0x1f8   :  { %v1509_v19 = vsel %vm1471_vm4, %v1455_v59, 0  ;;  %v1329_v34 = vadd.f32 %v1328_v28, %v1235_v15 }
 0x1f9   :  { %v4096_v50 = vand.u32 4294901760, %v1509_v19  ;;  %v1636_v10 = vand.u32 4294901760, %v1635_v23 }
 0x1fa   :  { %v1413_v20 = vadd.f32 %v1412_v58, %v1329_v34 }
 0x1fb   :  { %v1125_v21 = vpop.f32.mrf.mxu0  ;;  %1637 = vmatmul.f32.gmra.mxu0 %v1636_v10  ;;  %1778 = vmatmul.f32.gmra.mxu1 %v4096_v50  ;;  %v1641_v54 = vsub.f32 %v1509_v19, %v4096_v50  ;;  %v1240_v49 = vpop.f32.mrf.mxu1 }
 0x1fc   :  { %v1440_v32 = vadd.f32 %v3977_v12, %v1413_v20  ;;  %v1126_v13 = vadd.f32 %v1125_v21, %v1024_v18  ;;  %v1332_v47 = vpop.f32.mrf.mxu2 }
 0x1fd   :  { %1888 = vmatmul.f32.gmra.mxu2 %v1641_v54  ;;  %v1642_v52 = vand.u32 4294901760, %v1641_v54  ;;  %v1416_v16 = vpop.f32.mrf.mxu3 }
 0x1fe   :  { %v1456_v42 = vmax.f32 %v1440_v32, 0.0  ;;  %v1241_v0 = vadd.f32 %v1240_v49, %v1126_v13  ;;  %v2244_v49 = vld [vmem:[%s4583_s7 + $0x30] sm:$0xff] }
 0x1ff   :  { %2006 = vmatmul.f32.gmra.mxu3 %v1642_v52  ;;  %v1643_v25 = vsub.f32 %v1641_v54, %v1642_v52 }
 0x200   :  { %v1512_v43 = vsel %vm1471_vm4, %v1456_v42, 0  ;;  %v1333_v57 = vadd.f32 %v1332_v47, %v1241_v0 }
 0x201   :  { %v4105_v9 = vand.u32 4294901760, %v1512_v43  ;;  %v1644_v56 = vand.u32 4294901760, %v1643_v25 }
 0x202   :  { %v1417_v1 = vadd.f32 %v1416_v16, %v1333_v57  ;;  %v4153_v16 = vand.u32 4294901760, %v2244_v49 }
 0x203   :  { %v1130_v2 = vpop.f32.mrf.mxu0  ;;  %1645 = vmatmul.f32.gmra.mxu0 %v1644_v56  ;;  %1782 = vmatmul.f32.gmra.mxu1 %v4105_v9  ;;  %v1649_v17 = vsub.f32 %v1512_v43, %v4105_v9  ;;  %v1246_v55 = vpop.f32.mrf.mxu1 }
 0x204   :  { %v1441_v22 = vadd.f32 %v3977_v12, %v1417_v1  ;;  %v1131_v41 = vadd.f32 %v1130_v2, %v1028_v29  ;;  %v1336_v26 = vpop.f32.mrf.mxu2  ;;  %v4157_v51 = vsub.f32 %v2244_v49, %v4153_v16 }
 0x205   :  { %1893 = vmatmul.f32.gmra.mxu2 %v1649_v17  ;;  %v1650_v7 = vand.u32 4294901760, %v1649_v17  ;;  %v1420_v53 = vpop.f32.mrf.mxu3 }
 0x206   :  { %v1457_v38 = vmax.f32 %v1441_v22, 0.0  ;;  %v1247_v61 = vadd.f32 %v1246_v55, %v1131_v41 }
 0x207   :  { %2012 = vmatmul.f32.gmra.mxu3 %v1650_v7  ;;  %v1651_v4 = vsub.f32 %v1649_v17, %v1650_v7 }
 0x208   :  { %v1515_v27 = vsel %vm1471_vm4, %v1457_v38, 0  ;;  %v1337_v39 = vadd.f32 %v1336_v26, %v1247_v61 }
 0x209   :  { %v4112_v31 = vand.u32 4294901760, %v1515_v27  ;;  %v1652_v5 = vand.u32 4294901760, %v1651_v4 }
 0x20a   :  { %v1421_v3 = vadd.f32 %v1420_v53, %v1337_v39 }
 0x20b   :  { %1653 = vmatmul.f32.gmra.mxu0 %v1652_v5  ;;  %1786 = vmatmul.f32.gmra.mxu1 %v4112_v31  ;;  %v1657_v62 = vsub.f32 %v1515_v27, %v4112_v31 }
 0x20c   :  { %v1442_v28 = vadd.f32 %v3977_v12, %v1421_v3  ;;  %v2245_v12 = vld [vmem:[%s4583_s7 + $0x38] sm:$0xff] }
 0x20d   :  { %1898 = vmatmul.f32.gmra.mxu2 %v1657_v62  ;;  %v1658_v14 = vand.u32 4294901760, %v1657_v62  ;;  %v4127_v10 = vand.u32 4294901760, %v2245_v12 }
 0x20e   :  { %v1458_v58 = vmax.f32 %v1442_v28, 0.0 }
 0x20f   :  { %2018 = vmatmul.f32.gmra.mxu3 %v1658_v14  ;;  %v1659_v40 = vsub.f32 %v1657_v62, %v1658_v14  ;;  %2307 = vmatpush.msra.mxu2 %v4127_v10  ;;  %v4131_v44 = vsub.f32 %v2245_v12, %v4127_v10 }
 0x210   :  { %v1518_v35 = vsel %vm1471_vm4, %v1458_v58, 0  ;;  %2694 = vmatpush.msrb.mxu1 %v4127_v10 }
 0x211   :  { %v4118_v6 = vand.u32 4294901760, %v1518_v35  ;;  %v1660_v59 = vand.u32 4294901760, %v1659_v40  ;;  %v2461_v20 = vand.u32 4294901760, %v4131_v44  ;;  %2582 = vmatpush.msrb.mxu0 %v4131_v44  ;;  %2309 = vmatpush.msra.mxu2 %v4153_v16 }
 0x212   :  { %2696 = vmatpush.msrb.mxu1 %v4153_v16 }
 0x213   :  { %1661 = vmatmul.f32.gmra.mxu0 %v1660_v59  ;;  %1790 = vmatmul.f32.gmra.mxu1 %v4118_v6  ;;  %v1665_v15 = vsub.f32 %v1518_v35, %v4118_v6  ;;  %v2462_v21 = vsub.f32 %v4131_v44, %v2461_v20 }
 0x214   :  { %2585 = vmatpush.msrb.mxu0 %v4157_v51 }
 0x215   :  { %1903 = vmatmul.f32.gmra.mxu2 %v1665_v15  ;;  %v1666_v23 = vand.u32 4294901760, %v1665_v15  ;;  %v2463_v13 = vand.u32 4294901760, %v2462_v21 }
 0x217   :  { %2024 = vmatmul.f32.gmra.mxu3 %v1666_v23  ;;  %v1667_v19 = vsub.f32 %v1665_v15, %v1666_v23 }
 0x218   :  { %v4125_v34 = vpop.f32.mrf.mxu1  ;;  %2464 = vmatpush.msra.mxu3 %v2463_v13  ;;  %v2239_v13 = vld [vmem:[%s4583_s7 + $0x8] sm:$0xff] }
 0x219   :  { %v1668_v18 = vand.u32 4294901760, %v1667_v19 }
 0x21b   :  { %1669 = vmatmul.f32.gmra.mxu0 %v1668_v18  ;;  %2158 = vmatmul.f32.vlgmr.msra.gmra.mxu1 %v3982_v24 }
 0x220   :  { %v4140_v54 = vpop.f32.mrf.mxu0  ;;  %v4142_v32 = vpop.f32.mrf.mxu1 }
 0x223   :  { %2069 = vmatmul.f32.vlgmr.msra.gmra.mxu0 %v3982_v24  ;;  %2162 = vmatmul.f32.gmra.mxu1 %v3989_v11  ;;  %v2467_v24 = vand.u32 4294901760, %v4157_v51 }
 0x225   :  { %v2468_v42 = vsub.f32 %v4157_v51, %v2467_v24 }
 0x227   :  { %v2469_v43 = vand.u32 4294901760, %v2468_v42  ;;  %v2318_v42 = vand.u32 4294901760, %v2239_v13 }
 0x228   :  { %v4149_v47 = vpop.f32.mrf.mxu0  ;;  %v4151_v52 = vpop.f32.mrf.mxu1 }
 0x229   :  { %2470 = vmatpush.msra.mxu3 %v2469_v43  ;;  %v2496_v43 = vsub.f32 %v2239_v13, %v2318_v42 }
 0x22b   :  { %2073 = vmatmul.f32.gmra.mxu0 %v3989_v11  ;;  %2166 = vmatmul.f32.gmra.mxu1 %v3996_v37  ;;  %v2243_v11 = vld [vmem:[%s4583_s7 + $0x28] sm:$0xff] }
 0x22c   :  { %v4180_v29 = vand.u32 4294901760, %v2243_v11 }
 0x22e   :  { %2311 = vmatpush.msra.mxu2 %v4180_v29  ;;  %v4184_v1 = vsub.f32 %v2243_v11, %v4180_v29  ;;  %2698 = vmatpush.msrb.mxu1 %v4180_v29  ;;  %v1829_v11 = vpop.f32.mrf.mxu2 }
 0x230   :  { %v4167_v0 = vpop.f32.mrf.mxu0  ;;  %v4169_v25 = vpop.f32.mrf.mxu1  ;;  %2588 = vmatpush.msrb.mxu0 %v4184_v1 }
 0x233   :  { %2077 = vmatmul.f32.gmra.mxu0 %v3996_v37  ;;  %2170 = vmatmul.f32.gmra.mxu1 %v4003_v60  ;;  %v2473_v37 = vand.u32 4294901760, %v4184_v1 }
 0x235   :  { %v2474_v2 = vsub.f32 %v4184_v1, %v2473_v37 }
 0x237   :  { %v2475_v41 = vand.u32 4294901760, %v2474_v2 }
 0x238   :  { %v4176_v57 = vpop.f32.mrf.mxu0  ;;  %v4178_v56 = vpop.f32.mrf.mxu1 }
 0x239   :  { %2476 = vmatpush.msra.mxu3 %v2475_v41  ;;  %v1935_v41 = vpop.f32.mrf.mxu3 }
 0x23b   :  { %2081 = vmatmul.f32.gmra.mxu0 %v4003_v60  ;;  %2174 = vmatmul.f32.gmra.mxu1 %v4010_v45  ;;  %v2242_v60 = vld [vmem:[%s4583_s7 + $0x20] sm:$0xff] }
 0x23c   :  { %v4207_v7 = vand.u32 4294901760, %v2242_v60 }
 0x23e   :  { %2313 = vmatpush.msra.mxu2 %v4207_v7  ;;  %v4211_v38 = vsub.f32 %v2242_v60, %v4207_v7  ;;  %2700 = vmatpush.msrb.mxu1 %v4207_v7  ;;  %v2238_v60 = vld [vmem:[%s4583_s7] sm:$0xff] }
 0x240   :  { %v4194_v17 = vpop.f32.mrf.mxu0  ;;  %v4196_v22 = vpop.f32.mrf.mxu1  ;;  %2591 = vmatpush.msrb.mxu0 %v4211_v38 }
 0x243   :  { %2085 = vmatmul.f32.gmra.mxu0 %v4010_v45  ;;  %2178 = vmatmul.f32.gmra.mxu1 %v4019_v46  ;;  %v2479_v45 = vand.u32 4294901760, %v4211_v38 }
 0x245   :  { %v2480_v61 = vsub.f32 %v4211_v38, %v2479_v45 }
 0x247   :  { %v2481_v27 = vand.u32 4294901760, %v2480_v61 }
 0x248   :  { %v4203_v55 = vpop.f32.mrf.mxu0  ;;  %v4205_v26 = vpop.f32.mrf.mxu1 }
 0x249   :  { %2482 = vmatpush.msra.mxu3 %v2481_v27 }
 0x24b   :  { %2089 = vmatmul.f32.gmra.mxu0 %v4019_v46  ;;  %2182 = vmatmul.f32.gmra.mxu1 %v4030_v33  ;;  %v2241_v46 = vld [vmem:[%s4583_s7 + $0x18] sm:$0xff] }
 0x24c   :  { %v4234_v3 = vand.u32 4294901760, %v2241_v46 }
 0x24e   :  { %2315 = vmatpush.msra.mxu2 %v4234_v3  ;;  %v4238_v62 = vsub.f32 %v2241_v46, %v4234_v3  ;;  %2702 = vmatpush.msrb.mxu1 %v4234_v3 }
 0x250   :  { %v4221_v53 = vpop.f32.mrf.mxu0  ;;  %v4223_v4 = vpop.f32.mrf.mxu1  ;;  %2594 = vmatpush.msrb.mxu0 %v4238_v62 }
 0x253   :  { %2093 = vmatmul.f32.gmra.mxu0 %v4030_v33  ;;  %2186 = vmatmul.f32.gmra.mxu1 %v4041_v63  ;;  %v2485_v33 = vand.u32 4294901760, %v4238_v62 }
 0x255   :  { %v2486_v28 = vsub.f32 %v4238_v62, %v2485_v33 }
 0x257   :  { %v2487_v40 = vand.u32 4294901760, %v2486_v28  ;;  %v2320_v28 = vand.u32 4294901760, %v2238_v60 }
 0x258   :  { %v4230_v39 = vpop.f32.mrf.mxu0  ;;  %v4232_v5 = vpop.f32.mrf.mxu1 }
 0x259   :  { %2488 = vmatpush.msra.mxu3 %v2487_v40  ;;  %v2502_v40 = vsub.f32 %v2238_v60, %v2320_v28 }
 0x25b   :  { %2097 = vmatmul.f32.gmra.mxu0 %v4041_v63  ;;  %2190 = vmatmul.f32.gmra.mxu1 %v4052_v48  ;;  %v2240_v63 = vld [vmem:[%s4583_s7 + $0x10] sm:$0xff] }
 0x25c   :  { %v4261_v15 = vand.u32 4294901760, %v2240_v63 }
 0x25e   :  { %2317 = vmatpush.msra.mxu2 %v4261_v15  ;;  %v2490_v23 = vsub.f32 %v2240_v63, %v4261_v15  ;;  %2704 = vmatpush.msrb.mxu1 %v4261_v15  ;;  %v1834_v63 = vpop.f32.mrf.mxu2 }
 0x260   :  { %v4248_v14 = vpop.f32.mrf.mxu0  ;;  %v4250_v58 = vpop.f32.mrf.mxu1  ;;  %2597 = vmatpush.msrb.mxu0 %v2490_v23  ;;  %2319 = vmatpush.msra.mxu2 %v2318_v42 }
 0x261   :  { %2706 = vmatpush.msrb.mxu1 %v2318_v42 }
 0x262   :  { %2600 = vmatpush.msrb.mxu0 %v2496_v43  ;;  %2321 = vmatpush.msra.mxu2 %v2320_v28 }
 0x263   :  { %2101 = vmatmul.f32.gmra.mxu0 %v4052_v48  ;;  %2194 = vmatmul.f32.gmra.mxu1 %v4063_v30  ;;  %v2491_v48 = vand.u32 4294901760, %v2490_v23 }
 0x264   :  { %2603 = vmatpush.msrb.mxu0 %v2502_v40  ;;  %2708 = vmatpush.msrb.mxu1 %v2320_v28 }
 0x265   :  { %v2492_v19 = vsub.f32 %v2490_v23, %v2491_v48  ;;  %2817 = vmatpush.msrb.mxu2 %v2461_v20 }
 0x266   :  { %v1839_v44 = vpop.f32.mrf.mxu2 }
 0x267   :  { %v2493_v21 = vand.u32 4294901760, %v2492_v19  ;;  %2821 = vmatpush.msrb.mxu2 %v2467_v24 }
 0x268   :  { %v4257_v35 = vpop.f32.mrf.mxu0  ;;  %v4259_v59 = vpop.f32.mrf.mxu1 }
 0x269   :  { %2494 = vmatpush.msra.mxu3 %v2493_v21  ;;  %2825 = vmatpush.msrb.mxu2 %v2473_v37 }
 0x26b   :  { %2105 = vmatmul.f32.gmra.mxu0 %v4063_v30  ;;  %2198 = vmatmul.f32.gmra.mxu1 %v4074_v8 }
 0x26c   :  { %2829 = vmatpush.msrb.mxu2 %v2479_v45 }
 0x26e   :  { %2833 = vmatpush.msrb.mxu2 %v2485_v33  ;;  %v1844_v1 = vpop.f32.mrf.mxu2 }
 0x270   :  { %v4268_v12 = vpop.f32.mrf.mxu0  ;;  %v4270_v18 = vpop.f32.mrf.mxu1  ;;  %2837 = vmatpush.msrb.mxu2 %v2491_v48 }
 0x273   :  { %2109 = vmatmul.f32.gmra.mxu0 %v4074_v8  ;;  %2202 = vmatmul.f32.gmra.mxu1 %v4085_v36  ;;  %v2497_v8 = vand.u32 4294901760, %v2496_v43 }
 0x275   :  { %v2498_v2 = vsub.f32 %v2496_v43, %v2497_v8  ;;  %v1941_v43 = vpop.f32.mrf.mxu3  ;;  %2841 = vmatpush.msrb.mxu2 %v2497_v8 }
 0x277   :  { %v2499_v46 = vand.u32 4294901760, %v2498_v2 }
 0x278   :  { %v4277_v30 = vpop.f32.mrf.mxu0  ;;  %v4279_v49 = vpop.f32.mrf.mxu1 }
 0x279   :  { %2500 = vmatpush.msra.mxu3 %v2499_v46 }
 0x27b   :  { %2113 = vmatmul.f32.gmra.mxu0 %v4085_v36  ;;  %2206 = vmatmul.f32.gmra.mxu1 %v4096_v50  ;;  %v2503_v36 = vand.u32 4294901760, %v2502_v40 }
 0x27d   :  { %v2504_v23 = vsub.f32 %v2502_v40, %v2503_v36  ;;  %2845 = vmatpush.msrb.mxu2 %v2503_v36 }
 0x27f   :  { %v2505_v13 = vand.u32 4294901760, %v2504_v23 }
 0x280   :  { %v4286_v61 = vpop.f32.mrf.mxu0  ;;  %v4288_v27 = vpop.f32.mrf.mxu1 }
 0x281   :  { %2506 = vmatpush.msra.mxu3 %v2505_v13 }
 0x283   :  { %2117 = vmatmul.f32.gmra.mxu0 %v4096_v50  ;;  %2210 = vmatmul.f32.gmra.mxu1 %v4105_v9  ;;  %v4313_v50 = vld [vmem:[%s4582_s6] ss:$0 sm:$0xff] }
 0x284   :  { %2920 = vmatpush.msrb.mxu3 %v4127_v10  ;;  %v1551_v10 = vadd.f32 %v4313_v50, %v4140_v54  ;;  %v1559_v54 = vadd.f32 %v4313_v50, %v4149_v47  ;;  %v1567_v33 = vadd.f32 %v4313_v50, %v4167_v0  ;;  %v1575_v0 = vadd.f32 %v4313_v50, %v4176_v57 }
 0x286   :  { %2922 = vmatpush.msrb.mxu3 %v4153_v16  ;;  %v1947_v16 = vpop.f32.mrf.mxu3  ;;  %v1732_v51 = vadd.f32 %v4125_v34, %v1551_v10  ;;  %v1736_v38 = vadd.f32 %v4142_v32, %v1559_v54  ;;  %v1740_v8 = vadd.f32 %v4151_v52, %v1567_v33 }
 0x288   :  { %v4296_v19 = vpop.f32.mrf.mxu0  ;;  %v4298_v21 = vpop.f32.mrf.mxu1  ;;  %2924 = vmatpush.msrb.mxu3 %v4180_v29  ;;  %v1830_v37 = vadd.f32 %v1829_v11, %v1732_v51  ;;  %v1835_v34 = vadd.f32 %v1834_v63, %v1736_v38 }
 0x28a   :  { %2926 = vmatpush.msrb.mxu3 %v4207_v7  ;;  %v1936_v7 = vadd.f32 %v1935_v41, %v1830_v37  ;;  %v1942_v11 = vadd.f32 %v1941_v43, %v1835_v34  ;;  %v1744_v43 = vadd.f32 %v4169_v25, %v1575_v0 }
 0x28b   :  { %2121 = vmatmul.f32.gmra.mxu0 %v4105_v9  ;;  %2214 = vmatmul.f32.gmra.mxu1 %v4112_v31 }
 0x28c   :  { %2928 = vmatpush.msrb.mxu3 %v4234_v3  ;;  %v1845_v38 = vadd.f32 %v1844_v1, %v1744_v43 }
 0x28e   :  { %2930 = vmatpush.msrb.mxu3 %v4261_v15  ;;  %v1849_v15 = vpop.f32.mrf.mxu2 }
 0x290   :  { %v4315_v20 = vpop.f32.mrf.mxu0  ;;  %v4317_v9 = vpop.f32.mrf.mxu1  ;;  %2932 = vmatpush.msrb.mxu3 %v2318_v42 }
 0x292   :  { %2934 = vmatpush.msrb.mxu3 %v2320_v28  ;;  %v1840_v28 = vadd.f32 %v1839_v44, %v1740_v8 }
 0x293   :  { %2125 = vmatmul.f32.gmra.mxu0 %v4112_v31  ;;  %2218 = vmatmul.f32.gmra.mxu1 %v4118_v6  ;;  %v1953_v31 = vpop.f32.mrf.mxu3 }
 0x294   :  { %v1948_v13 = vadd.f32 %v1947_v16, %v1840_v28  ;;  %v1583_v16 = vadd.f32 %v4313_v50, %v4194_v17  ;;  %v1954_v34 = vadd.f32 %v1953_v31, %v1845_v38  ;;  %v1591_v31 = vadd.f32 %v4313_v50, %v4203_v55 }
 0x296   :  { %v1854_v52 = vpop.f32.mrf.mxu2  ;;  %v1748_v33 = vadd.f32 %v4178_v56, %v1583_v16 }
 0x298   :  { %v4328_v24 = vpop.f32.mrf.mxu0  ;;  %v2159_v29 = vpop.f32.mrf.mxu1 }
 0x29b   :  { %2129 = vmatmul.f32.gmra.mxu0 %v4118_v6  ;;  %v1959_v47 = vpop.f32.mrf.mxu3 }
 0x2a0   :  { %v2070_v45 = vpop.f32.mrf.mxu0  ;;  %v2163_v3 = vpop.f32.mrf.mxu1 }
 0x2a1   :  { %v2071_v62 = vadd.f32 %v2070_v45, %v1936_v7 }
 0x2a3   :  { %v2160_v48 = vadd.f32 %v2159_v29, %v2071_v62  ;;  %v1965_v54 = vpop.f32.mrf.mxu3 }
 0x2a5   :  { %v2222_v42 = vmax.f32 %v2160_v48, 0.0  ;;  %v1859_v48 = vpop.f32.mrf.mxu2 }
 0x2a7   :  { %v2251_v6 = vsel %vm1471_vm4, %v2222_v42, 0 }
 0x2a8   :  { %v4338_v2 = vand.u32 4294901760, %v2251_v6  ;;  %v2074_v41 = vpop.f32.mrf.mxu0  ;;  %v2167_v32 = vpop.f32.mrf.mxu1 }
 0x2a9   :  { %v2075_v60 = vadd.f32 %v2074_v41, %v1942_v11 }
 0x2aa   :  { %v2323_v46 = vsub.f32 %v2251_v6, %v4338_v2  ;;  %2508 = vmatmul.f32.vlgmr.msra.gmra.mxu3 %v4338_v2 }
 0x2ab   :  { %v2164_v40 = vadd.f32 %v2163_v3, %v2075_v60  ;;  %v1971_v60 = vpop.f32.mrf.mxu3 }
 0x2ac   :  { %v2324_v36 = vand.u32 4294901760, %v2323_v46  ;;  %2606 = vmatmul.f32.vlgmr.msrb.gmra.mxu0 %v2323_v46 }
 0x2ad   :  { %v2223_v63 = vmax.f32 %v2164_v40, 0.0 }
 0x2ae   :  { %v2325_v23 = vsub.f32 %v2323_v46, %v2324_v36  ;;  %2712 = vmatmul.f32.vlgmr.msrb.gmra.mxu1 %v2324_v36  ;;  %v1752_v36 = vadd.f32 %v4196_v22, %v1591_v31 }
 0x2af   :  { %v2254_v10 = vsel %vm1471_vm4, %v2223_v63, 0 }
 0x2b0   :  { %v4346_v51 = vand.u32 4294901760, %v2254_v10  ;;  %v2078_v29 = vpop.f32.mrf.mxu0  ;;  %v2171_v37 = vpop.f32.mrf.mxu1  ;;  %v2326_v44 = vand.u32 4294901760, %v2325_v23 }
 0x2b1   :  { %v2079_v7 = vadd.f32 %v2078_v29, %v1948_v13 }
 0x2b2   :  { %2327 = vmatmul.f32.vlgmr.msra.gmra.mxu2 %v2326_v44  ;;  %2512 = vmatmul.f32.gmra.mxu3 %v4346_v51  ;;  %v2331_v57 = vsub.f32 %v2254_v10, %v4346_v51  ;;  %v1864_v10 = vpop.f32.mrf.mxu2 }
 0x2b3   :  { %v2168_v45 = vadd.f32 %v2167_v32, %v2079_v7  ;;  %v1850_v32 = vadd.f32 %v1849_v15, %v1748_v33  ;;  %v1977_v7 = vpop.f32.mrf.mxu3 }
 0x2b4   :  { %2611 = vmatmul.f32.gmra.mxu0 %v2331_v57  ;;  %v2332_v25 = vand.u32 4294901760, %v2331_v57 }
 0x2b5   :  { %v2224_v3 = vmax.f32 %v2168_v45, 0.0  ;;  %v1960_v40 = vadd.f32 %v1959_v47, %v1850_v32  ;;  %v1599_v47 = vadd.f32 %v4313_v50, %v4221_v53 }
 0x2b6   :  { %2718 = vmatmul.f32.gmra.mxu1 %v2332_v25  ;;  %v2333_v62 = vsub.f32 %v2331_v57, %v2332_v25 }
 0x2b7   :  { %v2257_v42 = vsel %vm1471_vm4, %v2224_v3, 0  ;;  %v1756_v45 = vadd.f32 %v4205_v26, %v1599_v47 }
 0x2b8   :  { %v4354_v11 = vand.u32 4294901760, %v2257_v42  ;;  %v2082_v8 = vpop.f32.mrf.mxu0  ;;  %v2175_v6 = vpop.f32.mrf.mxu1  ;;  %v2334_v1 = vand.u32 4294901760, %v2333_v62 }
 0x2b9   :  { %v2083_v41 = vadd.f32 %v2082_v8, %v1954_v34  ;;  %v1607_v8 = vadd.f32 %v4313_v50, %v4230_v39 }
 0x2ba   :  { %2335 = vmatmul.f32.gmra.mxu2 %v2334_v1  ;;  %2516 = vmatmul.f32.gmra.mxu3 %v4354_v11  ;;  %v2339_v17 = vsub.f32 %v2257_v42, %v4354_v11  ;;  %v1860_v42 = vadd.f32 %v1859_v48, %v1756_v45 }
 0x2bb   :  { %v2172_v56 = vadd.f32 %v2171_v37, %v2083_v41  ;;  %v1855_v37 = vadd.f32 %v1854_v52, %v1752_v36  ;;  %v1760_v32 = vadd.f32 %v4223_v4, %v1607_v8  ;;  %v1983_v31 = vpop.f32.mrf.mxu3 }
 0x2bc   :  { %2616 = vmatmul.f32.gmra.mxu0 %v2339_v17  ;;  %v2340_v46 = vand.u32 4294901760, %v2339_v17 }
 0x2bd   :  { %v2225_v28 = vmax.f32 %v2172_v56, 0.0  ;;  %v1966_v16 = vadd.f32 %v1965_v54, %v1855_v37  ;;  %v1869_v54 = vpop.f32.mrf.mxu2  ;;  %v1865_v36 = vadd.f32 %v1864_v10, %v1760_v32 }
 0x2be   :  { %2724 = vmatmul.f32.gmra.mxu1 %v2340_v46  ;;  %v2341_v0 = vsub.f32 %v2339_v17, %v2340_v46  ;;  %v1972_v17 = vadd.f32 %v1971_v60, %v1860_v42  ;;  %v1615_v60 = vadd.f32 %v4313_v50, %v4248_v14 }
 0x2bf   :  { %v2260_v63 = vsel %vm1471_vm4, %v2225_v28, 0 }
 0x2c0   :  { %v4362_v23 = vand.u32 4294901760, %v2260_v63  ;;  %v2086_v13 = vpop.f32.mrf.mxu0  ;;  %v2179_v43 = vpop.f32.mrf.mxu1  ;;  %v2342_v15 = vand.u32 4294901760, %v2341_v0 }
 0x2c1   :  { %v2087_v29 = vadd.f32 %v2086_v13, %v1960_v40 }
 0x2c2   :  { %2343 = vmatmul.f32.gmra.mxu2 %v2342_v15  ;;  %2520 = vmatmul.f32.gmra.mxu3 %v4362_v23  ;;  %v2347_v55 = vsub.f32 %v2260_v63, %v4362_v23 }
 0x2c3   :  { %v2176_v44 = vadd.f32 %v2175_v6, %v2087_v29  ;;  %v1978_v29 = vadd.f32 %v1977_v7, %v1865_v36  ;;  %v1623_v7 = vadd.f32 %v4313_v50, %v4257_v35 }
 0x2c4   :  { %2621 = vmatmul.f32.gmra.mxu0 %v2347_v55  ;;  %v2348_v22 = vand.u32 4294901760, %v2347_v55 }
 0x2c5   :  { %v2226_v57 = vmax.f32 %v2176_v44, 0.0  ;;  %v1874_v13 = vpop.f32.mrf.mxu2 }
 0x2c6   :  { %2730 = vmatmul.f32.gmra.mxu1 %v2348_v22  ;;  %v2349_v38 = vsub.f32 %v2347_v55, %v2348_v22  ;;  %v1764_v55 = vadd.f32 %v4232_v5, %v1615_v60 }
 0x2c7   :  { %v2263_v25 = vsel %vm1471_vm4, %v2226_v57, 0 }
 0x2c8   :  { %v4370_v3 = vand.u32 4294901760, %v2263_v25  ;;  %v2090_v62 = vpop.f32.mrf.mxu0  ;;  %v2183_v34 = vpop.f32.mrf.mxu1  ;;  %v2350_v52 = vand.u32 4294901760, %v2349_v38 }
 0x2c9   :  { %v2091_v33 = vadd.f32 %v2090_v62, %v1966_v16  ;;  %v1989_v38 = vpop.f32.mrf.mxu3  ;;  %v1870_v16 = vadd.f32 %v1869_v54, %v1764_v55 }
 0x2ca   :  { %2351 = vmatmul.f32.gmra.mxu2 %v2350_v52  ;;  %2524 = vmatmul.f32.gmra.mxu3 %v4370_v3  ;;  %v2355_v53 = vsub.f32 %v2263_v25, %v4370_v3  ;;  %v1768_v52 = vadd.f32 %v4250_v58, %v1623_v7 }
 0x2cb   :  { %v2180_v6 = vadd.f32 %v2179_v43, %v2091_v33 }
 0x2cc   :  { %2626 = vmatmul.f32.gmra.mxu0 %v2355_v53  ;;  %v2356_v26 = vand.u32 4294901760, %v2355_v53 }
 0x2cd   :  { %v2227_v1 = vmax.f32 %v2180_v6, 0.0  ;;  %v1879_v33 = vpop.f32.mrf.mxu2 }
 0x2ce   :  { %2736 = vmatmul.f32.gmra.mxu1 %v2356_v26  ;;  %v2357_v41 = vsub.f32 %v2355_v53, %v2356_v26 }
 0x2cf   :  { %v2266_v56 = vsel %vm1471_vm4, %v2227_v1, 0  ;;  %v1875_v1 = vadd.f32 %v1874_v13, %v1768_v52 }
 0x2d0   :  { %v4378_v46 = vand.u32 4294901760, %v2266_v56  ;;  %v2094_v28 = vpop.f32.mrf.mxu0  ;;  %v2187_v48 = vpop.f32.mrf.mxu1  ;;  %v2358_v0 = vand.u32 4294901760, %v2357_v41  ;;  %v1631_v41 = vadd.f32 %v4313_v50, %v4268_v12 }
 0x2d1   :  { %v2095_v40 = vadd.f32 %v2094_v28, %v1972_v17  ;;  %v1995_v58 = vpop.f32.mrf.mxu3  ;;  %v1990_v28 = vadd.f32 %v1989_v38, %v1875_v1 }
 0x2d2   :  { %2359 = vmatmul.f32.gmra.mxu2 %v2358_v0  ;;  %2528 = vmatmul.f32.gmra.mxu3 %v4378_v46  ;;  %v2363_v39 = vsub.f32 %v2266_v56, %v4378_v46 }
 0x2d3   :  { %v2184_v63 = vadd.f32 %v2183_v34, %v2095_v40  ;;  %v1984_v34 = vadd.f32 %v1983_v31, %v1870_v16 }
 0x2d4   :  { %2631 = vmatmul.f32.gmra.mxu0 %v2363_v39  ;;  %v2364_v4 = vand.u32 4294901760, %v2363_v39 }
 0x2d5   :  { %v2228_v43 = vmax.f32 %v2184_v63, 0.0 }
 0x2d6   :  { %2742 = vmatmul.f32.gmra.mxu1 %v2364_v4  ;;  %v2365_v15 = vsub.f32 %v2363_v39, %v2364_v4  ;;  %v1884_v4 = vpop.f32.mrf.mxu2 }
 0x2d7   :  { %v2269_v37 = vsel %vm1471_vm4, %v2228_v43, 0  ;;  %v1639_v43 = vadd.f32 %v4313_v50, %v4277_v30 }
 0x2d8   :  { %v4386_v47 = vand.u32 4294901760, %v2269_v37  ;;  %v2098_v44 = vpop.f32.mrf.mxu0  ;;  %v2191_v22 = vpop.f32.mrf.mxu1  ;;  %v2366_v10 = vand.u32 4294901760, %v2365_v15 }
 0x2d9   :  { %v2099_v57 = vadd.f32 %v2098_v44, %v1978_v29  ;;  %v2001_v55 = vpop.f32.mrf.mxu3 }
 0x2da   :  { %2367 = vmatmul.f32.gmra.mxu2 %v2366_v10  ;;  %2532 = vmatmul.f32.gmra.mxu3 %v4386_v47  ;;  %v2371_v14 = vsub.f32 %v2269_v37, %v4386_v47 }
 0x2db   :  { %v2188_v45 = vadd.f32 %v2187_v48, %v2099_v57  ;;  %v1772_v48 = vadd.f32 %v4259_v59, %v1631_v41 }
 0x2dc   :  { %2636 = vmatmul.f32.gmra.mxu0 %v2371_v14  ;;  %v2372_v5 = vand.u32 4294901760, %v2371_v14 }
 0x2dd   :  { %v2229_v25 = vmax.f32 %v2188_v45, 0.0  ;;  %v1880_v13 = vadd.f32 %v1879_v33, %v1772_v48 }
 0x2de   :  { %2748 = vmatmul.f32.gmra.mxu1 %v2372_v5  ;;  %v2373_v62 = vsub.f32 %v2371_v14, %v2372_v5  ;;  %v1647_v5 = vadd.f32 %v4313_v50, %v4286_v61 }
 0x2df   :  { %v2272_v53 = vsel %vm1471_vm4, %v2229_v25, 0  ;;  %v1996_v44 = vadd.f32 %v1995_v58, %v1880_v13 }
 0x2e0   :  { %v4394_v42 = vand.u32 4294901760, %v2272_v53  ;;  %v2102_v8 = vpop.f32.mrf.mxu0  ;;  %v2195_v6 = vpop.f32.mrf.mxu1  ;;  %v2374_v54 = vand.u32 4294901760, %v2373_v62 }
 0x2e1   :  { %v2103_v26 = vadd.f32 %v2102_v8, %v1984_v34  ;;  %v1889_v62 = vpop.f32.mrf.mxu2 }
 0x2e2   :  { %2375 = vmatmul.f32.gmra.mxu2 %v2374_v54  ;;  %2536 = vmatmul.f32.gmra.mxu3 %v4394_v42  ;;  %v2379_v35 = vsub.f32 %v2272_v53, %v4394_v42  ;;  %v1780_v53 = vadd.f32 %v4279_v49, %v1647_v5 }
 0x2e3   :  { %v2192_v17 = vadd.f32 %v2191_v22, %v2103_v26  ;;  %v1776_v22 = vadd.f32 %v4270_v18, %v1639_v43  ;;  %v1663_v43 = vadd.f32 %v4313_v50, %v4315_v20 }
 0x2e4   :  { %2641 = vmatmul.f32.gmra.mxu0 %v2379_v35  ;;  %v2380_v32 = vand.u32 4294901760, %v2379_v35  ;;  %v1890_v41 = vadd.f32 %v1889_v62, %v1780_v53 }
 0x2e5   :  { %v2230_v31 = vmax.f32 %v2192_v17, 0.0  ;;  %v1885_v45 = vadd.f32 %v1884_v4, %v1776_v22  ;;  %v1655_v17 = vadd.f32 %v4313_v50, %v4296_v19 }
 0x2e6   :  { %2754 = vmatmul.f32.gmra.mxu1 %v2380_v32  ;;  %v2381_v56 = vsub.f32 %v2379_v35, %v2380_v32 }
 0x2e7   :  { %v2275_v0 = vsel %vm1471_vm4, %v2230_v31, 0  ;;  %v2002_v33 = vadd.f32 %v2001_v55, %v1885_v45  ;;  %v1671_v45 = vadd.f32 %v4313_v50, %v4328_v24 }
 0x2e8   :  { %v4402_v40 = vand.u32 4294901760, %v2275_v0  ;;  %v2106_v39 = vpop.f32.mrf.mxu0  ;;  %v2199_v36 = vpop.f32.mrf.mxu1  ;;  %v2382_v60 = vand.u32 4294901760, %v2381_v56 }
 0x2e9   :  { %v2107_v63 = vadd.f32 %v2106_v39, %v1990_v28  ;;  %v1894_v56 = vpop.f32.mrf.mxu2 }
 0x2ea   :  { %2383 = vmatmul.f32.gmra.mxu2 %v2382_v60  ;;  %2540 = vmatmul.f32.gmra.mxu3 %v4402_v40  ;;  %v2387_v12 = vsub.f32 %v2275_v0, %v4402_v40  ;;  %v1784_v0 = vadd.f32 %v4288_v27, %v1655_v17 }
 0x2eb   :  { %v2196_v15 = vadd.f32 %v2195_v6, %v2107_v63  ;;  %v2007_v6 = vpop.f32.mrf.mxu3 }
 0x2ec   :  { %2646 = vmatmul.f32.gmra.mxu0 %v2387_v12  ;;  %v2388_v59 = vand.u32 4294901760, %v2387_v12  ;;  %v2008_v48 = vadd.f32 %v2007_v6, %v1890_v41  ;;  %v1895_v13 = vadd.f32 %v1894_v56, %v1784_v0 }
 0x2ed   :  { %v2231_v29 = vmax.f32 %v2196_v15, 0.0 }
 0x2ee   :  { %2760 = vmatmul.f32.gmra.mxu1 %v2388_v59  ;;  %v2389_v37 = vsub.f32 %v2387_v12, %v2388_v59 }
 0x2ef   :  { %v2278_v10 = vsel %vm1471_vm4, %v2231_v29, 0 }
 0x2f0   :  { %v4410_v57 = vand.u32 4294901760, %v2278_v10  ;;  %v2110_v38 = vpop.f32.mrf.mxu0  ;;  %v2390_v14 = vand.u32 4294901760, %v2389_v37  ;;  %v2203_v7 = vpop.f32.mrf.mxu1 }
 0x2f1   :  { %v2111_v16 = vadd.f32 %v2110_v38, %v1996_v44  ;;  %v1788_v44 = vadd.f32 %v4298_v21, %v1663_v43 }
 0x2f2   :  { %2391 = vmatmul.f32.gmra.mxu2 %v2390_v14  ;;  %2544 = vmatmul.f32.gmra.mxu3 %v4410_v57  ;;  %v2395_v30 = vsub.f32 %v2278_v10, %v4410_v57  ;;  %v1899_v10 = vpop.f32.mrf.mxu2 }
 0x2f3   :  { %v2200_v25 = vadd.f32 %v2199_v36, %v2111_v16  ;;  %v2013_v12 = vpop.f32.mrf.mxu3 }
 0x2f4   :  { %2651 = vmatmul.f32.gmra.mxu0 %v2395_v30  ;;  %v2396_v18 = vand.u32 4294901760, %v2395_v30  ;;  %v2014_v37 = vadd.f32 %v2013_v12, %v1895_v13 }
 0x2f5   :  { %v2232_v34 = vmax.f32 %v2200_v25, 0.0 }
 0x2f6   :  { %2766 = vmatmul.f32.gmra.mxu1 %v2396_v18  ;;  %v2397_v52 = vsub.f32 %v2395_v30, %v2396_v18  ;;  %v1900_v30 = vadd.f32 %v1899_v10, %v1788_v44 }
 0x2f7   :  { %v2281_v8 = vsel %vm1471_vm4, %v2232_v34, 0 }
 0x2f8   :  { %v4418_v54 = vand.u32 4294901760, %v2281_v8  ;;  %v2114_v26 = vpop.f32.mrf.mxu0  ;;  %v2398_v35 = vand.u32 4294901760, %v2397_v52  ;;  %v2207_v32 = vpop.f32.mrf.mxu1  ;;  %v1792_v52 = vadd.f32 %v4317_v9, %v1671_v45 }
 0x2f9   :  { %v2115_v1 = vadd.f32 %v2114_v26, %v2002_v33 }
 0x2fa   :  { %2399 = vmatmul.f32.gmra.mxu2 %v2398_v35  ;;  %2548 = vmatmul.f32.gmra.mxu3 %v4418_v54  ;;  %v2403_v61 = vsub.f32 %v2281_v8, %v4418_v54 }
 0x2fb   :  { %v2204_v58 = vadd.f32 %v2203_v7, %v2115_v1  ;;  %v2019_v25 = vpop.f32.mrf.mxu3  ;;  %v1904_v1 = vpop.f32.mrf.mxu2 }
 0x2fc   :  { %2656 = vmatmul.f32.gmra.mxu0 %v2403_v61  ;;  %v2404_v49 = vand.u32 4294901760, %v2403_v61  ;;  %v2020_v34 = vadd.f32 %v2019_v25, %v1900_v30  ;;  %v1905_v24 = vadd.f32 %v1904_v1, %v1792_v52 }
 0x2fd   :  { %v2233_v31 = vmax.f32 %v2204_v58, 0.0 }
 0x2fe   :  { %2772 = vmatmul.f32.gmra.mxu1 %v2404_v49  ;;  %v2405_v28 = vsub.f32 %v2403_v61, %v2404_v49 }
 0x2ff   :  { %v2284_v39 = vsel %vm1471_vm4, %v2233_v31, 0 }
 0x300   :  { %v4426_v36 = vand.u32 4294901760, %v2284_v39  ;;  %v2118_v60 = vpop.f32.mrf.mxu0  ;;  %v2406_v63 = vand.u32 4294901760, %v2405_v28  ;;  %v2211_v29 = vpop.f32.mrf.mxu1 }
 0x301   :  { %v2119_v4 = vadd.f32 %v2118_v60, %v2008_v48 }
 0x302   :  { %2407 = vmatmul.f32.gmra.mxu2 %v2406_v63  ;;  %2552 = vmatmul.f32.gmra.mxu3 %v4426_v36  ;;  %v2411_v19 = vsub.f32 %v2284_v39, %v4426_v36 }
 0x303   :  { %v2208_v15 = vadd.f32 %v2207_v32, %v2119_v4  ;;  %v2025_v9 = vpop.f32.mrf.mxu3 }
 0x304   :  { %2661 = vmatmul.f32.gmra.mxu0 %v2411_v19  ;;  %v2412_v27 = vand.u32 4294901760, %v2411_v19  ;;  %v2026_v32 = vadd.f32 %v2025_v9, %v1905_v24 }
 0x305   :  { %v2234_v59 = vmax.f32 %v2208_v15, 0.0 }
 0x306   :  { %2778 = vmatmul.f32.gmra.mxu1 %v2412_v27  ;;  %v2413_v55 = vsub.f32 %v2411_v19, %v2412_v27 }
 0x307   :  { %v2287_v22 = vsel %vm1471_vm4, %v2234_v59, 0 }
 0x308   :  { %v4434_v38 = vand.u32 4294901760, %v2287_v22  ;;  %v2122_v14 = vpop.f32.mrf.mxu0  ;;  %v2414_v16 = vand.u32 4294901760, %v2413_v55  ;;  %v2215_v8 = vpop.f32.mrf.mxu1 }
 0x309   :  { %v2123_v7 = vadd.f32 %v2122_v14, %v2014_v37  ;;  %v4462_v37 = vld [vmem:[%s4584_s8] ss:$0 sm:$0xff]  ;;  %s3176_s8 = smov [#allocation2]  }
 0x30a   :  { %2415 = vmatmul.f32.gmra.mxu2 %v2414_v16  ;;  %2556 = vmatmul.f32.gmra.mxu3 %v4434_v38  ;;  %v2419_v20 = vsub.f32 %v2287_v22, %v4434_v38  ;;  %s3135_s17 = sshll.u32 %s3176_s8, 4  ;;  %s3136_s17 = int_to_ptr.vmem [resolvable:$true] %s3135_s17 }
 0x30b   :  { %v2212_v5 = vadd.f32 %v2211_v29, %v2123_v7 }
 0x30c   :  { %2666 = vmatmul.f32.gmra.mxu0 %v2419_v20  ;;  %v2420_v21 = vand.u32 4294901760, %v2419_v20 }
 0x30d   :  { %v2235_v62 = vmax.f32 %v2212_v5, 0.0 }
 0x30e   :  { %2784 = vmatmul.f32.gmra.mxu1 %v2420_v21  ;;  %v2421_v18 = vsub.f32 %v2419_v20, %v2420_v21 }
 0x30f   :  { %v2290_v33 = vsel %vm1471_vm4, %v2235_v62, 0 }
 0x310   :  { %v4442_v53 = vand.u32 4294901760, %v2290_v33  ;;  %v2126_v6 = vpop.f32.mrf.mxu0  ;;  %v2422_v26 = vand.u32 4294901760, %v2421_v18  ;;  %v2219_v0 = vpop.f32.mrf.mxu1 }
 0x311   :  { %v2127_v35 = vadd.f32 %v2126_v6, %v2020_v34 }
 0x312   :  { %2423 = vmatmul.f32.gmra.mxu2 %v2422_v26  ;;  %2560 = vmatmul.f32.gmra.mxu3 %v4442_v53  ;;  %v2427_v50 = vsub.f32 %v2290_v33, %v4442_v53 }
 0x313   :  { %v2216_v61 = vadd.f32 %v2215_v8, %v2127_v35 }
 0x314   :  { %2671 = vmatmul.f32.gmra.mxu0 %v2427_v50  ;;  %v2428_v41 = vand.u32 4294901760, %v2427_v50 }
 0x315   :  { %v2236_v17 = vmax.f32 %v2216_v61, 0.0 }
 0x316   :  { %2790 = vmatmul.f32.gmra.mxu1 %v2428_v41  ;;  %v2429_v58 = vsub.f32 %v2427_v50, %v2428_v41 }
 0x317   :  { %v2293_v49 = vsel %vm1471_vm4, %v2236_v17, 0 }
 0x318   :  { %v4447_v31 = vand.u32 4294901760, %v2293_v49  ;;  %v2130_v56 = vpop.f32.mrf.mxu0  ;;  %v2430_v28 = vand.u32 4294901760, %v2429_v58 }
 0x319   :  { %v2131_v48 = vadd.f32 %v2130_v56, %v2026_v32 }
 0x31a   :  { %2431 = vmatmul.f32.gmra.mxu2 %v2430_v28  ;;  %2564 = vmatmul.f32.gmra.mxu3 %v4447_v31  ;;  %v2435_v39 = vsub.f32 %v2293_v49, %v4447_v31 }
 0x31b   :  { %v2220_v60 = vadd.f32 %v2219_v0, %v2131_v48 }
 0x31c   :  { %2676 = vmatmul.f32.gmra.mxu0 %v2435_v39  ;;  %v2436_v63 = vand.u32 4294901760, %v2435_v39 }
 0x31d   :  { %v2237_v4 = vmax.f32 %v2220_v60, 0.0 }
 0x31e   :  { %2796 = vmatmul.f32.gmra.mxu1 %v2436_v63  ;;  %v2437_v12 = vsub.f32 %v2435_v39, %v2436_v63 }
 0x31f   :  { %v2296_v19 = vsel %vm1471_vm4, %v2237_v4, 0  ;;  %vm3126_vm4 = vcmask 1048512  }
 0x320   :  { %v4452_v13 = vand.u32 4294901760, %v2296_v19  ;;  %v2438_v43 = vand.u32 4294901760, %v2437_v12 }
 0x322   :  { %2439 = vmatmul.f32.gmra.mxu2 %v2438_v43  ;;  %2568 = vmatmul.f32.gmra.mxu3 %v4452_v13  ;;  %v2443_v15 = vsub.f32 %v2296_v19, %v4452_v13 }
 0x324   :  { %2681 = vmatmul.f32.gmra.mxu0 %v2443_v15  ;;  %v2444_v27 = vand.u32 4294901760, %v2443_v15 }
 0x326   :  { %2802 = vmatmul.f32.gmra.mxu1 %v2444_v27  ;;  %v2445_v59 = vsub.f32 %v2443_v15, %v2444_v27 }
 0x328   :  { %v2446_v29 = vand.u32 4294901760, %v2445_v59 }
 0x329   :  { %v2607_v63 = vpop.f32.mrf.mxu0 }
 0x32a   :  { %2447 = vmatmul.f32.gmra.mxu2 %v2446_v29  ;;  %2936 = vmatmul.f32.vlgmr.msrb.gmra.mxu3 %v4338_v2 }
 0x32d   :  { %v2509_v55 = vpop.f32.mrf.mxu3 }
 0x332   :  { %2847 = vmatmul.f32.vlgmr.msrb.gmra.mxu2 %v4338_v2  ;;  %2940 = vmatmul.f32.gmra.mxu3 %v4346_v51 }
 0x335   :  { %v2328_v44 = vpop.f32.mrf.mxu2  ;;  %v2513_v22 = vpop.f32.mrf.mxu3 }
 0x336   :  { %v2329_v10 = vadd.f32 %v4462_v37, %v2328_v44 }
 0x338   :  { %v4465_v14 = vadd.f32 %v2509_v55, %v2329_v10 }
 0x33a   :  { %2851 = vmatmul.f32.gmra.mxu2 %v4346_v51  ;;  %2944 = vmatmul.f32.gmra.mxu3 %v4354_v11 }
 0x33d   :  { %v2336_v16 = vpop.f32.mrf.mxu2  ;;  %v2517_v7 = vpop.f32.mrf.mxu3 }
 0x33e   :  { %v2337_v2 = vadd.f32 %v4462_v37, %v2336_v16 }
 0x340   :  { %v4470_v20 = vadd.f32 %v2513_v22, %v2337_v2 }
 0x342   :  { %2855 = vmatmul.f32.gmra.mxu2 %v4354_v11  ;;  %2948 = vmatmul.f32.gmra.mxu3 %v4362_v23 }
 0x345   :  { %v2344_v30 = vpop.f32.mrf.mxu2  ;;  %v2521_v45 = vpop.f32.mrf.mxu3 }
 0x346   :  { %v2345_v5 = vadd.f32 %v4462_v37, %v2344_v30 }
 0x348   :  { %v4475_v25 = vadd.f32 %v2517_v7, %v2345_v5 }
 0x34a   :  { %2859 = vmatmul.f32.gmra.mxu2 %v4362_v23  ;;  %2952 = vmatmul.f32.gmra.mxu3 %v4370_v3 }
 0x34d   :  { %v2352_v51 = vpop.f32.mrf.mxu2  ;;  %v2525_v21 = vpop.f32.mrf.mxu3 }
 0x34e   :  { %v2353_v62 = vadd.f32 %v4462_v37, %v2352_v51 }
 0x350   :  { %v4480_v18 = vadd.f32 %v2521_v45, %v2353_v62 }
 0x352   :  { %2863 = vmatmul.f32.gmra.mxu2 %v4370_v3  ;;  %2956 = vmatmul.f32.gmra.mxu3 %v4378_v46 }
 0x355   :  { %v2360_v11 = vpop.f32.mrf.mxu2  ;;  %v2529_v34 = vpop.f32.mrf.mxu3 }
 0x356   :  { %v2361_v52 = vadd.f32 %v4462_v37, %v2360_v11 }
 0x358   :  { %v4485_v33 = vadd.f32 %v2525_v21, %v2361_v52 }
 0x35a   :  { %2867 = vmatmul.f32.gmra.mxu2 %v4378_v46  ;;  %2960 = vmatmul.f32.gmra.mxu3 %v4386_v47 }
 0x35d   :  { %v2368_v23 = vpop.f32.mrf.mxu2  ;;  %v2533_v8 = vpop.f32.mrf.mxu3 }
 0x35e   :  { %v2369_v6 = vadd.f32 %v4462_v37, %v2368_v23 }
 0x360   :  { %v4490_v26 = vadd.f32 %v2529_v34, %v2369_v6 }
 0x362   :  { %2871 = vmatmul.f32.gmra.mxu2 %v4386_v47  ;;  %2964 = vmatmul.f32.gmra.mxu3 %v4394_v42 }
 0x365   :  { %v2376_v3 = vpop.f32.mrf.mxu2  ;;  %v2537_v35 = vpop.f32.mrf.mxu3 }
 0x366   :  { %v2377_v1 = vadd.f32 %v4462_v37, %v2376_v3 }
 0x368   :  { %v4495_v50 = vadd.f32 %v2533_v8, %v2377_v1 }
 0x36a   :  { %2875 = vmatmul.f32.gmra.mxu2 %v4394_v42  ;;  %2968 = vmatmul.f32.gmra.mxu3 %v4402_v40 }
 0x36d   :  { %v2384_v46 = vpop.f32.mrf.mxu2  ;;  %v2541_v24 = vpop.f32.mrf.mxu3 }
 0x36e   :  { %v2385_v61 = vadd.f32 %v4462_v37, %v2384_v46 }
 0x370   :  { %v4500_v41 = vadd.f32 %v2537_v35, %v2385_v61 }
 0x372   :  { %2879 = vmatmul.f32.gmra.mxu2 %v4402_v40  ;;  %2972 = vmatmul.f32.gmra.mxu3 %v4410_v57 }
 0x375   :  { %v2392_v47 = vpop.f32.mrf.mxu2  ;;  %v2545_v17 = vpop.f32.mrf.mxu3 }
 0x376   :  { %v2393_v9 = vadd.f32 %v4462_v37, %v2392_v47 }
 0x378   :  { %v4505_v58 = vadd.f32 %v2541_v24, %v2393_v9 }
 0x37a   :  { %2883 = vmatmul.f32.gmra.mxu2 %v4410_v57  ;;  %2976 = vmatmul.f32.gmra.mxu3 %v4418_v54 }
 0x37d   :  { %v2400_v42 = vpop.f32.mrf.mxu2  ;;  %v2549_v32 = vpop.f32.mrf.mxu3 }
 0x37e   :  { %v2401_v49 = vadd.f32 %v4462_v37, %v2400_v42 }
 0x380   :  { %v4510_v56 = vadd.f32 %v2545_v17, %v2401_v49 }
 0x382   :  { %2887 = vmatmul.f32.gmra.mxu2 %v4418_v54  ;;  %2980 = vmatmul.f32.gmra.mxu3 %v4426_v36  ;;  %v2713_v54 = vpop.f32.mrf.mxu1 }
 0x385   :  { %v2408_v40 = vpop.f32.mrf.mxu2  ;;  %v2553_v28 = vpop.f32.mrf.mxu3 }
 0x386   :  { %v2409_v48 = vadd.f32 %v4462_v37, %v2408_v40 }
 0x388   :  { %v4515_v0 = vadd.f32 %v2549_v32, %v2409_v48 }
 0x38a   :  { %2891 = vmatmul.f32.gmra.mxu2 %v4426_v36  ;;  %2984 = vmatmul.f32.gmra.mxu3 %v4434_v38  ;;  %v2612_v36 = vpop.f32.mrf.mxu0  ;;  %v2719_v29 = vpop.f32.mrf.mxu1 }
 0x38b   :  { %v2613_v6 = vadd.f32 %v2612_v36, %v4470_v20 }
 0x38d   :  { %v2416_v57 = vpop.f32.mrf.mxu2  ;;  %v2557_v39 = vpop.f32.mrf.mxu3  ;;  %v2720_v35 = vadd.f32 %v2719_v29, %v2613_v6 }
 0x38e   :  { %v2417_v60 = vadd.f32 %v4462_v37, %v2416_v57 }
 0x390   :  { %v4520_v4 = vadd.f32 %v2553_v28, %v2417_v60 }
 0x392   :  { %2895 = vmatmul.f32.gmra.mxu2 %v4434_v38  ;;  %2988 = vmatmul.f32.gmra.mxu3 %v4442_v53  ;;  %v2617_v44 = vpop.f32.mrf.mxu0  ;;  %v2725_v7 = vpop.f32.mrf.mxu1 }
 0x395   :  { %v2424_v12 = vpop.f32.mrf.mxu2  ;;  %v2561_v19 = vpop.f32.mrf.mxu3 }
 0x396   :  { %v2425_v43 = vadd.f32 %v4462_v37, %v2424_v12 }
 0x398   :  { %v4525_v15 = vadd.f32 %v2557_v39, %v2425_v43 }
 0x39a   :  { %2899 = vmatmul.f32.gmra.mxu2 %v4442_v53  ;;  %2992 = vmatmul.f32.gmra.mxu3 %v4447_v31  ;;  %v2622_v45 = vpop.f32.mrf.mxu0  ;;  %v2731_v21 = vpop.f32.mrf.mxu1 }
 0x39b   :  { %v2623_v40 = vadd.f32 %v2622_v45, %v4480_v18 }
 0x39d   :  { %v2432_v27 = vpop.f32.mrf.mxu2  ;;  %v2565_v59 = vpop.f32.mrf.mxu3  ;;  %v2732_v57 = vadd.f32 %v2731_v21, %v2623_v40 }
 0x39e   :  { %v2433_v55 = vadd.f32 %v4462_v37, %v2432_v27 }
 0x3a0   :  { %v4530_v38 = vadd.f32 %v2561_v19, %v2433_v55 }
 0x3a2   :  { %2903 = vmatmul.f32.gmra.mxu2 %v4447_v31  ;;  %2996 = vmatmul.f32.gmra.mxu3 %v4452_v13  ;;  %v2608_v31 = vadd.f32 %v2607_v63, %v4465_v14  ;;  %v2627_v23 = vpop.f32.mrf.mxu0  ;;  %v2737_v3 = vpop.f32.mrf.mxu1  ;;  %v2618_v14 = vadd.f32 %v2617_v44, %v4475_v25 }
 0x3a3   :  { %v2628_v12 = vadd.f32 %v2627_v23, %v4485_v33 }
 0x3a4   :  { %v2714_v62 = vadd.f32 %v2713_v54, %v2608_v31  ;;  %v2726_v17 = vadd.f32 %v2725_v7, %v2618_v14 }
 0x3a5   :  { %v2440_v22 = vpop.f32.mrf.mxu2  ;;  %v2569_v10 = vpop.f32.mrf.mxu3  ;;  %v2738_v43 = vadd.f32 %v2737_v3, %v2628_v12 }
 0x3a6   :  { %v2441_v16 = vadd.f32 %v4462_v37, %v2440_v22 }
 0x3a8   :  { %v4535_v53 = vadd.f32 %v2565_v59, %v2441_v16 }
 0x3aa   :  { %2907 = vmatmul.f32.gmra.mxu2 %v4452_v13  ;;  %v2632_v61 = vpop.f32.mrf.mxu0  ;;  %v2743_v32 = vpop.f32.mrf.mxu1 }
 0x3ab   :  { %v2633_v55 = vadd.f32 %v2632_v61, %v4490_v26 }
 0x3ad   :  { %v2448_v2 = vpop.f32.mrf.mxu2  ;;  %v2937_v30 = vpop.f32.mrf.mxu3 }
 0x3ae   :  { %v2449_v5 = vadd.f32 %v4462_v37, %v2448_v2 }
 0x3b0   :  { %v4539_v51 = vadd.f32 %v2569_v10, %v2449_v5  ;;  %v2744_v10 = vadd.f32 %v2743_v32, %v2633_v55 }
 0x3b2   :  { %v2637_v48 = vpop.f32.mrf.mxu0  ;;  %v2749_v63 = vpop.f32.mrf.mxu1 }
 0x3b3   :  { %v2638_v45 = vadd.f32 %v2637_v48, %v4495_v50 }
 0x3b5   :  { %v2848_v11 = vpop.f32.mrf.mxu2  ;;  %v2941_v34 = vpop.f32.mrf.mxu3  ;;  %v2750_v21 = vadd.f32 %v2749_v63, %v2638_v45 }
 0x3b6   :  { %v2849_v52 = vadd.f32 %v2848_v11, %v2714_v62 }
 0x3b8   :  { %v2938_v8 = vadd.f32 %v2937_v30, %v2849_v52 }
 0x3ba   :  { %v3001_v13 = vsel %vm3000_vm5, %v2938_v8, inf  ;;  %v2642_v59 = vpop.f32.mrf.mxu0  ;;  %v2755_v44 = vpop.f32.mrf.mxu1 }
 0x3bb   :  { %3002 = vmin.xlane.f32.xlu0 %v3001_v13  ;;  %v2643_v52 = vadd.f32 %v2642_v59, %v4500_v41 }
 0x3bd   :  { %v2852_v37 = vpop.f32.mrf.mxu2  ;;  %v2945_v1 = vpop.f32.mrf.mxu3  ;;  %v2756_v6 = vadd.f32 %v2755_v44, %v2643_v52 }
 0x3be   :  { %v2853_v46 = vadd.f32 %v2852_v37, %v2720_v35 }
 0x3c0   :  { %v2942_v24 = vadd.f32 %v2941_v34, %v2853_v46 }
 0x3c2   :  { %v3004_v47 = vsel %vm3000_vm5, %v2942_v24, inf  ;;  %v2647_v33 = vpop.f32.mrf.mxu0  ;;  %v2761_v31 = vpop.f32.mrf.mxu1 }
 0x3c3   :  { %3005 = vmin.xlane.f32.xlu0 %v3004_v47 }
 0x3c5   :  { %v2856_v9 = vpop.f32.mrf.mxu2  ;;  %v2949_v42 = vpop.f32.mrf.mxu3 }
 0x3c6   :  { %v2857_v20 = vadd.f32 %v2856_v9, %v2726_v17 }
 0x3c8   :  { %v2946_v49 = vadd.f32 %v2945_v1, %v2857_v20  ;;  %v2648_v1 = vadd.f32 %v2647_v33, %v4505_v58 }
 0x3ca   :  { %v3007_v28 = vsel %vm3000_vm5, %v2946_v49, inf  ;;  %v2652_v23 = vpop.f32.mrf.mxu0  ;;  %v2767_v50 = vpop.f32.mrf.mxu1  ;;  %v2762_v14 = vadd.f32 %v2761_v31, %v2648_v1 }
 0x3cb   :  { %3008 = vmin.xlane.f32.xlu1 %v3007_v28  ;;  %v2653_v9 = vadd.f32 %v2652_v23, %v4510_v56 }
 0x3cd   :  { %v2860_v39 = vpop.f32.mrf.mxu2  ;;  %v2953_v60 = vpop.f32.mrf.mxu3  ;;  %v2768_v20 = vadd.f32 %v2767_v50, %v2653_v9 }
 0x3ce   :  { %v2861_v25 = vadd.f32 %v2860_v39, %v2732_v57 }
 0x3d0   :  { %v2950_v54 = vadd.f32 %v2949_v42, %v2861_v25 }
 0x3d2   :  { %v3010_v19 = vsel %vm3000_vm5, %v2950_v54, inf  ;;  %v2657_v24 = vpop.f32.mrf.mxu0  ;;  %v2773_v42 = vpop.f32.mrf.mxu1 }
 0x3d3   :  { %3011 = vmin.xlane.f32.xlu1 %v3010_v19  ;;  %v2658_v57 = vadd.f32 %v2657_v24, %v4515_v0 }
 0x3d5   :  { %v2864_v36 = vpop.f32.mrf.mxu2  ;;  %v2957_v27 = vpop.f32.mrf.mxu3  ;;  %v2774_v25 = vadd.f32 %v2773_v42, %v2658_v57 }
 0x3d6   :  { %v2865_v18 = vadd.f32 %v2864_v36, %v2738_v43 }
 0x3d8   :  { %v2954_v29 = vadd.f32 %v2953_v60, %v2865_v18 }
 0x3da   :  { %v3013_v22 = vsel %vm3000_vm5, %v2954_v29, inf  ;;  %v2662_v58 = vpop.f32.mrf.mxu0  ;;  %v2779_v60 = vpop.f32.mrf.mxu1 }
 0x3db   :  { %3014 = vmin.xlane.f32.xlu2 %v3013_v22  ;;  %v2663_v19 = vadd.f32 %v2662_v58, %v4520_v4 }
 0x3dd   :  { %v2868_v16 = vpop.f32.mrf.mxu2  ;;  %v2961_v7 = vpop.f32.mrf.mxu3 }
 0x3de   :  { %v2869_v2 = vadd.f32 %v2868_v16, %v2744_v10 }
 0x3e0   :  { %v2958_v30 = vadd.f32 %v2957_v27, %v2869_v2  ;;  %v2780_v27 = vadd.f32 %v2779_v60, %v2663_v19 }
 0x3e2   :  { %v3016_v5 = vsel %vm3000_vm5, %v2958_v30, inf  ;;  %v2667_v43 = vpop.f32.mrf.mxu0  ;;  %v2785_v59 = vpop.f32.mrf.mxu1 }
 0x3e3   :  { %3017 = vmin.xlane.f32.xlu2 %v3016_v5  ;;  %v2668_v55 = vadd.f32 %v2667_v43, %v4525_v15 }
 0x3e5   :  { %v2872_v62 = vpop.f32.mrf.mxu2  ;;  %v2965_v11 = vpop.f32.mrf.mxu3  ;;  %v2786_v16 = vadd.f32 %v2785_v59, %v2668_v55 }
 0x3e6   :  { %v2873_v26 = vadd.f32 %v2872_v62, %v2750_v21 }
 0x3e8   :  { %v2962_v34 = vadd.f32 %v2961_v7, %v2873_v26 }
 0x3ea   :  { %v3019_v8 = vsel %vm3000_vm5, %v2962_v34, inf  ;;  %v2672_v10 = vpop.f32.mrf.mxu0  ;;  %v2791_v4 = vpop.f32.mrf.mxu1 }
 0x3eb   :  { %3020 = vmin.xlane.f32.xlu0 %v3019_v8  ;;  %v2673_v30 = vadd.f32 %v2672_v10, %v4530_v38 }
 0x3ed   :  { %v2876_v13 = vpop.f32.mrf.mxu2  ;;  %v2969_v3 = vpop.f32.mrf.mxu3  ;;  %v2792_v31 = vadd.f32 %v2791_v4, %v2673_v30 }
 0x3ee   :  { %v2877_v35 = vadd.f32 %v2876_v13, %v2756_v6 }
 0x3f0   :  { %v2966_v37 = vadd.f32 %v2965_v11, %v2877_v35 }
 0x3f2   :  { %v3022_v46 = vsel %vm3000_vm5, %v2966_v37, inf  ;;  %v2677_v21 = vpop.f32.mrf.mxu0  ;;  %v2797_v34 = vpop.f32.mrf.mxu1 }
 0x3f3   :  { %3023 = vmin.xlane.f32.xlu1 %v3022_v46  ;;  %v2678_v26 = vadd.f32 %v2677_v21, %v4535_v53 }
 0x3f5   :  { %v2880_v61 = vpop.f32.mrf.mxu2  ;;  %v2973_v47 = vpop.f32.mrf.mxu3  ;;  %v2798_v23 = vadd.f32 %v2797_v34, %v2678_v26 }
 0x3f6   :  { %v2881_v41 = vadd.f32 %v2880_v61, %v2762_v14 }
 0x3f8   :  { %v2970_v17 = vadd.f32 %v2969_v3, %v2881_v41 }
 0x3fa   :  { %v3025_v32 = vsel %vm3000_vm5, %v2970_v17, inf  ;;  %v2682_v38 = vpop.f32.mrf.mxu0  ;;  %v2803_v37 = vpop.f32.mrf.mxu1 }
 0x3fb   :  { %3026 = vmin.xlane.f32.xlu2 %v3025_v32  ;;  %v2683_v35 = vadd.f32 %v2682_v38, %v4539_v51 }
 0x3fd   :  { %v2884_v49 = vpop.f32.mrf.mxu2  ;;  %v2977_v40 = vpop.f32.mrf.mxu3  ;;  %v2804_v1 = vadd.f32 %v2803_v37, %v2683_v35 }
 0x3fe   :  { %v2885_v28 = vadd.f32 %v2884_v49, %v2768_v20  ;;  %v3065_v20 = vlaneseq }
 0x400   :  { %v2974_v48 = vadd.f32 %v2973_v47, %v2885_v28 }
 0x402   :  { %v3028_v39 = vsel %vm3000_vm5, %v2974_v48, inf }
 0x403   :  { %3029 = vmin.xlane.f32.xlu0 %v3028_v39 }
 0x405   :  { %v2888_v63 = vpop.f32.mrf.mxu2  ;;  %v2981_v56 = vpop.f32.mrf.mxu3 }
 0x406   :  { %v2889_v54 = vadd.f32 %v2888_v63, %v2774_v25 }
 0x408   :  { %v2978_v12 = vadd.f32 %v2977_v40, %v2889_v54  ;;  %v3066_v40 = vand.u32 127, %v3065_v20 }
 0x40a   :  { %v3031_v36 = vsel %vm3000_vm5, %v2978_v12, inf  ;;  %v3068_v58 = vadd.s32 4294967288, %v3066_v40  ;;  %v3072_v48 = vadd.s32 4294967280, %v3066_v40  ;;  %v3076_v57 = vadd.s32 4294967272, %v3066_v40 }
 0x40b   :  { %3032 = vmin.xlane.f32.xlu1 %v3031_v36  ;;  %v3080_v39 = vadd.s32 4294967264, %v3066_v40  ;;  %v3084_v63 = vadd.s32 4294967256, %v3066_v40  ;;  %v3092_v36 = vadd.s32 4294967240, %v3066_v40  ;;  %v3100_v55 = vadd.s32 4294967224, %v3066_v40 }
 0x40c   :  { %v3104_v10 = vadd.s32 4294967216, %v3066_v40  ;;  %v3112_v30 = vadd.s32 4294967200, %v3066_v40  ;;  %v3116_v21 = vadd.s32 4294967192, %v3066_v40  ;;  %v3120_v26 = vadd.s32 4294967184, %v3066_v40 }
 0x40d   :  { %v2892_v18 = vpop.f32.mrf.mxu2  ;;  %v2985_v44 = vpop.f32.mrf.mxu3 }
 0x40e   :  { %v2893_v29 = vadd.f32 %v2892_v18, %v2780_v27  ;;  %v3096_v18 = vadd.s32 4294967232, %v3066_v40 }
 0x410   :  { %v2982_v0 = vadd.f32 %v2981_v56, %v2893_v29  ;;  %v3088_v56 = vadd.s32 4294967248, %v3066_v40 }
 0x412   :  { %v3034_v22 = vsel %vm3000_vm5, %v2982_v0, inf }
 0x413   :  { %3035 = vmin.xlane.f32.xlu2 %v3034_v22 }
 0x415   :  { %v2896_v7 = vpop.f32.mrf.mxu2  ;;  %v2989_v5 = vpop.f32.mrf.mxu3 }
 0x416   :  { %v2897_v2 = vadd.f32 %v2896_v7, %v2786_v16 }
 0x418   :  { %v2986_v33 = vadd.f32 %v2985_v44, %v2897_v2  ;;  %v3108_v2 = vadd.s32 4294967208, %v3066_v40 }
 0x41a   :  { %v3037_v45 = vsel %vm3000_vm5, %v2986_v33, inf }
 0x41b   :  { %3038 = vmin.xlane.f32.xlu0 %v3037_v45 }
 0x41d   :  { %v2900_v62 = vpop.f32.mrf.mxu2  ;;  %v2993_v8 = vpop.f32.mrf.mxu3 }
 0x41e   :  { %v2901_v15 = vadd.f32 %v2900_v62, %v2792_v31 }
 0x420   :  { %v2990_v11 = vadd.f32 %v2989_v5, %v2901_v15 }
 0x422   :  { %v3040_v52 = vsel %vm3000_vm5, %v2990_v11, inf }
 0x423   :  { %3041 = vmin.xlane.f32.xlu1 %v3040_v52 }
 0x425   :  { %v2904_v6 = vpop.f32.mrf.mxu2  ;;  %v2997_v53 = vpop.f32.mrf.mxu3 }
 0x426   :  { %v2905_v13 = vadd.f32 %v2904_v6, %v2798_v23 }
 0x428   :  { %v2994_v3 = vadd.f32 %v2993_v8, %v2905_v13 }
 0x42a   :  { %v3043_v50 = vsel %vm3000_vm5, %v2994_v3, inf  ;;  %v3124_v3 = vadd.s32 4294967176, %v3066_v40 }
 0x42b   :  { %3044 = vmin.xlane.f32.xlu2 %v3043_v50 }
 0x42d   :  { %v2908_v46 = vpop.f32.mrf.mxu2 }
 0x42e   :  { %v2909_v24 = vadd.f32 %v2908_v46, %v2804_v1  ;;  %v3003_v47 = vpop.xlane.xlu0 %3002 }
 0x42f   :  { %v3067_v19 = vperm.slane %v3003_v47, %v3066_v40 }
 0x430   :  { %v2998_v14 = vadd.f32 %v2997_v53, %v2909_v24 }
 0x432   :  { %v3046_v61 = vsel %vm3000_vm5, %v2998_v14, inf }
 0x433   :  { %3047 = vmin.xlane.f32.xlu0 %v3046_v61 }
 0x436   :  { %v3006_v9 = vpop.xlane.xlu0 %3005 }
 0x437   :  { %v3069_v25 = vperm.slane %v3006_v9, %v3068_v58 }
 0x439   :  { %v3071_v29 = vsel %vm3070_vm6, %v3069_v25, %v3067_v19 }
 0x43e   :  { %v3009_v41 = vpop.xlane.xlu1 %3008 }
 0x43f   :  { %v3073_v54 = vperm.slane %v3009_v41, %v3072_v48 }
 0x441   :  { %v3075_v44 = vsel %vm3074_vm7, %v3073_v54, %v3071_v29 }
 0x446   :  { %v3012_v42 = vpop.xlane.xlu1 %3011 }
 0x447   :  { %v3077_v43 = vperm.slane %v3012_v42, %v3076_v57 }
 0x449   :  { %v3079_v16 = vsel %vm3078_vm8, %v3077_v43, %v3075_v44 }
 0x44e   :  { %v3015_v17 = vpop.xlane.xlu2 %3014 }
 0x44f   :  { %v3081_v59 = vperm.slane %v3015_v17, %v3080_v39 }
 0x451   :  { %v3083_v4 = vsel %vm3082_vm9, %v3081_v59, %v3079_v16 }
 0x456   :  { %v3018_v32 = vpop.xlane.xlu2 %3017 }
 0x457   :  { %v3085_v0 = vperm.slane %v3018_v32, %v3084_v63 }
 0x459   :  { %v3087_v5 = vsel %vm3086_vm10, %v3085_v0, %v3083_v4 }
 0x45e   :  { %v3021_v51 = vpop.xlane.xlu0 %3020 }
 0x45f   :  { %v3089_v22 = vperm.slane %v3021_v51, %v3088_v56 }
 0x461   :  { %v3091_v62 = vsel %vm3090_vm11, %v3089_v22, %v3087_v5 }
 0x466   :  { %v3024_v49 = vpop.xlane.xlu1 %3023 }
 0x467   :  { %v3093_v7 = vperm.slane %v3024_v49, %v3092_v36 }
 0x469   :  { %v3095_v34 = vsel %vm3094_vm12, %v3093_v7, %v3091_v62 }
 0x46e   :  { %v3027_v28 = vpop.xlane.xlu2 %3026 }
 0x46f   :  { %v3097_v33 = vperm.slane %v3027_v28, %v3096_v18 }
 0x471   :  { %v3099_v8 = vsel %vm3098_vm13, %v3097_v33, %v3095_v34 }
 0x476   :  { %v3030_v60 = vpop.xlane.xlu0 %3029 }
 0x477   :  { %v3101_v31 = vperm.slane %v3030_v60, %v3100_v55 }
 0x479   :  { %v3103_v13 = vsel %vm3102_vm14, %v3101_v31, %v3099_v8 }
 0x47e   :  { %v3033_v12 = vpop.xlane.xlu1 %3032 }
 0x47f   :  { %v3105_v15 = vperm.slane %v3033_v12, %v3104_v10 }
 0x481   :  { %v3107_v35 = vsel %vm3106_vm15, %v3105_v15, %v3103_v13 }
 0x486   :  { %v3036_v27 = vpop.xlane.xlu2 %3035 }
 0x487   :  { %v3109_v52 = vperm.slane %v3036_v27, %v3108_v2 }
 0x489   :  { %v3111_v37 = vsel %vm3110_vm0, %v3109_v52, %v3107_v35 }
 0x48e   :  { %v3039_v45 = vpop.xlane.xlu0 %3038 }
 0x48f   :  { %v3113_v6 = vperm.slane %v3039_v45, %v3112_v30 }
 0x491   :  { %v3115_v1 = vsel %vm3114_vm1, %v3113_v6, %v3111_v37 }
 0x496   :  { %v3042_v11 = vpop.xlane.xlu1 %3041 }
 0x497   :  { %v3117_v38 = vperm.slane %v3042_v11, %v3116_v21 }
 0x499   :  { %v3119_v24 = vsel %vm3118_vm2, %v3117_v38, %v3115_v1 }
 0x49e   :  { %v3045_v23 = vpop.xlane.xlu2 %3044 }
 0x49f   :  { %v3121_v50 = vperm.slane %v3045_v23, %v3120_v26 }
 0x4a1   :  { %v3123_v14 = vsel %vm3122_vm3, %v3121_v50, %v3119_v24 }
 0x4a6   :  { %v3048_v46 = vpop.xlane.xlu0 %3047 }
 0x4a7   :  { %v3125_v53 = vperm.slane %v3048_v46, %v3124_v3 }
 0x4a9   :  { %v3127_v61 = vsel %vm3126_vm4, %v3125_v53, %v3123_v14 }
 0x4aa   :  { %3129 = vst [vmem:[#allocation2] sm:$0x1] %v3127_v61 }
 0x4ab   :  { %3140 = dma.vmem_to_hbm [thread:$0]  %s3136_s17, 16, %s3138_s20, [#allocation3]  }
 0x4ac   :  { %3174 = dma.done.wait [#allocation3], 16  }
 0x4ad   :  { %3175 = vsyncadd [#allocation3], 4294967280 }
 0x4ae   :  { %3145 = vsyncpa [#allocation3], 1 }

// kernel: tpu_custom_call.1
= control target key start
LH: loop header
LB: loop body
LE: loop exit
PB: predicated region body
PF: predicated region fallthrough
CT: control target
= control target key end

     0   :  { %vm117_vm0 = vcmask 1045504   ;;  %vm68_vm1 = vcmask 48128   ;;  %vm781_vm2 = vcmask 1040384   ;;  %vm732_vm3 = vcmask 138240   ;;  %s4532_s3 = inlined_call_operand.vmem [shape: f32[6,64], index: 3, kind: input, shape index: {}]   ;;  %s4533_s1 = inlined_call_operand.vmem [shape: f32[128,6], index: 1, kind: input, shape index: {}]   ;;  %s4534_s2 = inlined_call_operand.vmem [shape: f32[17,64], index: 2, kind: input, shape index: {}]   ;;  %s4535_s0 = inlined_call_operand.vmem [shape: f32[128,17], index: 0, kind: input, shape index: {}]   ;;  %s4536_s5 = inlined_call_operand.vmem [shape: f32[64,64], index: 5, kind: input, shape index: {}]   ;;  %s4537_s4 = inlined_call_operand.vmem [shape: f32[1,64], index: 4, kind: input, shape index: {}]   ;;  %s4538_s6 = inlined_call_operand.vmem [shape: f32[1,64], index: 6, kind: input, shape index: {}]   ;;  %s4539_s7 = inlined_call_operand.vmem [shape: f32[64,2], index: 7, kind: input, shape index: {}]   ;;  %s4540_s8 = inlined_call_operand.vmem [shape: f32[1,2], index: 8, kind: input, shape index: {}]   ;;  %s4541_s9 = inlined_call_operand.vmem [shape: f32[128,1], index: 9, kind: output, shape index: {}]  }
   0x1   :  { %v67_v0 = vld [vmem:[%s4532_s3] sm:$0x3f]  ;;  %v66_v2 = vld [vmem:[%s4534_s2 + $0x10] sm:$0x1]  ;;  %v49_v6 = vld [vmem:[%s4533_s1 + $0x8] sm:$0xff]  ;;  %vm1470_vm4 = vcmask 523264  }
   0x2   :  { %v48_v1 = vld [vmem:[%s4533_s1] sm:$0xff]  ;;  %v119_v3 = vsel %vm117_vm0, %v67_v0, 0  ;;  %v783_v5 = vsel %vm781_vm2, %v66_v2, 0  ;;  %v50_v7 = vld [vmem:[%s4533_s1 + $0x10] sm:$0xff]  ;;  %v73_v11 = vsel %vm68_vm1, %v49_v6, 0  ;;  %v51_v29 = vld [vmem:[%s4533_s1 + $0x18] sm:$0xff] }
   0x3   :  { %v70_v4 = vsel %vm68_vm1, %v48_v1, 0  ;;  %v136_v8 = vand.u32 4294901760, %v119_v3  ;;  %v3140_v10 = vand.u32 4294901760, %v783_v5  ;;  %v3143_v12 = vand.u32 4294901760, %v73_v11  ;;  %v52_v36 = vld [vmem:[%s4533_s1 + $0x20] sm:$0xff]  ;;  %v65_v40 = vld [vmem:[%s4534_s2 + $0x8] sm:$0xff] }
   0x4   :  { %v3138_v9 = vand.u32 4294901760, %v70_v4  ;;  %v76_v16 = vsel %vm68_vm1, %v50_v7, 0  ;;  %v79_v32 = vsel %vm68_vm1, %v51_v29, 0  ;;  %v82_v39 = vsel %vm68_vm1, %v52_v36, 0  ;;  %v53_v46 = vld [vmem:[%s4533_s1 + $0x28] sm:$0xff]  ;;  %v54_v56 = vld [vmem:[%s4533_s1 + $0x30] sm:$0xff] }
   0x5   :  { %v283_v13 = vsub.f32 %v119_v3, %v136_v8  ;;  %468 = vmatpush.msra.mxu3 %v136_v8  ;;  %137 = vmatpush.msra.mxu0 %v136_v8  ;;  %v3147_v15 = vsub.f32 %v783_v5, %v3140_v10  ;;  %v147_v17 = vsub.f32 %v73_v11, %v3143_v12  ;;  %v3152_v21 = vand.u32 4294901760, %v76_v16  ;;  %v55_v63 = vld [vmem:[%s4533_s1 + $0x38] sm:$0xff]  ;;  %v56_v6 = vld [vmem:[%s4533_s1 + $0x40] sm:$0xff]  ;;  %v58_v29 = vld [vmem:[%s4533_s1 + $0x50] sm:$0xff] }
   0x6   :  { %v139_v14 = vsub.f32 %v70_v4, %v3138_v9  ;;  %v3166_v35 = vand.u32 4294901760, %v79_v32  ;;  %v3177_v41 = vand.u32 4294901760, %v65_v40  ;;  %v3179_v44 = vand.u32 4294901760, %v82_v39 }
   0x7   :  { %370 = vmatpush.msra.mxu2 %v283_v13  ;;  %v284_v19 = vand.u32 4294901760, %v283_v13  ;;  %v948_v20 = vand.u32 4294901760, %v3147_v15  ;;  %v148_v25 = vand.u32 4294901760, %v147_v17  ;;  %v155_v31 = vsub.f32 %v76_v16, %v3152_v21 }
   0x8   :  { %v140_v18 = vand.u32 4294901760, %v139_v14  ;;  %373 = vmatmul.f32.vlgmr.msra.gmra.mxu2 %v139_v14  ;;  %v163_v38 = vsub.f32 %v79_v32, %v3166_v35  ;;  %v3183_v45 = vsub.f32 %v65_v40, %v3177_v41  ;;  %v171_v49 = vsub.f32 %v82_v39, %v3179_v44 }
   0x9   :  { %799 = vmatpush.msrb.mxu2 %v3140_v10  ;;  %v285_v23 = vsub.f32 %v283_v13, %v284_v19  ;;  %v949_v24 = vsub.f32 %v3147_v15, %v948_v20  ;;  %584 = vmatpush.msrb.mxu0 %v284_v19  ;;  %v149_v30 = vsub.f32 %v147_v17, %v148_v25  ;;  %v156_v34 = vand.u32 4294901760, %v155_v31 }
   0xa   :  { %472 = vmatmul.f32.vlgmr.msra.gmra.mxu3 %v140_v18  ;;  %v141_v22 = vsub.f32 %v139_v14, %v140_v18  ;;  %v164_v43 = vand.u32 4294901760, %v163_v38  ;;  %v954_v47 = vand.u32 4294901760, %v3183_v45  ;;  %v85_v51 = vsel %vm68_vm1, %v53_v46, 0 }
   0xb   :  { %v286_v27 = vand.u32 4294901760, %v285_v23  ;;  %v950_v28 = vand.u32 4294901760, %v949_v24  ;;  %v150_v33 = vand.u32 4294901760, %v149_v30  ;;  %v157_v37 = vsub.f32 %v155_v31, %v156_v34  ;;  %801 = vmatpush.msrb.mxu2 %v3177_v41  ;;  %v64_v23 = vld [vmem:[%s4534_s2] sm:$0xff] }
   0xc   :  { %v142_v26 = vand.u32 4294901760, %v141_v22  ;;  %v165_v48 = vsub.f32 %v163_v38, %v164_v43  ;;  %v955_v50 = vsub.f32 %v3183_v45, %v954_v47  ;;  %v172_v54 = vand.u32 4294901760, %v171_v49 }
   0xd   :  { %287 = vmatpush.msra.mxu1 %v286_v27  ;;  %951 = vmatpush.msrb.mxu3 %v950_v28  ;;  %v158_v42 = vand.u32 4294901760, %v157_v37  ;;  %v3197_v55 = vand.u32 4294901760, %v85_v51  ;;  %v88_v59 = vsel %vm68_vm1, %v54_v56, 0  ;;  %v91_v2 = vsel %vm68_vm1, %v55_v63, 0 }
   0xe   :  { %143 = vmatmul.f32.vlgmr.msra.gmra.mxu0 %v142_v26  ;;  %289 = vmatmul.f32.vlgmr.msra.gmra.mxu1 %v3138_v9  ;;  %v956_v52 = vand.u32 4294901760, %v955_v50  ;;  %v166_v53 = vand.u32 4294901760, %v165_v48  ;;  %v173_v57 = vsub.f32 %v171_v49, %v172_v54  ;;  %v3205_v62 = vand.u32 4294901760, %v88_v59 }
   0xf   :  { %666 = vmatpush.msrb.mxu1 %v136_v8  ;;  %1044 = vmatpush.msra.mxu0 %v3147_v15  ;;  %v179_v58 = vsub.f32 %v85_v51, %v3197_v55  ;;  %v3213_v5 = vand.u32 4294901760, %v91_v2  ;;  %v94_v11 = vsel %vm68_vm1, %v56_v6, 0  ;;  %v802_v24 = vand.u32 4294901760, %v64_v23 }
  0x10   :  { %378 = vmatmul.f32.gmra.mxu2 %v147_v17  ;;  %957 = vmatpush.msrb.mxu3 %v956_v52  ;;  %v174_v60 = vand.u32 4294901760, %v173_v57  ;;  %v187_v1 = vsub.f32 %v88_v59, %v3205_v62  ;;  %v3221_v16 = vand.u32 4294901760, %v94_v11  ;;  %v57_v17 = vld [vmem:[%s4533_s1 + $0x48] sm:$0xff]  ;;  %v100_v15 = vsel %vm68_vm1, %v58_v29, 0 }
  0x11   :  { %1146 = vmatpush.msra.mxu1 %v3140_v10  ;;  %1047 = vmatpush.msra.mxu0 %v3183_v45  ;;  %v180_v61 = vand.u32 4294901760, %v179_v58  ;;  %v195_v8 = vsub.f32 %v91_v2, %v3213_v5  ;;  %v97_v22 = vsel %vm68_vm1, %v57_v17, 0  ;;  %v959_v28 = vsub.f32 %v64_v23, %v802_v24  ;;  %v61_v52 = vld [vmem:[%s4533_s1 + $0x68] sm:$0xff] }
  0x12   :  { %478 = vmatmul.f32.gmra.mxu3 %v148_v25  ;;  %v188_v4 = vand.u32 4294901760, %v187_v1  ;;  %v203_v19 = vsub.f32 %v94_v11, %v3221_v16  ;;  %v3232_v27 = vand.u32 4294901760, %v97_v22  ;;  %803 = vmatpush.msrb.mxu2 %v802_v24  ;;  %v3244_v37 = vand.u32 4294901760, %v100_v15  ;;  %v32_v11 = vld [vmem:[%s4535_s0] sm:$0xff] }
  0x13   :  { %1148 = vmatpush.msra.mxu1 %v3177_v41  ;;  %v181_v0 = vsub.f32 %v179_v58, %v180_v61  ;;  %v196_v14 = vand.u32 4294901760, %v195_v8  ;;  %v960_v30 = vand.u32 4294901760, %v959_v28  ;;  %1050 = vmatpush.msra.mxu0 %v959_v28  ;;  %v109_v56 = vsel %vm68_vm1, %v61_v52, 0 }
  0x14   :  { %v189_v7 = vsub.f32 %v187_v1, %v188_v4  ;;  %v204_v26 = vand.u32 4294901760, %v203_v19  ;;  %1264 = vmatpush.msra.mxu2 %v948_v20  ;;  %v211_v32 = vsub.f32 %v97_v22, %v3232_v27  ;;  %v219_v40 = vsub.f32 %v100_v15, %v3244_v37 }
  0x15   :  { %v182_v3 = vand.u32 4294901760, %v181_v0  ;;  %v197_v18 = vsub.f32 %v195_v8, %v196_v14  ;;  %1150 = vmatpush.msra.mxu1 %v802_v24  ;;  %v3270_v59 = vand.u32 4294901760, %v109_v56  ;;  %vm2999_vm5 = vcmask 15360  }
  0x16   :  { %151 = vmatmul.f32.gmra.mxu0 %v150_v33  ;;  %293 = vmatmul.f32.gmra.mxu1 %v3143_v12  ;;  %v190_v13 = vand.u32 4294901760, %v189_v7  ;;  %v961_v33 = vsub.f32 %v959_v28, %v960_v30  ;;  %v212_v36 = vand.u32 4294901760, %v211_v32  ;;  %v220_v45 = vand.u32 4294901760, %v219_v40 }
  0x17   :  { %v198_v25 = vand.u32 4294901760, %v197_v18  ;;  %1268 = vmatpush.msra.mxu2 %v954_v47  ;;  %v243_v63 = vsub.f32 %v109_v56, %v3270_v59  ;;  %v734_v18 = vsel %vm732_vm3, %v32_v11, 0  ;;  %vm3048_vm6 = vcmask 7168  }
  0x18   :  { %383 = vmatmul.f32.gmra.mxu2 %v155_v31  ;;  %v205_v31 = vsub.f32 %v203_v19, %v204_v26  ;;  %v962_v20 = vand.u32 4294901760, %v961_v33  ;;  %v213_v39 = vsub.f32 %v211_v32, %v212_v36  ;;  %v221_v47 = vsub.f32 %v219_v40, %v220_v45  ;;  %v34_v33 = vld [vmem:[%s4535_s0 + $0x10] sm:$0xff] }
  0x19   :  { %1272 = vmatpush.msra.mxu2 %v960_v30  ;;  %v244_v2 = vand.u32 4294901760, %v243_v63 }
  0x1a   :  { %484 = vmatmul.f32.gmra.mxu3 %v156_v34  ;;  %v206_v34 = vand.u32 4294901760, %v205_v31 }
  0x1b   :  { %963 = vmatpush.msrb.mxu3 %v962_v20  ;;  %v245_v6 = vsub.f32 %v243_v63, %v244_v2 }
  0x1d   :  { %1352 = vmatpush.msra.mxu3 %v3140_v10  ;;  %v60_v10 = vld [vmem:[%s4533_s1 + $0x60] sm:$0xff] }
  0x1e   :  { %159 = vmatmul.f32.gmra.mxu0 %v158_v42  ;;  %297 = vmatmul.f32.gmra.mxu1 %v3152_v21 }
  0x1f   :  { %1354 = vmatpush.msra.mxu3 %v3177_v41  ;;  %v106_v41 = vsel %vm68_vm1, %v60_v10, 0 }
  0x20   :  { %388 = vmatmul.f32.gmra.mxu2 %v163_v38  ;;  %v59_v38 = vld [vmem:[%s4533_s1 + $0x58] sm:$0xff]  ;;  %v3262_v51 = vand.u32 4294901760, %v106_v41 }
  0x21   :  { %v103_v42 = vsel %vm68_vm1, %v59_v38, 0  ;;  %1356 = vmatpush.msra.mxu3 %v802_v24  ;;  %v33_v24 = vld [vmem:[%s4535_s0 + $0x8] sm:$0xff] }
  0x22   :  { %490 = vmatmul.f32.gmra.mxu3 %v164_v43  ;;  %v214_v43 = vand.u32 4294901760, %v213_v39  ;;  %v3254_v46 = vand.u32 4294901760, %v103_v42  ;;  %v737_v29 = vsel %vm732_vm3, %v33_v24, 0 }
  0x23   :  { %v3304_v31 = vand.u32 4294901760, %v737_v29 }
  0x24   :  { %v227_v48 = vsub.f32 %v103_v42, %v3254_v46  ;;  %v35_v42 = vld [vmem:[%s4535_s0 + $0x18] sm:$0xff] }
  0x25   :  { %v3314_v20 = vsub.f32 %v737_v29, %v3304_v31  ;;  %v743_v10 = vsel %vm732_vm3, %v35_v42, 0 }
  0x26   :  { %167 = vmatmul.f32.gmra.mxu0 %v166_v53  ;;  %301 = vmatmul.f32.gmra.mxu1 %v3166_v35  ;;  %v228_v50 = vand.u32 4294901760, %v227_v48 }
  0x27   :  { %v814_v39 = vand.u32 4294901760, %v3314_v20 }
  0x28   :  { %393 = vmatmul.f32.gmra.mxu2 %v171_v49  ;;  %v222_v49 = vand.u32 4294901760, %v221_v47  ;;  %v229_v53 = vsub.f32 %v227_v48, %v228_v50 }
  0x2a   :  { %496 = vmatmul.f32.gmra.mxu3 %v172_v54  ;;  %v235_v54 = vsub.f32 %v106_v41, %v3262_v51  ;;  %v230_v57 = vand.u32 4294901760, %v229_v53 }
  0x2e   :  { %175 = vmatmul.f32.gmra.mxu0 %v174_v60  ;;  %305 = vmatmul.f32.gmra.mxu1 %v3179_v44  ;;  %v62_v60 = vld [vmem:[%s4533_s1 + $0x70] sm:$0xff] }
  0x2f   :  { %v112_v0 = vsel %vm68_vm1, %v62_v60, 0 }
  0x30   :  { %398 = vmatmul.f32.gmra.mxu2 %v179_v58  ;;  %v236_v58 = vand.u32 4294901760, %v235_v54 }
  0x32   :  { %502 = vmatmul.f32.gmra.mxu3 %v180_v61  ;;  %v237_v61 = vsub.f32 %v235_v54, %v236_v58 }
  0x36   :  { %183 = vmatmul.f32.gmra.mxu0 %v182_v3  ;;  %309 = vmatmul.f32.gmra.mxu1 %v3197_v55  ;;  %v3278_v3 = vand.u32 4294901760, %v112_v0 }
  0x38   :  { %403 = vmatmul.f32.gmra.mxu2 %v187_v1  ;;  %v238_v1 = vand.u32 4294901760, %v237_v61  ;;  %v251_v7 = vsub.f32 %v112_v0, %v3278_v3 }
  0x3a   :  { %508 = vmatmul.f32.gmra.mxu3 %v188_v4  ;;  %v63_v4 = vld [vmem:[%s4533_s1 + $0x78] sm:$0xff] }
  0x3e   :  { %191 = vmatmul.f32.gmra.mxu0 %v190_v13  ;;  %313 = vmatmul.f32.gmra.mxu1 %v3205_v62  ;;  %v246_v13 = vand.u32 4294901760, %v245_v6 }
  0x40   :  { %408 = vmatmul.f32.gmra.mxu2 %v195_v8  ;;  %v115_v8 = vsel %vm68_vm1, %v63_v4, 0 }
  0x41   :  { %v3289_v17 = vand.u32 4294901760, %v115_v8 }
  0x42   :  { %514 = vmatmul.f32.gmra.mxu3 %v196_v14  ;;  %v252_v14 = vand.u32 4294901760, %v251_v7 }
  0x43   :  { %v259_v23 = vsub.f32 %v115_v8, %v3289_v17 }
  0x44   :  { %v253_v22 = vsub.f32 %v251_v7, %v252_v14 }
  0x45   :  { %v260_v28 = vand.u32 4294901760, %v259_v23 }
  0x46   :  { %199 = vmatmul.f32.gmra.mxu0 %v198_v25  ;;  %317 = vmatmul.f32.gmra.mxu1 %v3213_v5 }
  0x48   :  { %413 = vmatmul.f32.gmra.mxu2 %v203_v19  ;;  %v3292_v19 = vand.u32 4294901760, %v734_v18 }
  0x4a   :  { %520 = vmatmul.f32.gmra.mxu3 %v204_v26  ;;  %v3300_v25 = vsub.f32 %v734_v18, %v3292_v19  ;;  %v254_v26 = vand.u32 4294901760, %v253_v22 }
  0x4c   :  { %v806_v30 = vand.u32 4294901760, %v3300_v25 }
  0x4e   :  { %207 = vmatmul.f32.gmra.mxu0 %v206_v34  ;;  %321 = vmatmul.f32.gmra.mxu1 %v3221_v16  ;;  %v807_v15 = vsub.f32 %v3300_v25, %v806_v30 }
  0x50   :  { %418 = vmatmul.f32.gmra.mxu2 %v211_v32  ;;  %v261_v32 = vsub.f32 %v259_v23, %v260_v28  ;;  %v808_v38 = vand.u32 4294901760, %v807_v15 }
  0x52   :  { %526 = vmatmul.f32.gmra.mxu3 %v212_v36  ;;  %v262_v34 = vand.u32 4294901760, %v261_v32  ;;  %v740_v36 = vsel %vm732_vm3, %v34_v33, 0 }
  0x56   :  { %215 = vmatmul.f32.gmra.mxu0 %v214_v43  ;;  %325 = vmatmul.f32.gmra.mxu1 %v3232_v27  ;;  %v815_v43 = vsub.f32 %v3314_v20, %v814_v39 }
  0x58   :  { %423 = vmatmul.f32.gmra.mxu2 %v219_v40  ;;  %v3318_v40 = vand.u32 4294901760, %v740_v36  ;;  %v816_v52 = vand.u32 4294901760, %v815_v43 }
  0x5a   :  { %532 = vmatmul.f32.gmra.mxu3 %v220_v45  ;;  %v3328_v45 = vsub.f32 %v740_v36, %v3318_v40  ;;  %v38_v36 = vld [vmem:[%s4535_s0 + $0x30] sm:$0xff] }
  0x5c   :  { %v4553_v53 = vand.u32 4294901760, %v3328_v45 }
  0x5e   :  { %223 = vmatmul.f32.gmra.mxu0 %v222_v49  ;;  %329 = vmatmul.f32.gmra.mxu1 %v3244_v37  ;;  %v823_v60 = vsub.f32 %v3328_v45, %v4553_v53 }
  0x60   :  { %428 = vmatmul.f32.gmra.mxu2 %v227_v48  ;;  %v824_v6 = vand.u32 4294901760, %v823_v60  ;;  %v39_v60 = vld [vmem:[%s4535_s0 + $0x38] sm:$0xff] }
  0x62   :  { %538 = vmatmul.f32.gmra.mxu3 %v228_v50 }
  0x66   :  { %231 = vmatmul.f32.gmra.mxu0 %v230_v57  ;;  %333 = vmatmul.f32.gmra.mxu1 %v3254_v46  ;;  %v36_v57 = vld [vmem:[%s4535_s0 + $0x20] sm:$0xff] }
  0x68   :  { %433 = vmatmul.f32.gmra.mxu2 %v235_v54  ;;  %v3333_v54 = vand.u32 4294901760, %v743_v10 }
  0x6a   :  { %544 = vmatmul.f32.gmra.mxu3 %v236_v58  ;;  %v3346_v61 = vsub.f32 %v743_v10, %v3333_v54  ;;  %v752_v10 = vsel %vm732_vm3, %v38_v36, 0 }
  0x6e   :  { %239 = vmatmul.f32.gmra.mxu0 %v238_v1  ;;  %337 = vmatmul.f32.gmra.mxu1 %v3262_v51 }
  0x70   :  { %438 = vmatmul.f32.gmra.mxu2 %v243_v63  ;;  %v746_v63 = vsel %vm732_vm3, %v36_v57, 0 }
  0x71   :  { %v3351_v8 = vand.u32 4294901760, %v746_v63 }
  0x72   :  { %550 = vmatmul.f32.gmra.mxu3 %v244_v2 }
  0x73   :  { %v3364_v22 = vsub.f32 %v746_v63, %v3351_v8 }
  0x75   :  { %v4550_v33 = vand.u32 4294901760, %v3364_v22 }
  0x76   :  { %247 = vmatmul.f32.gmra.mxu0 %v246_v13  ;;  %341 = vmatmul.f32.gmra.mxu1 %v3270_v59  ;;  %v37_v13 = vld [vmem:[%s4535_s0 + $0x28] sm:$0xff] }
  0x77   :  { %v839_v42 = vsub.f32 %v3364_v22, %v4550_v33 }
  0x78   :  { %443 = vmatmul.f32.gmra.mxu2 %v251_v7  ;;  %v4552_v7 = vand.u32 4294901760, %v3346_v61 }
  0x7a   :  { %556 = vmatmul.f32.gmra.mxu3 %v252_v14  ;;  %v831_v18 = vsub.f32 %v3346_v61, %v4552_v7 }
  0x7c   :  { %v832_v32 = vand.u32 4294901760, %v831_v18 }
  0x7e   :  { %255 = vmatmul.f32.gmra.mxu0 %v254_v26  ;;  %345 = vmatmul.f32.gmra.mxu1 %v3278_v3 }
  0x80   :  { %448 = vmatmul.f32.gmra.mxu2 %v259_v23  ;;  %v749_v23 = vsel %vm732_vm3, %v37_v13, 0 }
  0x81   :  { %v3369_v15 = vand.u32 4294901760, %v749_v23 }
  0x82   :  { %562 = vmatmul.f32.gmra.mxu3 %v260_v28 }
  0x83   :  { %v3382_v43 = vsub.f32 %v749_v23, %v3369_v15 }
  0x86   :  { %263 = vmatmul.f32.gmra.mxu0 %v262_v34  ;;  %349 = vmatmul.f32.gmra.mxu1 %v3289_v17 }
  0x88   :  { %809 = vmatmul.f32.vlgmr.msrb.gmra.mxu2 %v808_v38 }
  0x8a   :  { %965 = vmatmul.f32.vlgmr.msrb.gmra.mxu3 %v3292_v19 }
  0x8b   :  { %v144_v47 = vpop.f32.mrf.mxu0  ;;  %v290_v48 = vpop.f32.mrf.mxu1 }
  0x8c   :  { %v374_v41 = vpop.f32.mrf.mxu2  ;;  %v291_v49 = vadd.f32 %v290_v48, %v144_v47 }
  0x8d   :  { %v473_v50 = vpop.f32.mrf.mxu3 }
  0x8e   :  { %586 = vmatmul.f32.vlgmr.msrb.gmra.mxu0 %v3138_v9  ;;  %v375_v56 = vadd.f32 %v374_v41, %v291_v49  ;;  %668 = vmatmul.f32.vlgmr.msrb.gmra.mxu1 %v3138_v9 }
  0x90   :  { %v3340_v58 = vadd.f32 %v473_v50, %v375_v56  ;;  %817 = vmatmul.f32.gmra.mxu2 %v816_v52  ;;  %v840_v50 = vand.u32 4294901760, %v839_v42  ;;  %v4549_v52 = vand.u32 4294901760, %v3382_v43  ;;  %v3387_v56 = vand.u32 4294901760, %v752_v10 }
  0x92   :  { %969 = vmatmul.f32.gmra.mxu3 %v3304_v31 }
  0x93   :  { %v152_v0 = vpop.f32.mrf.mxu0  ;;  %v294_v9 = vpop.f32.mrf.mxu1 }
  0x94   :  { %v379_v1 = vpop.f32.mrf.mxu2  ;;  %v295_v2 = vadd.f32 %v294_v9, %v152_v0  ;;  %v847_v0 = vsub.f32 %v3382_v43, %v4549_v52  ;;  %v3400_v9 = vsub.f32 %v752_v10, %v3387_v56 }
  0x95   :  { %v479_v4 = vpop.f32.mrf.mxu3 }
  0x96   :  { %590 = vmatmul.f32.gmra.mxu0 %v3143_v12  ;;  %v380_v11 = vadd.f32 %v379_v1, %v295_v2  ;;  %672 = vmatmul.f32.gmra.mxu1 %v3143_v12  ;;  %v755_v1 = vsel %vm732_vm3, %v39_v60, 0  ;;  %v848_v13 = vand.u32 4294901760, %v847_v0  ;;  %v4547_v18 = vand.u32 4294901760, %v3400_v9 }
  0x97   :  { %v3405_v23 = vand.u32 4294901760, %v755_v1 }
  0x98   :  { %v3358_v14 = vadd.f32 %v479_v4, %v380_v11  ;;  %825 = vmatmul.f32.gmra.mxu2 %v824_v6 }
  0x9a   :  { %973 = vmatmul.f32.gmra.mxu3 %v3318_v40 }
  0x9b   :  { %v160_v24 = vpop.f32.mrf.mxu0  ;;  %v298_v12 = vpop.f32.mrf.mxu1 }
  0x9c   :  { %v384_v26 = vpop.f32.mrf.mxu2  ;;  %v299_v28 = vadd.f32 %v298_v12, %v160_v24  ;;  %v40_v12 = vld [vmem:[%s4535_s0 + $0x40] sm:$0xff] }
  0x9d   :  { %v485_v29 = vpop.f32.mrf.mxu3 }
  0x9e   :  { %594 = vmatmul.f32.gmra.mxu0 %v3152_v21  ;;  %v385_v34 = vadd.f32 %v384_v26, %v299_v28  ;;  %676 = vmatmul.f32.gmra.mxu1 %v3152_v21  ;;  %v855_v28 = vsub.f32 %v3400_v9, %v4547_v18 }
  0xa0   :  { %v3376_v38 = vadd.f32 %v485_v29, %v385_v34  ;;  %833 = vmatmul.f32.gmra.mxu2 %v832_v32  ;;  %v3418_v29 = vsub.f32 %v755_v1, %v3405_v23  ;;  %v758_v32 = vsel %vm732_vm3, %v40_v12, 0  ;;  %v42_v12 = vld [vmem:[%s4535_s0 + $0x50] sm:$0xff] }
  0xa2   :  { %977 = vmatmul.f32.gmra.mxu3 %v3333_v54 }
  0xa3   :  { %v168_v47 = vpop.f32.mrf.mxu0  ;;  %v302_v21 = vpop.f32.mrf.mxu1 }
  0xa4   :  { %v389_v48 = vpop.f32.mrf.mxu2  ;;  %v303_v41 = vadd.f32 %v302_v21, %v168_v47  ;;  %v856_v47 = vand.u32 4294901760, %v855_v28  ;;  %v4546_v21 = vand.u32 4294901760, %v3418_v29 }
  0xa5   :  { %v491_v49 = vpop.f32.mrf.mxu3 }
  0xa6   :  { %598 = vmatmul.f32.gmra.mxu0 %v3166_v35  ;;  %v390_v57 = vadd.f32 %v389_v48, %v303_v41  ;;  %680 = vmatmul.f32.gmra.mxu1 %v3166_v35  ;;  %v3423_v48 = vand.u32 4294901760, %v758_v32 }
  0xa8   :  { %v3394_v63 = vadd.f32 %v491_v49, %v390_v57  ;;  %841 = vmatmul.f32.gmra.mxu2 %v840_v50  ;;  %v41_v49 = vld [vmem:[%s4535_s0 + $0x48] sm:$0xff]  ;;  %v863_v57 = vsub.f32 %v3418_v29, %v4546_v21  ;;  %v3436_v60 = vsub.f32 %v758_v32, %v3423_v48 }
  0xa9   :  { %v761_v0 = vsel %vm732_vm3, %v41_v49, 0 }
  0xaa   :  { %981 = vmatmul.f32.gmra.mxu3 %v3351_v8 }
  0xab   :  { %v176_v2 = vpop.f32.mrf.mxu0  ;;  %v306_v35 = vpop.f32.mrf.mxu1 }
  0xac   :  { %v394_v4 = vpop.f32.mrf.mxu2  ;;  %v307_v6 = vadd.f32 %v306_v35, %v176_v2 }
  0xad   :  { %v497_v11 = vpop.f32.mrf.mxu3 }
  0xae   :  { %602 = vmatmul.f32.gmra.mxu0 %v3179_v44  ;;  %v395_v24 = vadd.f32 %v394_v4, %v307_v6  ;;  %684 = vmatmul.f32.gmra.mxu1 %v3179_v44  ;;  %v864_v6 = vand.u32 4294901760, %v863_v57 }
  0xb0   :  { %v3412_v26 = vadd.f32 %v497_v11, %v395_v24  ;;  %849 = vmatmul.f32.gmra.mxu2 %v848_v13  ;;  %v4544_v11 = vand.u32 4294901760, %v3436_v60  ;;  %v3441_v13 = vand.u32 4294901760, %v761_v0 }
  0xb2   :  { %985 = vmatmul.f32.gmra.mxu3 %v3369_v15  ;;  %v871_v32 = vsub.f32 %v3436_v60, %v4544_v11 }
  0xb3   :  { %v184_v34 = vpop.f32.mrf.mxu0  ;;  %v310_v44 = vpop.f32.mrf.mxu1 }
  0xb4   :  { %v399_v36 = vpop.f32.mrf.mxu2  ;;  %v311_v42 = vadd.f32 %v310_v44, %v184_v34  ;;  %v3454_v34 = vsub.f32 %v761_v0, %v3441_v13  ;;  %v764_v44 = vsel %vm732_vm3, %v42_v12, 0  ;;  %v43_v0 = vld [vmem:[%s4535_s0 + $0x58] sm:$0xff] }
  0xb5   :  { %v503_v10 = vpop.f32.mrf.mxu3  ;;  %v3459_v57 = vand.u32 4294901760, %v764_v44 }
  0xb6   :  { %606 = vmatmul.f32.gmra.mxu0 %v3197_v55  ;;  %v400_v41 = vadd.f32 %v399_v36, %v311_v42  ;;  %688 = vmatmul.f32.gmra.mxu1 %v3197_v55  ;;  %v4543_v49 = vand.u32 4294901760, %v3454_v34 }
  0xb8   :  { %v3430_v50 = vadd.f32 %v503_v10, %v400_v41  ;;  %857 = vmatmul.f32.gmra.mxu2 %v856_v47  ;;  %v872_v41 = vand.u32 4294901760, %v871_v32 }
  0xba   :  { %989 = vmatmul.f32.gmra.mxu3 %v3387_v56 }
  0xbb   :  { %v192_v1 = vpop.f32.mrf.mxu0  ;;  %v314_v55 = vpop.f32.mrf.mxu1 }
  0xbc   :  { %v404_v2 = vpop.f32.mrf.mxu2  ;;  %v315_v35 = vadd.f32 %v314_v55, %v192_v1 }
  0xbd   :  { %v509_v4 = vpop.f32.mrf.mxu3 }
  0xbe   :  { %610 = vmatmul.f32.gmra.mxu0 %v3205_v62  ;;  %v405_v24 = vadd.f32 %v404_v2, %v315_v35  ;;  %692 = vmatmul.f32.gmra.mxu1 %v3205_v62  ;;  %v879_v2 = vsub.f32 %v3454_v34, %v4543_v49  ;;  %v3472_v35 = vsub.f32 %v764_v44, %v3459_v57  ;;  %v44_v44 = vld [vmem:[%s4535_s0 + $0x60] sm:$0xff] }
  0xc0   :  { %v3448_v28 = vadd.f32 %v509_v4, %v405_v24  ;;  %865 = vmatmul.f32.gmra.mxu2 %v864_v6  ;;  %v767_v4 = vsel %vm732_vm3, %v43_v0, 0  ;;  %v770_v0 = vsel %vm732_vm3, %v44_v44, 0 }
  0xc2   :  { %993 = vmatmul.f32.gmra.mxu3 %v3405_v23 }
  0xc3   :  { %v200_v36 = vpop.f32.mrf.mxu0  ;;  %v318_v62 = vpop.f32.mrf.mxu1 }
  0xc4   :  { %v409_v42 = vpop.f32.mrf.mxu2  ;;  %v319_v10 = vadd.f32 %v318_v62, %v200_v36  ;;  %v880_v36 = vand.u32 4294901760, %v879_v2  ;;  %v4542_v62 = vand.u32 4294901760, %v3472_v35 }
  0xc5   :  { %v515_v47 = vpop.f32.mrf.mxu3 }
  0xc6   :  { %614 = vmatmul.f32.gmra.mxu0 %v3213_v5  ;;  %v410_v1 = vadd.f32 %v409_v42, %v319_v10  ;;  %696 = vmatmul.f32.gmra.mxu1 %v3213_v5  ;;  %v3477_v42 = vand.u32 4294901760, %v767_v4 }
  0xc8   :  { %v3466_v55 = vadd.f32 %v515_v47, %v410_v1  ;;  %873 = vmatmul.f32.gmra.mxu2 %v872_v41  ;;  %v887_v41 = vsub.f32 %v3472_v35, %v4542_v62  ;;  %v3490_v1 = vsub.f32 %v767_v4, %v3477_v42  ;;  %v45_v4 = vld [vmem:[%s4535_s0 + $0x68] sm:$0xff] }
  0xca   :  { %997 = vmatmul.f32.gmra.mxu3 %v3423_v48 }
  0xcb   :  { %v208_v6 = vpop.f32.mrf.mxu0  ;;  %v322_v5 = vpop.f32.mrf.mxu1 }
  0xcc   :  { %v414_v24 = vpop.f32.mrf.mxu2  ;;  %v323_v12 = vadd.f32 %v322_v5, %v208_v6 }
  0xcd   :  { %v521_v32 = vpop.f32.mrf.mxu3 }
  0xce   :  { %618 = vmatmul.f32.gmra.mxu0 %v3221_v16  ;;  %v415_v10 = vadd.f32 %v414_v24, %v323_v12  ;;  %700 = vmatmul.f32.gmra.mxu1 %v3221_v16  ;;  %v888_v12 = vand.u32 4294901760, %v887_v41 }
  0xd0   :  { %v3484_v47 = vadd.f32 %v521_v32, %v415_v10  ;;  %881 = vmatmul.f32.gmra.mxu2 %v880_v36  ;;  %v4545_v32 = vand.u32 4294901760, %v3490_v1  ;;  %v3495_v36 = vand.u32 4294901760, %v770_v0 }
  0xd2   :  { %1001 = vmatmul.f32.gmra.mxu3 %v3441_v13  ;;  %v895_v41 = vsub.f32 %v3490_v1, %v4545_v32 }
  0xd3   :  { %v216_v2 = vpop.f32.mrf.mxu0  ;;  %v326_v16 = vpop.f32.mrf.mxu1 }
  0xd4   :  { %v419_v6 = vpop.f32.mrf.mxu2  ;;  %v327_v5 = vadd.f32 %v326_v16, %v216_v2  ;;  %v3508_v2 = vsub.f32 %v770_v0, %v3495_v36  ;;  %v773_v16 = vsel %vm732_vm3, %v45_v4, 0  ;;  %v896_v11 = vand.u32 4294901760, %v895_v41  ;;  %v46_v0 = vld [vmem:[%s4535_s0 + $0x70] sm:$0xff] }
  0xd5   :  { %v527_v24 = vpop.f32.mrf.mxu3 }
  0xd6   :  { %622 = vmatmul.f32.gmra.mxu0 %v3232_v27  ;;  %v420_v10 = vadd.f32 %v419_v6, %v327_v5  ;;  %704 = vmatmul.f32.gmra.mxu1 %v3232_v27 }
  0xd8   :  { %v3502_v44 = vadd.f32 %v527_v24, %v420_v10  ;;  %889 = vmatmul.f32.gmra.mxu2 %v888_v12  ;;  %v4548_v24 = vand.u32 4294901760, %v3508_v2  ;;  %v3513_v12 = vand.u32 4294901760, %v773_v16 }
  0xda   :  { %1005 = vmatmul.f32.gmra.mxu3 %v3459_v57  ;;  %v903_v41 = vsub.f32 %v3508_v2, %v4548_v24 }
  0xdb   :  { %v224_v6 = vpop.f32.mrf.mxu0  ;;  %v330_v27 = vpop.f32.mrf.mxu1 }
  0xdc   :  { %v424_v5 = vpop.f32.mrf.mxu2  ;;  %v331_v62 = vadd.f32 %v330_v27, %v224_v6  ;;  %v3526_v6 = vsub.f32 %v773_v16, %v3513_v12  ;;  %v904_v18 = vand.u32 4294901760, %v903_v41  ;;  %v47_v16 = vld [vmem:[%s4535_s0 + $0x78] sm:$0xff] }
  0xdd   :  { %v533_v49 = vpop.f32.mrf.mxu3 }
  0xde   :  { %626 = vmatmul.f32.gmra.mxu0 %v3244_v37  ;;  %v425_v10 = vadd.f32 %v424_v5, %v331_v62  ;;  %708 = vmatmul.f32.gmra.mxu1 %v3244_v37  ;;  %v776_v62 = vsel %vm732_vm3, %v46_v0, 0 }
  0xe0   :  { %v3520_v4 = vadd.f32 %v533_v49, %v425_v10  ;;  %897 = vmatmul.f32.gmra.mxu2 %v896_v11  ;;  %v4551_v49 = vand.u32 4294901760, %v3526_v6  ;;  %v3531_v11 = vand.u32 4294901760, %v776_v62 }
  0xe2   :  { %1009 = vmatmul.f32.gmra.mxu3 %v3477_v42  ;;  %v911_v41 = vsub.f32 %v3526_v6, %v4551_v49 }
  0xe3   :  { %v232_v27 = vpop.f32.mrf.mxu0  ;;  %v334_v37 = vpop.f32.mrf.mxu1 }
  0xe4   :  { %v429_v5 = vpop.f32.mrf.mxu2  ;;  %v335_v32 = vadd.f32 %v334_v37, %v232_v27  ;;  %v3544_v27 = vsub.f32 %v776_v62, %v3531_v11  ;;  %v912_v33 = vand.u32 4294901760, %v911_v41 }
  0xe5   :  { %v539_v21 = vpop.f32.mrf.mxu3 }
  0xe6   :  { %630 = vmatmul.f32.gmra.mxu0 %v3254_v46  ;;  %v430_v10 = vadd.f32 %v429_v5, %v335_v32  ;;  %712 = vmatmul.f32.gmra.mxu1 %v3254_v46  ;;  %v779_v32 = vsel %vm732_vm3, %v47_v16, 0 }
  0xe8   :  { %v3538_v0 = vadd.f32 %v539_v21, %v430_v10  ;;  %905 = vmatmul.f32.gmra.mxu2 %v904_v18  ;;  %v4554_v21 = vand.u32 4294901760, %v3544_v27  ;;  %v3549_v18 = vand.u32 4294901760, %v779_v32 }
  0xea   :  { %1013 = vmatmul.f32.gmra.mxu3 %v3495_v36  ;;  %v919_v16 = vsub.f32 %v3544_v27, %v4554_v21 }
  0xeb   :  { %v240_v37 = vpop.f32.mrf.mxu0  ;;  %v338_v46 = vpop.f32.mrf.mxu1 }
  0xec   :  { %v434_v5 = vpop.f32.mrf.mxu2  ;;  %v339_v24 = vadd.f32 %v338_v46, %v240_v37  ;;  %v3559_v37 = vsub.f32 %v779_v32, %v3549_v18 }
  0xed   :  { %v545_v52 = vpop.f32.mrf.mxu3 }
  0xee   :  { %634 = vmatmul.f32.gmra.mxu0 %v3262_v51  ;;  %v435_v10 = vadd.f32 %v434_v5, %v339_v24  ;;  %716 = vmatmul.f32.gmra.mxu1 %v3262_v51  ;;  %v920_v24 = vand.u32 4294901760, %v919_v16  ;;  %v4555_v51 = vand.u32 4294901760, %v3559_v37 }
  0xf0   :  { %v3553_v62 = vadd.f32 %v545_v52, %v435_v10  ;;  %913 = vmatmul.f32.gmra.mxu2 %v912_v33  ;;  %v927_v32 = vsub.f32 %v3559_v37, %v4555_v51 }
  0xf2   :  { %1017 = vmatmul.f32.gmra.mxu3 %v3513_v12  ;;  %v928_v21 = vand.u32 4294901760, %v927_v32 }
  0xf3   :  { %v248_v41 = vpop.f32.mrf.mxu0  ;;  %v342_v46 = vpop.f32.mrf.mxu1 }
  0xf4   :  { %v439_v49 = vpop.f32.mrf.mxu2  ;;  %v343_v7 = vadd.f32 %v342_v46, %v248_v41 }
  0xf5   :  { %v551_v53 = vpop.f32.mrf.mxu3 }
  0xf6   :  { %638 = vmatmul.f32.gmra.mxu0 %v3270_v59  ;;  %v440_v33 = vadd.f32 %v439_v49, %v343_v7  ;;  %720 = vmatmul.f32.gmra.mxu1 %v3270_v59 }
  0xf8   :  { %v3565_v52 = vadd.f32 %v551_v53, %v440_v33  ;;  %921 = vmatmul.f32.gmra.mxu2 %v920_v24  ;;  %v1465_v33 = vld [vmem:[%s4536_s5 + $0x38] sm:$0xff] }
  0xf9   :  { %v3579_v32 = vand.u32 4294901760, %v1465_v33 }
  0xfa   :  { %1021 = vmatmul.f32.gmra.mxu3 %v3531_v11 }
  0xfb   :  { %v256_v5 = vpop.f32.mrf.mxu0  ;;  %v346_v10 = vpop.f32.mrf.mxu1  ;;  %1528 = vmatpush.msrb.mxu0 %v3579_v32  ;;  %1915 = vmatpush.msrb.mxu3 %v3579_v32 }
  0xfc   :  { %v444_v41 = vpop.f32.mrf.mxu2  ;;  %v347_v16 = vadd.f32 %v346_v10, %v256_v5 }
  0xfd   :  { %v557_v46 = vpop.f32.mrf.mxu3 }
  0xfe   :  { %642 = vmatmul.f32.gmra.mxu0 %v3278_v3  ;;  %v445_v7 = vadd.f32 %v444_v41, %v347_v16  ;;  %724 = vmatmul.f32.gmra.mxu1 %v3278_v3  ;;  %v3585_v3 = vsub.f32 %v1465_v33, %v3579_v32 }
 0x100   :  { %v3573_v59 = vadd.f32 %v557_v46, %v445_v7  ;;  %929 = vmatmul.f32.gmra.mxu2 %v928_v21  ;;  %v4561_v16 = vand.u32 4294901760, %v3585_v3 }
 0x101   :  { %1803 = vmatpush.msrb.mxu2 %v3585_v3 }
 0x102   :  { %4562 = vst [vmem:[#allocation2_spill] sm:$0xff] %v3573_v59  ;;  %1025 = vmatmul.f32.gmra.mxu3 %v3549_v18 }
 0x103   :  { %v264_v53 = vpop.f32.mrf.mxu0  ;;  %v350_v49 = vpop.f32.mrf.mxu1 }
 0x104   :  { %v449_v24 = vpop.f32.mrf.mxu2  ;;  %v351_v5 = vadd.f32 %v350_v49, %v264_v53 }
 0x105   :  { %v563_v10 = vpop.f32.mrf.mxu3 }
 0x106   :  { %646 = vmatmul.f32.gmra.mxu0 %v3289_v17  ;;  %v450_v41 = vadd.f32 %v449_v24, %v351_v5  ;;  %728 = vmatmul.f32.gmra.mxu1 %v3289_v17  ;;  %v1683_v17 = vsub.f32 %v3585_v3, %v4561_v16 }
 0x108   :  { %v3588_v21 = vadd.f32 %v563_v10, %v450_v41  ;;  %1274 = vmatmul.f32.vlgmr.msra.gmra.mxu2 %v3292_v19  ;;  %v1684_v33 = vand.u32 4294901760, %v1683_v17  ;;  %v1464_v17 = vld [vmem:[%s4536_s5 + $0x30] sm:$0xff] }
 0x10a   :  { %4563 = vst [vmem:[#allocation3_spill] sm:$0xff] %v3588_v21  ;;  %1358 = vmatmul.f32.vlgmr.msra.gmra.mxu3 %v3292_v19  ;;  %1685 = vmatpush.msrb.mxu1 %v1684_v33 }
 0x10b   :  { %v587_v46 = vpop.f32.mrf.mxu0  ;;  %v669_v53 = vpop.f32.mrf.mxu1 }
 0x10c   :  { %v588_v7 = vadd.f32 %v587_v46, %v3340_v58  ;;  %v810_v49 = vpop.f32.mrf.mxu2 }
 0x10d   :  { %v966_v24 = vpop.f32.mrf.mxu3 }
 0x10e   :  { %v670_v5 = vadd.f32 %v669_v53, %v588_v7  ;;  %1053 = vmatmul.f32.vlgmr.msra.gmra.mxu0 %v3300_v25  ;;  %1154 = vmatmul.f32.vlgmr.msra.gmra.mxu1 %v806_v30  ;;  %v3609_v25 = vand.u32 4294901760, %v1464_v17 }
 0x110   :  { %v811_v19 = vadd.f32 %v810_v49, %v670_v5  ;;  %1278 = vmatmul.f32.gmra.mxu2 %v3304_v31  ;;  %1530 = vmatpush.msrb.mxu0 %v3609_v25 }
 0x111   :  { %1917 = vmatpush.msrb.mxu3 %v3609_v25 }
 0x112   :  { %v3602_v10 = vadd.f32 %v966_v24, %v811_v19  ;;  %1362 = vmatmul.f32.gmra.mxu3 %v3304_v31  ;;  %v3616_v31 = vsub.f32 %v1464_v17, %v3609_v25 }
 0x113   :  { %v591_v41 = vpop.f32.mrf.mxu0  ;;  %v673_v46 = vpop.f32.mrf.mxu1 }
 0x114   :  { %v592_v58 = vadd.f32 %v591_v41, %v3358_v14  ;;  %v818_v51 = vpop.f32.mrf.mxu2  ;;  %v4560_v53 = vand.u32 4294901760, %v3616_v31  ;;  %1806 = vmatpush.msrb.mxu2 %v3616_v31  ;;  %v4577_v59 = vand.u32 4294901760, %v3616_v31 }
 0x115   :  { %v970_v7 = vpop.f32.mrf.mxu3 }
 0x116   :  { %v674_v30 = vadd.f32 %v673_v46, %v592_v58  ;;  %1058 = vmatmul.f32.gmra.mxu0 %v3314_v20  ;;  %1160 = vmatmul.f32.gmra.mxu1 %v814_v39  ;;  %v1689_v39 = vsub.f32 %v3616_v31, %v4560_v53  ;;  %v4564_v58 = vand.u32 4294901760, %v3328_v45 }
 0x118   :  { %v819_v14 = vadd.f32 %v818_v51, %v674_v30  ;;  %1282 = vmatmul.f32.gmra.mxu2 %v3318_v40  ;;  %v1690_v19 = vand.u32 4294901760, %v1689_v39 }
 0x11a   :  { %v3621_v49 = vadd.f32 %v970_v7, %v819_v14  ;;  %1366 = vmatmul.f32.gmra.mxu3 %v3318_v40  ;;  %1691 = vmatpush.msrb.mxu1 %v1690_v19  ;;  %v1463_v14 = vld [vmem:[%s4536_s5 + $0x28] sm:$0xff] }
 0x11b   :  { %v595_v20 = vpop.f32.mrf.mxu0  ;;  %v677_v51 = vpop.f32.mrf.mxu1 }
 0x11c   :  { %v596_v24 = vadd.f32 %v595_v20, %v3376_v38  ;;  %v826_v33 = vpop.f32.mrf.mxu2 }
 0x11d   :  { %v974_v5 = vpop.f32.mrf.mxu3 }
 0x11e   :  { %v678_v41 = vadd.f32 %v677_v51, %v596_v24  ;;  %1063 = vmatmul.f32.gmra.mxu0 %v3328_v45  ;;  %1166 = vmatmul.f32.gmra.mxu1 %v4564_v58  ;;  %v3640_v45 = vand.u32 4294901760, %v1463_v14  ;;  %v4565_v24 = vand.u32 4294901760, %v3346_v61 }
 0x120   :  { %v827_v40 = vadd.f32 %v826_v33, %v678_v41  ;;  %1286 = vmatmul.f32.gmra.mxu2 %v3333_v54  ;;  %1532 = vmatpush.msrb.mxu0 %v3640_v45 }
 0x121   :  { %1919 = vmatpush.msrb.mxu3 %v3640_v45 }
 0x122   :  { %v3633_v46 = vadd.f32 %v974_v5, %v827_v40  ;;  %1370 = vmatmul.f32.gmra.mxu3 %v3333_v54  ;;  %v3647_v54 = vsub.f32 %v1463_v14, %v3640_v45 }
 0x123   :  { %v599_v17 = vpop.f32.mrf.mxu0  ;;  %v681_v7 = vpop.f32.mrf.mxu1 }
 0x124   :  { %v600_v38 = vadd.f32 %v599_v17, %v3394_v63  ;;  %v834_v30 = vpop.f32.mrf.mxu2  ;;  %v4559_v51 = vand.u32 4294901760, %v3647_v54  ;;  %1809 = vmatpush.msrb.mxu2 %v3647_v54 }
 0x125   :  { %v978_v20 = vpop.f32.mrf.mxu3 }
 0x126   :  { %v682_v39 = vadd.f32 %v681_v7, %v600_v38  ;;  %1068 = vmatmul.f32.gmra.mxu0 %v3346_v61  ;;  %1172 = vmatmul.f32.gmra.mxu1 %v4565_v24  ;;  %v1695_v5 = vsub.f32 %v3647_v54, %v4559_v51  ;;  %v4566_v7 = vand.u32 4294901760, %v3364_v22  ;;  %v1462_v24 = vld [vmem:[%s4536_s5 + $0x20] sm:$0xff] }
 0x128   :  { %v835_v63 = vadd.f32 %v834_v30, %v682_v39  ;;  %1290 = vmatmul.f32.gmra.mxu2 %v3351_v8  ;;  %v1696_v17 = vand.u32 4294901760, %v1695_v5  ;;  %v4567_v5 = vand.u32 4294901760, %v3382_v43 }
 0x12a   :  { %v3652_v33 = vadd.f32 %v978_v20, %v835_v63  ;;  %1374 = vmatmul.f32.gmra.mxu3 %v3351_v8  ;;  %1697 = vmatpush.msrb.mxu1 %v1696_v17 }
 0x12b   :  { %v603_v61 = vpop.f32.mrf.mxu0  ;;  %v685_v41 = vpop.f32.mrf.mxu1 }
 0x12c   :  { %v604_v19 = vadd.f32 %v603_v61, %v3412_v26  ;;  %v842_v58 = vpop.f32.mrf.mxu2 }
 0x12d   :  { %v982_v40 = vpop.f32.mrf.mxu3 }
 0x12e   :  { %v686_v38 = vadd.f32 %v685_v41, %v604_v19  ;;  %1073 = vmatmul.f32.gmra.mxu0 %v3364_v22  ;;  %1178 = vmatmul.f32.gmra.mxu1 %v4566_v7  ;;  %v3671_v22 = vand.u32 4294901760, %v1462_v24 }
 0x130   :  { %v843_v8 = vadd.f32 %v842_v58, %v686_v38  ;;  %1294 = vmatmul.f32.gmra.mxu2 %v3369_v15  ;;  %1534 = vmatpush.msrb.mxu0 %v3671_v22 }
 0x131   :  { %1921 = vmatpush.msrb.mxu3 %v3671_v22 }
 0x132   :  { %v3664_v30 = vadd.f32 %v982_v40, %v843_v8  ;;  %1378 = vmatmul.f32.gmra.mxu3 %v3369_v15  ;;  %v3678_v15 = vsub.f32 %v1462_v24, %v3671_v22 }
 0x133   :  { %v607_v14 = vpop.f32.mrf.mxu0  ;;  %v689_v20 = vpop.f32.mrf.mxu1 }
 0x134   :  { %v608_v26 = vadd.f32 %v607_v14, %v3430_v50  ;;  %v850_v39 = vpop.f32.mrf.mxu2  ;;  %v4558_v19 = vand.u32 4294901760, %v3678_v15  ;;  %1812 = vmatpush.msrb.mxu2 %v3678_v15 }
 0x135   :  { %v986_v63 = vpop.f32.mrf.mxu3 }
 0x136   :  { %v690_v61 = vadd.f32 %v689_v20, %v608_v26  ;;  %1078 = vmatmul.f32.gmra.mxu0 %v3382_v43  ;;  %1184 = vmatmul.f32.gmra.mxu1 %v4567_v5  ;;  %v1701_v58 = vsub.f32 %v3678_v15, %v4558_v19  ;;  %v4568_v26 = vand.u32 4294901760, %v3400_v9 }
 0x138   :  { %v851_v50 = vadd.f32 %v850_v39, %v690_v61  ;;  %1298 = vmatmul.f32.gmra.mxu2 %v3387_v56  ;;  %v1702_v8 = vand.u32 4294901760, %v1701_v58  ;;  %v1461_v61 = vld [vmem:[%s4536_s5 + $0x18] sm:$0xff] }
 0x13a   :  { %v3683_v41 = vadd.f32 %v986_v63, %v851_v50  ;;  %1382 = vmatmul.f32.gmra.mxu3 %v3387_v56  ;;  %1703 = vmatpush.msrb.mxu1 %v1702_v8 }
 0x13b   :  { %v611_v43 = vpop.f32.mrf.mxu0  ;;  %v693_v17 = vpop.f32.mrf.mxu1 }
 0x13c   :  { %v612_v40 = vadd.f32 %v611_v43, %v3448_v28  ;;  %v858_v38 = vpop.f32.mrf.mxu2  ;;  %v4569_v43 = vand.u32 4294901760, %v3418_v29 }
 0x13d   :  { %v990_v7 = vpop.f32.mrf.mxu3 }
 0x13e   :  { %v694_v14 = vadd.f32 %v693_v17, %v612_v40  ;;  %1083 = vmatmul.f32.gmra.mxu0 %v3400_v9  ;;  %1190 = vmatmul.f32.gmra.mxu1 %v4568_v26  ;;  %v3702_v9 = vand.u32 4294901760, %v1461_v61  ;;  %v4570_v26 = vand.u32 4294901760, %v3436_v60 }
 0x140   :  { %v859_v56 = vadd.f32 %v858_v38, %v694_v14  ;;  %1302 = vmatmul.f32.gmra.mxu2 %v3405_v23  ;;  %1536 = vmatpush.msrb.mxu0 %v3702_v9 }
 0x141   :  { %1923 = vmatpush.msrb.mxu3 %v3702_v9 }
 0x142   :  { %v3695_v20 = vadd.f32 %v990_v7, %v859_v56  ;;  %1386 = vmatmul.f32.gmra.mxu3 %v3405_v23  ;;  %v3709_v23 = vsub.f32 %v1461_v61, %v3702_v9 }
 0x143   :  { %v615_v39 = vpop.f32.mrf.mxu0  ;;  %v697_v24 = vpop.f32.mrf.mxu1 }
 0x144   :  { %v616_v28 = vadd.f32 %v615_v39, %v3466_v55  ;;  %v866_v63 = vpop.f32.mrf.mxu2  ;;  %v4557_v58 = vand.u32 4294901760, %v3709_v23  ;;  %1815 = vmatpush.msrb.mxu2 %v3709_v23 }
 0x145   :  { %v994_v5 = vpop.f32.mrf.mxu3 }
 0x146   :  { %v698_v50 = vadd.f32 %v697_v24, %v616_v28  ;;  %1088 = vmatmul.f32.gmra.mxu0 %v3418_v29  ;;  %1196 = vmatmul.f32.gmra.mxu1 %v4569_v43  ;;  %v1707_v17 = vsub.f32 %v3709_v23, %v4557_v58  ;;  %v1460_v28 = vld [vmem:[%s4536_s5 + $0x10] sm:$0xff] }
 0x148   :  { %v867_v55 = vadd.f32 %v866_v63, %v698_v50  ;;  %1306 = vmatmul.f32.gmra.mxu2 %v3423_v48  ;;  %v1708_v14 = vand.u32 4294901760, %v1707_v17  ;;  %v3745_v63 = vand.u32 4294901760, %v1460_v28 }
 0x14a   :  { %v3714_v40 = vadd.f32 %v994_v5, %v867_v55  ;;  %1390 = vmatmul.f32.gmra.mxu3 %v3423_v48  ;;  %1709 = vmatpush.msrb.mxu1 %v1708_v14  ;;  %v4572_v14 = vand.u32 4294901760, %v3472_v35 }
 0x14b   :  { %v3718_v29 = vpop.f32.mrf.mxu0  ;;  %v3723_v38 = vpop.f32.mrf.mxu1  ;;  %1538 = vmatpush.msrb.mxu0 %v3745_v63  ;;  %1925 = vmatpush.msrb.mxu3 %v3745_v63 }
 0x14c   :  { %v3725_v7 = vpop.f32.mrf.mxu2 }
 0x14d   :  { %v3727_v8 = vpop.f32.mrf.mxu3 }
 0x14e   :  { %1093 = vmatmul.f32.gmra.mxu0 %v3436_v60  ;;  %1202 = vmatmul.f32.gmra.mxu1 %v4570_v26  ;;  %v4571_v60 = vand.u32 4294901760, %v3454_v34 }
 0x150   :  { %1310 = vmatmul.f32.gmra.mxu2 %v3441_v13 }
 0x152   :  { %1394 = vmatmul.f32.gmra.mxu3 %v3441_v13  ;;  %v3752_v13 = vsub.f32 %v1460_v28, %v3745_v63 }
 0x153   :  { %v3734_v48 = vpop.f32.mrf.mxu0  ;;  %v3736_v56 = vpop.f32.mrf.mxu1 }
 0x154   :  { %v3738_v39 = vpop.f32.mrf.mxu2  ;;  %v4556_v61 = vand.u32 4294901760, %v3752_v13  ;;  %1818 = vmatpush.msrb.mxu2 %v3752_v13 }
 0x155   :  { %v3743_v24 = vpop.f32.mrf.mxu3 }
 0x156   :  { %1098 = vmatmul.f32.gmra.mxu0 %v3454_v34  ;;  %1208 = vmatmul.f32.gmra.mxu1 %v4571_v60  ;;  %v1713_v34 = vsub.f32 %v3752_v13, %v4556_v61  ;;  %v1459_v60 = vld [vmem:[%s4536_s5 + $0x8] sm:$0xff] }
 0x157   :  { %v3786_v61 = vand.u32 4294901760, %v1459_v60 }
 0x158   :  { %1314 = vmatmul.f32.gmra.mxu2 %v3459_v57  ;;  %v1714_v17 = vand.u32 4294901760, %v1713_v34 }
 0x159   :  { %1540 = vmatpush.msrb.mxu0 %v3786_v61  ;;  %1927 = vmatpush.msrb.mxu3 %v3786_v61 }
 0x15a   :  { %1398 = vmatmul.f32.gmra.mxu3 %v3459_v57  ;;  %1715 = vmatpush.msrb.mxu1 %v1714_v17 }
 0x15b   :  { %v3759_v5 = vpop.f32.mrf.mxu0  ;;  %v3764_v50 = vpop.f32.mrf.mxu1 }
 0x15c   :  { %v3766_v43 = vpop.f32.mrf.mxu2 }
 0x15d   :  { %v3768_v55 = vpop.f32.mrf.mxu3 }
 0x15e   :  { %1103 = vmatmul.f32.gmra.mxu0 %v3472_v35  ;;  %1214 = vmatmul.f32.gmra.mxu1 %v4572_v14  ;;  %v4573_v35 = vand.u32 4294901760, %v3490_v1 }
 0x160   :  { %1318 = vmatmul.f32.gmra.mxu2 %v3477_v42 }
 0x162   :  { %1402 = vmatmul.f32.gmra.mxu3 %v3477_v42  ;;  %v1717_v42 = vsub.f32 %v1459_v60, %v3786_v61  ;;  %v4574_v60 = vand.u32 4294901760, %v3508_v2 }
 0x163   :  { %v3775_v57 = vpop.f32.mrf.mxu0  ;;  %v3777_v26 = vpop.f32.mrf.mxu1 }
 0x164   :  { %v3779_v28 = vpop.f32.mrf.mxu2  ;;  %v1718_v17 = vand.u32 4294901760, %v1717_v42  ;;  %1821 = vmatpush.msrb.mxu2 %v1717_v42 }
 0x165   :  { %v3784_v34 = vpop.f32.mrf.mxu3 }
 0x166   :  { %1108 = vmatmul.f32.gmra.mxu0 %v3490_v1  ;;  %1220 = vmatmul.f32.gmra.mxu1 %v4573_v35  ;;  %v1719_v58 = vsub.f32 %v1717_v42, %v1718_v17 }
 0x168   :  { %1322 = vmatmul.f32.gmra.mxu2 %v3495_v36  ;;  %v1720_v35 = vand.u32 4294901760, %v1719_v58  ;;  %v4575_v58 = vand.u32 4294901760, %v3585_v3  ;;  %v4579_v3 = vand.u32 4294901760, %v3647_v54 }
 0x16a   :  { %1406 = vmatmul.f32.gmra.mxu3 %v3495_v36  ;;  %v1458_v36 = vld [vmem:[%s4536_s5] sm:$0xff]  ;;  %1721 = vmatpush.msrb.mxu1 %v1720_v35 }
 0x16b   :  { %v3796_v14 = vpop.f32.mrf.mxu0  ;;  %v3798_v19 = vpop.f32.mrf.mxu1  ;;  %v1541_v53 = vand.u32 4294901760, %v1458_v36 }
 0x16c   :  { %v3800_v51 = vpop.f32.mrf.mxu2 }
 0x16d   :  { %v3802_v1 = vpop.f32.mrf.mxu3  ;;  %1542 = vmatpush.msrb.mxu0 %v1541_v53  ;;  %v1723_v42 = vsub.f32 %v1458_v36, %v1541_v53  ;;  %1929 = vmatpush.msrb.mxu3 %v1541_v53  ;;  %v4578_v36 = vand.u32 4294901760, %v3526_v6 }
 0x16e   :  { %1113 = vmatmul.f32.gmra.mxu0 %v3508_v2  ;;  %1226 = vmatmul.f32.gmra.mxu1 %v4574_v60 }
 0x16f   :  { %2038 = vmatpush.msra.mxu0 %v4575_v58  ;;  %v1724_v21 = vand.u32 4294901760, %v1723_v42  ;;  %1824 = vmatpush.msrb.mxu2 %v1723_v42 }
 0x170   :  { %1326 = vmatmul.f32.gmra.mxu2 %v3513_v12 }
 0x171   :  { %2042 = vmatpush.msra.mxu0 %v4577_v59  ;;  %v4581_v59 = vand.u32 4294901760, %v3709_v23 }
 0x172   :  { %1410 = vmatmul.f32.gmra.mxu3 %v3513_v12  ;;  %v1725_v12 = vsub.f32 %v1723_v42, %v1724_v21 }
 0x173   :  { %v3812_v16 = vpop.f32.mrf.mxu0  ;;  %v3816_v2 = vpop.f32.mrf.mxu1  ;;  %2046 = vmatpush.msra.mxu0 %v4579_v3 }
 0x174   :  { %v3818_v60 = vpop.f32.mrf.mxu2  ;;  %v1726_v58 = vand.u32 4294901760, %v1725_v12  ;;  %v3872_v12 = vld [vmem:[%s4537_s4] ss:$0 sm:$0xff] }
 0x175   :  { %4576 = vst [vmem:[#allocation4_spill] sm:$0xff] %v3818_v60  ;;  %v3820_v35 = vpop.f32.mrf.mxu3  ;;  %v4580_v60 = vand.u32 4294901760, %v3678_v15  ;;  %v4582_v15 = vand.u32 4294901760, %v3752_v13 }
 0x176   :  { %1118 = vmatmul.f32.gmra.mxu0 %v3526_v6  ;;  %1232 = vmatmul.f32.gmra.mxu1 %v4578_v36 }
 0x177   :  { %2050 = vmatpush.msra.mxu0 %v4580_v60  ;;  %1727 = vmatpush.msrb.mxu1 %v1726_v58 }
 0x178   :  { %1330 = vmatmul.f32.gmra.mxu2 %v3531_v11 }
 0x179   :  { %2141 = vmatpush.msra.mxu1 %v3579_v32  ;;  %2054 = vmatpush.msra.mxu0 %v4581_v59 }
 0x17a   :  { %1414 = vmatmul.f32.gmra.mxu3 %v3531_v11  ;;  %v4583_v11 = vand.u32 4294901760, %v3544_v27 }
 0x17b   :  { %v3833_v31 = vpop.f32.mrf.mxu0  ;;  %v3838_v6 = vpop.f32.mrf.mxu1  ;;  %2143 = vmatpush.msra.mxu1 %v3609_v25  ;;  %2058 = vmatpush.msra.mxu0 %v4582_v15 }
 0x17c   :  { %v3840_v54 = vpop.f32.mrf.mxu2 }
 0x17d   :  { %v3842_v42 = vpop.f32.mrf.mxu3  ;;  %2062 = vmatpush.msra.mxu0 %v1718_v17  ;;  %2145 = vmatpush.msra.mxu1 %v3640_v45 }
 0x17e   :  { %1123 = vmatmul.f32.gmra.mxu0 %v3544_v27  ;;  %1238 = vmatmul.f32.gmra.mxu1 %v4583_v11 }
 0x17f   :  { %2066 = vmatpush.msra.mxu0 %v1724_v21  ;;  %2147 = vmatpush.msra.mxu1 %v3671_v22  ;;  %v4584_v21 = vand.u32 4294901760, %v3559_v37 }
 0x180   :  { %1334 = vmatmul.f32.gmra.mxu2 %v3549_v18 }
 0x181   :  { %2149 = vmatpush.msra.mxu1 %v3702_v9 }
 0x182   :  { %1418 = vmatmul.f32.gmra.mxu3 %v3549_v18 }
 0x183   :  { %v3854_v32 = vpop.f32.mrf.mxu0  ;;  %v3856_v25 = vpop.f32.mrf.mxu1  ;;  %2151 = vmatpush.msra.mxu1 %v3745_v63 }
 0x184   :  { %v3858_v23 = vpop.f32.mrf.mxu2 }
 0x185   :  { %v3861_v27 = vpop.f32.mrf.mxu3  ;;  %2153 = vmatpush.msra.mxu1 %v3786_v61 }
 0x186   :  { %1128 = vmatmul.f32.gmra.mxu0 %v3559_v37  ;;  %1244 = vmatmul.f32.gmra.mxu1 %v4584_v21 }
 0x187   :  { %2155 = vmatpush.msra.mxu1 %v1541_v53 }
 0x18b   :  { %v1054_v18 = vpop.f32.mrf.mxu0  ;;  %v1155_v22 = vpop.f32.mrf.mxu1 }
 0x18c   :  { %v1055_v45 = vadd.f32 %v1054_v18, %v3602_v10  ;;  %v1275_v13 = vpop.f32.mrf.mxu2 }
 0x18d   :  { %v1359_v17 = vpop.f32.mrf.mxu3 }
 0x18e   :  { %v1156_v60 = vadd.f32 %v1155_v22, %v1055_v45 }
 0x190   :  { %v1276_v9 = vadd.f32 %v1275_v13, %v1156_v60 }
 0x192   :  { %v1360_v63 = vadd.f32 %v1359_v17, %v1276_v9 }
 0x193   :  { %v1059_v36 = vpop.f32.mrf.mxu0  ;;  %v1161_v53 = vpop.f32.mrf.mxu1 }
 0x194   :  { %v1426_v37 = vadd.f32 %v3872_v12, %v1360_v63  ;;  %v1060_v61 = vadd.f32 %v1059_v36, %v3621_v49  ;;  %v1279_v3 = vpop.f32.mrf.mxu2 }
 0x195   :  { %v1363_v10 = vpop.f32.mrf.mxu3 }
 0x196   :  { %v1442_v58 = vmax.f32 %v1426_v37, 0.0  ;;  %v1162_v59 = vadd.f32 %v1161_v53, %v1060_v61 }
 0x198   :  { %v1472_v15 = vsel %vm1470_vm4, %v1442_v58, 0  ;;  %v1280_v11 = vadd.f32 %v1279_v3, %v1162_v59 }
 0x199   :  { %v3877_v21 = vand.u32 4294901760, %v1472_v15 }
 0x19a   :  { %v1364_v18 = vadd.f32 %v1363_v10, %v1280_v11 }
 0x19b   :  { %v1544_v45 = vsub.f32 %v1472_v15, %v3877_v21  ;;  %v1064_v22 = vpop.f32.mrf.mxu0  ;;  %1729 = vmatmul.f32.vlgmr.msrb.gmra.mxu1 %v3877_v21  ;;  %v1167_v17 = vpop.f32.mrf.mxu1 }
 0x19c   :  { %v1427_v13 = vadd.f32 %v3872_v12, %v1364_v18  ;;  %v1065_v49 = vadd.f32 %v1064_v22, %v3633_v46  ;;  %v1283_v60 = vpop.f32.mrf.mxu2 }
 0x19d   :  { %v1545_v9 = vand.u32 4294901760, %v1544_v45  ;;  %1827 = vmatmul.f32.vlgmr.msrb.gmra.mxu2 %v1544_v45  ;;  %v1367_v63 = vpop.f32.mrf.mxu3 }
 0x19e   :  { %v1443_v36 = vmax.f32 %v1427_v13, 0.0  ;;  %v1168_v37 = vadd.f32 %v1167_v17, %v1065_v49 }
 0x19f   :  { %v1546_v61 = vsub.f32 %v1544_v45, %v1545_v9  ;;  %1933 = vmatmul.f32.vlgmr.msrb.gmra.mxu3 %v1545_v9 }
 0x1a0   :  { %v1475_v53 = vsel %vm1470_vm4, %v1443_v36, 0  ;;  %v1284_v3 = vadd.f32 %v1283_v60, %v1168_v37 }
 0x1a1   :  { %v3884_v10 = vand.u32 4294901760, %v1475_v53  ;;  %v1547_v58 = vand.u32 4294901760, %v1546_v61 }
 0x1a2   :  { %v1368_v59 = vadd.f32 %v1367_v63, %v1284_v3 }
 0x1a3   :  { %v1069_v15 = vpop.f32.mrf.mxu0  ;;  %1548 = vmatmul.f32.vlgmr.msrb.gmra.mxu0 %v1547_v58  ;;  %1733 = vmatmul.f32.gmra.mxu1 %v3884_v10  ;;  %v1552_v46 = vsub.f32 %v1475_v53, %v3884_v10  ;;  %v1173_v22 = vpop.f32.mrf.mxu1 }
 0x1a4   :  { %v1428_v11 = vadd.f32 %v3872_v12, %v1368_v59  ;;  %v1070_v18 = vadd.f32 %v1069_v15, %v3652_v33  ;;  %v1287_v45 = vpop.f32.mrf.mxu2 }
 0x1a5   :  { %1832 = vmatmul.f32.gmra.mxu2 %v1552_v46  ;;  %v1553_v13 = vand.u32 4294901760, %v1552_v46  ;;  %v1371_v49 = vpop.f32.mrf.mxu3 }
 0x1a6   :  { %v1444_v17 = vmax.f32 %v1428_v11, 0.0  ;;  %v1174_v60 = vadd.f32 %v1173_v22, %v1070_v18 }
 0x1a7   :  { %1939 = vmatmul.f32.gmra.mxu3 %v1553_v13  ;;  %v1554_v9 = vsub.f32 %v1552_v46, %v1553_v13 }
 0x1a8   :  { %v1478_v63 = vsel %vm1470_vm4, %v1444_v17, 0  ;;  %v1288_v36 = vadd.f32 %v1287_v45, %v1174_v60 }
 0x1a9   :  { %v3891_v37 = vand.u32 4294901760, %v1478_v63  ;;  %v1555_v61 = vand.u32 4294901760, %v1554_v9 }
 0x1aa   :  { %v1372_v53 = vadd.f32 %v1371_v49, %v1288_v36 }
 0x1ab   :  { %v1074_v3 = vpop.f32.mrf.mxu0  ;;  %1556 = vmatmul.f32.gmra.mxu0 %v1555_v61  ;;  %1737 = vmatmul.f32.gmra.mxu1 %v3891_v37  ;;  %v1560_v33 = vsub.f32 %v1478_v63, %v3891_v37  ;;  %v1179_v15 = vpop.f32.mrf.mxu1 }
 0x1ac   :  { %v1429_v58 = vadd.f32 %v3872_v12, %v1372_v53  ;;  %v1075_v59 = vadd.f32 %v1074_v3, %v3664_v30  ;;  %v1291_v11 = vpop.f32.mrf.mxu2 }
 0x1ad   :  { %1837 = vmatmul.f32.gmra.mxu2 %v1560_v33  ;;  %v1561_v46 = vand.u32 4294901760, %v1560_v33  ;;  %v1375_v18 = vpop.f32.mrf.mxu3 }
 0x1ae   :  { %v1445_v22 = vmax.f32 %v1429_v58, 0.0  ;;  %v1180_v45 = vadd.f32 %v1179_v15, %v1075_v59 }
 0x1af   :  { %1945 = vmatmul.f32.gmra.mxu3 %v1561_v46  ;;  %v1562_v13 = vsub.f32 %v1560_v33, %v1561_v46 }
 0x1b0   :  { %v1481_v49 = vsel %vm1470_vm4, %v1445_v22, 0  ;;  %v1292_v17 = vadd.f32 %v1291_v11, %v1180_v45 }
 0x1b1   :  { %v3898_v60 = vand.u32 4294901760, %v1481_v49  ;;  %v1563_v9 = vand.u32 4294901760, %v1562_v13 }
 0x1b2   :  { %v1376_v63 = vadd.f32 %v1375_v18, %v1292_v17 }
 0x1b3   :  { %v1079_v36 = vpop.f32.mrf.mxu0  ;;  %1564 = vmatmul.f32.gmra.mxu0 %v1563_v9  ;;  %1741 = vmatmul.f32.gmra.mxu1 %v3898_v60  ;;  %v1568_v30 = vsub.f32 %v1481_v49, %v3898_v60  ;;  %v1185_v3 = vpop.f32.mrf.mxu1 }
 0x1b4   :  { %v1430_v61 = vadd.f32 %v3872_v12, %v1376_v63  ;;  %v1080_v53 = vadd.f32 %v1079_v36, %v3683_v41  ;;  %v1295_v58 = vpop.f32.mrf.mxu2 }
 0x1b5   :  { %1842 = vmatmul.f32.gmra.mxu2 %v1568_v30  ;;  %v1569_v33 = vand.u32 4294901760, %v1568_v30  ;;  %v1379_v59 = vpop.f32.mrf.mxu3 }
 0x1b6   :  { %v1446_v15 = vmax.f32 %v1430_v61, 0.0  ;;  %v1186_v11 = vadd.f32 %v1185_v3, %v1080_v53  ;;  %v620_v3 = vadd.f32 %v3718_v29, %v3484_v47 }
 0x1b7   :  { %1951 = vmatmul.f32.gmra.mxu3 %v1569_v33  ;;  %v1570_v46 = vsub.f32 %v1568_v30, %v1569_v33 }
 0x1b8   :  { %v1484_v18 = vsel %vm1470_vm4, %v1446_v15, 0  ;;  %v1296_v22 = vadd.f32 %v1295_v58, %v1186_v11 }
 0x1b9   :  { %v3905_v45 = vand.u32 4294901760, %v1484_v18  ;;  %v1571_v13 = vand.u32 4294901760, %v1570_v46 }
 0x1ba   :  { %v1380_v49 = vadd.f32 %v1379_v59, %v1296_v22 }
 0x1bb   :  { %v1084_v17 = vpop.f32.mrf.mxu0  ;;  %1572 = vmatmul.f32.gmra.mxu0 %v1571_v13  ;;  %1745 = vmatmul.f32.gmra.mxu1 %v3905_v45  ;;  %v1576_v41 = vsub.f32 %v1484_v18, %v3905_v45  ;;  %v1191_v36 = vpop.f32.mrf.mxu1 }
 0x1bc   :  { %v1431_v9 = vadd.f32 %v3872_v12, %v1380_v49  ;;  %v1085_v63 = vadd.f32 %v1084_v17, %v3695_v20  ;;  %v1299_v61 = vpop.f32.mrf.mxu2  ;;  %v702_v20 = vadd.f32 %v3723_v38, %v620_v3  ;;  %v624_v38 = vadd.f32 %v3734_v48, %v3502_v44 }
 0x1bd   :  { %1847 = vmatmul.f32.gmra.mxu2 %v1576_v41  ;;  %v1577_v30 = vand.u32 4294901760, %v1576_v41  ;;  %v1383_v53 = vpop.f32.mrf.mxu3 }
 0x1be   :  { %v1447_v58 = vmax.f32 %v1431_v9, 0.0  ;;  %v1192_v33 = vadd.f32 %v1191_v36, %v1085_v63  ;;  %v875_v36 = vadd.f32 %v3725_v7, %v702_v20 }
 0x1bf   :  { %1957 = vmatmul.f32.gmra.mxu3 %v1577_v30  ;;  %v1578_v59 = vsub.f32 %v1576_v41, %v1577_v30 }
 0x1c0   :  { %v1487_v15 = vsel %vm1470_vm4, %v1447_v58, 0  ;;  %v1300_v11 = vadd.f32 %v1299_v61, %v1192_v33 }
 0x1c1   :  { %v3914_v46 = vand.u32 4294901760, %v1487_v15  ;;  %v1579_v18 = vand.u32 4294901760, %v1578_v59  ;;  %v999_v59 = vadd.f32 %v3727_v8, %v875_v36  ;;  %v628_v8 = vadd.f32 %v3759_v5, %v3520_v4 }
 0x1c2   :  { %v1384_v22 = vadd.f32 %v1383_v53, %v1300_v11 }
 0x1c3   :  { %v1089_v13 = vpop.f32.mrf.mxu0  ;;  %1580 = vmatmul.f32.gmra.mxu0 %v1579_v18  ;;  %1749 = vmatmul.f32.gmra.mxu1 %v3914_v46  ;;  %v1584_v49 = vsub.f32 %v1487_v15, %v3914_v46  ;;  %v1197_v17 = vpop.f32.mrf.mxu1  ;;  %v706_v15 = vadd.f32 %v3736_v56, %v624_v38 }
 0x1c4   :  { %v1432_v47 = vadd.f32 %v3872_v12, %v1384_v22  ;;  %v1090_v29 = vadd.f32 %v1089_v13, %v3714_v40  ;;  %v1303_v41 = vpop.f32.mrf.mxu2 }
 0x1c5   :  { %1852 = vmatmul.f32.gmra.mxu2 %v1584_v49  ;;  %v1585_v9 = vand.u32 4294901760, %v1584_v49  ;;  %v1387_v63 = vpop.f32.mrf.mxu3 }
 0x1c6   :  { %v1448_v61 = vmax.f32 %v1432_v47, 0.0  ;;  %v1198_v30 = vadd.f32 %v1197_v17, %v1090_v29  ;;  %v883_v47 = vadd.f32 %v3738_v39, %v706_v15 }
 0x1c7   :  { %1963 = vmatmul.f32.gmra.mxu3 %v1585_v9  ;;  %v1586_v53 = vsub.f32 %v1584_v49, %v1585_v9 }
 0x1c8   :  { %v1490_v3 = vsel %vm1470_vm4, %v1448_v61, 0  ;;  %v1304_v58 = vadd.f32 %v1303_v41, %v1198_v30  ;;  %v1003_v38 = vadd.f32 %v3743_v24, %v883_v47  ;;  %v710_v61 = vadd.f32 %v3764_v50, %v628_v8 }
 0x1c9   :  { %v3925_v33 = vand.u32 4294901760, %v1490_v3  ;;  %v1587_v40 = vand.u32 4294901760, %v1586_v53  ;;  %v632_v24 = vadd.f32 %v3775_v57, %v3538_v0 }
 0x1ca   :  { %v1388_v11 = vadd.f32 %v1387_v63, %v1304_v58  ;;  %v891_v15 = vadd.f32 %v3766_v43, %v710_v61 }
 0x1cb   :  { %v1094_v18 = vpop.f32.mrf.mxu0  ;;  %1588 = vmatmul.f32.gmra.mxu0 %v1587_v40  ;;  %1753 = vmatmul.f32.gmra.mxu1 %v3925_v33  ;;  %v1592_v44 = vsub.f32 %v1490_v3, %v3925_v33  ;;  %v1203_v20 = vpop.f32.mrf.mxu1 }
 0x1cc   :  { %v1433_v7 = vadd.f32 %v3872_v12, %v1388_v11  ;;  %v1095_v48 = vadd.f32 %v1094_v18, %v999_v59  ;;  %v1307_v22 = vpop.f32.mrf.mxu2 }
 0x1cd   :  { %1857 = vmatmul.f32.gmra.mxu2 %v1592_v44  ;;  %v1593_v13 = vand.u32 4294901760, %v1592_v44  ;;  %v1391_v49 = vpop.f32.mrf.mxu3 }
 0x1ce   :  { %v1449_v56 = vmax.f32 %v1433_v7, 0.0  ;;  %v1204_v29 = vadd.f32 %v1203_v20, %v1095_v48 }
 0x1cf   :  { %1969 = vmatmul.f32.gmra.mxu3 %v1593_v13  ;;  %v1594_v17 = vsub.f32 %v1592_v44, %v1593_v13  ;;  %v714_v13 = vadd.f32 %v3777_v26, %v632_v24 }
 0x1d0   :  { %v1493_v41 = vsel %vm1470_vm4, %v1449_v56, 0  ;;  %v1308_v9 = vadd.f32 %v1307_v22, %v1204_v29  ;;  %v1007_v22 = vadd.f32 %v3768_v55, %v891_v15  ;;  %v636_v55 = vadd.f32 %v3796_v14, %v3553_v62 }
 0x1d1   :  { %v3936_v63 = vand.u32 4294901760, %v1493_v41  ;;  %v1595_v36 = vand.u32 4294901760, %v1594_v17 }
 0x1d2   :  { %v1392_v30 = vadd.f32 %v1391_v49, %v1308_v9 }
 0x1d3   :  { %v1099_v53 = vpop.f32.mrf.mxu0  ;;  %1596 = vmatmul.f32.gmra.mxu0 %v1595_v36  ;;  %1757 = vmatmul.f32.gmra.mxu1 %v3936_v63  ;;  %v1600_v4 = vsub.f32 %v1493_v41, %v3936_v63  ;;  %v1209_v3 = vpop.f32.mrf.mxu1  ;;  %v899_v41 = vadd.f32 %v3779_v28, %v714_v13 }
 0x1d4   :  { %v1434_v39 = vadd.f32 %v3872_v12, %v1392_v30  ;;  %v1100_v5 = vadd.f32 %v1099_v53, %v1003_v38  ;;  %v1311_v58 = vpop.f32.mrf.mxu2 }
 0x1d5   :  { %1862 = vmatmul.f32.gmra.mxu2 %v1600_v4  ;;  %v1601_v40 = vand.u32 4294901760, %v1600_v4  ;;  %v1395_v59 = vpop.f32.mrf.mxu3 }
 0x1d6   :  { %v1450_v50 = vmax.f32 %v1434_v39, 0.0  ;;  %v1210_v11 = vadd.f32 %v1209_v3, %v1100_v5  ;;  %v718_v39 = vadd.f32 %v3798_v19, %v636_v55  ;;  %v640_v19 = vadd.f32 %v3812_v16, %v3565_v52 }
 0x1d7   :  { %1975 = vmatmul.f32.gmra.mxu3 %v1601_v40  ;;  %v1602_v18 = vsub.f32 %v1600_v4, %v1601_v40  ;;  %v1011_v4 = vadd.f32 %v3784_v34, %v899_v41 }
 0x1d8   :  { %v1496_v44 = vsel %vm1470_vm4, %v1450_v50, 0  ;;  %v1312_v7 = vadd.f32 %v1311_v58, %v1210_v11  ;;  %v907_v24 = vadd.f32 %v3800_v51, %v718_v39  ;;  %v722_v13 = vadd.f32 %v3816_v2, %v640_v19 }
 0x1d9   :  { %v3947_v48 = vand.u32 4294901760, %v1496_v44  ;;  %v1603_v20 = vand.u32 4294901760, %v1602_v18 }
 0x1da   :  { %v1396_v49 = vadd.f32 %v1395_v59, %v1312_v7 }
 0x1db   :  { %v1104_v47 = vpop.f32.mrf.mxu0  ;;  %1604 = vmatmul.f32.gmra.mxu0 %v1603_v20  ;;  %1761 = vmatmul.f32.gmra.mxu1 %v3947_v48  ;;  %v1608_v0 = vsub.f32 %v1496_v44, %v3947_v48  ;;  %v1215_v8 = vpop.f32.mrf.mxu1 }
 0x1dc   :  { %v1435_v43 = vadd.f32 %v3872_v12, %v1396_v49  ;;  %v1105_v57 = vadd.f32 %v1104_v47, %v1007_v22  ;;  %v1315_v56 = vpop.f32.mrf.mxu2  ;;  %v1015_v22 = vadd.f32 %v3802_v1, %v907_v24  ;;  %v4586_v1 = vld [vmem:[#allocation2_spill] sm:$0xff] }
 0x1dd   :  { %1867 = vmatmul.f32.gmra.mxu2 %v1608_v0  ;;  %v1609_v29 = vand.u32 4294901760, %v1608_v0  ;;  %v1399_v17 = vpop.f32.mrf.mxu3  ;;  %v644_v2 = vadd.f32 %v3833_v31, %v4586_v1 }
 0x1de   :  { %v1451_v26 = vmax.f32 %v1435_v43, 0.0  ;;  %v1216_v9 = vadd.f32 %v1215_v8, %v1105_v57 }
 0x1df   :  { %1981 = vmatmul.f32.gmra.mxu3 %v1609_v29  ;;  %v1610_v36 = vsub.f32 %v1608_v0, %v1609_v29 }
 0x1e0   :  { %v1499_v38 = vsel %vm1470_vm4, %v1451_v26, 0  ;;  %v1316_v61 = vadd.f32 %v1315_v56, %v1216_v9  ;;  %v4585_v56 = vld [vmem:[#allocation4_spill] sm:$0xff] }
 0x1e1   :  { %v3958_v30 = vand.u32 4294901760, %v1499_v38  ;;  %v1611_v53 = vand.u32 4294901760, %v1610_v36  ;;  %v915_v29 = vadd.f32 %v4585_v56, %v722_v13 }
 0x1e2   :  { %v1400_v5 = vadd.f32 %v1399_v17, %v1316_v61 }
 0x1e3   :  { %v1109_v3 = vpop.f32.mrf.mxu0  ;;  %1612 = vmatmul.f32.gmra.mxu0 %v1611_v53  ;;  %1765 = vmatmul.f32.gmra.mxu1 %v3958_v30  ;;  %v1616_v62 = vsub.f32 %v1499_v38, %v3958_v30  ;;  %v1221_v58 = vpop.f32.mrf.mxu1  ;;  %v1019_v61 = vadd.f32 %v3820_v35, %v915_v29  ;;  %v726_v53 = vadd.f32 %v3838_v6, %v644_v2  ;;  %v4587_v35 = vld [vmem:[#allocation3_spill] sm:$0xff] }
 0x1e4   :  { %v1436_v28 = vadd.f32 %v3872_v12, %v1400_v5  ;;  %v1110_v14 = vadd.f32 %v1109_v3, %v1011_v4  ;;  %v1319_v40 = vpop.f32.mrf.mxu2  ;;  %v648_v6 = vadd.f32 %v3854_v32, %v4587_v35 }
 0x1e5   :  { %1872 = vmatmul.f32.gmra.mxu2 %v1616_v62  ;;  %v1617_v59 = vand.u32 4294901760, %v1616_v62  ;;  %v1403_v15 = vpop.f32.mrf.mxu3 }
 0x1e6   :  { %v1452_v34 = vmax.f32 %v1436_v28, 0.0  ;;  %v1222_v50 = vadd.f32 %v1221_v58, %v1110_v14 }
 0x1e7   :  { %1987 = vmatmul.f32.gmra.mxu3 %v1617_v59  ;;  %v1618_v11 = vsub.f32 %v1616_v62, %v1617_v59 }
 0x1e8   :  { %v1502_v18 = vsel %vm1470_vm4, %v1452_v34, 0  ;;  %v1320_v44 = vadd.f32 %v1319_v40, %v1222_v50  ;;  %v923_v40 = vadd.f32 %v3840_v54, %v726_v53 }
 0x1e9   :  { %v3969_v7 = vand.u32 4294901760, %v1502_v18  ;;  %v1619_v20 = vand.u32 4294901760, %v1618_v11 }
 0x1ea   :  { %v1404_v49 = vadd.f32 %v1403_v15, %v1320_v44  ;;  %v730_v44 = vadd.f32 %v3856_v25, %v648_v6 }
 0x1eb   :  { %v1114_v47 = vpop.f32.mrf.mxu0  ;;  %1620 = vmatmul.f32.gmra.mxu0 %v1619_v20  ;;  %1769 = vmatmul.f32.gmra.mxu1 %v3969_v7  ;;  %v1624_v52 = vsub.f32 %v1502_v18, %v3969_v7  ;;  %v1227_v0 = vpop.f32.mrf.mxu1  ;;  %v1023_v18 = vadd.f32 %v3842_v42, %v923_v40 }
 0x1ec   :  { %v1437_v16 = vadd.f32 %v3872_v12, %v1404_v49  ;;  %v1115_v51 = vadd.f32 %v1114_v47, %v1015_v22  ;;  %v1323_v43 = vpop.f32.mrf.mxu2 }
 0x1ed   :  { %1877 = vmatmul.f32.gmra.mxu2 %v1624_v52  ;;  %v1625_v57 = vand.u32 4294901760, %v1624_v52  ;;  %v1407_v8 = vpop.f32.mrf.mxu3 }
 0x1ee   :  { %v1453_v17 = vmax.f32 %v1437_v16, 0.0  ;;  %v1228_v41 = vadd.f32 %v1227_v0, %v1115_v51  ;;  %v931_v51 = vadd.f32 %v3858_v23, %v730_v44 }
 0x1ef   :  { %1993 = vmatmul.f32.gmra.mxu3 %v1625_v57  ;;  %v1626_v55 = vsub.f32 %v1624_v52, %v1625_v57 }
 0x1f0   :  { %v1505_v26 = vsel %vm1470_vm4, %v1453_v17, 0  ;;  %v1324_v9 = vadd.f32 %v1323_v43, %v1228_v41  ;;  %v1027_v29 = vadd.f32 %v3861_v27, %v931_v51 }
 0x1f1   :  { %v3980_v36 = vand.u32 4294901760, %v1505_v26  ;;  %v1627_v38 = vand.u32 4294901760, %v1626_v55 }
 0x1f2   :  { %v1408_v4 = vadd.f32 %v1407_v8, %v1324_v9 }
 0x1f3   :  { %v1119_v39 = vpop.f32.mrf.mxu0  ;;  %1628 = vmatmul.f32.gmra.mxu0 %v1627_v38  ;;  %1773 = vmatmul.f32.gmra.mxu1 %v3980_v36  ;;  %v1632_v31 = vsub.f32 %v1505_v26, %v3980_v36  ;;  %v1233_v62 = vpop.f32.mrf.mxu1 }
 0x1f4   :  { %v1438_v5 = vadd.f32 %v3872_v12, %v1408_v4  ;;  %v1120_v3 = vadd.f32 %v1119_v39, %v1019_v61  ;;  %v1327_v28 = vpop.f32.mrf.mxu2 }
 0x1f5   :  { %1882 = vmatmul.f32.gmra.mxu2 %v1632_v31  ;;  %v1633_v14 = vand.u32 4294901760, %v1632_v31  ;;  %v1411_v58 = vpop.f32.mrf.mxu3 }
 0x1f6   :  { %v1454_v59 = vmax.f32 %v1438_v5, 0.0  ;;  %v1234_v15 = vadd.f32 %v1233_v62, %v1120_v3 }
 0x1f7   :  { %1999 = vmatmul.f32.gmra.mxu3 %v1633_v14  ;;  %v1634_v24 = vsub.f32 %v1632_v31, %v1633_v14 }
 0x1f8   :  { %v1508_v19 = vsel %vm1470_vm4, %v1454_v59, 0  ;;  %v1328_v34 = vadd.f32 %v1327_v28, %v1234_v15 }
 0x1f9   :  { %v3991_v50 = vand.u32 4294901760, %v1508_v19  ;;  %v1635_v11 = vand.u32 4294901760, %v1634_v24 }
 0x1fa   :  { %v1412_v20 = vadd.f32 %v1411_v58, %v1328_v34 }
 0x1fb   :  { %v1124_v22 = vpop.f32.mrf.mxu0  ;;  %1636 = vmatmul.f32.gmra.mxu0 %v1635_v11  ;;  %1777 = vmatmul.f32.gmra.mxu1 %v3991_v50  ;;  %v1640_v54 = vsub.f32 %v1508_v19, %v3991_v50  ;;  %v1239_v49 = vpop.f32.mrf.mxu1 }
 0x1fc   :  { %v1439_v32 = vadd.f32 %v3872_v12, %v1412_v20  ;;  %v1125_v13 = vadd.f32 %v1124_v22, %v1023_v18  ;;  %v1331_v47 = vpop.f32.mrf.mxu2 }
 0x1fd   :  { %1887 = vmatmul.f32.gmra.mxu2 %v1640_v54  ;;  %v1641_v52 = vand.u32 4294901760, %v1640_v54  ;;  %v1415_v16 = vpop.f32.mrf.mxu3 }
 0x1fe   :  { %v1455_v42 = vmax.f32 %v1439_v32, 0.0  ;;  %v1240_v0 = vadd.f32 %v1239_v49, %v1125_v13  ;;  %v2243_v49 = vld [vmem:[%s4539_s7 + $0x30] sm:$0xff] }
 0x1ff   :  { %2005 = vmatmul.f32.gmra.mxu3 %v1641_v52  ;;  %v1642_v25 = vsub.f32 %v1640_v54, %v1641_v52 }
 0x200   :  { %v1511_v43 = vsel %vm1470_vm4, %v1455_v42, 0  ;;  %v1332_v57 = vadd.f32 %v1331_v47, %v1240_v0 }
 0x201   :  { %v4000_v8 = vand.u32 4294901760, %v1511_v43  ;;  %v1643_v56 = vand.u32 4294901760, %v1642_v25 }
 0x202   :  { %v1416_v1 = vadd.f32 %v1415_v16, %v1332_v57  ;;  %v4048_v16 = vand.u32 4294901760, %v2243_v49 }
 0x203   :  { %v1129_v2 = vpop.f32.mrf.mxu0  ;;  %1644 = vmatmul.f32.gmra.mxu0 %v1643_v56  ;;  %1781 = vmatmul.f32.gmra.mxu1 %v4000_v8  ;;  %v1648_v17 = vsub.f32 %v1511_v43, %v4000_v8  ;;  %v1245_v55 = vpop.f32.mrf.mxu1 }
 0x204   :  { %v1440_v23 = vadd.f32 %v3872_v12, %v1416_v1  ;;  %v1130_v41 = vadd.f32 %v1129_v2, %v1027_v29  ;;  %v1335_v26 = vpop.f32.mrf.mxu2  ;;  %v4052_v51 = vsub.f32 %v2243_v49, %v4048_v16 }
 0x205   :  { %1892 = vmatmul.f32.gmra.mxu2 %v1648_v17  ;;  %v1649_v9 = vand.u32 4294901760, %v1648_v17  ;;  %v1419_v53 = vpop.f32.mrf.mxu3 }
 0x206   :  { %v1456_v38 = vmax.f32 %v1440_v23, 0.0  ;;  %v1246_v61 = vadd.f32 %v1245_v55, %v1130_v41 }
 0x207   :  { %2011 = vmatmul.f32.gmra.mxu3 %v1649_v9  ;;  %v1650_v4 = vsub.f32 %v1648_v17, %v1649_v9 }
 0x208   :  { %v1514_v27 = vsel %vm1470_vm4, %v1456_v38, 0  ;;  %v1336_v39 = vadd.f32 %v1335_v26, %v1246_v61 }
 0x209   :  { %v4007_v31 = vand.u32 4294901760, %v1514_v27  ;;  %v1651_v5 = vand.u32 4294901760, %v1650_v4 }
 0x20a   :  { %v1420_v3 = vadd.f32 %v1419_v53, %v1336_v39 }
 0x20b   :  { %1652 = vmatmul.f32.gmra.mxu0 %v1651_v5  ;;  %1785 = vmatmul.f32.gmra.mxu1 %v4007_v31  ;;  %v1656_v62 = vsub.f32 %v1514_v27, %v4007_v31 }
 0x20c   :  { %v1441_v28 = vadd.f32 %v3872_v12, %v1420_v3  ;;  %v2244_v12 = vld [vmem:[%s4539_s7 + $0x38] sm:$0xff] }
 0x20d   :  { %1897 = vmatmul.f32.gmra.mxu2 %v1656_v62  ;;  %v1657_v14 = vand.u32 4294901760, %v1656_v62  ;;  %v4022_v11 = vand.u32 4294901760, %v2244_v12 }
 0x20e   :  { %v1457_v58 = vmax.f32 %v1441_v28, 0.0 }
 0x20f   :  { %2017 = vmatmul.f32.gmra.mxu3 %v1657_v14  ;;  %v1658_v40 = vsub.f32 %v1656_v62, %v1657_v14  ;;  %2306 = vmatpush.msra.mxu2 %v4022_v11  ;;  %v4026_v44 = vsub.f32 %v2244_v12, %v4022_v11 }
 0x210   :  { %v1517_v35 = vsel %vm1470_vm4, %v1457_v58, 0  ;;  %2693 = vmatpush.msrb.mxu1 %v4022_v11 }
 0x211   :  { %v4013_v6 = vand.u32 4294901760, %v1517_v35  ;;  %v1659_v59 = vand.u32 4294901760, %v1658_v40  ;;  %v2460_v20 = vand.u32 4294901760, %v4026_v44  ;;  %2581 = vmatpush.msrb.mxu0 %v4026_v44  ;;  %2308 = vmatpush.msra.mxu2 %v4048_v16 }
 0x212   :  { %2695 = vmatpush.msrb.mxu1 %v4048_v16 }
 0x213   :  { %1660 = vmatmul.f32.gmra.mxu0 %v1659_v59  ;;  %1789 = vmatmul.f32.gmra.mxu1 %v4013_v6  ;;  %v1664_v15 = vsub.f32 %v1517_v35, %v4013_v6  ;;  %v2461_v22 = vsub.f32 %v4026_v44, %v2460_v20 }
 0x214   :  { %2584 = vmatpush.msrb.mxu0 %v4052_v51 }
 0x215   :  { %1902 = vmatmul.f32.gmra.mxu2 %v1664_v15  ;;  %v1665_v24 = vand.u32 4294901760, %v1664_v15  ;;  %v2462_v13 = vand.u32 4294901760, %v2461_v22 }
 0x217   :  { %2023 = vmatmul.f32.gmra.mxu3 %v1665_v24  ;;  %v1666_v19 = vsub.f32 %v1664_v15, %v1665_v24 }
 0x218   :  { %v4020_v34 = vpop.f32.mrf.mxu1  ;;  %2463 = vmatpush.msra.mxu3 %v2462_v13  ;;  %v2238_v13 = vld [vmem:[%s4539_s7 + $0x8] sm:$0xff] }
 0x219   :  { %v1667_v18 = vand.u32 4294901760, %v1666_v19 }
 0x21b   :  { %1668 = vmatmul.f32.gmra.mxu0 %v1667_v18  ;;  %2157 = vmatmul.f32.vlgmr.msra.gmra.mxu1 %v3877_v21 }
 0x220   :  { %v4035_v54 = vpop.f32.mrf.mxu0  ;;  %v4037_v32 = vpop.f32.mrf.mxu1 }
 0x223   :  { %2068 = vmatmul.f32.vlgmr.msra.gmra.mxu0 %v3877_v21  ;;  %2161 = vmatmul.f32.gmra.mxu1 %v3884_v10  ;;  %v2466_v21 = vand.u32 4294901760, %v4052_v51 }
 0x225   :  { %v2467_v42 = vsub.f32 %v4052_v51, %v2466_v21 }
 0x227   :  { %v2468_v43 = vand.u32 4294901760, %v2467_v42  ;;  %v2317_v42 = vand.u32 4294901760, %v2238_v13 }
 0x228   :  { %v4044_v47 = vpop.f32.mrf.mxu0  ;;  %v4046_v52 = vpop.f32.mrf.mxu1 }
 0x229   :  { %2469 = vmatpush.msra.mxu3 %v2468_v43  ;;  %v2495_v43 = vsub.f32 %v2238_v13, %v2317_v42 }
 0x22b   :  { %2072 = vmatmul.f32.gmra.mxu0 %v3884_v10  ;;  %2165 = vmatmul.f32.gmra.mxu1 %v3891_v37  ;;  %v2242_v10 = vld [vmem:[%s4539_s7 + $0x28] sm:$0xff] }
 0x22c   :  { %v4075_v29 = vand.u32 4294901760, %v2242_v10 }
 0x22e   :  { %2310 = vmatpush.msra.mxu2 %v4075_v29  ;;  %v4079_v1 = vsub.f32 %v2242_v10, %v4075_v29  ;;  %2697 = vmatpush.msrb.mxu1 %v4075_v29  ;;  %v1828_v10 = vpop.f32.mrf.mxu2 }
 0x230   :  { %v4062_v0 = vpop.f32.mrf.mxu0  ;;  %v4064_v25 = vpop.f32.mrf.mxu1  ;;  %2587 = vmatpush.msrb.mxu0 %v4079_v1 }
 0x233   :  { %2076 = vmatmul.f32.gmra.mxu0 %v3891_v37  ;;  %2169 = vmatmul.f32.gmra.mxu1 %v3898_v60  ;;  %v2472_v37 = vand.u32 4294901760, %v4079_v1 }
 0x235   :  { %v2473_v2 = vsub.f32 %v4079_v1, %v2472_v37 }
 0x237   :  { %v2474_v41 = vand.u32 4294901760, %v2473_v2 }
 0x238   :  { %v4071_v57 = vpop.f32.mrf.mxu0  ;;  %v4073_v56 = vpop.f32.mrf.mxu1 }
 0x239   :  { %2475 = vmatpush.msra.mxu3 %v2474_v41  ;;  %v1934_v41 = vpop.f32.mrf.mxu3 }
 0x23b   :  { %2080 = vmatmul.f32.gmra.mxu0 %v3898_v60  ;;  %2173 = vmatmul.f32.gmra.mxu1 %v3905_v45  ;;  %v2241_v60 = vld [vmem:[%s4539_s7 + $0x20] sm:$0xff] }
 0x23c   :  { %v4102_v9 = vand.u32 4294901760, %v2241_v60 }
 0x23e   :  { %2312 = vmatpush.msra.mxu2 %v4102_v9  ;;  %v4106_v38 = vsub.f32 %v2241_v60, %v4102_v9  ;;  %2699 = vmatpush.msrb.mxu1 %v4102_v9  ;;  %v2237_v60 = vld [vmem:[%s4539_s7] sm:$0xff] }
 0x240   :  { %v4089_v17 = vpop.f32.mrf.mxu0  ;;  %v4091_v23 = vpop.f32.mrf.mxu1  ;;  %2590 = vmatpush.msrb.mxu0 %v4106_v38 }
 0x243   :  { %2084 = vmatmul.f32.gmra.mxu0 %v3905_v45  ;;  %2177 = vmatmul.f32.gmra.mxu1 %v3914_v46  ;;  %v2478_v45 = vand.u32 4294901760, %v4106_v38 }
 0x245   :  { %v2479_v61 = vsub.f32 %v4106_v38, %v2478_v45 }
 0x247   :  { %v2480_v27 = vand.u32 4294901760, %v2479_v61 }
 0x248   :  { %v4098_v55 = vpop.f32.mrf.mxu0  ;;  %v4100_v26 = vpop.f32.mrf.mxu1 }
 0x249   :  { %2481 = vmatpush.msra.mxu3 %v2480_v27 }
 0x24b   :  { %2088 = vmatmul.f32.gmra.mxu0 %v3914_v46  ;;  %2181 = vmatmul.f32.gmra.mxu1 %v3925_v33  ;;  %v2240_v46 = vld [vmem:[%s4539_s7 + $0x18] sm:$0xff] }
 0x24c   :  { %v4129_v3 = vand.u32 4294901760, %v2240_v46 }
 0x24e   :  { %2314 = vmatpush.msra.mxu2 %v4129_v3  ;;  %v4133_v62 = vsub.f32 %v2240_v46, %v4129_v3  ;;  %2701 = vmatpush.msrb.mxu1 %v4129_v3 }
 0x250   :  { %v4116_v53 = vpop.f32.mrf.mxu0  ;;  %v4118_v4 = vpop.f32.mrf.mxu1  ;;  %2593 = vmatpush.msrb.mxu0 %v4133_v62 }
 0x253   :  { %2092 = vmatmul.f32.gmra.mxu0 %v3925_v33  ;;  %2185 = vmatmul.f32.gmra.mxu1 %v3936_v63  ;;  %v2484_v33 = vand.u32 4294901760, %v4133_v62 }
 0x255   :  { %v2485_v28 = vsub.f32 %v4133_v62, %v2484_v33 }
 0x257   :  { %v2486_v40 = vand.u32 4294901760, %v2485_v28  ;;  %v2319_v28 = vand.u32 4294901760, %v2237_v60 }
 0x258   :  { %v4125_v39 = vpop.f32.mrf.mxu0  ;;  %v4127_v5 = vpop.f32.mrf.mxu1 }
 0x259   :  { %2487 = vmatpush.msra.mxu3 %v2486_v40  ;;  %v2501_v40 = vsub.f32 %v2237_v60, %v2319_v28 }
 0x25b   :  { %2096 = vmatmul.f32.gmra.mxu0 %v3936_v63  ;;  %2189 = vmatmul.f32.gmra.mxu1 %v3947_v48  ;;  %v2239_v63 = vld [vmem:[%s4539_s7 + $0x10] sm:$0xff] }
 0x25c   :  { %v4156_v15 = vand.u32 4294901760, %v2239_v63 }
 0x25e   :  { %2316 = vmatpush.msra.mxu2 %v4156_v15  ;;  %v2489_v24 = vsub.f32 %v2239_v63, %v4156_v15  ;;  %2703 = vmatpush.msrb.mxu1 %v4156_v15  ;;  %v1833_v63 = vpop.f32.mrf.mxu2 }
 0x260   :  { %v4143_v14 = vpop.f32.mrf.mxu0  ;;  %v4145_v58 = vpop.f32.mrf.mxu1  ;;  %2596 = vmatpush.msrb.mxu0 %v2489_v24  ;;  %2318 = vmatpush.msra.mxu2 %v2317_v42 }
 0x261   :  { %2705 = vmatpush.msrb.mxu1 %v2317_v42 }
 0x262   :  { %2599 = vmatpush.msrb.mxu0 %v2495_v43  ;;  %2320 = vmatpush.msra.mxu2 %v2319_v28 }
 0x263   :  { %2100 = vmatmul.f32.gmra.mxu0 %v3947_v48  ;;  %2193 = vmatmul.f32.gmra.mxu1 %v3958_v30  ;;  %v2490_v48 = vand.u32 4294901760, %v2489_v24 }
 0x264   :  { %2602 = vmatpush.msrb.mxu0 %v2501_v40  ;;  %2707 = vmatpush.msrb.mxu1 %v2319_v28 }
 0x265   :  { %v2491_v19 = vsub.f32 %v2489_v24, %v2490_v48  ;;  %2816 = vmatpush.msrb.mxu2 %v2460_v20 }
 0x266   :  { %v1838_v44 = vpop.f32.mrf.mxu2 }
 0x267   :  { %v2492_v22 = vand.u32 4294901760, %v2491_v19  ;;  %2820 = vmatpush.msrb.mxu2 %v2466_v21 }
 0x268   :  { %v4152_v35 = vpop.f32.mrf.mxu0  ;;  %v4154_v59 = vpop.f32.mrf.mxu1 }
 0x269   :  { %2493 = vmatpush.msra.mxu3 %v2492_v22  ;;  %2824 = vmatpush.msrb.mxu2 %v2472_v37 }
 0x26b   :  { %2104 = vmatmul.f32.gmra.mxu0 %v3958_v30  ;;  %2197 = vmatmul.f32.gmra.mxu1 %v3969_v7 }
 0x26c   :  { %2828 = vmatpush.msrb.mxu2 %v2478_v45 }
 0x26e   :  { %2832 = vmatpush.msrb.mxu2 %v2484_v33  ;;  %v1843_v1 = vpop.f32.mrf.mxu2 }
 0x270   :  { %v4163_v12 = vpop.f32.mrf.mxu0  ;;  %v4165_v18 = vpop.f32.mrf.mxu1  ;;  %2836 = vmatpush.msrb.mxu2 %v2490_v48 }
 0x273   :  { %2108 = vmatmul.f32.gmra.mxu0 %v3969_v7  ;;  %2201 = vmatmul.f32.gmra.mxu1 %v3980_v36  ;;  %v2496_v7 = vand.u32 4294901760, %v2495_v43 }
 0x275   :  { %v2497_v2 = vsub.f32 %v2495_v43, %v2496_v7  ;;  %v1940_v43 = vpop.f32.mrf.mxu3  ;;  %2840 = vmatpush.msrb.mxu2 %v2496_v7 }
 0x277   :  { %v2498_v46 = vand.u32 4294901760, %v2497_v2 }
 0x278   :  { %v4172_v30 = vpop.f32.mrf.mxu0  ;;  %v4174_v49 = vpop.f32.mrf.mxu1 }
 0x279   :  { %2499 = vmatpush.msra.mxu3 %v2498_v46 }
 0x27b   :  { %2112 = vmatmul.f32.gmra.mxu0 %v3980_v36  ;;  %2205 = vmatmul.f32.gmra.mxu1 %v3991_v50  ;;  %v2502_v36 = vand.u32 4294901760, %v2501_v40 }
 0x27d   :  { %v2503_v24 = vsub.f32 %v2501_v40, %v2502_v36  ;;  %2844 = vmatpush.msrb.mxu2 %v2502_v36 }
 0x27f   :  { %v2504_v13 = vand.u32 4294901760, %v2503_v24 }
 0x280   :  { %v4181_v61 = vpop.f32.mrf.mxu0  ;;  %v4183_v27 = vpop.f32.mrf.mxu1 }
 0x281   :  { %2505 = vmatpush.msra.mxu3 %v2504_v13 }
 0x283   :  { %2116 = vmatmul.f32.gmra.mxu0 %v3991_v50  ;;  %2209 = vmatmul.f32.gmra.mxu1 %v4000_v8  ;;  %v4208_v50 = vld [vmem:[%s4538_s6] ss:$0 sm:$0xff] }
 0x284   :  { %2919 = vmatpush.msrb.mxu3 %v4022_v11  ;;  %v1550_v11 = vadd.f32 %v4208_v50, %v4035_v54  ;;  %v1558_v54 = vadd.f32 %v4208_v50, %v4044_v47  ;;  %v1566_v33 = vadd.f32 %v4208_v50, %v4062_v0  ;;  %v1574_v0 = vadd.f32 %v4208_v50, %v4071_v57 }
 0x286   :  { %2921 = vmatpush.msrb.mxu3 %v4048_v16  ;;  %v1946_v16 = vpop.f32.mrf.mxu3  ;;  %v1731_v51 = vadd.f32 %v4020_v34, %v1550_v11  ;;  %v1735_v38 = vadd.f32 %v4037_v32, %v1558_v54  ;;  %v1739_v7 = vadd.f32 %v4046_v52, %v1566_v33 }
 0x288   :  { %v4191_v19 = vpop.f32.mrf.mxu0  ;;  %v4193_v22 = vpop.f32.mrf.mxu1  ;;  %2923 = vmatpush.msrb.mxu3 %v4075_v29  ;;  %v1829_v37 = vadd.f32 %v1828_v10, %v1731_v51  ;;  %v1834_v34 = vadd.f32 %v1833_v63, %v1735_v38 }
 0x28a   :  { %2925 = vmatpush.msrb.mxu3 %v4102_v9  ;;  %v1935_v9 = vadd.f32 %v1934_v41, %v1829_v37  ;;  %v1941_v10 = vadd.f32 %v1940_v43, %v1834_v34  ;;  %v1743_v43 = vadd.f32 %v4064_v25, %v1574_v0 }
 0x28b   :  { %2120 = vmatmul.f32.gmra.mxu0 %v4000_v8  ;;  %2213 = vmatmul.f32.gmra.mxu1 %v4007_v31 }
 0x28c   :  { %2927 = vmatpush.msrb.mxu3 %v4129_v3  ;;  %v1844_v38 = vadd.f32 %v1843_v1, %v1743_v43 }
 0x28e   :  { %2929 = vmatpush.msrb.mxu3 %v4156_v15  ;;  %v1848_v15 = vpop.f32.mrf.mxu2 }
 0x290   :  { %v4210_v20 = vpop.f32.mrf.mxu0  ;;  %v4212_v8 = vpop.f32.mrf.mxu1  ;;  %2931 = vmatpush.msrb.mxu3 %v2317_v42 }
 0x292   :  { %2933 = vmatpush.msrb.mxu3 %v2319_v28  ;;  %v1839_v28 = vadd.f32 %v1838_v44, %v1739_v7 }
 0x293   :  { %2124 = vmatmul.f32.gmra.mxu0 %v4007_v31  ;;  %2217 = vmatmul.f32.gmra.mxu1 %v4013_v6  ;;  %v1952_v31 = vpop.f32.mrf.mxu3 }
 0x294   :  { %v1947_v13 = vadd.f32 %v1946_v16, %v1839_v28  ;;  %v1582_v16 = vadd.f32 %v4208_v50, %v4089_v17  ;;  %v1953_v34 = vadd.f32 %v1952_v31, %v1844_v38  ;;  %v1590_v31 = vadd.f32 %v4208_v50, %v4098_v55 }
 0x296   :  { %v1853_v52 = vpop.f32.mrf.mxu2  ;;  %v1747_v33 = vadd.f32 %v4073_v56, %v1582_v16 }
 0x298   :  { %v4223_v21 = vpop.f32.mrf.mxu0  ;;  %v2158_v29 = vpop.f32.mrf.mxu1 }
 0x29b   :  { %2128 = vmatmul.f32.gmra.mxu0 %v4013_v6  ;;  %v1958_v47 = vpop.f32.mrf.mxu3 }
 0x2a0   :  { %v2069_v45 = vpop.f32.mrf.mxu0  ;;  %v2162_v3 = vpop.f32.mrf.mxu1 }
 0x2a1   :  { %v2070_v62 = vadd.f32 %v2069_v45, %v1935_v9 }
 0x2a3   :  { %v2159_v48 = vadd.f32 %v2158_v29, %v2070_v62  ;;  %v1964_v54 = vpop.f32.mrf.mxu3 }
 0x2a5   :  { %v2221_v42 = vmax.f32 %v2159_v48, 0.0  ;;  %v1858_v48 = vpop.f32.mrf.mxu2 }
 0x2a7   :  { %v2250_v6 = vsel %vm1470_vm4, %v2221_v42, 0 }
 0x2a8   :  { %v4233_v2 = vand.u32 4294901760, %v2250_v6  ;;  %v2073_v41 = vpop.f32.mrf.mxu0  ;;  %v2166_v32 = vpop.f32.mrf.mxu1 }
 0x2a9   :  { %v2074_v60 = vadd.f32 %v2073_v41, %v1941_v10 }
 0x2aa   :  { %v2322_v46 = vsub.f32 %v2250_v6, %v4233_v2  ;;  %2507 = vmatmul.f32.vlgmr.msra.gmra.mxu3 %v4233_v2 }
 0x2ab   :  { %v2163_v40 = vadd.f32 %v2162_v3, %v2074_v60  ;;  %v1970_v60 = vpop.f32.mrf.mxu3 }
 0x2ac   :  { %v2323_v36 = vand.u32 4294901760, %v2322_v46  ;;  %2605 = vmatmul.f32.vlgmr.msrb.gmra.mxu0 %v2322_v46 }
 0x2ad   :  { %v2222_v63 = vmax.f32 %v2163_v40, 0.0 }
 0x2ae   :  { %v2324_v24 = vsub.f32 %v2322_v46, %v2323_v36  ;;  %2711 = vmatmul.f32.vlgmr.msrb.gmra.mxu1 %v2323_v36  ;;  %v1751_v36 = vadd.f32 %v4091_v23, %v1590_v31 }
 0x2af   :  { %v2253_v11 = vsel %vm1470_vm4, %v2222_v63, 0 }
 0x2b0   :  { %v4241_v51 = vand.u32 4294901760, %v2253_v11  ;;  %v2077_v29 = vpop.f32.mrf.mxu0  ;;  %v2170_v37 = vpop.f32.mrf.mxu1  ;;  %v2325_v44 = vand.u32 4294901760, %v2324_v24 }
 0x2b1   :  { %v2078_v9 = vadd.f32 %v2077_v29, %v1947_v13 }
 0x2b2   :  { %2326 = vmatmul.f32.vlgmr.msra.gmra.mxu2 %v2325_v44  ;;  %2511 = vmatmul.f32.gmra.mxu3 %v4241_v51  ;;  %v2330_v57 = vsub.f32 %v2253_v11, %v4241_v51  ;;  %v1863_v11 = vpop.f32.mrf.mxu2 }
 0x2b3   :  { %v2167_v45 = vadd.f32 %v2166_v32, %v2078_v9  ;;  %v1849_v32 = vadd.f32 %v1848_v15, %v1747_v33  ;;  %v1976_v9 = vpop.f32.mrf.mxu3 }
 0x2b4   :  { %2610 = vmatmul.f32.gmra.mxu0 %v2330_v57  ;;  %v2331_v25 = vand.u32 4294901760, %v2330_v57 }
 0x2b5   :  { %v2223_v3 = vmax.f32 %v2167_v45, 0.0  ;;  %v1959_v40 = vadd.f32 %v1958_v47, %v1849_v32  ;;  %v1598_v47 = vadd.f32 %v4208_v50, %v4116_v53 }
 0x2b6   :  { %2717 = vmatmul.f32.gmra.mxu1 %v2331_v25  ;;  %v2332_v62 = vsub.f32 %v2330_v57, %v2331_v25 }
 0x2b7   :  { %v2256_v42 = vsel %vm1470_vm4, %v2223_v3, 0  ;;  %v1755_v45 = vadd.f32 %v4100_v26, %v1598_v47 }
 0x2b8   :  { %v4249_v10 = vand.u32 4294901760, %v2256_v42  ;;  %v2081_v7 = vpop.f32.mrf.mxu0  ;;  %v2174_v6 = vpop.f32.mrf.mxu1  ;;  %v2333_v1 = vand.u32 4294901760, %v2332_v62 }
 0x2b9   :  { %v2082_v41 = vadd.f32 %v2081_v7, %v1953_v34  ;;  %v1606_v7 = vadd.f32 %v4208_v50, %v4125_v39 }
 0x2ba   :  { %2334 = vmatmul.f32.gmra.mxu2 %v2333_v1  ;;  %2515 = vmatmul.f32.gmra.mxu3 %v4249_v10  ;;  %v2338_v17 = vsub.f32 %v2256_v42, %v4249_v10  ;;  %v1859_v42 = vadd.f32 %v1858_v48, %v1755_v45 }
 0x2bb   :  { %v2171_v56 = vadd.f32 %v2170_v37, %v2082_v41  ;;  %v1854_v37 = vadd.f32 %v1853_v52, %v1751_v36  ;;  %v1759_v32 = vadd.f32 %v4118_v4, %v1606_v7  ;;  %v1982_v31 = vpop.f32.mrf.mxu3 }
 0x2bc   :  { %2615 = vmatmul.f32.gmra.mxu0 %v2338_v17  ;;  %v2339_v46 = vand.u32 4294901760, %v2338_v17 }
 0x2bd   :  { %v2224_v28 = vmax.f32 %v2171_v56, 0.0  ;;  %v1965_v16 = vadd.f32 %v1964_v54, %v1854_v37  ;;  %v1868_v54 = vpop.f32.mrf.mxu2  ;;  %v1864_v36 = vadd.f32 %v1863_v11, %v1759_v32 }
 0x2be   :  { %2723 = vmatmul.f32.gmra.mxu1 %v2339_v46  ;;  %v2340_v0 = vsub.f32 %v2338_v17, %v2339_v46  ;;  %v1971_v17 = vadd.f32 %v1970_v60, %v1859_v42  ;;  %v1614_v60 = vadd.f32 %v4208_v50, %v4143_v14 }
 0x2bf   :  { %v2259_v63 = vsel %vm1470_vm4, %v2224_v28, 0 }
 0x2c0   :  { %v4257_v24 = vand.u32 4294901760, %v2259_v63  ;;  %v2085_v13 = vpop.f32.mrf.mxu0  ;;  %v2178_v43 = vpop.f32.mrf.mxu1  ;;  %v2341_v15 = vand.u32 4294901760, %v2340_v0 }
 0x2c1   :  { %v2086_v29 = vadd.f32 %v2085_v13, %v1959_v40 }
 0x2c2   :  { %2342 = vmatmul.f32.gmra.mxu2 %v2341_v15  ;;  %2519 = vmatmul.f32.gmra.mxu3 %v4257_v24  ;;  %v2346_v55 = vsub.f32 %v2259_v63, %v4257_v24 }
 0x2c3   :  { %v2175_v44 = vadd.f32 %v2174_v6, %v2086_v29  ;;  %v1977_v29 = vadd.f32 %v1976_v9, %v1864_v36  ;;  %v1622_v9 = vadd.f32 %v4208_v50, %v4152_v35 }
 0x2c4   :  { %2620 = vmatmul.f32.gmra.mxu0 %v2346_v55  ;;  %v2347_v23 = vand.u32 4294901760, %v2346_v55 }
 0x2c5   :  { %v2225_v57 = vmax.f32 %v2175_v44, 0.0  ;;  %v1873_v13 = vpop.f32.mrf.mxu2 }
 0x2c6   :  { %2729 = vmatmul.f32.gmra.mxu1 %v2347_v23  ;;  %v2348_v38 = vsub.f32 %v2346_v55, %v2347_v23  ;;  %v1763_v55 = vadd.f32 %v4127_v5, %v1614_v60 }
 0x2c7   :  { %v2262_v25 = vsel %vm1470_vm4, %v2225_v57, 0 }
 0x2c8   :  { %v4265_v3 = vand.u32 4294901760, %v2262_v25  ;;  %v2089_v62 = vpop.f32.mrf.mxu0  ;;  %v2182_v34 = vpop.f32.mrf.mxu1  ;;  %v2349_v52 = vand.u32 4294901760, %v2348_v38 }
 0x2c9   :  { %v2090_v33 = vadd.f32 %v2089_v62, %v1965_v16  ;;  %v1988_v38 = vpop.f32.mrf.mxu3  ;;  %v1869_v16 = vadd.f32 %v1868_v54, %v1763_v55 }
 0x2ca   :  { %2350 = vmatmul.f32.gmra.mxu2 %v2349_v52  ;;  %2523 = vmatmul.f32.gmra.mxu3 %v4265_v3  ;;  %v2354_v53 = vsub.f32 %v2262_v25, %v4265_v3  ;;  %v1767_v52 = vadd.f32 %v4145_v58, %v1622_v9 }
 0x2cb   :  { %v2179_v6 = vadd.f32 %v2178_v43, %v2090_v33 }
 0x2cc   :  { %2625 = vmatmul.f32.gmra.mxu0 %v2354_v53  ;;  %v2355_v26 = vand.u32 4294901760, %v2354_v53 }
 0x2cd   :  { %v2226_v1 = vmax.f32 %v2179_v6, 0.0  ;;  %v1878_v33 = vpop.f32.mrf.mxu2 }
 0x2ce   :  { %2735 = vmatmul.f32.gmra.mxu1 %v2355_v26  ;;  %v2356_v41 = vsub.f32 %v2354_v53, %v2355_v26 }
 0x2cf   :  { %v2265_v56 = vsel %vm1470_vm4, %v2226_v1, 0  ;;  %v1874_v1 = vadd.f32 %v1873_v13, %v1767_v52 }
 0x2d0   :  { %v4273_v46 = vand.u32 4294901760, %v2265_v56  ;;  %v2093_v28 = vpop.f32.mrf.mxu0  ;;  %v2186_v48 = vpop.f32.mrf.mxu1  ;;  %v2357_v0 = vand.u32 4294901760, %v2356_v41  ;;  %v1630_v41 = vadd.f32 %v4208_v50, %v4163_v12 }
 0x2d1   :  { %v2094_v40 = vadd.f32 %v2093_v28, %v1971_v17  ;;  %v1994_v58 = vpop.f32.mrf.mxu3  ;;  %v1989_v28 = vadd.f32 %v1988_v38, %v1874_v1 }
 0x2d2   :  { %2358 = vmatmul.f32.gmra.mxu2 %v2357_v0  ;;  %2527 = vmatmul.f32.gmra.mxu3 %v4273_v46  ;;  %v2362_v39 = vsub.f32 %v2265_v56, %v4273_v46 }
 0x2d3   :  { %v2183_v63 = vadd.f32 %v2182_v34, %v2094_v40  ;;  %v1983_v34 = vadd.f32 %v1982_v31, %v1869_v16 }
 0x2d4   :  { %2630 = vmatmul.f32.gmra.mxu0 %v2362_v39  ;;  %v2363_v4 = vand.u32 4294901760, %v2362_v39 }
 0x2d5   :  { %v2227_v43 = vmax.f32 %v2183_v63, 0.0 }
 0x2d6   :  { %2741 = vmatmul.f32.gmra.mxu1 %v2363_v4  ;;  %v2364_v15 = vsub.f32 %v2362_v39, %v2363_v4  ;;  %v1883_v4 = vpop.f32.mrf.mxu2 }
 0x2d7   :  { %v2268_v37 = vsel %vm1470_vm4, %v2227_v43, 0  ;;  %v1638_v43 = vadd.f32 %v4208_v50, %v4172_v30 }
 0x2d8   :  { %v4281_v47 = vand.u32 4294901760, %v2268_v37  ;;  %v2097_v44 = vpop.f32.mrf.mxu0  ;;  %v2190_v23 = vpop.f32.mrf.mxu1  ;;  %v2365_v11 = vand.u32 4294901760, %v2364_v15 }
 0x2d9   :  { %v2098_v57 = vadd.f32 %v2097_v44, %v1977_v29  ;;  %v2000_v55 = vpop.f32.mrf.mxu3 }
 0x2da   :  { %2366 = vmatmul.f32.gmra.mxu2 %v2365_v11  ;;  %2531 = vmatmul.f32.gmra.mxu3 %v4281_v47  ;;  %v2370_v14 = vsub.f32 %v2268_v37, %v4281_v47 }
 0x2db   :  { %v2187_v45 = vadd.f32 %v2186_v48, %v2098_v57  ;;  %v1771_v48 = vadd.f32 %v4154_v59, %v1630_v41 }
 0x2dc   :  { %2635 = vmatmul.f32.gmra.mxu0 %v2370_v14  ;;  %v2371_v5 = vand.u32 4294901760, %v2370_v14 }
 0x2dd   :  { %v2228_v25 = vmax.f32 %v2187_v45, 0.0  ;;  %v1879_v13 = vadd.f32 %v1878_v33, %v1771_v48 }
 0x2de   :  { %2747 = vmatmul.f32.gmra.mxu1 %v2371_v5  ;;  %v2372_v62 = vsub.f32 %v2370_v14, %v2371_v5  ;;  %v1646_v5 = vadd.f32 %v4208_v50, %v4181_v61 }
 0x2df   :  { %v2271_v53 = vsel %vm1470_vm4, %v2228_v25, 0  ;;  %v1995_v44 = vadd.f32 %v1994_v58, %v1879_v13 }
 0x2e0   :  { %v4289_v42 = vand.u32 4294901760, %v2271_v53  ;;  %v2101_v7 = vpop.f32.mrf.mxu0  ;;  %v2194_v6 = vpop.f32.mrf.mxu1  ;;  %v2373_v54 = vand.u32 4294901760, %v2372_v62 }
 0x2e1   :  { %v2102_v26 = vadd.f32 %v2101_v7, %v1983_v34  ;;  %v1888_v62 = vpop.f32.mrf.mxu2 }
 0x2e2   :  { %2374 = vmatmul.f32.gmra.mxu2 %v2373_v54  ;;  %2535 = vmatmul.f32.gmra.mxu3 %v4289_v42  ;;  %v2378_v35 = vsub.f32 %v2271_v53, %v4289_v42  ;;  %v1779_v53 = vadd.f32 %v4174_v49, %v1646_v5 }
 0x2e3   :  { %v2191_v17 = vadd.f32 %v2190_v23, %v2102_v26  ;;  %v1775_v23 = vadd.f32 %v4165_v18, %v1638_v43  ;;  %v1662_v43 = vadd.f32 %v4208_v50, %v4210_v20 }
 0x2e4   :  { %2640 = vmatmul.f32.gmra.mxu0 %v2378_v35  ;;  %v2379_v32 = vand.u32 4294901760, %v2378_v35  ;;  %v1889_v41 = vadd.f32 %v1888_v62, %v1779_v53 }
 0x2e5   :  { %v2229_v31 = vmax.f32 %v2191_v17, 0.0  ;;  %v1884_v45 = vadd.f32 %v1883_v4, %v1775_v23  ;;  %v1654_v17 = vadd.f32 %v4208_v50, %v4191_v19 }
 0x2e6   :  { %2753 = vmatmul.f32.gmra.mxu1 %v2379_v32  ;;  %v2380_v56 = vsub.f32 %v2378_v35, %v2379_v32 }
 0x2e7   :  { %v2274_v0 = vsel %vm1470_vm4, %v2229_v31, 0  ;;  %v2001_v33 = vadd.f32 %v2000_v55, %v1884_v45  ;;  %v1670_v45 = vadd.f32 %v4208_v50, %v4223_v21 }
 0x2e8   :  { %v4297_v40 = vand.u32 4294901760, %v2274_v0  ;;  %v2105_v39 = vpop.f32.mrf.mxu0  ;;  %v2198_v36 = vpop.f32.mrf.mxu1  ;;  %v2381_v60 = vand.u32 4294901760, %v2380_v56 }
 0x2e9   :  { %v2106_v63 = vadd.f32 %v2105_v39, %v1989_v28  ;;  %v1893_v56 = vpop.f32.mrf.mxu2 }
 0x2ea   :  { %2382 = vmatmul.f32.gmra.mxu2 %v2381_v60  ;;  %2539 = vmatmul.f32.gmra.mxu3 %v4297_v40  ;;  %v2386_v12 = vsub.f32 %v2274_v0, %v4297_v40  ;;  %v1783_v0 = vadd.f32 %v4183_v27, %v1654_v17 }
 0x2eb   :  { %v2195_v15 = vadd.f32 %v2194_v6, %v2106_v63  ;;  %v2006_v6 = vpop.f32.mrf.mxu3 }
 0x2ec   :  { %2645 = vmatmul.f32.gmra.mxu0 %v2386_v12  ;;  %v2387_v59 = vand.u32 4294901760, %v2386_v12  ;;  %v2007_v48 = vadd.f32 %v2006_v6, %v1889_v41  ;;  %v1894_v13 = vadd.f32 %v1893_v56, %v1783_v0 }
 0x2ed   :  { %v2230_v29 = vmax.f32 %v2195_v15, 0.0 }
 0x2ee   :  { %2759 = vmatmul.f32.gmra.mxu1 %v2387_v59  ;;  %v2388_v37 = vsub.f32 %v2386_v12, %v2387_v59 }
 0x2ef   :  { %v2277_v11 = vsel %vm1470_vm4, %v2230_v29, 0 }
 0x2f0   :  { %v4305_v57 = vand.u32 4294901760, %v2277_v11  ;;  %v2109_v38 = vpop.f32.mrf.mxu0  ;;  %v2389_v14 = vand.u32 4294901760, %v2388_v37  ;;  %v2202_v9 = vpop.f32.mrf.mxu1 }
 0x2f1   :  { %v2110_v16 = vadd.f32 %v2109_v38, %v1995_v44  ;;  %v1787_v44 = vadd.f32 %v4193_v22, %v1662_v43 }
 0x2f2   :  { %2390 = vmatmul.f32.gmra.mxu2 %v2389_v14  ;;  %2543 = vmatmul.f32.gmra.mxu3 %v4305_v57  ;;  %v2394_v30 = vsub.f32 %v2277_v11, %v4305_v57  ;;  %v1898_v11 = vpop.f32.mrf.mxu2 }
 0x2f3   :  { %v2199_v25 = vadd.f32 %v2198_v36, %v2110_v16  ;;  %v2012_v12 = vpop.f32.mrf.mxu3 }
 0x2f4   :  { %2650 = vmatmul.f32.gmra.mxu0 %v2394_v30  ;;  %v2395_v18 = vand.u32 4294901760, %v2394_v30  ;;  %v2013_v37 = vadd.f32 %v2012_v12, %v1894_v13 }
 0x2f5   :  { %v2231_v34 = vmax.f32 %v2199_v25, 0.0 }
 0x2f6   :  { %2765 = vmatmul.f32.gmra.mxu1 %v2395_v18  ;;  %v2396_v52 = vsub.f32 %v2394_v30, %v2395_v18  ;;  %v1899_v30 = vadd.f32 %v1898_v11, %v1787_v44 }
 0x2f7   :  { %v2280_v7 = vsel %vm1470_vm4, %v2231_v34, 0 }
 0x2f8   :  { %v4313_v54 = vand.u32 4294901760, %v2280_v7  ;;  %v2113_v26 = vpop.f32.mrf.mxu0  ;;  %v2397_v35 = vand.u32 4294901760, %v2396_v52  ;;  %v2206_v32 = vpop.f32.mrf.mxu1  ;;  %v1791_v52 = vadd.f32 %v4212_v8, %v1670_v45 }
 0x2f9   :  { %v2114_v1 = vadd.f32 %v2113_v26, %v2001_v33 }
 0x2fa   :  { %2398 = vmatmul.f32.gmra.mxu2 %v2397_v35  ;;  %2547 = vmatmul.f32.gmra.mxu3 %v4313_v54  ;;  %v2402_v61 = vsub.f32 %v2280_v7, %v4313_v54 }
 0x2fb   :  { %v2203_v58 = vadd.f32 %v2202_v9, %v2114_v1  ;;  %v2018_v25 = vpop.f32.mrf.mxu3  ;;  %v1903_v1 = vpop.f32.mrf.mxu2 }
 0x2fc   :  { %2655 = vmatmul.f32.gmra.mxu0 %v2402_v61  ;;  %v2403_v49 = vand.u32 4294901760, %v2402_v61  ;;  %v2019_v34 = vadd.f32 %v2018_v25, %v1899_v30  ;;  %v1904_v21 = vadd.f32 %v1903_v1, %v1791_v52 }
 0x2fd   :  { %v2232_v31 = vmax.f32 %v2203_v58, 0.0 }
 0x2fe   :  { %2771 = vmatmul.f32.gmra.mxu1 %v2403_v49  ;;  %v2404_v28 = vsub.f32 %v2402_v61, %v2403_v49 }
 0x2ff   :  { %v2283_v39 = vsel %vm1470_vm4, %v2232_v31, 0 }
 0x300   :  { %v4321_v36 = vand.u32 4294901760, %v2283_v39  ;;  %v2117_v60 = vpop.f32.mrf.mxu0  ;;  %v2405_v63 = vand.u32 4294901760, %v2404_v28  ;;  %v2210_v29 = vpop.f32.mrf.mxu1 }
 0x301   :  { %v2118_v4 = vadd.f32 %v2117_v60, %v2007_v48 }
 0x302   :  { %2406 = vmatmul.f32.gmra.mxu2 %v2405_v63  ;;  %2551 = vmatmul.f32.gmra.mxu3 %v4321_v36  ;;  %v2410_v19 = vsub.f32 %v2283_v39, %v4321_v36 }
 0x303   :  { %v2207_v15 = vadd.f32 %v2206_v32, %v2118_v4  ;;  %v2024_v8 = vpop.f32.mrf.mxu3 }
 0x304   :  { %2660 = vmatmul.f32.gmra.mxu0 %v2410_v19  ;;  %v2411_v27 = vand.u32 4294901760, %v2410_v19  ;;  %v2025_v32 = vadd.f32 %v2024_v8, %v1904_v21 }
 0x305   :  { %v2233_v59 = vmax.f32 %v2207_v15, 0.0 }
 0x306   :  { %2777 = vmatmul.f32.gmra.mxu1 %v2411_v27  ;;  %v2412_v55 = vsub.f32 %v2410_v19, %v2411_v27 }
 0x307   :  { %v2286_v23 = vsel %vm1470_vm4, %v2233_v59, 0 }
 0x308   :  { %v4329_v38 = vand.u32 4294901760, %v2286_v23  ;;  %v2121_v14 = vpop.f32.mrf.mxu0  ;;  %v2413_v16 = vand.u32 4294901760, %v2412_v55  ;;  %v2214_v7 = vpop.f32.mrf.mxu1 }
 0x309   :  { %v2122_v9 = vadd.f32 %v2121_v14, %v2013_v37  ;;  %v4357_v37 = vld [vmem:[%s4540_s8] ss:$0 sm:$0xff] }
 0x30a   :  { %2414 = vmatmul.f32.gmra.mxu2 %v2413_v16  ;;  %2555 = vmatmul.f32.gmra.mxu3 %v4329_v38  ;;  %v2418_v20 = vsub.f32 %v2286_v23, %v4329_v38 }
 0x30b   :  { %v2211_v5 = vadd.f32 %v2210_v29, %v2122_v9 }
 0x30c   :  { %2665 = vmatmul.f32.gmra.mxu0 %v2418_v20  ;;  %v2419_v22 = vand.u32 4294901760, %v2418_v20 }
 0x30d   :  { %v2234_v62 = vmax.f32 %v2211_v5, 0.0 }
 0x30e   :  { %2783 = vmatmul.f32.gmra.mxu1 %v2419_v22  ;;  %v2420_v18 = vsub.f32 %v2418_v20, %v2419_v22 }
 0x30f   :  { %v2289_v33 = vsel %vm1470_vm4, %v2234_v62, 0 }
 0x310   :  { %v4337_v53 = vand.u32 4294901760, %v2289_v33  ;;  %v2125_v6 = vpop.f32.mrf.mxu0  ;;  %v2421_v26 = vand.u32 4294901760, %v2420_v18  ;;  %v2218_v0 = vpop.f32.mrf.mxu1 }
 0x311   :  { %v2126_v35 = vadd.f32 %v2125_v6, %v2019_v34 }
 0x312   :  { %2422 = vmatmul.f32.gmra.mxu2 %v2421_v26  ;;  %2559 = vmatmul.f32.gmra.mxu3 %v4337_v53  ;;  %v2426_v50 = vsub.f32 %v2289_v33, %v4337_v53 }
 0x313   :  { %v2215_v61 = vadd.f32 %v2214_v7, %v2126_v35 }
 0x314   :  { %2670 = vmatmul.f32.gmra.mxu0 %v2426_v50  ;;  %v2427_v41 = vand.u32 4294901760, %v2426_v50 }
 0x315   :  { %v2235_v17 = vmax.f32 %v2215_v61, 0.0 }
 0x316   :  { %2789 = vmatmul.f32.gmra.mxu1 %v2427_v41  ;;  %v2428_v58 = vsub.f32 %v2426_v50, %v2427_v41 }
 0x317   :  { %v2292_v49 = vsel %vm1470_vm4, %v2235_v17, 0 }
 0x318   :  { %v4342_v31 = vand.u32 4294901760, %v2292_v49  ;;  %v2129_v56 = vpop.f32.mrf.mxu0  ;;  %v2429_v28 = vand.u32 4294901760, %v2428_v58 }
 0x319   :  { %v2130_v48 = vadd.f32 %v2129_v56, %v2025_v32 }
 0x31a   :  { %2430 = vmatmul.f32.gmra.mxu2 %v2429_v28  ;;  %2563 = vmatmul.f32.gmra.mxu3 %v4342_v31  ;;  %v2434_v39 = vsub.f32 %v2292_v49, %v4342_v31 }
 0x31b   :  { %v2219_v60 = vadd.f32 %v2218_v0, %v2130_v48 }
 0x31c   :  { %2675 = vmatmul.f32.gmra.mxu0 %v2434_v39  ;;  %v2435_v63 = vand.u32 4294901760, %v2434_v39 }
 0x31d   :  { %v2236_v4 = vmax.f32 %v2219_v60, 0.0 }
 0x31e   :  { %2795 = vmatmul.f32.gmra.mxu1 %v2435_v63  ;;  %v2436_v12 = vsub.f32 %v2434_v39, %v2435_v63 }
 0x31f   :  { %v2295_v19 = vsel %vm1470_vm4, %v2236_v4, 0 }
 0x320   :  { %v4347_v13 = vand.u32 4294901760, %v2295_v19  ;;  %v2437_v43 = vand.u32 4294901760, %v2436_v12 }
 0x322   :  { %2438 = vmatmul.f32.gmra.mxu2 %v2437_v43  ;;  %2567 = vmatmul.f32.gmra.mxu3 %v4347_v13  ;;  %v2442_v15 = vsub.f32 %v2295_v19, %v4347_v13 }
 0x324   :  { %2680 = vmatmul.f32.gmra.mxu0 %v2442_v15  ;;  %v2443_v27 = vand.u32 4294901760, %v2442_v15 }
 0x326   :  { %2801 = vmatmul.f32.gmra.mxu1 %v2443_v27  ;;  %v2444_v59 = vsub.f32 %v2442_v15, %v2443_v27 }
 0x328   :  { %v2445_v29 = vand.u32 4294901760, %v2444_v59 }
 0x329   :  { %v2606_v63 = vpop.f32.mrf.mxu0 }
 0x32a   :  { %2446 = vmatmul.f32.gmra.mxu2 %v2445_v29  ;;  %2935 = vmatmul.f32.vlgmr.msrb.gmra.mxu3 %v4233_v2 }
 0x32d   :  { %v2508_v55 = vpop.f32.mrf.mxu3 }
 0x332   :  { %2846 = vmatmul.f32.vlgmr.msrb.gmra.mxu2 %v4233_v2  ;;  %2939 = vmatmul.f32.gmra.mxu3 %v4241_v51 }
 0x335   :  { %v2327_v44 = vpop.f32.mrf.mxu2  ;;  %v2512_v23 = vpop.f32.mrf.mxu3 }
 0x336   :  { %v2328_v11 = vadd.f32 %v4357_v37, %v2327_v44 }
 0x338   :  { %v4360_v14 = vadd.f32 %v2508_v55, %v2328_v11 }
 0x33a   :  { %2850 = vmatmul.f32.gmra.mxu2 %v4241_v51  ;;  %2943 = vmatmul.f32.gmra.mxu3 %v4249_v10 }
 0x33d   :  { %v2335_v16 = vpop.f32.mrf.mxu2  ;;  %v2516_v9 = vpop.f32.mrf.mxu3 }
 0x33e   :  { %v2336_v2 = vadd.f32 %v4357_v37, %v2335_v16 }
 0x340   :  { %v4365_v20 = vadd.f32 %v2512_v23, %v2336_v2 }
 0x342   :  { %2854 = vmatmul.f32.gmra.mxu2 %v4249_v10  ;;  %2947 = vmatmul.f32.gmra.mxu3 %v4257_v24 }
 0x345   :  { %v2343_v30 = vpop.f32.mrf.mxu2  ;;  %v2520_v45 = vpop.f32.mrf.mxu3 }
 0x346   :  { %v2344_v5 = vadd.f32 %v4357_v37, %v2343_v30 }
 0x348   :  { %v4370_v25 = vadd.f32 %v2516_v9, %v2344_v5 }
 0x34a   :  { %2858 = vmatmul.f32.gmra.mxu2 %v4257_v24  ;;  %2951 = vmatmul.f32.gmra.mxu3 %v4265_v3 }
 0x34d   :  { %v2351_v51 = vpop.f32.mrf.mxu2  ;;  %v2524_v22 = vpop.f32.mrf.mxu3 }
 0x34e   :  { %v2352_v62 = vadd.f32 %v4357_v37, %v2351_v51 }
 0x350   :  { %v4375_v18 = vadd.f32 %v2520_v45, %v2352_v62 }
 0x352   :  { %2862 = vmatmul.f32.gmra.mxu2 %v4265_v3  ;;  %2955 = vmatmul.f32.gmra.mxu3 %v4273_v46 }
 0x355   :  { %v2359_v10 = vpop.f32.mrf.mxu2  ;;  %v2528_v34 = vpop.f32.mrf.mxu3 }
 0x356   :  { %v2360_v52 = vadd.f32 %v4357_v37, %v2359_v10 }
 0x358   :  { %v4380_v33 = vadd.f32 %v2524_v22, %v2360_v52 }
 0x35a   :  { %2866 = vmatmul.f32.gmra.mxu2 %v4273_v46  ;;  %2959 = vmatmul.f32.gmra.mxu3 %v4281_v47 }
 0x35d   :  { %v2367_v24 = vpop.f32.mrf.mxu2  ;;  %v2532_v7 = vpop.f32.mrf.mxu3 }
 0x35e   :  { %v2368_v6 = vadd.f32 %v4357_v37, %v2367_v24 }
 0x360   :  { %v4385_v26 = vadd.f32 %v2528_v34, %v2368_v6 }
 0x362   :  { %2870 = vmatmul.f32.gmra.mxu2 %v4281_v47  ;;  %2963 = vmatmul.f32.gmra.mxu3 %v4289_v42 }
 0x365   :  { %v2375_v3 = vpop.f32.mrf.mxu2  ;;  %v2536_v35 = vpop.f32.mrf.mxu3 }
 0x366   :  { %v2376_v1 = vadd.f32 %v4357_v37, %v2375_v3 }
 0x368   :  { %v4390_v50 = vadd.f32 %v2532_v7, %v2376_v1 }
 0x36a   :  { %2874 = vmatmul.f32.gmra.mxu2 %v4289_v42  ;;  %2967 = vmatmul.f32.gmra.mxu3 %v4297_v40 }
 0x36d   :  { %v2383_v46 = vpop.f32.mrf.mxu2  ;;  %v2540_v21 = vpop.f32.mrf.mxu3 }
 0x36e   :  { %v2384_v61 = vadd.f32 %v4357_v37, %v2383_v46 }
 0x370   :  { %v4395_v41 = vadd.f32 %v2536_v35, %v2384_v61 }
 0x372   :  { %2878 = vmatmul.f32.gmra.mxu2 %v4297_v40  ;;  %2971 = vmatmul.f32.gmra.mxu3 %v4305_v57 }
 0x375   :  { %v2391_v47 = vpop.f32.mrf.mxu2  ;;  %v2544_v17 = vpop.f32.mrf.mxu3 }
 0x376   :  { %v2392_v8 = vadd.f32 %v4357_v37, %v2391_v47 }
 0x378   :  { %v4400_v58 = vadd.f32 %v2540_v21, %v2392_v8 }
 0x37a   :  { %2882 = vmatmul.f32.gmra.mxu2 %v4305_v57  ;;  %2975 = vmatmul.f32.gmra.mxu3 %v4313_v54 }
 0x37d   :  { %v2399_v42 = vpop.f32.mrf.mxu2  ;;  %v2548_v32 = vpop.f32.mrf.mxu3 }
 0x37e   :  { %v2400_v49 = vadd.f32 %v4357_v37, %v2399_v42 }
 0x380   :  { %v4405_v56 = vadd.f32 %v2544_v17, %v2400_v49 }
 0x382   :  { %2886 = vmatmul.f32.gmra.mxu2 %v4313_v54  ;;  %2979 = vmatmul.f32.gmra.mxu3 %v4321_v36  ;;  %v2712_v54 = vpop.f32.mrf.mxu1 }
 0x385   :  { %v2407_v40 = vpop.f32.mrf.mxu2  ;;  %v2552_v28 = vpop.f32.mrf.mxu3 }
 0x386   :  { %v2408_v48 = vadd.f32 %v4357_v37, %v2407_v40 }
 0x388   :  { %v4410_v0 = vadd.f32 %v2548_v32, %v2408_v48 }
 0x38a   :  { %2890 = vmatmul.f32.gmra.mxu2 %v4321_v36  ;;  %2983 = vmatmul.f32.gmra.mxu3 %v4329_v38  ;;  %v2611_v36 = vpop.f32.mrf.mxu0  ;;  %v2718_v29 = vpop.f32.mrf.mxu1 }
 0x38b   :  { %v2612_v6 = vadd.f32 %v2611_v36, %v4365_v20 }
 0x38d   :  { %v2415_v57 = vpop.f32.mrf.mxu2  ;;  %v2556_v39 = vpop.f32.mrf.mxu3  ;;  %v2719_v35 = vadd.f32 %v2718_v29, %v2612_v6 }
 0x38e   :  { %v2416_v60 = vadd.f32 %v4357_v37, %v2415_v57 }
 0x390   :  { %v4415_v4 = vadd.f32 %v2552_v28, %v2416_v60 }
 0x392   :  { %2894 = vmatmul.f32.gmra.mxu2 %v4329_v38  ;;  %2987 = vmatmul.f32.gmra.mxu3 %v4337_v53  ;;  %v2616_v44 = vpop.f32.mrf.mxu0  ;;  %v2724_v9 = vpop.f32.mrf.mxu1 }
 0x395   :  { %v2423_v12 = vpop.f32.mrf.mxu2  ;;  %v2560_v19 = vpop.f32.mrf.mxu3 }
 0x396   :  { %v2424_v43 = vadd.f32 %v4357_v37, %v2423_v12 }
 0x398   :  { %v4420_v15 = vadd.f32 %v2556_v39, %v2424_v43 }
 0x39a   :  { %2898 = vmatmul.f32.gmra.mxu2 %v4337_v53  ;;  %2991 = vmatmul.f32.gmra.mxu3 %v4342_v31  ;;  %v2621_v45 = vpop.f32.mrf.mxu0  ;;  %v2730_v22 = vpop.f32.mrf.mxu1 }
 0x39b   :  { %v2622_v40 = vadd.f32 %v2621_v45, %v4375_v18 }
 0x39d   :  { %v2431_v27 = vpop.f32.mrf.mxu2  ;;  %v2564_v59 = vpop.f32.mrf.mxu3  ;;  %v2731_v57 = vadd.f32 %v2730_v22, %v2622_v40 }
 0x39e   :  { %v2432_v55 = vadd.f32 %v4357_v37, %v2431_v27 }
 0x3a0   :  { %v4425_v38 = vadd.f32 %v2560_v19, %v2432_v55 }
 0x3a2   :  { %2902 = vmatmul.f32.gmra.mxu2 %v4342_v31  ;;  %2995 = vmatmul.f32.gmra.mxu3 %v4347_v13  ;;  %v2607_v31 = vadd.f32 %v2606_v63, %v4360_v14  ;;  %v2626_v24 = vpop.f32.mrf.mxu0  ;;  %v2736_v3 = vpop.f32.mrf.mxu1  ;;  %v2617_v14 = vadd.f32 %v2616_v44, %v4370_v25 }
 0x3a3   :  { %v2627_v12 = vadd.f32 %v2626_v24, %v4380_v33 }
 0x3a4   :  { %v2713_v62 = vadd.f32 %v2712_v54, %v2607_v31  ;;  %v2725_v17 = vadd.f32 %v2724_v9, %v2617_v14 }
 0x3a5   :  { %v2439_v23 = vpop.f32.mrf.mxu2  ;;  %v2568_v11 = vpop.f32.mrf.mxu3  ;;  %v2737_v43 = vadd.f32 %v2736_v3, %v2627_v12 }
 0x3a6   :  { %v2440_v16 = vadd.f32 %v4357_v37, %v2439_v23 }
 0x3a8   :  { %v4430_v53 = vadd.f32 %v2564_v59, %v2440_v16 }
 0x3aa   :  { %2906 = vmatmul.f32.gmra.mxu2 %v4347_v13  ;;  %v2631_v61 = vpop.f32.mrf.mxu0  ;;  %v2742_v32 = vpop.f32.mrf.mxu1 }
 0x3ab   :  { %v2632_v55 = vadd.f32 %v2631_v61, %v4385_v26 }
 0x3ad   :  { %v2447_v2 = vpop.f32.mrf.mxu2  ;;  %v2936_v30 = vpop.f32.mrf.mxu3 }
 0x3ae   :  { %v2448_v5 = vadd.f32 %v4357_v37, %v2447_v2 }
 0x3b0   :  { %v4434_v51 = vadd.f32 %v2568_v11, %v2448_v5  ;;  %v2743_v11 = vadd.f32 %v2742_v32, %v2632_v55 }
 0x3b2   :  { %v2636_v48 = vpop.f32.mrf.mxu0  ;;  %v2748_v63 = vpop.f32.mrf.mxu1 }
 0x3b3   :  { %v2637_v45 = vadd.f32 %v2636_v48, %v4390_v50 }
 0x3b5   :  { %v2847_v10 = vpop.f32.mrf.mxu2  ;;  %v2940_v34 = vpop.f32.mrf.mxu3  ;;  %v2749_v22 = vadd.f32 %v2748_v63, %v2637_v45 }
 0x3b6   :  { %v2848_v52 = vadd.f32 %v2847_v10, %v2713_v62 }
 0x3b8   :  { %v2937_v7 = vadd.f32 %v2936_v30, %v2848_v52 }
 0x3ba   :  { %v3000_v13 = vsel %vm2999_vm5, %v2937_v7, inf  ;;  %v2641_v59 = vpop.f32.mrf.mxu0  ;;  %v2754_v44 = vpop.f32.mrf.mxu1 }
 0x3bb   :  { %3001 = vmin.xlane.f32.xlu0 %v3000_v13  ;;  %v2642_v52 = vadd.f32 %v2641_v59, %v4395_v41 }
 0x3bd   :  { %v2851_v37 = vpop.f32.mrf.mxu2  ;;  %v2944_v1 = vpop.f32.mrf.mxu3  ;;  %v2755_v6 = vadd.f32 %v2754_v44, %v2642_v52 }
 0x3be   :  { %v2852_v46 = vadd.f32 %v2851_v37, %v2719_v35 }
 0x3c0   :  { %v2941_v21 = vadd.f32 %v2940_v34, %v2852_v46 }
 0x3c2   :  { %v3003_v47 = vsel %vm2999_vm5, %v2941_v21, inf  ;;  %v2646_v33 = vpop.f32.mrf.mxu0  ;;  %v2760_v31 = vpop.f32.mrf.mxu1 }
 0x3c3   :  { %3004 = vmin.xlane.f32.xlu0 %v3003_v47 }
 0x3c5   :  { %v2855_v8 = vpop.f32.mrf.mxu2  ;;  %v2948_v42 = vpop.f32.mrf.mxu3 }
 0x3c6   :  { %v2856_v20 = vadd.f32 %v2855_v8, %v2725_v17 }
 0x3c8   :  { %v2945_v49 = vadd.f32 %v2944_v1, %v2856_v20  ;;  %v2647_v1 = vadd.f32 %v2646_v33, %v4400_v58 }
 0x3ca   :  { %v3006_v28 = vsel %vm2999_vm5, %v2945_v49, inf  ;;  %v2651_v24 = vpop.f32.mrf.mxu0  ;;  %v2766_v50 = vpop.f32.mrf.mxu1  ;;  %v2761_v14 = vadd.f32 %v2760_v31, %v2647_v1 }
 0x3cb   :  { %3007 = vmin.xlane.f32.xlu1 %v3006_v28  ;;  %v2652_v8 = vadd.f32 %v2651_v24, %v4405_v56 }
 0x3cd   :  { %v2859_v39 = vpop.f32.mrf.mxu2  ;;  %v2952_v60 = vpop.f32.mrf.mxu3  ;;  %v2767_v20 = vadd.f32 %v2766_v50, %v2652_v8 }
 0x3ce   :  { %v2860_v25 = vadd.f32 %v2859_v39, %v2731_v57 }
 0x3d0   :  { %v2949_v54 = vadd.f32 %v2948_v42, %v2860_v25 }
 0x3d2   :  { %v3009_v19 = vsel %vm2999_vm5, %v2949_v54, inf  ;;  %v2656_v21 = vpop.f32.mrf.mxu0  ;;  %v2772_v42 = vpop.f32.mrf.mxu1 }
 0x3d3   :  { %3010 = vmin.xlane.f32.xlu1 %v3009_v19  ;;  %v2657_v57 = vadd.f32 %v2656_v21, %v4410_v0 }
 0x3d5   :  { %v2863_v36 = vpop.f32.mrf.mxu2  ;;  %v2956_v27 = vpop.f32.mrf.mxu3  ;;  %v2773_v25 = vadd.f32 %v2772_v42, %v2657_v57 }
 0x3d6   :  { %v2864_v18 = vadd.f32 %v2863_v36, %v2737_v43 }
 0x3d8   :  { %v2953_v29 = vadd.f32 %v2952_v60, %v2864_v18 }
 0x3da   :  { %v3012_v23 = vsel %vm2999_vm5, %v2953_v29, inf  ;;  %v2661_v58 = vpop.f32.mrf.mxu0  ;;  %v2778_v60 = vpop.f32.mrf.mxu1 }
 0x3db   :  { %3013 = vmin.xlane.f32.xlu2 %v3012_v23  ;;  %v2662_v19 = vadd.f32 %v2661_v58, %v4415_v4 }
 0x3dd   :  { %v2867_v16 = vpop.f32.mrf.mxu2  ;;  %v2960_v9 = vpop.f32.mrf.mxu3 }
 0x3de   :  { %v2868_v2 = vadd.f32 %v2867_v16, %v2743_v11 }
 0x3e0   :  { %v2957_v30 = vadd.f32 %v2956_v27, %v2868_v2  ;;  %v2779_v27 = vadd.f32 %v2778_v60, %v2662_v19 }
 0x3e2   :  { %v3015_v5 = vsel %vm2999_vm5, %v2957_v30, inf  ;;  %v2666_v43 = vpop.f32.mrf.mxu0  ;;  %v2784_v59 = vpop.f32.mrf.mxu1 }
 0x3e3   :  { %3016 = vmin.xlane.f32.xlu2 %v3015_v5  ;;  %v2667_v55 = vadd.f32 %v2666_v43, %v4420_v15 }
 0x3e5   :  { %v2871_v62 = vpop.f32.mrf.mxu2  ;;  %v2964_v10 = vpop.f32.mrf.mxu3  ;;  %v2785_v16 = vadd.f32 %v2784_v59, %v2667_v55 }
 0x3e6   :  { %v2872_v26 = vadd.f32 %v2871_v62, %v2749_v22 }
 0x3e8   :  { %v2961_v34 = vadd.f32 %v2960_v9, %v2872_v26 }
 0x3ea   :  { %v3018_v7 = vsel %vm2999_vm5, %v2961_v34, inf  ;;  %v2671_v11 = vpop.f32.mrf.mxu0  ;;  %v2790_v4 = vpop.f32.mrf.mxu1 }
 0x3eb   :  { %3019 = vmin.xlane.f32.xlu0 %v3018_v7  ;;  %v2672_v30 = vadd.f32 %v2671_v11, %v4425_v38 }
 0x3ed   :  { %v2875_v13 = vpop.f32.mrf.mxu2  ;;  %v2968_v3 = vpop.f32.mrf.mxu3  ;;  %v2791_v31 = vadd.f32 %v2790_v4, %v2672_v30 }
 0x3ee   :  { %v2876_v35 = vadd.f32 %v2875_v13, %v2755_v6 }
 0x3f0   :  { %v2965_v37 = vadd.f32 %v2964_v10, %v2876_v35 }
 0x3f2   :  { %v3021_v46 = vsel %vm2999_vm5, %v2965_v37, inf  ;;  %v2676_v22 = vpop.f32.mrf.mxu0  ;;  %v2796_v34 = vpop.f32.mrf.mxu1 }
 0x3f3   :  { %3022 = vmin.xlane.f32.xlu1 %v3021_v46  ;;  %v2677_v26 = vadd.f32 %v2676_v22, %v4430_v53 }
 0x3f5   :  { %v2879_v61 = vpop.f32.mrf.mxu2  ;;  %v2972_v47 = vpop.f32.mrf.mxu3  ;;  %v2797_v24 = vadd.f32 %v2796_v34, %v2677_v26 }
 0x3f6   :  { %v2880_v41 = vadd.f32 %v2879_v61, %v2761_v14 }
 0x3f8   :  { %v2969_v17 = vadd.f32 %v2968_v3, %v2880_v41 }
 0x3fa   :  { %v3024_v32 = vsel %vm2999_vm5, %v2969_v17, inf  ;;  %v2681_v38 = vpop.f32.mrf.mxu0  ;;  %v2802_v37 = vpop.f32.mrf.mxu1 }
 0x3fb   :  { %3025 = vmin.xlane.f32.xlu2 %v3024_v32  ;;  %v2682_v35 = vadd.f32 %v2681_v38, %v4434_v51 }
 0x3fd   :  { %v2883_v49 = vpop.f32.mrf.mxu2  ;;  %v2976_v40 = vpop.f32.mrf.mxu3  ;;  %v2803_v1 = vadd.f32 %v2802_v37, %v2682_v35 }
 0x3fe   :  { %v2884_v28 = vadd.f32 %v2883_v49, %v2767_v20 }
 0x400   :  { %v2973_v48 = vadd.f32 %v2972_v47, %v2884_v28 }
 0x402   :  { %v3027_v39 = vsel %vm2999_vm5, %v2973_v48, inf }
 0x403   :  { %3028 = vmin.xlane.f32.xlu0 %v3027_v39 }
 0x405   :  { %v2887_v63 = vpop.f32.mrf.mxu2  ;;  %v2980_v56 = vpop.f32.mrf.mxu3 }
 0x406   :  { %v2888_v54 = vadd.f32 %v2887_v63, %v2773_v25 }
 0x408   :  { %v2977_v12 = vadd.f32 %v2976_v40, %v2888_v54 }
 0x40a   :  { %v3030_v36 = vsel %vm2999_vm5, %v2977_v12, inf }
 0x40b   :  { %3031 = vmin.xlane.f32.xlu1 %v3030_v36 }
 0x40d   :  { %v2891_v18 = vpop.f32.mrf.mxu2  ;;  %v2984_v44 = vpop.f32.mrf.mxu3 }
 0x40e   :  { %v2892_v29 = vadd.f32 %v2891_v18, %v2779_v27 }
 0x410   :  { %v2981_v0 = vadd.f32 %v2980_v56, %v2892_v29 }
 0x412   :  { %v3033_v23 = vsel %vm2999_vm5, %v2981_v0, inf }
 0x413   :  { %3034 = vmin.xlane.f32.xlu2 %v3033_v23 }
 0x415   :  { %v2895_v9 = vpop.f32.mrf.mxu2  ;;  %v2988_v5 = vpop.f32.mrf.mxu3 }
 0x416   :  { %v2896_v2 = vadd.f32 %v2895_v9, %v2785_v16 }
 0x418   :  { %v2985_v33 = vadd.f32 %v2984_v44, %v2896_v2 }
 0x41a   :  { %v3036_v45 = vsel %vm2999_vm5, %v2985_v33, inf }
 0x41b   :  { %3037 = vmin.xlane.f32.xlu0 %v3036_v45 }
 0x41d   :  { %v2899_v62 = vpop.f32.mrf.mxu2  ;;  %v2992_v7 = vpop.f32.mrf.mxu3 }
 0x41e   :  { %v2900_v15 = vadd.f32 %v2899_v62, %v2791_v31 }
 0x420   :  { %v2989_v10 = vadd.f32 %v2988_v5, %v2900_v15 }
 0x422   :  { %v3039_v52 = vsel %vm2999_vm5, %v2989_v10, inf }
 0x423   :  { %3040 = vmin.xlane.f32.xlu1 %v3039_v52 }
 0x425   :  { %v2903_v6 = vpop.f32.mrf.mxu2  ;;  %v2996_v14 = vpop.f32.mrf.mxu3 }
 0x426   :  { %v2904_v13 = vadd.f32 %v2903_v6, %v2797_v24 }
 0x428   :  { %v2993_v3 = vadd.f32 %v2992_v7, %v2904_v13 }
 0x42a   :  { %v3042_v50 = vsel %vm2999_vm5, %v2993_v3, inf }
 0x42b   :  { %3043 = vmin.xlane.f32.xlu2 %v3042_v50 }
 0x42d   :  { %v2907_v46 = vpop.f32.mrf.mxu2 }
 0x42e   :  { %v2908_v53 = vadd.f32 %v2907_v46, %v2803_v1  ;;  %v3002_v21 = vpop.xlane.xlu0 %3001 }
 0x42f   :  { %3049 = vst.msk [vmem:[%s4541_s9] sm:$0xff] %vm3048_vm6, %v3002_v21 }
 0x430   :  { %v2997_v61 = vadd.f32 %v2996_v14, %v2908_v53 }
 0x432   :  { %v3045_v47 = vsel %vm2999_vm5, %v2997_v61, inf }
 0x433   :  { %3046 = vmin.xlane.f32.xlu0 %v3045_v47 }
 0x436   :  { %v3005_v51 = vpop.xlane.xlu0 %3004 }
 0x437   :  { %3050 = vst.msk [vmem:[%s4541_s9 + $0x8] sm:$0xff] %vm3048_vm6, %v3005_v51 }
 0x43e   :  { %v3008_v41 = vpop.xlane.xlu1 %3007 }
 0x43f   :  { %3051 = vst.msk [vmem:[%s4541_s9 + $0x10] sm:$0xff] %vm3048_vm6, %v3008_v41 }
 0x446   :  { %v3011_v17 = vpop.xlane.xlu1 %3010 }
 0x447   :  { %3052 = vst.msk [vmem:[%s4541_s9 + $0x18] sm:$0xff] %vm3048_vm6, %v3011_v17 }
 0x44e   :  { %v3014_v8 = vpop.xlane.xlu2 %3013 }
 0x44f   :  { %3053 = vst.msk [vmem:[%s4541_s9 + $0x20] sm:$0xff] %vm3048_vm6, %v3014_v8 }
 0x456   :  { %v3017_v42 = vpop.xlane.xlu2 %3016 }
 0x457   :  { %3054 = vst.msk [vmem:[%s4541_s9 + $0x28] sm:$0xff] %vm3048_vm6, %v3017_v42 }
 0x45e   :  { %v3020_v32 = vpop.xlane.xlu0 %3019 }
 0x45f   :  { %3055 = vst.msk [vmem:[%s4541_s9 + $0x30] sm:$0xff] %vm3048_vm6, %v3020_v32 }
 0x466   :  { %v3023_v20 = vpop.xlane.xlu1 %3022 }
 0x467   :  { %3056 = vst.msk [vmem:[%s4541_s9 + $0x38] sm:$0xff] %vm3048_vm6, %v3023_v20 }
 0x46e   :  { %v3026_v49 = vpop.xlane.xlu2 %3025 }
 0x46f   :  { %3057 = vst.msk [vmem:[%s4541_s9 + $0x40] sm:$0xff] %vm3048_vm6, %v3026_v49 }
 0x476   :  { %v3029_v40 = vpop.xlane.xlu0 %3028 }
 0x477   :  { %3058 = vst.msk [vmem:[%s4541_s9 + $0x48] sm:$0xff] %vm3048_vm6, %v3029_v40 }
 0x47e   :  { %v3032_v28 = vpop.xlane.xlu1 %3031 }
 0x47f   :  { %3059 = vst.msk [vmem:[%s4541_s9 + $0x50] sm:$0xff] %vm3048_vm6, %v3032_v28 }
 0x486   :  { %v3035_v58 = vpop.xlane.xlu2 %3034 }
 0x487   :  { %3060 = vst.msk [vmem:[%s4541_s9 + $0x58] sm:$0xff] %vm3048_vm6, %v3035_v58 }
 0x48e   :  { %v3038_v48 = vpop.xlane.xlu0 %3037 }
 0x48f   :  { %3061 = vst.msk [vmem:[%s4541_s9 + $0x60] sm:$0xff] %vm3048_vm6, %v3038_v48 }
 0x496   :  { %v3041_v57 = vpop.xlane.xlu1 %3040 }
 0x497   :  { %3062 = vst.msk [vmem:[%s4541_s9 + $0x68] sm:$0xff] %vm3048_vm6, %v3041_v57 }
 0x49e   :  { %v3044_v39 = vpop.xlane.xlu2 %3043 }
 0x49f   :  { %3063 = vst.msk [vmem:[%s4541_s9 + $0x70] sm:$0xff] %vm3048_vm6, %v3044_v39 }
 0x4a6   :  { %v3047_v60 = vpop.xlane.xlu0 %3046 }
 0x4a7   :  { %3064 = vst.msk [vmem:[%s4541_s9 + $0x78] sm:$0xff] %vm3048_vm6, %v3047_v60 }

</bundles_post_ra>
